<compile_context>
chip_gen: v5e
topology: v5e:2x2
jax: 0.10.0
libtpu: 0.0.40
codegen_flags: <defaults>
</compile_context>

<pallas_src>
import functools

import jax
import jax.numpy as jnp
from jax.experimental import pallas as pl
from jax.experimental.pallas import tpu as pltpu

LANE = 128


def _round_up(x, m):
    return ((x + m - 1) // m) * m


def _vmem_budget_bytes():
    """Per-generation VMEM request: v7x (64 MiB phys) -> ~56 MiB, v5e/v6e (128) -> 100 MiB."""
    cap = None
    try:
        info = pltpu.get_tpu_info()
        for name in ("vmem_capacity_bytes", "vmem_bytes", "vmem_size_bytes"):
            v = getattr(info, name, None)
            if v:
                cap = int(v)
                break
    except Exception:
        cap = None
    if not cap:
        cap = 64 * 1024 * 1024  # conservative default == v7x per-core VMEM
    return int(min(cap - 8 * 1024 * 1024, 100 * 1024 * 1024))


def _choose_tiles(n, tm_max=512, tk_max=2048):
    """Pick (tm, tk, n_pad): both multiples of 128, tm | tk, n_pad % tk == 0.

    tm is capped so the row ("parallel") grid axis keeps >= 2 tiles when the graph
    is big enough — v7x has 2 TensorCores and only the row axis is parallel.
    """
    n128 = _round_up(max(int(n), 1), LANE)
    half = _round_up((n128 + 1) // 2, LANE)
    tm = min(tm_max, half) if n128 >= 2 * LANE else n128
    tm = max(LANE, _round_up(tm, LANE))
    # K tile: as large as possible (big contiguous A-row bursts), a multiple of tm,
    # never larger than the padded problem size.
    tk = max(tm, (min(tk_max, _round_up(n128, tm)) // tm) * tm)
    n_pad = _round_up(n128, tk)
    return tm, tk, n_pad


def _x_fits_vmem(n_pad, tm, tk, f_in, f_out, vmem_budget):
    """True if the full (n_pad, f_in) bf16 feature matrix can sit in VMEM alongside
    the double-buffered A tiles, outputs, weights and the f32 accumulator."""
    x_bytes = 2 * n_pad * f_in * 2            # resident features (default 2 buffers)
    a_bytes = 2 * tm * tk * 2                 # double-buffered bf16 A tiles
    out_bytes = 2 * tm * f_out * 4            # double-buffered output (worst case f32)
    acc_bytes = tm * f_in * 4                 # f32 accumulator scratch
    w_bytes = 2 * (f_in * f_out * 2 + f_out * 4)
    headroom = 4 * 1024 * 1024
    return x_bytes + a_bytes + out_bytes + acc_bytes + w_bytes + headroom <= vmem_budget


def gcn_layer_kernel(a_ref, x_ref, w_ref, b_ref, o_ref, acc_ref, *,
                     tk, x_resident, log_softmax_cols):
    """One GCN layer row-tile: acc_k += A[i, k] @ X[k] over the K grid axis.

    At the last K step the cheap per-row-tile transform runs once (hoisted out of
    the K loop): h = relu(acc @ W + b), optionally followed by a masked log_softmax
    over the first `log_softmax_cols` lanes (padding lanes masked out).
    """
    k = pl.program_id(1)

    @pl.when(k == 0)
    def _():
        acc_ref[...] = jnp.zeros_like(acc_ref)

    if x_resident:
        # Feature matrix is VMEM-resident (grid-invariant block, DMA'd once);
        # slice the current K chunk locally.
        start = pl.multiple_of(k * tk, tk)
        x_blk = x_ref[pl.ds(start, tk), :]
    else:
        x_blk = x_ref[...]

    # Aggregation: bf16 inputs, f32 MXU accumulation.
    acc_ref[...] += jnp.dot(a_ref[...], x_blk, preferred_element_type=jnp.float32)

    @pl.when(k == pl.num_programs(1) - 1)
    def _():
        # bf16 x bf16 MXU matmul with f32 accumulation (no multi-pass f32 matmul).
        h = jnp.dot(acc_ref[...].astype(jnp.bfloat16), w_ref[...],
                    preferred_element_type=jnp.float32)
        h = jnp.maximum(h + b_ref[...], 0.0)

        if log_softmax_cols is not None:
            # Masked log_softmax over the real (unpadded) feature columns.
            col = jax.lax.broadcasted_iota(jnp.int32, h.shape, 1)
            h = jnp.where(col < log_softmax_cols, h, jnp.float32(-1e30))
            m = jnp.max(h, axis=1, keepdims=True)
            s = h - m
            lse = jnp.log(jnp.sum(jnp.exp(s), axis=1, keepdims=True))
            h = s - lse

        o_ref[...] = h.astype(o_ref.dtype)


def _gcn_layer(a_p, x_p, w_p, b_p, *, tm, tk, out_dtype, x_resident, vmem_limit,
               log_softmax_cols=None):
    n_pad = a_p.shape[0]
    f_in = x_p.shape[1]
    f_out = w_p.shape[1]
    grid = (n_pad // tm, n_pad // tk)

    if x_resident:
        # Grid-invariant index_map: the whole feature matrix is DMA'd into VMEM once
        # and never re-streamed per row tile.  (pl.Buffered(1) would drop the unused
        # second buffer; kept at the default for portability — budgeted for 2.)
        x_spec = pl.BlockSpec((n_pad, f_in), lambda i, k: (0, 0))
    else:
        x_spec = pl.BlockSpec((tk, f_in), lambda i, k: (k, 0))

    kernel = functools.partial(gcn_layer_kernel, tk=tk, x_resident=x_resident,
                               log_softmax_cols=log_softmax_cols)

    return pl.pallas_call(
        kernel,
        out_shape=jax.ShapeDtypeStruct((n_pad, f_out), out_dtype),
        grid_spec=pltpu.PrefetchScalarGridSpec(
            num_scalar_prefetch=0,
            grid=grid,
            in_specs=[
                pl.BlockSpec((tm, tk), lambda i, k: (i, k)),       # A_hat tile (bf16)
                x_spec,                                            # node features
                pl.BlockSpec((f_in, f_out), lambda i, k: (0, 0)),  # W (resident, bf16)
                pl.BlockSpec((1, f_out), lambda i, k: (0, 0)),     # bias (resident, f32)
            ],
            out_specs=pl.BlockSpec((tm, f_out), lambda i, k: (i, 0)),
            scratch_shapes=[pltpu.VMEM((tm, f_in), jnp.float32)],
        ),
        compiler_params=pltpu.CompilerParams(
            dimension_semantics=("parallel", "arbitrary"),
            vmem_limit_bytes=vmem_limit,
        ),
    )(a_p, x_p, w_p, b_p)


def build_normalized_adjacency(edge_index, num_nodes, *, n_pad=None, dtype=jnp.bfloat16):
    """Dense GCN-normalized adjacency, add_self_loops=False, scattered directly into a
    zero-padded (n_pad, n_pad) buffer of `dtype` (no intermediate f32 N x N copy).

    edge_index: int32 [2, E] with row 0 = source, row 1 = target.
    A_hat[t, s] = deg_inv_sqrt[t] * deg_inv_sqrt[s], deg = in-degree on targets.
    Padded rows/cols stay exactly zero, so padded nodes never influence real rows.
    """
    if n_pad is None:
        n_pad = num_nodes
    src, dst = edge_index[0], edge_index[1]
    deg = jnp.zeros((num_nodes,), jnp.float32).at[dst].add(1.0)
    dis = jnp.where(deg > 0, jax.lax.rsqrt(jnp.maximum(deg, 1e-12)), 0.0)
    vals = (dis[dst] * dis[src]).astype(dtype)
    return jnp.zeros((n_pad, n_pad), dtype).at[dst, src].add(vals)


def gcn_forward(x, edge_index, w1, b1, w2, b2, *, tm_max=512, tk_max=2048):
    """Full two-layer GCN forward (eval mode). Returns [N, out_channels] f32 log-probs."""
    n, in_c = x.shape
    hid = w1.shape[1]
    out_c = w2.shape[1]

    tm, tk, n_pad = _choose_tiles(n, tm_max, tk_max)
    in_p = _round_up(in_c, LANE)
    hid_p = _round_up(hid, LANE)
    out_p = _round_up(out_c, LANE)

    vmem_limit = _vmem_budget_bytes()
    f_max = max(in_p, hid_p, out_p)
    x_resident = _x_fits_vmem(n_pad, tm, tk, f_max, f_max, vmem_limit)

    # --- padded operands (zero padding is exact for the aggregation) ---
    a_p = build_normalized_adjacency(edge_index, n, n_pad=n_pad, dtype=jnp.bfloat16)
    x_p = jnp.zeros((n_pad, in_p), jnp.bfloat16).at[:n, :in_c].set(x.astype(jnp.bfloat16))
    w1_p = jnp.zeros((in_p, hid_p), jnp.bfloat16).at[:in_c, :hid].set(w1.astype(jnp.bfloat16))
    b1_p = jnp.zeros((1, hid_p), jnp.float32).at[0, :hid].set(b1.reshape(-1))
    w2_p = jnp.zeros((hid_p, out_p), jnp.bfloat16).at[:hid, :out_c].set(w2.astype(jnp.bfloat16))
    b2_p = jnp.zeros((1, out_p), jnp.float32).at[0, :out_c].set(b2.reshape(-1))

    # Layer 1: relu((A @ X) @ W1 + b1).  Padded rows of h1 may hold relu(b1), but the
    # padded *columns* of A_hat are exactly zero, so they never reach real rows.
    h1 = _gcn_layer(a_p, x_p, w1_p, b1_p, tm=tm, tk=tk, out_dtype=jnp.bfloat16,
                    x_resident=x_resident, vmem_limit=vmem_limit)

    # TODO(synk): F.dropout(training=True) is stochastic; module mirrored in eval
    # mode here, so dropout is the identity.

    # Layer 2: relu((A @ h1) @ W2 + b2), then masked log_softmax over real columns.
    out_padded = _gcn_layer(a_p, h1, w2_p, b2_p, tm=tm, tk=tk, out_dtype=jnp.float32,
                            x_resident=x_resident, vmem_limit=vmem_limit,
                            log_softmax_cols=out_c)

    return out_padded[:n, :out_c]


def glorot(key, shape):
    fan_in, fan_out = shape
    lim = jnp.sqrt(6.0 / (fan_in + fan_out))
    return jax.random.uniform(key, shape, jnp.float32, -lim, lim)


def _reference_forward(a_hat, x, w1, b1, w2, b2):
    h1 = jnp.maximum(a_hat @ (x @ w1) + b1[None, :], 0.0)
    h2 = jnp.maximum(a_hat @ (h1 @ w2) + b2[None, :], 0.0)
    return jax.nn.log_softmax(h2, axis=1)


if __name__ == "__main__":
    key = jax.random.PRNGKey(0)
    k_x, k_w1, k_w2 = jax.random.split(key, 3)

    num_nodes = 1024         # -> tm=512, tk=1024, grid (2, 1): 2 row tiles, resident X
    in_channels = 4
    hidden = 16
    out_channels = 8

    # Node features.
    x = jax.random.normal(k_x, (num_nodes, in_channels), jnp.float32)

    # Small deterministic graph: bidirectional ring over the nodes (no self loops).
    ring = jnp.stack([jnp.arange(num_nodes), (jnp.arange(num_nodes) + 1) % num_nodes])
    edge_index = jnp.concatenate([ring, ring[::-1]], axis=1).astype(jnp.int32)

    # Deterministic parameters (GCNConv: weight [in, out], bias [out]).
    w1 = glorot(k_w1, (in_channels, hidden))
    b1 = jnp.zeros((hidden,), jnp.float32)
    w2 = glorot(k_w2, (hidden, out_channels))
    b2 = jnp.zeros((out_channels,), jnp.float32)

    out = jax.jit(gcn_forward)(x, edge_index, w1, b1, w2, b2)
    jax.block_until_ready(out)

    assert out.shape == (num_nodes, out_channels)
    assert bool(jnp.all(jnp.isfinite(out)))
    # Rows of log_softmax must exp-sum to 1 (exact up to f32 rounding).
    assert jnp.allclose(jnp.sum(jnp.exp(out), axis=1), 1.0, atol=1e-3)
    # Matches the dense f32 reference within bf16 aggregation/weight tolerance.
    a_hat_f32 = build_normalized_adjacency(edge_index, num_nodes, dtype=jnp.float32)
    ref = _reference_forward(a_hat_f32, x, w1, b1, w2, b2)
    assert jnp.allclose(out, ref, atol=5e-2, rtol=5e-2)
    print("KERNEL_OK")
</pallas_src>

<mosaic_0001>
module attributes {stable_mosaic.version = 11 : i64} {
  func.func @gcn_layer_kernel(%arg0: i32, %arg1: i32, %arg2: memref<512x1024xbf16, #tpu.memory_space<vmem>>, %arg3: memref<1024x128xbf16, #tpu.memory_space<vmem>>, %arg4: memref<128x128xbf16, #tpu.memory_space<vmem>>, %arg5: memref<1x128xf32, #tpu.memory_space<vmem>>, %arg6: memref<512x128xbf16, #tpu.memory_space<vmem>>, %arg7: memref<512x128xf32, #tpu.memory_space<vmem>>) attributes {dimension_semantics = [#tpu.dimension_semantics<parallel>, #tpu.dimension_semantics<arbitrary>], iteration_bounds = array<i64: 2, 1>, scalar_prefetch = 0 : i64, scratch_operands = 1 : i64, tpu.core_type = #tpu.core_type<tc>, window_params = [{transform_indices = @transform_0, window_bounds = array<i64: 512, 1024>}, {pipeline_mode = #tpu.pipeline_mode<synchronous>, transform_indices = @transform_1, window_bounds = array<i64: 1024, 128>}, {pipeline_mode = #tpu.pipeline_mode<synchronous>, transform_indices = @transform_2, window_bounds = array<i64: 128, 128>}, {pipeline_mode = #tpu.pipeline_mode<synchronous>, transform_indices = @transform_3, window_bounds = array<i64: 1, 128>}, {transform_indices = @transform_4, window_bounds = array<i64: 512, 128>}]} {
    %c0_i32 = arith.constant 0 : i32
    %0 = arith.cmpi eq, %arg1, %c0_i32 : i32
    %1 = arith.extui %0 : i1 to i32
    %c0_i32_0 = arith.constant 0 : i32
    %2 = arith.cmpi ne, %1, %c0_i32_0 : i32
    scf.if %2 {
      %cst_9 = arith.constant 0.000000e+00 : f32
      %15 = vector.broadcast %cst_9 : f32 to vector<512x128xf32>
      %c0_10 = arith.constant 0 : index
      %c0_11 = arith.constant 0 : index
      %16 = vector.load %arg7[%c0_10, %c0_11] : memref<512x128xf32, #tpu.memory_space<vmem>>, vector<512x128xf32>
      tpu.vector_store %arg7[%c0_10, %c0_11], %15 {strides = array<i32>} : memref<512x128xf32, #tpu.memory_space<vmem>>, vector<512x128xf32>,
    } else {
    }
    %c1024_i32 = arith.constant 1024 : i32
    %3 = arith.muli %arg1, %c1024_i32 : i32
    %4 = tpu.assume_multiple %3, 1024 : i32
    %5 = arith.index_cast %4 : i32 to index
    %c0 = arith.constant 0 : index
    %6 = vector.load %arg3[%5, %c0] : memref<1024x128xbf16, #tpu.memory_space<vmem>>, vector<1024x128xbf16>
    %c0_1 = arith.constant 0 : index
    %c0_2 = arith.constant 0 : index
    %7 = vector.load %arg7[%c0_1, %c0_2] : memref<512x128xf32, #tpu.memory_space<vmem>>, vector<512x128xf32>
    %c0_3 = arith.constant 0 : index
    %c0_4 = arith.constant 0 : index
    %8 = vector.load %arg2[%c0_3, %c0_4] : memref<512x1024xbf16, #tpu.memory_space<vmem>>, vector<512x1024xbf16>
    %cst = arith.constant dense<0.000000e+00> : vector<512x128xf32>
    %9 = tpu.matmul %8, %6, %cst {dimension_numbers = #tpu.dot_dimension_numbers<[1], [0], [0], [1], [0, 0, 1, 1], [], []>} : vector<512x1024xbf16>, vector<1024x128xbf16>, vector<512x128xf32> -> vector<512x128xf32>
    %10 = arith.addf %7, %9 : vector<512x128xf32>
    %c0_5 = arith.constant 0 : index
    %c0_6 = arith.constant 0 : index
    %11 = vector.load %arg7[%c0_5, %c0_6] : memref<512x128xf32, #tpu.memory_space<vmem>>, vector<512x128xf32>
    tpu.vector_store %arg7[%c0_5, %c0_6], %10 {strides = array<i32>} : memref<512x128xf32, #tpu.memory_space<vmem>>, vector<512x128xf32>,
    %c0_i32_7 = arith.constant 0 : i32
    %12 = arith.cmpi eq, %arg1, %c0_i32_7 : i32
    %13 = arith.extui %12 : i1 to i32
    %c0_i32_8 = arith.constant 0 : i32
    %14 = arith.cmpi ne, %13, %c0_i32_8 : i32
    scf.if %14 {
      %c0_9 = arith.constant 0 : index
      %c0_10 = arith.constant 0 : index
      %15 = vector.load %arg7[%c0_9, %c0_10] : memref<512x128xf32, #tpu.memory_space<vmem>>, vector<512x128xf32>
      %16 = arith.truncf %15 : vector<512x128xf32> to vector<512x128xbf16>
      %c0_11 = arith.constant 0 : index
      %c0_12 = arith.constant 0 : index
      %17 = vector.load %arg4[%c0_11, %c0_12] : memref<128x128xbf16, #tpu.memory_space<vmem>>, vector<128x128xbf16>
      %cst_13 = arith.constant dense<0.000000e+00> : vector<512x128xf32>
      %18 = tpu.matmul %16, %17, %cst_13 {dimension_numbers = #tpu.dot_dimension_numbers<[1], [0], [0], [1], [0, 0, 1, 1], [], []>} : vector<512x128xbf16>, vector<128x128xbf16>, vector<512x128xf32> -> vector<512x128xf32>
      %c0_14 = arith.constant 0 : index
      %c0_15 = arith.constant 0 : index
      %19 = vector.load %arg5[%c0_14, %c0_15] : memref<1x128xf32, #tpu.memory_space<vmem>>, vector<1x128xf32>
      %20 = vector.broadcast %19 : vector<1x128xf32> to vector<512x128xf32>
      %21 = arith.addf %18, %20 : vector<512x128xf32>
      %cst_16 = arith.constant 0.000000e+00 : f32
      %22 = vector.broadcast %cst_16 : f32 to vector<512x128xf32>
      %23 = arith.maximumf %21, %22 : vector<512x128xf32>
      %24 = arith.truncf %23 : vector<512x128xf32> to vector<512x128xbf16>
      %c0_17 = arith.constant 0 : index
      %c0_18 = arith.constant 0 : index
      %25 = vector.load %arg6[%c0_17, %c0_18] : memref<512x128xbf16, #tpu.memory_space<vmem>>, vector<512x128xbf16>
      tpu.vector_store %arg6[%c0_17, %c0_18], %24 {strides = array<i32>} : memref<512x128xbf16, #tpu.memory_space<vmem>>, vector<512x128xbf16>,
    } else {
    }
    return
  }
  func.func @transform_0(%arg0: i32, %arg1: i32) -> (i32, i32) {
    %c0_i32 = arith.constant 0 : i32
    return %arg0, %arg1 : i32, i32
  }
  func.func @transform_1(%arg0: i32, %arg1: i32) -> (i32, i32) {
    %c0_i32 = arith.constant 0 : i32
    %c0_i32_0 = arith.constant 0 : i32
    %c0_i32_1 = arith.constant 0 : i32
    return %c0_i32, %c0_i32_0 : i32, i32
  }
  func.func @transform_2(%arg0: i32, %arg1: i32) -> (i32, i32) {
    %c0_i32 = arith.constant 0 : i32
    %c0_i32_0 = arith.constant 0 : i32
    %c0_i32_1 = arith.constant 0 : i32
    return %c0_i32, %c0_i32_0 : i32, i32
  }
  func.func @transform_3(%arg0: i32, %arg1: i32) -> (i32, i32) {
    %c0_i32 = arith.constant 0 : i32
    %c0_i32_0 = arith.constant 0 : i32
    %c0_i32_1 = arith.constant 0 : i32
    return %c0_i32, %c0_i32_0 : i32, i32
  }
  func.func @transform_4(%arg0: i32, %arg1: i32) -> (i32, i32) {
    %c0_i32 = arith.constant 0 : i32
    %c0_i32_0 = arith.constant 0 : i32
    return %arg0, %c0_i32 : i32, i32
  }
}

module attributes {stable_mosaic.version = 11 : i64} {
  func.func @gcn_layer_kernel(%arg0: i32, %arg1: i32, %arg2: memref<512x1024xbf16, #tpu.memory_space<vmem>>, %arg3: memref<1024x128xbf16, #tpu.memory_space<vmem>>, %arg4: memref<128x128xbf16, #tpu.memory_space<vmem>>, %arg5: memref<1x128xf32, #tpu.memory_space<vmem>>, %arg6: memref<512x128xf32, #tpu.memory_space<vmem>>, %arg7: memref<512x128xf32, #tpu.memory_space<vmem>>) attributes {dimension_semantics = [#tpu.dimension_semantics<parallel>, #tpu.dimension_semantics<arbitrary>], iteration_bounds = array<i64: 2, 1>, scalar_prefetch = 0 : i64, scratch_operands = 1 : i64, tpu.core_type = #tpu.core_type<tc>, window_params = [{transform_indices = @transform_0, window_bounds = array<i64: 512, 1024>}, {pipeline_mode = #tpu.pipeline_mode<synchronous>, transform_indices = @transform_1, window_bounds = array<i64: 1024, 128>}, {pipeline_mode = #tpu.pipeline_mode<synchronous>, transform_indices = @transform_2, window_bounds = array<i64: 128, 128>}, {pipeline_mode = #tpu.pipeline_mode<synchronous>, transform_indices = @transform_3, window_bounds = array<i64: 1, 128>}, {transform_indices = @transform_4, window_bounds = array<i64: 512, 128>}]} {
    %c0_i32 = arith.constant 0 : i32
    %0 = arith.cmpi eq, %arg1, %c0_i32 : i32
    %1 = arith.extui %0 : i1 to i32
    %c0_i32_0 = arith.constant 0 : i32
    %2 = arith.cmpi ne, %1, %c0_i32_0 : i32
    scf.if %2 {
      %cst_9 = arith.constant 0.000000e+00 : f32
      %15 = vector.broadcast %cst_9 : f32 to vector<512x128xf32>
      %c0_10 = arith.constant 0 : index
      %c0_11 = arith.constant 0 : index
      %16 = vector.load %arg7[%c0_10, %c0_11] : memref<512x128xf32, #tpu.memory_space<vmem>>, vector<512x128xf32>
      tpu.vector_store %arg7[%c0_10, %c0_11], %15 {strides = array<i32>} : memref<512x128xf32, #tpu.memory_space<vmem>>, vector<512x128xf32>,
    } else {
    }
    %c1024_i32 = arith.constant 1024 : i32
    %3 = arith.muli %arg1, %c1024_i32 : i32
    %4 = tpu.assume_multiple %3, 1024 : i32
    %5 = arith.index_cast %4 : i32 to index
    %c0 = arith.constant 0 : index
    %6 = vector.load %arg3[%5, %c0] : memref<1024x128xbf16, #tpu.memory_space<vmem>>, vector<1024x128xbf16>
    %c0_1 = arith.constant 0 : index
    %c0_2 = arith.constant 0 : index
    %7 = vector.load %arg7[%c0_1, %c0_2] : memref<512x128xf32, #tpu.memory_space<vmem>>, vector<512x128xf32>
    %c0_3 = arith.constant 0 : index
    %c0_4 = arith.constant 0 : index
    %8 = vector.load %arg2[%c0_3, %c0_4] : memref<512x1024xbf16, #tpu.memory_space<vmem>>, vector<512x1024xbf16>
    %cst = arith.constant dense<0.000000e+00> : vector<512x128xf32>
    %9 = tpu.matmul %8, %6, %cst {dimension_numbers = #tpu.dot_dimension_numbers<[1], [0], [0], [1], [0, 0, 1, 1], [], []>} : vector<512x1024xbf16>, vector<1024x128xbf16>, vector<512x128xf32> -> vector<512x128xf32>
    %10 = arith.addf %7, %9 : vector<512x128xf32>
    %c0_5 = arith.constant 0 : index
    %c0_6 = arith.constant 0 : index
    %11 = vector.load %arg7[%c0_5, %c0_6] : memref<512x128xf32, #tpu.memory_space<vmem>>, vector<512x128xf32>
    tpu.vector_store %arg7[%c0_5, %c0_6], %10 {strides = array<i32>} : memref<512x128xf32, #tpu.memory_space<vmem>>, vector<512x128xf32>,
    %c0_i32_7 = arith.constant 0 : i32
    %12 = arith.cmpi eq, %arg1, %c0_i32_7 : i32
    %13 = arith.extui %12 : i1 to i32
    %c0_i32_8 = arith.constant 0 : i32
    %14 = arith.cmpi ne, %13, %c0_i32_8 : i32
    scf.if %14 {
      %c0_9 = arith.constant 0 : index
      %c0_10 = arith.constant 0 : index
      %15 = vector.load %arg7[%c0_9, %c0_10] : memref<512x128xf32, #tpu.memory_space<vmem>>, vector<512x128xf32>
      %16 = arith.truncf %15 : vector<512x128xf32> to vector<512x128xbf16>
      %c0_11 = arith.constant 0 : index
      %c0_12 = arith.constant 0 : index
      %17 = vector.load %arg4[%c0_11, %c0_12] : memref<128x128xbf16, #tpu.memory_space<vmem>>, vector<128x128xbf16>
      %cst_13 = arith.constant dense<0.000000e+00> : vector<512x128xf32>
      %18 = tpu.matmul %16, %17, %cst_13 {dimension_numbers = #tpu.dot_dimension_numbers<[1], [0], [0], [1], [0, 0, 1, 1], [], []>} : vector<512x128xbf16>, vector<128x128xbf16>, vector<512x128xf32> -> vector<512x128xf32>
      %c0_14 = arith.constant 0 : index
      %c0_15 = arith.constant 0 : index
      %19 = vector.load %arg5[%c0_14, %c0_15] : memref<1x128xf32, #tpu.memory_space<vmem>>, vector<1x128xf32>
      %20 = vector.broadcast %19 : vector<1x128xf32> to vector<512x128xf32>
      %21 = arith.addf %18, %20 : vector<512x128xf32>
      %cst_16 = arith.constant 0.000000e+00 : f32
      %22 = vector.broadcast %cst_16 : f32 to vector<512x128xf32>
      %23 = arith.maximumf %21, %22 : vector<512x128xf32>
      %24 = tpu.iota {dimensions = array<i32: 1>} : vector<512x128xi32>
      %c8_i32 = arith.constant 8 : i32
      %25 = vector.broadcast %c8_i32 : i32 to vector<512x128xi32>
      %26 = arith.cmpi slt, %24, %25 : vector<512x128xi32>
      %cst_17 = arith.constant -1.000000e+30 : f32
      %27 = vector.broadcast %cst_17 : f32 to vector<512x128xf32>
      %28 = arith.select %26, %23, %27 : vector<512x128xi1>, vector<512x128xf32>
      %cst_18 = arith.constant dense<0xFF800000> : vector<512xf32>
      %29 = vector.multi_reduction <maximumf>, %28, %cst_18 [1] : vector<512x128xf32> to vector<512xf32>
      %30 = vector.shape_cast %29 : vector<512xf32> to vector<512x1xf32>
      %31 = vector.broadcast %30 : vector<512x1xf32> to vector<512x128xf32>
      %32 = arith.subf %28, %31 : vector<512x128xf32>
      %33 = math.exp %32 : vector<512x128xf32>
      %cst_19 = arith.constant dense<0.000000e+00> : vector<512xf32>
      %34 = vector.multi_reduction <add>, %33, %cst_19 [1] : vector<512x128xf32> to vector<512xf32>
      %35 = vector.shape_cast %34 : vector<512xf32> to vector<512x1xf32>
      %36 = math.log %35 : vector<512x1xf32>
      %37 = vector.broadcast %36 : vector<512x1xf32> to vector<512x128xf32>
      %38 = arith.subf %32, %37 : vector<512x128xf32>
      %c0_20 = arith.constant 0 : index
      %c0_21 = arith.constant 0 : index
      %39 = vector.load %arg6[%c0_20, %c0_21] : memref<512x128xf32, #tpu.memory_space<vmem>>, vector<512x128xf32>
      tpu.vector_store %arg6[%c0_20, %c0_21], %38 {strides = array<i32>} : memref<512x128xf32, #tpu.memory_space<vmem>>, vector<512x128xf32>,
    } else {
    }
    return
  }
  func.func @transform_0(%arg0: i32, %arg1: i32) -> (i32, i32) {
    %c0_i32 = arith.constant 0 : i32
    return %arg0, %arg1 : i32, i32
  }
  func.func @transform_1(%arg0: i32, %arg1: i32) -> (i32, i32) {
    %c0_i32 = arith.constant 0 : i32
    %c0_i32_0 = arith.constant 0 : i32
    %c0_i32_1 = arith.constant 0 : i32
    return %c0_i32, %c0_i32_0 : i32, i32
  }
  func.func @transform_2(%arg0: i32, %arg1: i32) -> (i32, i32) {
    %c0_i32 = arith.constant 0 : i32
    %c0_i32_0 = arith.constant 0 : i32
    %c0_i32_1 = arith.constant 0 : i32
    return %c0_i32, %c0_i32_0 : i32, i32
  }
  func.func @transform_3(%arg0: i32, %arg1: i32) -> (i32, i32) {
    %c0_i32 = arith.constant 0 : i32
    %c0_i32_0 = arith.constant 0 : i32
    %c0_i32_1 = arith.constant 0 : i32
    return %c0_i32, %c0_i32_0 : i32, i32
  }
  func.func @transform_4(%arg0: i32, %arg1: i32) -> (i32, i32) {
    %c0_i32 = arith.constant 0 : i32
    %c0_i32_0 = arith.constant 0 : i32
    return %arg0, %c0_i32 : i32, i32
  }
}

</mosaic_0001>

<bundles_post_ra>
// kernel: gcn_forward.2
= control target key start
LH: loop header
LB: loop body
LE: loop exit
PB: predicated region body
PF: predicated region fallthrough
CT: control target
= control target key end

     0   :  { %s6441_s15 = smov 0   ;;  %s6443_s16 = smov 0   ;;  %s7739_s0 = inlined_call_operand.vmem [shape: bf16[1024,1024], index: 0, kind: input, shape index: {}]   ;;  %s7740_s1 = inlined_call_operand.vmem [shape: bf16[1024,128], index: 1, kind: input, shape index: {}]   ;;  %s7741_s2 = inlined_call_operand.vmem [shape: bf16[128,128], index: 2, kind: input, shape index: {}]   ;;  %s7742_s3 = inlined_call_operand.vmem [shape: f32[1,128], index: 3, kind: input, shape index: {}]   ;;  %s7743_s4 = inlined_call_operand.vmem [shape: bf16[1024,128], index: 4, kind: output, shape index: {}]  }
   0x1   :  { %s6445_s17 = smov 0  }
   0x2 LB: > { %s26_s18 = sadd.s32 1, %s6410_s16  ;;  %p4502_p0 = scmp.ge.s32.totalorder %s6414_s17, 1  ;;  %s6414_s17 = sphi %s6445_s17, %s14_s17   ;;  %s6410_s16 = sphi %s6443_s16, %s7851_s16   ;;  %s6406_s15 = sphi %s6441_s15, %s7850_s15  }
   0x3   : > { %p28_p1 = scmp.ge.s32.totalorder %s26_s18, 2  ;;  %p183_p2 = scmp.lt.s32.totalorder %s6414_s17, 3 }
   0x5   : > { %s7853_s18 = smov (%p28_p1, %s26_s18), 0  ;;  %p184_p3 = pnand %p4502_p0, %p183_p2 }
   0x7   : > { %187 = sbr.rel (%p184_p3) target bundleno = 1468 (0x5bc), region = 36 }
   0xc   : > { %v5830_v0 = vld [vmem:[%s7740_s1 + $0x38] sm:$0xff]  ;;  %v5829_v1 = vld [vmem:[%s7740_s1 + $0x30] sm:$0xff]  ;;  %v5828_v2 = vld [vmem:[%s7740_s1 + $0x28] sm:$0xff]  ;;  %s4503_s25 = sshll.u32 %s6406_s15, 6 }
   0xd   : > { %6342 = vmatpush.bf16.msra.mxu1 %v5830_v0  ;;  %6343 = vmatpush.bf16.msra.mxu2 %v5830_v0  ;;  %v5827_v3 = vld [vmem:[%s7740_s1 + $0x20] sm:$0xff]  ;;  %p216_p4 = scmp.lt.s32.totalorder %s4503_s25, 127  ;;  %v5826_v4 = vld [vmem:[%s7740_s1 + $0x18] sm:$0xff]  ;;  %v5825_v5 = vld [vmem:[%s7740_s1 + $0x10] sm:$0xff] }
   0xe   : > { %6344 = vmatpush.bf16.msra.mxu3 %v5830_v0  ;;  %2417 = vmatpush.bf16.msra.mxu0 %v5830_v0  ;;  %v5824_v6 = vld [vmem:[%s7740_s1 + $0x8] sm:$0xff]  ;;  %v5823_v7 = vld [vmem:[%s7740_s1] sm:$0xff]  ;;  %v5846_v14 = vld [vmem:[%s7740_s1 + $0xb8] sm:$0xff] }
   0xf   : > { %s7855_s25 = smov (!%p216_p4, %s4503_s25), 127  ;;  %v5854_v15 = vld [vmem:[%s7740_s1 + $0xf8] sm:$0xff]  ;;  %v5845_v22 = vld [vmem:[%s7740_s1 + $0xb0] sm:$0xff]  ;;  %v5844_v26 = vld [vmem:[%s7740_s1 + $0xa8] sm:$0xff] }
  0x10   : > { %s5822_s6 = sshll.u32 %s7855_s25, 5  ;;  %v5838_v16 = vld [vmem:[%s7740_s1 + $0x78] sm:$0xff]  ;;  %v5853_v23 = vld [vmem:[%s7740_s1 + $0xf0] sm:$0xff]  ;;  %v5852_v27 = vld [vmem:[%s7740_s1 + $0xe8] sm:$0xff]  ;;  %s4507_s21 = sshll.u32 %s7855_s25, 2 }
  0x11   : > { %6345 = vmatpush.bf16.msra.mxu1 %v5829_v1  ;;  %6346 = vmatpush.bf16.msra.mxu2 %v5829_v1  ;;  %s6489_s11 = scalar_lea.vmem %s7739_s0, %s5822_s6  ;;  %v5837_v24 = vld [vmem:[%s7740_s1 + $0x70] sm:$0xff]  ;;  %v5836_v28 = vld [vmem:[%s7740_s1 + $0x68] sm:$0xff]  ;;  %v5843_v41 = vld [vmem:[%s7740_s1 + $0xa0] sm:$0xff]  ;;  %s7495_s24 = scalar_lea.vmem %s7743_s4, %s4507_s21 }
  0x12   : > { %6347 = vmatpush.bf16.msra.mxu3 %v5829_v1  ;;  %2418 = vmatpush.bf16.msra.mxu0 %v5829_v1  ;;  %v4766_v8 = vld [vmem:[%s6489_s11 + $0x200] sm:$0xf]  ;;  %v5842_v56 = vld [vmem:[%s7740_s1 + $0x98] sm:$0xff] }
  0x13   : > { %v5955_v9 = vld [vmem:[%s6489_s11 + $0x21c] sm:$0xf0]  ;;  %v5850_v57 = vld [vmem:[%s7740_s1 + $0xd8] sm:$0xff] }
  0x14   : > { %v5022_v10 = vld [vmem:[%s6489_s11 + $0x400] sm:$0xf]  ;;  %v4767_v17 = vor.u32 %v5955_v9, %v4766_v8  ;;  %v5834_v58 = vld [vmem:[%s7740_s1 + $0x58] sm:$0xff]  ;;  %v5849_v8 = vld [vmem:[%s7740_s1 + $0xd0] sm:$0xff] }
  0x15   : > { %6348 = vmatpush.bf16.msra.mxu1 %v5828_v2  ;;  %6349 = vmatpush.bf16.msra.mxu2 %v5828_v2  ;;  %v6019_v11 = vld [vmem:[%s6489_s11 + $0x41c] sm:$0xf0]  ;;  %v5833_v9 = vld [vmem:[%s7740_s1 + $0x50] sm:$0xff] }
  0x16   : > { %6350 = vmatpush.bf16.msra.mxu3 %v5828_v2  ;;  %2419 = vmatpush.bf16.msra.mxu0 %v5828_v2  ;;  %v5278_v12 = vld [vmem:[%s6489_s11 + $0x600] sm:$0xf]  ;;  %v5023_v18 = vor.u32 %v6019_v11, %v5022_v10 }
  0x17   : > { %v6083_v13 = vld [vmem:[%s6489_s11 + $0x61c] sm:$0xf0] }
  0x18   : > { %v5279_v19 = vor.u32 %v6083_v13, %v5278_v12  ;;  %v4510_v20 = vld [vmem:[%s6489_s11] sm:$0xf] }
  0x19   : > { %6351 = vmatpush.bf16.msra.mxu1 %v5827_v3  ;;  %6352 = vmatpush.bf16.msra.mxu2 %v5827_v3  ;;  %v5891_v21 = vld [vmem:[%s6489_s11 + $0x1c] sm:$0xf0] }
  0x1a   : > { %6353 = vmatpush.bf16.msra.mxu3 %v5827_v3  ;;  %2420 = vmatpush.bf16.msra.mxu0 %v5827_v3  ;;  %v4511_v25 = vor.u32 %v5891_v21, %v4510_v20  ;;  %v4798_v29 = vld [vmem:[%s6489_s11 + $0x240] sm:$0xf] }
  0x1b   : > { %v5963_v30 = vld [vmem:[%s6489_s11 + $0x25c] sm:$0xf0] }
  0x1c   : > { %v5054_v31 = vld [vmem:[%s6489_s11 + $0x440] sm:$0xf]  ;;  %v4799_v35 = vor.u32 %v5963_v30, %v4798_v29 }
  0x1d   : > { %6354 = vmatpush.bf16.msra.mxu1 %v5826_v4  ;;  %6355 = vmatpush.bf16.msra.mxu2 %v5826_v4  ;;  %v6027_v32 = vld [vmem:[%s6489_s11 + $0x45c] sm:$0xf0] }
  0x1e   : > { %6356 = vmatpush.bf16.msra.mxu3 %v5826_v4  ;;  %2421 = vmatpush.bf16.msra.mxu0 %v5826_v4  ;;  %v5310_v33 = vld [vmem:[%s6489_s11 + $0x640] sm:$0xf]  ;;  %v5055_v36 = vor.u32 %v6027_v32, %v5054_v31 }
  0x1f   : > { %v6091_v34 = vld [vmem:[%s6489_s11 + $0x65c] sm:$0xf0] }
  0x20   : > { %v5311_v37 = vor.u32 %v6091_v34, %v5310_v33  ;;  %v4542_v38 = vld [vmem:[%s6489_s11 + $0x40] sm:$0xf] }
  0x21   : > { %6357 = vmatpush.bf16.msra.mxu1 %v5825_v5  ;;  %6358 = vmatpush.bf16.msra.mxu2 %v5825_v5  ;;  %v5899_v39 = vld [vmem:[%s6489_s11 + $0x5c] sm:$0xf0] }
  0x22   : > { %6359 = vmatpush.bf16.msra.mxu3 %v5825_v5  ;;  %2422 = vmatpush.bf16.msra.mxu0 %v5825_v5  ;;  %v4543_v40 = vor.u32 %v5899_v39, %v4542_v38  ;;  %v5851_v42 = vld [vmem:[%s7740_s1 + $0xe0] sm:$0xff] }
  0x23   : > { %v5835_v43 = vld [vmem:[%s7740_s1 + $0x60] sm:$0xff] }
  0x24   : > { %v4830_v44 = vld [vmem:[%s6489_s11 + $0x280] sm:$0xf] }
  0x25   : > { %6360 = vmatpush.bf16.msra.mxu1 %v5824_v6  ;;  %6361 = vmatpush.bf16.msra.mxu2 %v5824_v6  ;;  %v5971_v45 = vld [vmem:[%s6489_s11 + $0x29c] sm:$0xf0] }
  0x26   : > { %6362 = vmatpush.bf16.msra.mxu3 %v5824_v6  ;;  %2423 = vmatpush.bf16.msra.mxu0 %v5824_v6  ;;  %v5086_v46 = vld [vmem:[%s6489_s11 + $0x480] sm:$0xf]  ;;  %v4831_v50 = vor.u32 %v5971_v45, %v4830_v44 }
  0x27   : > { %v6035_v47 = vld [vmem:[%s6489_s11 + $0x49c] sm:$0xf0] }
  0x28   : > { %v5342_v48 = vld [vmem:[%s6489_s11 + $0x680] sm:$0xf]  ;;  %v5087_v51 = vor.u32 %v6035_v47, %v5086_v46 }
  0x29   : > { %6363 = vmatpush.bf16.msra.mxu1 %v5823_v7  ;;  %6364 = vmatpush.bf16.msra.mxu2 %v5823_v7  ;;  %v6099_v49 = vld [vmem:[%s6489_s11 + $0x69c] sm:$0xf0] }
  0x2a   : > { %6365 = vmatpush.bf16.msra.mxu3 %v5823_v7  ;;  %2424 = vmatpush.bf16.msra.mxu0 %v5823_v7  ;;  %v5343_v52 = vor.u32 %v6099_v49, %v5342_v48  ;;  %v4574_v53 = vld [vmem:[%s6489_s11 + $0x80] sm:$0xf]  ;;  %v5841_v7 = vld [vmem:[%s7740_s1 + $0x90] sm:$0xff]  ;;  %v5858_v48 = vld [vmem:[%s7740_s1 + $0x118] sm:$0xff] }
  0x2b   : > { %v5907_v54 = vld [vmem:[%s6489_s11 + $0x9c] sm:$0xf0] }
  0x2c   : > { %2465 = vmatmul.bf16.vlgmr.msra.gmra.mxu1 %v4767_v17  ;;  %2505 = vmatmul.bf16.vlgmr.msra.gmra.mxu2 %v5023_v18  ;;  %v4575_v55 = vor.u32 %v5907_v54, %v4574_v53  ;;  %v4862_v59 = vld [vmem:[%s6489_s11 + $0x2c0] sm:$0xf] }
  0x2d   : > { %2755 = vmatpush.bf16.msrb.mxu2 %v5846_v14  ;;  %2586 = vmatpush.bf16.msrb.mxu1 %v5838_v16  ;;  %v5979_v60 = vld [vmem:[%s6489_s11 + $0x2dc] sm:$0xf0] }
  0x2e   : > { %2924 = vmatpush.bf16.msrb.mxu3 %v5854_v15  ;;  %2425 = vmatmul.bf16.vlgmr.msra.gmra.mxu0 %v4511_v25  ;;  %v5118_v61 = vld [vmem:[%s6489_s11 + $0x4c0] sm:$0xf]  ;;  %v4863_v1 = vor.u32 %v5979_v60, %v4862_v59  ;;  %v5862_v25 = vld [vmem:[%s7740_s1 + $0x138] sm:$0xff]  ;;  %v5856_v60 = vld [vmem:[%s7740_s1 + $0x108] sm:$0xff] }
  0x2f   : > { %2545 = vmatmul.bf16.vlgmr.msra.gmra.mxu3 %v5279_v19  ;;  %v6043_v62 = vld [vmem:[%s6489_s11 + $0x4dc] sm:$0xf0]  ;;  %3093 = vmatpush.bf16.msrb.mxu0 %v5862_v25  ;;  %v5886_v59 = vld [vmem:[%s7740_s1 + $0x1f8] sm:$0xff] }
  0x30   : > { %v5374_v63 = vld [vmem:[%s6489_s11 + $0x6c0] sm:$0xf]  ;;  %v5119_v2 = vor.u32 %v6043_v62, %v5118_v61  ;;  %v5870_v61 = vld [vmem:[%s7740_s1 + $0x178] sm:$0xff] }
  0x31   : > { %2756 = vmatpush.bf16.msrb.mxu2 %v5845_v22  ;;  %2587 = vmatpush.bf16.msrb.mxu1 %v5837_v24  ;;  %v6107_v0 = vld [vmem:[%s6489_s11 + $0x6dc] sm:$0xf0]  ;;  %v5840_v22 = vld [vmem:[%s7740_s1 + $0x88] sm:$0xff] }
  0x32   : > { %2925 = vmatpush.bf16.msrb.mxu3 %v5853_v23  ;;  %v5375_v3 = vor.u32 %v6107_v0, %v5374_v63  ;;  %v4606_v4 = vld [vmem:[%s6489_s11 + $0xc0] sm:$0xf]  ;;  %v5848_v23 = vld [vmem:[%s7740_s1 + $0xc8] sm:$0xff] }
  0x33   : > { %v5915_v5 = vld [vmem:[%s6489_s11 + $0xdc] sm:$0xf0]  ;;  %v5832_v24 = vld [vmem:[%s7740_s1 + $0x48] sm:$0xff] }
  0x34   : > { %v4607_v6 = vor.u32 %v5915_v5, %v4606_v4  ;;  %v4894_v10 = vld [vmem:[%s6489_s11 + $0x300] sm:$0xf] }
  0x35   : > { %2757 = vmatpush.bf16.msrb.mxu2 %v5844_v26  ;;  %2588 = vmatpush.bf16.msrb.mxu1 %v5836_v28  ;;  %v5987_v11 = vld [vmem:[%s6489_s11 + $0x31c] sm:$0xf0]  ;;  %v5861_v26 = vld [vmem:[%s7740_s1 + $0x130] sm:$0xff] }
  0x36   : > { %2926 = vmatpush.bf16.msrb.mxu3 %v5852_v27  ;;  %v5150_v12 = vld [vmem:[%s6489_s11 + $0x500] sm:$0xf]  ;;  %v4895_v16 = vor.u32 %v5987_v11, %v4894_v10  ;;  %3094 = vmatpush.bf16.msrb.mxu0 %v5861_v26  ;;  %v5887_v11 = vld [vmem:[%s6489_s11 + $0x4] sm:$0xf] }
  0x37   : > { %v6051_v13 = vld [vmem:[%s6489_s11 + $0x51c] sm:$0xf0] }
  0x38   : > { %v5406_v14 = vld [vmem:[%s6489_s11 + $0x700] sm:$0xf]  ;;  %v5151_v17 = vor.u32 %v6051_v13, %v5150_v12  ;;  %v4512_v12 = vld [vmem:[%s6489_s11 + $0x20] sm:$0xf0]  ;;  %v4518_v13 = vld [vmem:[%s6489_s11 + $0x8] sm:$0xf] }
  0x39   : > { %2758 = vmatpush.bf16.msrb.mxu2 %v5843_v41  ;;  %2589 = vmatpush.bf16.msrb.mxu1 %v5835_v43  ;;  %v6115_v15 = vld [vmem:[%s6489_s11 + $0x71c] sm:$0xf0]  ;;  %v5860_v41 = vld [vmem:[%s7740_s1 + $0x128] sm:$0xff] }
  0x3a   : > { %2927 = vmatpush.bf16.msrb.mxu3 %v5851_v42  ;;  %v5407_v18 = vor.u32 %v6115_v15, %v5406_v14  ;;  %v4638_v19 = vld [vmem:[%s6489_s11 + $0x100] sm:$0xf]  ;;  %3095 = vmatpush.bf16.msrb.mxu0 %v5860_v41  ;;  %v5892_v14 = vld [vmem:[%s6489_s11 + $0x24] sm:$0xf0]  ;;  %v5888_v15 = vld [vmem:[%s6489_s11 + $0xc] sm:$0xf] }
  0x3b   : > { %v5923_v20 = vld [vmem:[%s6489_s11 + $0x11c] sm:$0xf0]  ;;  %v4558_v41 = vld [vmem:[%s6489_s11 + $0x50] sm:$0xf] }
  0x3c   : > { %2470 = vmatmul.bf16.gmra.mxu1 %v4799_v35  ;;  %2510 = vmatmul.bf16.gmra.mxu2 %v5055_v36  ;;  %v4639_v21 = vor.u32 %v5923_v20, %v4638_v19  ;;  %v4926_v27 = vld [vmem:[%s6489_s11 + $0x340] sm:$0xf] }
  0x3d   : > { %2759 = vmatpush.bf16.msrb.mxu2 %v5842_v56  ;;  %2590 = vmatpush.bf16.msrb.mxu1 %v5834_v58  ;;  %v5995_v28 = vld [vmem:[%s6489_s11 + $0x35c] sm:$0xf0]  ;;  %v5857_v56 = vld [vmem:[%s7740_s1 + $0x110] sm:$0xff]  ;;  %v5878_v58 = vld [vmem:[%s7740_s1 + $0x1b8] sm:$0xff] }
  0x3e   : > { %2430 = vmatmul.bf16.gmra.mxu0 %v4543_v40  ;;  %2928 = vmatpush.bf16.msrb.mxu3 %v5850_v57  ;;  %v5182_v29 = vld [vmem:[%s6489_s11 + $0x540] sm:$0xf]  ;;  %v4927_v33 = vor.u32 %v5995_v28, %v4926_v27  ;;  %v5895_v28 = vld [vmem:[%s6489_s11 + $0x44] sm:$0xf] }
  0x3f   : > { %2550 = vmatmul.bf16.gmra.mxu3 %v5311_v37  ;;  %v6059_v30 = vld [vmem:[%s6489_s11 + $0x55c] sm:$0xf0] }
  0x40   : > { %v5438_v31 = vld [vmem:[%s6489_s11 + $0x740] sm:$0xf]  ;;  %v5183_v34 = vor.u32 %v6059_v30, %v5182_v29  ;;  %v4544_v30 = vld [vmem:[%s6489_s11 + $0x60] sm:$0xf0] }
  0x41   : > { %2760 = vmatpush.bf16.msrb.mxu2 %v5841_v7  ;;  %2591 = vmatpush.bf16.msrb.mxu1 %v5833_v9  ;;  %v6123_v32 = vld [vmem:[%s6489_s11 + $0x75c] sm:$0xf0] }
  0x42   : > { %2929 = vmatpush.bf16.msrb.mxu3 %v5849_v8  ;;  %v5439_v35 = vor.u32 %v6123_v32, %v5438_v31  ;;  %v4670_v36 = vld [vmem:[%s6489_s11 + $0x140] sm:$0xf]  ;;  %v4550_v31 = vld [vmem:[%s6489_s11 + $0x48] sm:$0xf] }
  0x43   : > { %v5931_v37 = vld [vmem:[%s6489_s11 + $0x15c] sm:$0xf0]  ;;  %v5900_v32 = vld [vmem:[%s6489_s11 + $0x64] sm:$0xf0] }
  0x44   : > { %v4671_v38 = vor.u32 %v5931_v37, %v4670_v36  ;;  %v5839_v39 = vld [vmem:[%s7740_s1 + $0x80] sm:$0xff]  ;;  %v4547_v37 = vor.u32 %v5895_v28, %v4544_v30 }
  0x45   : > { %2761 = vmatpush.bf16.msrb.mxu2 %v5840_v22  ;;  %2592 = vmatpush.bf16.msrb.mxu1 %v5832_v24  ;;  %v5847_v40 = vld [vmem:[%s7740_s1 + $0xc0] sm:$0xff]  ;;  %v5893_v22 = vld [vmem:[%s6489_s11 + $0x2c] sm:$0xf0] }
  0x46   : > { %2930 = vmatpush.bf16.msrb.mxu3 %v5848_v23  ;;  %v5831_v42 = vld [vmem:[%s7740_s1 + $0x40] sm:$0xff] }
  0x47   : > { %v5859_v43 = vld [vmem:[%s7740_s1 + $0x120] sm:$0xff] }
  0x48   : > { %v4958_v44 = vld [vmem:[%s6489_s11 + $0x380] sm:$0xf]  ;;  %3096 = vmatpush.bf16.msrb.mxu0 %v5859_v43 }
  0x49   : > { %2762 = vmatpush.bf16.msrb.mxu2 %v5839_v39  ;;  %2593 = vmatpush.bf16.msrb.mxu1 %v5831_v42  ;;  %v6003_v45 = vld [vmem:[%s6489_s11 + $0x39c] sm:$0xf0]  ;;  %v5901_v42 = vld [vmem:[%s6489_s11 + $0x6c] sm:$0xf0] }
  0x4a   : > { %2931 = vmatpush.bf16.msrb.mxu3 %v5847_v40  ;;  %v5214_v46 = vld [vmem:[%s6489_s11 + $0x580] sm:$0xf]  ;;  %v4559_v43 = vor.u32 %v5901_v42, %v4558_v41  ;;  %v5920_v41 = vld [vmem:[%s6489_s11 + $0x10c] sm:$0xf] }
  0x4b   : > { %v6067_v47 = vld [vmem:[%s6489_s11 + $0x59c] sm:$0xf0]  ;;  %v4648_v42 = vld [vmem:[%s6489_s11 + $0x128] sm:$0xf0] }
  0x4c   : > { %2475 = vmatmul.bf16.gmra.mxu1 %v4831_v50  ;;  %2515 = vmatmul.bf16.gmra.mxu2 %v5087_v51  ;;  %v5470_v49 = vld [vmem:[%s6489_s11 + $0x780] sm:$0xf]  ;;  %v4959_v51 = vor.u32 %v6003_v45, %v4958_v44 }
  0x4d   : > { %v6131_v50 = vld [vmem:[%s6489_s11 + $0x79c] sm:$0xf0]  ;;  %3097 = vmatpush.bf16.msrb.mxu0 %v5858_v48  ;;  %3431 = vmatpush.bf16.msra.mxu2 %v5878_v58  ;;  %v5903_v48 = vld [vmem:[%s6489_s11 + $0x84] sm:$0xf] }
  0x4e   : > { %2435 = vmatmul.bf16.gmra.mxu0 %v4575_v55  ;;  %v5471_v53 = vor.u32 %v6131_v50, %v5470_v49  ;;  %v4702_v54 = vld [vmem:[%s6489_s11 + $0x180] sm:$0xf]  ;;  %3600 = vmatpush.bf16.msra.mxu3 %v5886_v59  ;;  %v4576_v50 = vld [vmem:[%s6489_s11 + $0xa0] sm:$0xf0] }
  0x4f   : > { %2555 = vmatmul.bf16.gmra.mxu3 %v5343_v52  ;;  %v5215_v52 = vor.u32 %v6067_v47, %v5214_v46  ;;  %v5939_v55 = vld [vmem:[%s6489_s11 + $0x19c] sm:$0xf0]  ;;  %3262 = vmatpush.bf16.msra.mxu1 %v5870_v61  ;;  %v4590_v61 = vld [vmem:[%s6489_s11 + $0x90] sm:$0xf] }
  0x50   : > { %v4703_v57 = vor.u32 %v5939_v55, %v4702_v54  ;;  %v5855_v62 = vld [vmem:[%s7740_s1 + $0x100] sm:$0xff]  ;;  %v4584_v54 = vld [vmem:[%s6489_s11 + $0xa8] sm:$0xf0] }
  0x51   : > { %3098 = vmatpush.bf16.msrb.mxu0 %v5857_v56  ;;  %v4990_v63 = vld [vmem:[%s6489_s11 + $0x3c0] sm:$0xf] }
  0x52   : > { %v6011_v0 = vld [vmem:[%s6489_s11 + $0x3dc] sm:$0xf0] }
  0x53   : > { %v6139_v4 = vld [vmem:[%s6489_s11 + $0x7dc] sm:$0xf0]  ;;  %v4991_v5 = vor.u32 %v6011_v0, %v4990_v63 }
  0x54   : > { %v4734_v8 = vld [vmem:[%s6489_s11 + $0x1c0] sm:$0xf] }
  0x55   : > { %3099 = vmatpush.bf16.msrb.mxu0 %v5856_v60  ;;  %v5947_v9 = vld [vmem:[%s6489_s11 + $0x1dc] sm:$0xf0] }
  0x56   : > { %v4735_v10 = vor.u32 %v5947_v9, %v4734_v8  ;;  %v4608_v9 = vld [vmem:[%s6489_s11 + $0xe0] sm:$0xf0] }
  0x59   : > { %3100 = vmatpush.bf16.msrb.mxu0 %v5855_v62  ;;  %v5909_v62 = vld [vmem:[%s6489_s11 + $0xac] sm:$0xf0] }
  0x5a   : > { %v4591_v63 = vor.u32 %v5909_v62, %v4590_v61 }
  0x5c   : > { %2480 = vmatmul.bf16.gmra.mxu1 %v4863_v1  ;;  %2520 = vmatmul.bf16.gmra.mxu2 %v5119_v2  ;;  %v5246_v1 = vld [vmem:[%s6489_s11 + $0x5c0] sm:$0xf] }
  0x5d   : > { %v6075_v2 = vld [vmem:[%s6489_s11 + $0x5dc] sm:$0xf0] }
  0x5e   : > { %2440 = vmatmul.bf16.gmra.mxu0 %v4607_v6  ;;  %v5247_v6 = vor.u32 %v6075_v2, %v5246_v1  ;;  %v5877_v1 = vld [vmem:[%s7740_s1 + $0x1b0] sm:$0xff] }
  0x5f   : > { %2560 = vmatmul.bf16.gmra.mxu3 %v5375_v3  ;;  %v5502_v3 = vld [vmem:[%s6489_s11 + $0x7c0] sm:$0xf]  ;;  %v5885_v2 = vld [vmem:[%s7740_s1 + $0x1f0] sm:$0xff]  ;;  %3432 = vmatpush.bf16.msra.mxu2 %v5877_v1  ;;  %v5927_v1 = vld [vmem:[%s6489_s11 + $0x144] sm:$0xf] }
  0x60   : > { %v5503_v7 = vor.u32 %v6139_v4, %v5502_v3  ;;  %3601 = vmatpush.bf16.msra.mxu3 %v5885_v2 }
  0x6c   : > { %2485 = vmatmul.bf16.gmra.mxu1 %v4895_v16  ;;  %2525 = vmatmul.bf16.gmra.mxu2 %v5151_v17  ;;  %v4520_v16 = vld [vmem:[%s6489_s11 + $0x28] sm:$0xf0]  ;;  %v4515_v17 = vor.u32 %v5887_v11, %v4512_v12  ;;  %v5916_v11 = vld [vmem:[%s6489_s11 + $0xe4] sm:$0xf0] }
  0x6d   : > { %v4523_v20 = vor.u32 %v5888_v15, %v4520_v16  ;;  %v5912_v12 = vld [vmem:[%s6489_s11 + $0xcc] sm:$0xf] }
  0x6e   : > { %2445 = vmatmul.bf16.gmra.mxu0 %v4639_v21  ;;  %v4526_v21 = vld [vmem:[%s6489_s11 + $0x10] sm:$0xf] }
  0x6f   : > { %2565 = vmatmul.bf16.gmra.mxu3 %v5407_v18  ;;  %v4519_v18 = vor.u32 %v5892_v14, %v4518_v13  ;;  %v4527_v23 = vor.u32 %v5893_v22, %v4526_v21  ;;  %v4616_v13 = vld [vmem:[%s6489_s11 + $0xe8] sm:$0xf0]  ;;  %v4622_v21 = vld [vmem:[%s6489_s11 + $0xd0] sm:$0xf] }
  0x70   : > { %v5917_v22 = vld [vmem:[%s6489_s11 + $0xec] sm:$0xf0] }
  0x7c   : > { %2490 = vmatmul.bf16.gmra.mxu1 %v4927_v33  ;;  %2530 = vmatmul.bf16.gmra.mxu2 %v5183_v34  ;;  %v5896_v33 = vld [vmem:[%s6489_s11 + $0x4c] sm:$0xf] }
  0x7d   : > { %v4552_v34 = vld [vmem:[%s6489_s11 + $0x68] sm:$0xf0] }
  0x7e   : > { %2450 = vmatmul.bf16.gmra.mxu0 %v4671_v38  ;;  %v4551_v38 = vor.u32 %v5900_v32, %v4550_v31  ;;  %v4555_v40 = vor.u32 %v5896_v33, %v4552_v34  ;;  %v5919_v33 = vld [vmem:[%s6489_s11 + $0x104] sm:$0xf] }
  0x7f   : > { %2570 = vmatmul.bf16.gmra.mxu3 %v5439_v35 }
  0x8c   : > { %2495 = vmatmul.bf16.gmra.mxu1 %v4959_v51  ;;  %2535 = vmatmul.bf16.gmra.mxu2 %v5215_v52  ;;  %v4582_v51 = vld [vmem:[%s6489_s11 + $0x88] sm:$0xf] }
  0x8d   : > { %v5908_v52 = vld [vmem:[%s6489_s11 + $0xa4] sm:$0xf0] }
  0x8e   : > { %2455 = vmatmul.bf16.gmra.mxu0 %v4703_v57  ;;  %v4579_v57 = vor.u32 %v5903_v48, %v4576_v50  ;;  %v4583_v58 = vor.u32 %v5908_v52, %v4582_v51 }
  0x8f   : > { %2575 = vmatmul.bf16.gmra.mxu3 %v5471_v53  ;;  %v5904_v53 = vld [vmem:[%s6489_s11 + $0x8c] sm:$0xf] }
  0x90   : > { %v4587_v60 = vor.u32 %v5904_v53, %v4584_v54  ;;  %v4651_v53 = vor.u32 %v5920_v41, %v4648_v42  ;;  %v4654_v54 = vld [vmem:[%s6489_s11 + $0x110] sm:$0xf]  ;;  %v5935_v42 = vld [vmem:[%s6489_s11 + $0x184] sm:$0xf] }
  0x9c   : > { %2500 = vmatmul.bf16.gmra.mxu1 %v4991_v5  ;;  %2540 = vmatmul.bf16.gmra.mxu2 %v5247_v6  ;;  %v5869_v5 = vld [vmem:[%s7740_s1 + $0x170] sm:$0xff] }
  0x9d   : > { %3263 = vmatpush.bf16.msra.mxu1 %v5869_v5  ;;  %v4672_v5 = vld [vmem:[%s6489_s11 + $0x160] sm:$0xf0] }
  0x9e   : > { %2460 = vmatmul.bf16.gmra.mxu0 %v4735_v10  ;;  %v4614_v10 = vld [vmem:[%s6489_s11 + $0xc8] sm:$0xf] }
  0x9f   : > { %2580 = vmatmul.bf16.gmra.mxu3 %v5503_v7  ;;  %v5911_v7 = vld [vmem:[%s6489_s11 + $0xc4] sm:$0xf] }
  0xa0   : > { %v4611_v16 = vor.u32 %v5911_v7, %v4608_v9  ;;  %v4678_v7 = vld [vmem:[%s6489_s11 + $0x148] sm:$0xf] }
  0xa1   : > { %v5932_v9 = vld [vmem:[%s6489_s11 + $0x164] sm:$0xf0] }
  0xa9   : > { %v6669_v19 = vpop.f32.mrf.mxu1 }
  0xab   : > { %v6673_v24 = vpop.f32.mrf.mxu0 }
  0xac   : > { %2594 = vmatmul.bf16.vlgmr.msrb.gmra.mxu1 %v4515_v17  ;;  %2763 = vmatmul.bf16.vlgmr.msrb.gmra.mxu2 %v4519_v18  ;;  %v4615_v17 = vor.u32 %v5916_v11, %v4614_v10  ;;  %v5928_v10 = vld [vmem:[%s6489_s11 + $0x14c] sm:$0xf] }
  0xad   : > { %v4680_v11 = vld [vmem:[%s6489_s11 + $0x168] sm:$0xf0] }
  0xae   : > { %3101 = vmatmul.bf16.vlgmr.msrb.gmra.mxu0 %v4527_v23  ;;  %v4623_v23 = vor.u32 %v5917_v22, %v4622_v21  ;;  %v4683_v21 = vor.u32 %v5928_v10, %v4680_v11  ;;  %v4686_v22 = vld [vmem:[%s6489_s11 + $0x150] sm:$0xf] }
  0xaf   : > { %2932 = vmatmul.bf16.vlgmr.msrb.gmra.mxu3 %v4523_v20  ;;  %v6675_v25 = vpop.f32.mrf.mxu2  ;;  %v4619_v20 = vor.u32 %v5912_v12, %v4616_v13 }
  0xb1   : > { %v6679_v27 = vpop.f32.mrf.mxu1 }
  0xb2   : > { %v6677_v26 = vpop.f32.mrf.mxu3 }
  0xb3   : > { %7744 = vst [vmem:[#allocation3_spill] sm:$0xff] %v6677_v26  ;;  %v6682_v29 = vpop.f32.mrf.mxu0 }
  0xb7   : > { %v6689_v35 = vpop.f32.mrf.mxu2 }
  0xb9   : > { %v6693_v39 = vpop.f32.mrf.mxu1 }
  0xba   : > { %v6691_v36 = vpop.f32.mrf.mxu3 }
  0xbb   : > { %7745 = vst [vmem:[#allocation4_spill] sm:$0xff] %v6691_v36  ;;  %v6697_v44 = vpop.f32.mrf.mxu0 }
  0xbc   : > { %2599 = vmatmul.bf16.gmra.mxu1 %v4547_v37  ;;  %2768 = vmatmul.bf16.gmra.mxu2 %v4551_v38  ;;  %v4640_v37 = vld [vmem:[%s6489_s11 + $0x120] sm:$0xf0]  ;;  %v4646_v38 = vld [vmem:[%s6489_s11 + $0x108] sm:$0xf] }
  0xbd   : > { %v4643_v50 = vor.u32 %v5919_v33, %v4640_v37 }
  0xbe   : > { %3106 = vmatmul.bf16.gmra.mxu0 %v4559_v43 }
  0xbf   : > { %2937 = vmatmul.bf16.gmra.mxu3 %v4555_v40  ;;  %v6699_v45 = vpop.f32.mrf.mxu2  ;;  %v5924_v40 = vld [vmem:[%s6489_s11 + $0x124] sm:$0xf0] }
  0xc0   : > { %v4647_v51 = vor.u32 %v5924_v40, %v4646_v38 }
  0xc1   : > { %v6703_v47 = vpop.f32.mrf.mxu1 }
  0xc2   : > { %v6701_v46 = vpop.f32.mrf.mxu3 }
  0xc3   : > { %7746 = vst [vmem:[#allocation5_spill] sm:$0xff] %v6701_v46  ;;  %v6706_v49 = vpop.f32.mrf.mxu0 }
  0xc7   : > { %v6713_v55 = vpop.f32.mrf.mxu2 }
  0xc9   : > { %v6717_v59 = vpop.f32.mrf.mxu1 }
  0xca   : > { %v6715_v56 = vpop.f32.mrf.mxu3 }
  0xcb   : > { %7747 = vst [vmem:[#allocation6_spill] sm:$0xff] %v6715_v56  ;;  %v6721_v0 = vpop.f32.mrf.mxu0  ;;  %v5957_v56 = vld [vmem:[%s6489_s11 + $0x22c] sm:$0xf0] }
  0xcc   : > { %2604 = vmatmul.bf16.gmra.mxu1 %v4579_v57  ;;  %2773 = vmatmul.bf16.gmra.mxu2 %v4583_v58  ;;  %v5925_v57 = vld [vmem:[%s6489_s11 + $0x12c] sm:$0xf0] }
  0xcd   : > { %v4655_v58 = vor.u32 %v5925_v57, %v4654_v54  ;;  %v5940_v54 = vld [vmem:[%s6489_s11 + $0x1a4] sm:$0xf0]  ;;  %v5936_v57 = vld [vmem:[%s6489_s11 + $0x18c] sm:$0xf] }
  0xce   : > { %3111 = vmatmul.bf16.gmra.mxu0 %v4591_v63 }
  0xcf   : > { %2942 = vmatmul.bf16.gmra.mxu3 %v4587_v60  ;;  %v6729_v3 = vpop.f32.mrf.mxu2 }
  0xd1   : > { %v6736_v6 = vpop.f32.mrf.mxu1 }
  0xd2   : > { %v6731_v4 = vpop.f32.mrf.mxu3 }
  0xd3   : > { %7748 = vst [vmem:[#allocation7_spill] sm:$0xff] %v6731_v4  ;;  %v6739_v8 = vpop.f32.mrf.mxu0 }
  0xd7   : > { %v6746_v14 = vpop.f32.mrf.mxu2 }
  0xd9   : > { %v6750_v18 = vpop.f32.mrf.mxu1 }
  0xda   : > { %v6748_v15 = vpop.f32.mrf.mxu3 }
  0xdb   : > { %7749 = vst [vmem:[#allocation8_spill] sm:$0xff] %v6748_v15  ;;  %v6754_v28 = vpop.f32.mrf.mxu0 }
  0xdc   : > { %2609 = vmatmul.bf16.gmra.mxu1 %v4611_v16  ;;  %2778 = vmatmul.bf16.gmra.mxu2 %v4615_v17  ;;  %v4675_v16 = vor.u32 %v5927_v1, %v4672_v5  ;;  %v4679_v17 = vor.u32 %v5932_v9, %v4678_v7 }
  0xde   : > { %3116 = vmatmul.bf16.gmra.mxu0 %v4623_v23  ;;  %v5933_v23 = vld [vmem:[%s6489_s11 + $0x16c] sm:$0xf0] }
  0xdf   : > { %2947 = vmatmul.bf16.gmra.mxu3 %v4619_v20  ;;  %v6756_v30 = vpop.f32.mrf.mxu2  ;;  %v4687_v33 = vor.u32 %v5933_v23, %v4686_v22  ;;  %v5876_v23 = vld [vmem:[%s7740_s1 + $0x1a8] sm:$0xff] }
  0xe0   : > { %3433 = vmatpush.bf16.msra.mxu2 %v5876_v23 }
  0xe1   : > { %v6760_v32 = vpop.f32.mrf.mxu1 }
  0xe2   : > { %v6758_v31 = vpop.f32.mrf.mxu3 }
  0xe3   : > { %7750 = vst [vmem:[#allocation9_spill] sm:$0xff] %v6758_v31  ;;  %v6763_v34 = vpop.f32.mrf.mxu0 }
  0xe7   : > { %v6770_v43 = vpop.f32.mrf.mxu2 }
  0xe9   : > { %v6774_v52 = vpop.f32.mrf.mxu1 }
  0xea   : > { %v6772_v48 = vpop.f32.mrf.mxu3 }
  0xeb   : > { %7751 = vst [vmem:[#allocation10_spill] sm:$0xff] %v6772_v48  ;;  %v6778_v60 = vpop.f32.mrf.mxu0 }
  0xec   : > { %2614 = vmatmul.bf16.gmra.mxu1 %v4643_v50  ;;  %2783 = vmatmul.bf16.gmra.mxu2 %v4647_v51  ;;  %v4704_v51 = vld [vmem:[%s6489_s11 + $0x1a0] sm:$0xf0] }
  0xed   : > { %v4707_v7 = vor.u32 %v5935_v42, %v4704_v51 }
  0xee   : > { %3121 = vmatmul.bf16.gmra.mxu0 %v4655_v58  ;;  %v4712_v58 = vld [vmem:[%s6489_s11 + $0x1a8] sm:$0xf0] }
  0xef   : > { %2952 = vmatmul.bf16.gmra.mxu3 %v4651_v53  ;;  %v6780_v61 = vpop.f32.mrf.mxu2  ;;  %v4710_v53 = vld [vmem:[%s6489_s11 + $0x188] sm:$0xf]  ;;  %v4715_v11 = vor.u32 %v5936_v57, %v4712_v58  ;;  %v5943_v57 = vld [vmem:[%s6489_s11 + $0x1c4] sm:$0xf] }
  0xf0   : > { %v4711_v9 = vor.u32 %v5940_v54, %v4710_v53  ;;  %v5868_v54 = vld [vmem:[%s7740_s1 + $0x168] sm:$0xff] }
  0xf1   : > { %v6784_v63 = vpop.f32.mrf.mxu1  ;;  %3264 = vmatpush.bf16.msra.mxu1 %v5868_v54  ;;  %v5949_v54 = vld [vmem:[%s6489_s11 + $0x1ec] sm:$0xf0] }
  0xf2   : > { %v6782_v62 = vpop.f32.mrf.mxu3 }
  0xf3   : > { %7752 = vst [vmem:[#allocation11_spill] sm:$0xff] %v6782_v62  ;;  %v6787_v2 = vpop.f32.mrf.mxu0 }
  0xf7   : > { %v6794_v12 = vpop.f32.mrf.mxu2 }
  0xf9   : > { %v6798_v20 = vpop.f32.mrf.mxu1 }
  0xfa   : > { %v6796_v13 = vpop.f32.mrf.mxu3 }
  0xfb   : > { %7753 = vst [vmem:[#allocation12_spill] sm:$0xff] %v6796_v13  ;;  %v6802_v37 = vpop.f32.mrf.mxu0  ;;  %v4750_v13 = vld [vmem:[%s6489_s11 + $0x1d0] sm:$0xf] }
  0xfc   : > { %2619 = vmatmul.bf16.gmra.mxu1 %v4675_v16  ;;  %2788 = vmatmul.bf16.gmra.mxu2 %v4679_v17  ;;  %v4718_v16 = vld [vmem:[%s6489_s11 + $0x190] sm:$0xf]  ;;  %v4751_v62 = vor.u32 %v5949_v54, %v4750_v13  ;;  %v4768_v13 = vld [vmem:[%s6489_s11 + $0x220] sm:$0xf0]  ;;  %v4776_v54 = vld [vmem:[%s6489_s11 + $0x228] sm:$0xf0] }
  0xfd   : > { %v5941_v17 = vld [vmem:[%s6489_s11 + $0x1ac] sm:$0xf0] }
  0xfe   : > { %3126 = vmatmul.bf16.gmra.mxu0 %v4687_v33  ;;  %v5884_v33 = vld [vmem:[%s7740_s1 + $0x1e8] sm:$0xff] }
  0xff   : > { %2957 = vmatmul.bf16.gmra.mxu3 %v4683_v21  ;;  %v6804_v38 = vpop.f32.mrf.mxu2  ;;  %v4719_v21 = vor.u32 %v5941_v17, %v4718_v16  ;;  %v5944_v16 = vld [vmem:[%s6489_s11 + $0x1cc] sm:$0xf] }
 0x100   : > { %3602 = vmatpush.bf16.msra.mxu3 %v5884_v33  ;;  %v4744_v17 = vld [vmem:[%s6489_s11 + $0x1e8] sm:$0xf0] }
 0x101   : > { %v6808_v41 = vpop.f32.mrf.mxu1 }
 0x102   : > { %v6806_v40 = vpop.f32.mrf.mxu3 }
 0x103   : > { %7754 = vst [vmem:[#allocation13_spill] sm:$0xff] %v6806_v40  ;;  %v6811_v50 = vpop.f32.mrf.mxu0  ;;  %v4747_v40 = vor.u32 %v5944_v16, %v4744_v17  ;;  %v5956_v17 = vld [vmem:[%s6489_s11 + $0x224] sm:$0xf0] }
 0x107   : > { %v6818_v1 = vpop.f32.mrf.mxu2 }
 0x109   : > { %v6822_v10 = vpop.f32.mrf.mxu1 }
 0x10a   : > { %v6820_v5 = vpop.f32.mrf.mxu3 }
 0x10b   : > { %7755 = vst [vmem:[#allocation14_spill] sm:$0xff] %v6820_v5  ;;  %v6826_v22 = vpop.f32.mrf.mxu0 }
 0x10c   : > { %2624 = vmatmul.bf16.gmra.mxu1 %v4707_v7  ;;  %2793 = vmatmul.bf16.gmra.mxu2 %v4711_v9  ;;  %v4736_v7 = vld [vmem:[%s6489_s11 + $0x1e0] sm:$0xf0]  ;;  %v4742_v9 = vld [vmem:[%s6489_s11 + $0x1c8] sm:$0xf] }
 0x10d   : > { %v4739_v33 = vor.u32 %v5943_v57, %v4736_v7  ;;  %v6150_v57 = vld [vmem:[%s7741_s2 + $0x38] sm:$0xff] }
 0x10e   : > { %3131 = vmatmul.bf16.gmra.mxu0 %v4719_v21 }
 0x10f   : > { %2962 = vmatmul.bf16.gmra.mxu3 %v4715_v11  ;;  %v6834_v42 = vpop.f32.mrf.mxu2  ;;  %v5948_v11 = vld [vmem:[%s6489_s11 + $0x1e4] sm:$0xf0]  ;;  %4064 = vmatpush.bf16.msra.mxu0 %v6150_v57 }
 0x110   : > { %7756 = vst [vmem:[#allocation15_spill] sm:$0xff] %v6834_v42 }
 0x111   : > { %v6838_v53 = vpop.f32.mrf.mxu1 }
 0x112   : > { %v6836_v51 = vpop.f32.mrf.mxu3 }
 0x113   : > { %7757 = vst [vmem:[#allocation16_spill] sm:$0xff] %v6836_v51  ;;  %v6844_v58 = vpop.f32.mrf.mxu0  ;;  %v4743_v51 = vor.u32 %v5948_v11, %v4742_v9 }
 0x117   : > { %v6851_v23 = vpop.f32.mrf.mxu2 }
 0x118   : > { %7758 = vst [vmem:[#allocation17_spill] sm:$0xff] %v6851_v23 }
 0x119   : > { %v6855_v5 = vpop.f32.mrf.mxu1 }
 0x11a   : > { %v6853_v21 = vpop.f32.mrf.mxu3 }
 0x11b   : > { %7759 = vst [vmem:[#allocation18_spill] sm:$0xff] %v6853_v21  ;;  %v6859_v48 = vpop.f32.mrf.mxu0 }
 0x11c   : > { %2629 = vmatmul.bf16.gmra.mxu1 %v4739_v33  ;;  %2798 = vmatmul.bf16.gmra.mxu2 %v4743_v51  ;;  %v5951_v51 = vld [vmem:[%s6489_s11 + $0x204] sm:$0xf]  ;;  %v5952_v33 = vld [vmem:[%s6489_s11 + $0x20c] sm:$0xf] }
 0x11d   : > { %v4771_v57 = vor.u32 %v5951_v51, %v4768_v13  ;;  %v4779_v4 = vor.u32 %v5952_v33, %v4776_v54  ;;  %v5959_v54 = vld [vmem:[%s6489_s11 + $0x244] sm:$0xf] }
 0x11e   : > { %3136 = vmatmul.bf16.gmra.mxu0 %v4751_v62  ;;  %v4782_v62 = vld [vmem:[%s6489_s11 + $0x210] sm:$0xf] }
 0x11f   : > { %2967 = vmatmul.bf16.gmra.mxu3 %v4747_v40  ;;  %v6864_v7 = vpop.f32.mrf.mxu2  ;;  %v4774_v40 = vld [vmem:[%s6489_s11 + $0x208] sm:$0xf]  ;;  %v4783_v36 = vor.u32 %v5957_v56, %v4782_v62  ;;  %v4808_v62 = vld [vmem:[%s6489_s11 + $0x268] sm:$0xf0] }
 0x120   : > { %7760 = vst [vmem:[#allocation19_spill] sm:$0xff] %v6864_v7  ;;  %v4775_v15 = vor.u32 %v5956_v17, %v4774_v40 }
 0x121   : > { %v6868_v11 = vpop.f32.mrf.mxu1 }
 0x122   : > { %v6866_v9 = vpop.f32.mrf.mxu3 }
 0x123   : > { %7761 = vst [vmem:[#allocation20_spill] sm:$0xff] %v6866_v9  ;;  %v6871_v16 = vpop.f32.mrf.mxu0 }
 0x127   : > { %v6878_v21 = vpop.f32.mrf.mxu2 }
 0x128   : > { %7762 = vst [vmem:[#allocation21_spill] sm:$0xff] %v6878_v21 }
 0x129   : > { %v2595_v9 = vpop.f32.mrf.mxu1 }
 0x12a   : > { %v6880_v31 = vpop.f32.mrf.mxu3  ;;  %v2596_v46 = vadd.f32 %v2595_v9, %v6673_v24  ;;  %v4800_v9 = vld [vmem:[%s6489_s11 + $0x260] sm:$0xf0] }
 0x12b   : > { %7763 = vst [vmem:[#allocation22_spill] sm:$0xff] %v6880_v31  ;;  %v3102_v26 = vpop.f32.mrf.mxu0 }
 0x12c   : > { %2634 = vmatmul.bf16.gmra.mxu1 %v4771_v57  ;;  %2803 = vmatmul.bf16.gmra.mxu2 %v4775_v15  ;;  %v4806_v57 = vld [vmem:[%s6489_s11 + $0x248] sm:$0xf] }
 0x12d   : > { %v5964_v15 = vld [vmem:[%s6489_s11 + $0x264] sm:$0xf0] }
 0x12e   : > { %3141 = vmatmul.bf16.gmra.mxu0 %v4783_v36  ;;  %v4807_v36 = vor.u32 %v5964_v15, %v4806_v57 }
 0x12f   : > { %2972 = vmatmul.bf16.gmra.mxu3 %v4779_v4  ;;  %v2764_v31 = vpop.f32.mrf.mxu2  ;;  %v5960_v4 = vld [vmem:[%s6489_s11 + $0x24c] sm:$0xf] }
 0x130   : > { %v2765_v51 = vadd.f32 %v2764_v31, %v2596_v46  ;;  %v4803_v31 = vor.u32 %v5959_v54, %v4800_v9 }
 0x131   : > { %v2597_v40 = vpop.f32.mrf.mxu1 }
 0x132   : > { %v2933_v13 = vpop.f32.mrf.mxu3  ;;  %v2598_v56 = vadd.f32 %v2597_v40, %v6682_v29 }
 0x133   : > { %v2934_v17 = vadd.f32 %v2933_v13, %v2765_v51  ;;  %v3104_v24 = vpop.f32.mrf.mxu0  ;;  %v4811_v51 = vor.u32 %v5960_v4, %v4808_v62  ;;  %v5965_v13 = vld [vmem:[%s6489_s11 + $0x26c] sm:$0xf0]  ;;  %v5972_v4 = vld [vmem:[%s6489_s11 + $0x2a4] sm:$0xf0] }
 0x135   : > { %v6885_v33 = vadd.f32 %v3102_v26, %v2934_v17  ;;  %v4814_v26 = vld [vmem:[%s6489_s11 + $0x250] sm:$0xf] }
 0x136   : > { %v4815_v29 = vor.u32 %v5965_v13, %v4814_v26 }
 0x137   : > { %7764 = vst [vmem:[#allocation23_spill] sm:$0xff] %v6885_v33  ;;  %v2766_v21 = vpop.f32.mrf.mxu2 }
 0x138   : > { %v2767_v7 = vadd.f32 %v2766_v21, %v2598_v56  ;;  %v4838_v56 = vld [vmem:[%s6489_s11 + $0x288] sm:$0xf] }
 0x139   : > { %v2600_v23 = vpop.f32.mrf.mxu1  ;;  %v4839_v13 = vor.u32 %v5972_v4, %v4838_v56 }
 0x13a   : > { %v2935_v46 = vpop.f32.mrf.mxu3  ;;  %v2601_v33 = vadd.f32 %v2600_v23, %v6697_v44  ;;  %v5967_v44 = vld [vmem:[%s6489_s11 + $0x284] sm:$0xf] }
 0x13b   : > { %v2936_v17 = vadd.f32 %v2935_v46, %v2767_v7  ;;  %v3107_v21 = vpop.f32.mrf.mxu0  ;;  %v5968_v46 = vld [vmem:[%s6489_s11 + $0x28c] sm:$0xf] }
 0x13c   : > { %2639 = vmatmul.bf16.gmra.mxu1 %v4803_v31  ;;  %2808 = vmatmul.bf16.gmra.mxu2 %v4807_v36  ;;  %v4840_v31 = vld [vmem:[%s6489_s11 + $0x2a8] sm:$0xf0] }
 0x13d   : > { %v6897_v42 = vadd.f32 %v3104_v24, %v2936_v17  ;;  %v4832_v24 = vld [vmem:[%s6489_s11 + $0x2a0] sm:$0xf0] }
 0x13e   : > { %3146 = vmatmul.bf16.gmra.mxu0 %v4815_v29  ;;  %v4835_v26 = vor.u32 %v5967_v44, %v4832_v24  ;;  %v4843_v29 = vor.u32 %v5968_v46, %v4840_v31  ;;  %v5875_v44 = vld [vmem:[%s7740_s1 + $0x1a0] sm:$0xff] }
 0x13f   : > { %2977 = vmatmul.bf16.gmra.mxu3 %v4811_v51  ;;  %v2769_v40 = vpop.f32.mrf.mxu2  ;;  %v5883_v24 = vld [vmem:[%s7740_s1 + $0x1e0] sm:$0xff]  ;;  %3434 = vmatpush.bf16.msra.mxu2 %v5875_v44 }
 0x140   : > { %v2770_v54 = vadd.f32 %v2769_v40, %v2601_v33  ;;  %v5973_v40 = vld [vmem:[%s6489_s11 + $0x2ac] sm:$0xf0]  ;;  %3603 = vmatpush.bf16.msra.mxu3 %v5883_v24  ;;  %v5867_v46 = vld [vmem:[%s7740_s1 + $0x160] sm:$0xff] }
 0x141   : > { %v2602_v57 = vpop.f32.mrf.mxu1  ;;  %3265 = vmatpush.bf16.msra.mxu1 %v5867_v46 }
 0x142   : > { %v2938_v9 = vpop.f32.mrf.mxu3  ;;  %v2603_v62 = vadd.f32 %v2602_v57, %v6706_v49 }
 0x143   : > { %v2939_v7 = vadd.f32 %v2938_v9, %v2770_v54  ;;  %v3109_v23 = vpop.f32.mrf.mxu0 }
 0x145   : > { %v6899_v15 = vadd.f32 %v3107_v21, %v2939_v7  ;;  %v4846_v21 = vld [vmem:[%s6489_s11 + $0x290] sm:$0xf] }
 0x146   : > { %v4847_v49 = vor.u32 %v5973_v40, %v4846_v21  ;;  %v4872_v21 = vld [vmem:[%s6489_s11 + $0x2e8] sm:$0xf0] }
 0x147   : > { %v2771_v36 = vpop.f32.mrf.mxu2 }
 0x148   : > { %v2772_v51 = vadd.f32 %v2771_v36, %v2603_v62  ;;  %v5975_v36 = vld [vmem:[%s6489_s11 + $0x2c4] sm:$0xf] }
 0x149   : > { %v2605_v17 = vpop.f32.mrf.mxu1 }
 0x14a   : > { %v2940_v33 = vpop.f32.mrf.mxu3  ;;  %v2606_v9 = vadd.f32 %v2605_v17, %v6721_v0 }
 0x14b   : > { %v2941_v54 = vadd.f32 %v2940_v33, %v2772_v51  ;;  %v3112_v57 = vpop.f32.mrf.mxu0  ;;  %v4864_v33 = vld [vmem:[%s6489_s11 + $0x2e0] sm:$0xf0] }
 0x14c   : > { %2644 = vmatmul.bf16.gmra.mxu1 %v4835_v26  ;;  %2813 = vmatmul.bf16.gmra.mxu2 %v4839_v13  ;;  %v4870_v26 = vld [vmem:[%s6489_s11 + $0x2c8] sm:$0xf] }
 0x14d   : > { %v6911_v7 = vadd.f32 %v3109_v23, %v2941_v54  ;;  %v5980_v13 = vld [vmem:[%s6489_s11 + $0x2e4] sm:$0xf0] }
 0x14e   : > { %3151 = vmatmul.bf16.gmra.mxu0 %v4847_v49  ;;  %v4867_v49 = vor.u32 %v5975_v36, %v4864_v33  ;;  %v4871_v44 = vor.u32 %v5980_v13, %v4870_v26  ;;  %v6149_v36 = vld [vmem:[%s7741_s2 + $0x30] sm:$0xff] }
 0x14f   : > { %2982 = vmatmul.bf16.gmra.mxu3 %v4843_v29  ;;  %v2774_v0 = vpop.f32.mrf.mxu2  ;;  %v5976_v29 = vld [vmem:[%s6489_s11 + $0x2cc] sm:$0xf]  ;;  %4065 = vmatpush.bf16.msra.mxu0 %v6149_v36 }
 0x150   : > { %v2775_v23 = vadd.f32 %v2774_v0, %v2606_v9  ;;  %v4878_v0 = vld [vmem:[%s6489_s11 + $0x2d0] sm:$0xf] }
 0x151   : > { %v2607_v4 = vpop.f32.mrf.mxu1 }
 0x152   : > { %v2943_v56 = vpop.f32.mrf.mxu3  ;;  %v2608_v17 = vadd.f32 %v2607_v4, %v6739_v8 }
 0x153   : > { %v2944_v62 = vadd.f32 %v2943_v56, %v2775_v23  ;;  %v3114_v51 = vpop.f32.mrf.mxu0  ;;  %v5981_v23 = vld [vmem:[%s6489_s11 + $0x2ec] sm:$0xf0] }
 0x154   : > { %v4879_v8 = vor.u32 %v5981_v23, %v4878_v0 }
 0x155   : > { %v6922_v31 = vadd.f32 %v3112_v57, %v2944_v62  ;;  %v4875_v57 = vor.u32 %v5976_v29, %v4872_v21  ;;  %v5983_v29 = vld [vmem:[%s6489_s11 + $0x304] sm:$0xf] }
 0x157   : > { %v2776_v40 = vpop.f32.mrf.mxu2 }
 0x158   : > { %v2777_v54 = vadd.f32 %v2776_v40, %v2608_v17  ;;  %v4896_v40 = vld [vmem:[%s6489_s11 + $0x320] sm:$0xf0] }
 0x159   : > { %v2610_v24 = vpop.f32.mrf.mxu1 }
 0x15a   : > { %v2945_v9 = vpop.f32.mrf.mxu3  ;;  %v2611_v62 = vadd.f32 %v2610_v24, %v6754_v28  ;;  %v4904_v24 = vld [vmem:[%s6489_s11 + $0x328] sm:$0xf0] }
 0x15b   : > { %v2946_v56 = vadd.f32 %v2945_v9, %v2777_v54  ;;  %v3117_v4 = vpop.f32.mrf.mxu0  ;;  %v4902_v54 = vld [vmem:[%s6489_s11 + $0x308] sm:$0xf] }
 0x15c   : > { %2649 = vmatmul.bf16.gmra.mxu1 %v4867_v49  ;;  %2818 = vmatmul.bf16.gmra.mxu2 %v4871_v44  ;;  %v5988_v9 = vld [vmem:[%s6489_s11 + $0x324] sm:$0xf0]  ;;  %v5984_v44 = vld [vmem:[%s6489_s11 + $0x30c] sm:$0xf] }
 0x15d   : > { %v6934_v46 = vadd.f32 %v3114_v51, %v2946_v56  ;;  %v4899_v56 = vor.u32 %v5983_v29, %v4896_v40  ;;  %v4907_v36 = vor.u32 %v5984_v44, %v4904_v24  ;;  %v4928_v24 = vld [vmem:[%s6489_s11 + $0x360] sm:$0xf0] }
 0x15e   : > { %3156 = vmatmul.bf16.gmra.mxu0 %v4879_v8 }
 0x15f   : > { %2987 = vmatmul.bf16.gmra.mxu3 %v4875_v57  ;;  %v2779_v33 = vpop.f32.mrf.mxu2 }
 0x160   : > { %v2780_v28 = vadd.f32 %v2779_v33, %v2611_v62  ;;  %v4903_v62 = vor.u32 %v5988_v9, %v4902_v54  ;;  %v5989_v33 = vld [vmem:[%s6489_s11 + $0x32c] sm:$0xf0] }
 0x161   : > { %v2612_v51 = vpop.f32.mrf.mxu1 }
 0x162   : > { %v2948_v26 = vpop.f32.mrf.mxu3  ;;  %v2613_v49 = vadd.f32 %v2612_v51, %v6763_v34 }
 0x163   : > { %v2949_v13 = vadd.f32 %v2948_v26, %v2780_v28  ;;  %v3119_v21 = vpop.f32.mrf.mxu0 }
 0x165   : > { %v6939_v17 = vadd.f32 %v3117_v4, %v2949_v13  ;;  %v4910_v4 = vld [vmem:[%s6489_s11 + $0x310] sm:$0xf] }
 0x166   : > { %v4911_v34 = vor.u32 %v5989_v33, %v4910_v4 }
 0x167   : > { %v2781_v57 = vpop.f32.mrf.mxu2 }
 0x168   : > { %v2782_v0 = vadd.f32 %v2781_v57, %v2613_v49  ;;  %v4934_v57 = vld [vmem:[%s6489_s11 + $0x348] sm:$0xf] }
 0x169   : > { %v2615_v8 = vpop.f32.mrf.mxu1 }
 0x16a   : > { %v2950_v23 = vpop.f32.mrf.mxu3  ;;  %v2616_v26 = vadd.f32 %v2615_v8, %v6778_v60  ;;  %v5991_v60 = vld [vmem:[%s6489_s11 + $0x344] sm:$0xf] }
 0x16b   : > { %v2951_v28 = vadd.f32 %v2950_v23, %v2782_v0  ;;  %v3122_v51 = vpop.f32.mrf.mxu0  ;;  %v5996_v0 = vld [vmem:[%s6489_s11 + $0x364] sm:$0xf0]  ;;  %v4931_v33 = vor.u32 %v5991_v60, %v4928_v24 }
 0x16c   : > { %2654 = vmatmul.bf16.gmra.mxu1 %v4899_v56  ;;  %2823 = vmatmul.bf16.gmra.mxu2 %v4903_v62  ;;  %v5992_v56 = vld [vmem:[%s6489_s11 + $0x34c] sm:$0xf] }
 0x16d   : > { %v6951_v13 = vadd.f32 %v3119_v21, %v2951_v28  ;;  %v4936_v62 = vld [vmem:[%s6489_s11 + $0x368] sm:$0xf0]  ;;  %v4935_v28 = vor.u32 %v5996_v0, %v4934_v57 }
 0x16e   : > { %3161 = vmatmul.bf16.gmra.mxu0 %v4911_v34  ;;  %v4939_v34 = vor.u32 %v5992_v56, %v4936_v62  ;;  %v4960_v62 = vld [vmem:[%s6489_s11 + $0x3a0] sm:$0xf0] }
 0x16f   : > { %2992 = vmatmul.bf16.gmra.mxu3 %v4907_v36  ;;  %v2784_v29 = vpop.f32.mrf.mxu2 }
 0x170   : > { %v2785_v40 = vadd.f32 %v2784_v29, %v2616_v26  ;;  %v5997_v29 = vld [vmem:[%s6489_s11 + $0x36c] sm:$0xf0] }
 0x171   : > { %v2617_v9 = vpop.f32.mrf.mxu1 }
 0x172   : > { %v2953_v54 = vpop.f32.mrf.mxu3  ;;  %v2618_v23 = vadd.f32 %v2617_v9, %v6787_v2 }
 0x173   : > { %v2954_v49 = vadd.f32 %v2953_v54, %v2785_v40  ;;  %v3124_v21 = vpop.f32.mrf.mxu0 }
 0x175   : > { %v6953_v44 = vadd.f32 %v3122_v51, %v2954_v49  ;;  %v4942_v51 = vld [vmem:[%s6489_s11 + $0x350] sm:$0xf] }
 0x176   : > { %v4943_v2 = vor.u32 %v5997_v29, %v4942_v51 }
 0x177   : > { %v2786_v8 = vpop.f32.mrf.mxu2 }
 0x178   : > { %v2787_v36 = vadd.f32 %v2786_v8, %v2618_v23  ;;  %v4966_v8 = vld [vmem:[%s6489_s11 + $0x388] sm:$0xf] }
 0x179   : > { %v2620_v26 = vpop.f32.mrf.mxu1 }
 0x17a   : > { %v2955_v4 = vpop.f32.mrf.mxu3  ;;  %v2621_v54 = vadd.f32 %v2620_v26, %v6802_v37  ;;  %v5999_v37 = vld [vmem:[%s6489_s11 + $0x384] sm:$0xf] }
 0x17b   : > { %v2956_v40 = vadd.f32 %v2955_v4, %v2787_v36  ;;  %v3127_v9 = vpop.f32.mrf.mxu0  ;;  %v6004_v36 = vld [vmem:[%s6489_s11 + $0x3a4] sm:$0xf0]  ;;  %v4963_v29 = vor.u32 %v5999_v37, %v4960_v62  ;;  %v5874_v37 = vld [vmem:[%s7740_s1 + $0x198] sm:$0xff] }
 0x17c   : > { %2659 = vmatmul.bf16.gmra.mxu1 %v4931_v33  ;;  %2828 = vmatmul.bf16.gmra.mxu2 %v4935_v28  ;;  %v6000_v33 = vld [vmem:[%s6489_s11 + $0x38c] sm:$0xf]  ;;  %v5882_v62 = vld [vmem:[%s7740_s1 + $0x1d8] sm:$0xff] }
 0x17d   : > { %v6965_v49 = vadd.f32 %v3124_v21, %v2956_v40  ;;  %v4968_v28 = vld [vmem:[%s6489_s11 + $0x3a8] sm:$0xf0]  ;;  %v4967_v40 = vor.u32 %v6004_v36, %v4966_v8  ;;  %3435 = vmatpush.bf16.msra.mxu2 %v5874_v37  ;;  %3604 = vmatpush.bf16.msra.mxu3 %v5882_v62 }
 0x17e   : > { %3166 = vmatmul.bf16.gmra.mxu0 %v4943_v2  ;;  %v4971_v2 = vor.u32 %v6000_v33, %v4968_v28  ;;  %v5866_v33 = vld [vmem:[%s7740_s1 + $0x158] sm:$0xff] }
 0x17f   : > { %2997 = vmatmul.bf16.gmra.mxu3 %v4939_v34  ;;  %v2789_v60 = vpop.f32.mrf.mxu2  ;;  %3266 = vmatpush.bf16.msra.mxu1 %v5866_v33 }
 0x180   : > { %v2790_v24 = vadd.f32 %v2789_v60, %v2621_v54  ;;  %v6005_v60 = vld [vmem:[%s6489_s11 + $0x3ac] sm:$0xf0] }
 0x181   : > { %v2622_v0 = vpop.f32.mrf.mxu1 }
 0x182   : > { %v2958_v57 = vpop.f32.mrf.mxu3  ;;  %v2623_v4 = vadd.f32 %v2622_v0, %v6811_v50 }
 0x183   : > { %v2959_v23 = vadd.f32 %v2958_v57, %v2790_v24  ;;  %v3129_v21 = vpop.f32.mrf.mxu0 }
 0x185   : > { %v6967_v56 = vadd.f32 %v3127_v9, %v2959_v23  ;;  %v4974_v9 = vld [vmem:[%s6489_s11 + $0x390] sm:$0xf] }
 0x186   : > { %v4975_v50 = vor.u32 %v6005_v60, %v4974_v9  ;;  %v5000_v9 = vld [vmem:[%s6489_s11 + $0x3e8] sm:$0xf0] }
 0x187   : > { %v2791_v26 = vpop.f32.mrf.mxu2 }
 0x188   : > { %v2792_v34 = vadd.f32 %v2791_v26, %v2623_v4  ;;  %v6007_v26 = vld [vmem:[%s6489_s11 + $0x3c4] sm:$0xf] }
 0x189   : > { %v2625_v54 = vpop.f32.mrf.mxu1 }
 0x18a   : > { %v2960_v51 = vpop.f32.mrf.mxu3  ;;  %v2626_v57 = vadd.f32 %v2625_v54, %v6826_v22 }
 0x18b   : > { %v2961_v24 = vadd.f32 %v2960_v51, %v2792_v34  ;;  %v3132_v0 = vpop.f32.mrf.mxu0  ;;  %v4992_v51 = vld [vmem:[%s6489_s11 + $0x3e0] sm:$0xf0] }
 0x18c   : > { %2664 = vmatmul.bf16.gmra.mxu1 %v4963_v29  ;;  %2833 = vmatmul.bf16.gmra.mxu2 %v4967_v40  ;;  %v4998_v29 = vld [vmem:[%s6489_s11 + $0x3c8] sm:$0xf] }
 0x18d   : > { %v6979_v23 = vadd.f32 %v3129_v21, %v2961_v24  ;;  %v6012_v40 = vld [vmem:[%s6489_s11 + $0x3e4] sm:$0xf0] }
 0x18e   : > { %3171 = vmatmul.bf16.gmra.mxu0 %v4975_v50  ;;  %v4995_v50 = vor.u32 %v6007_v26, %v4992_v51  ;;  %v4999_v37 = vor.u32 %v6012_v40, %v4998_v29  ;;  %v6148_v26 = vld [vmem:[%s7741_s2 + $0x28] sm:$0xff] }
 0x18f   : > { %3002 = vmatmul.bf16.gmra.mxu3 %v4971_v2  ;;  %v2794_v22 = vpop.f32.mrf.mxu2  ;;  %v6008_v2 = vld [vmem:[%s6489_s11 + $0x3cc] sm:$0xf]  ;;  %4066 = vmatpush.bf16.msra.mxu0 %v6148_v26 }
 0x190   : > { %v2795_v21 = vadd.f32 %v2794_v22, %v2626_v57  ;;  %v5006_v22 = vld [vmem:[%s6489_s11 + $0x3d0] sm:$0xf] }
 0x191   : > { %v2627_v36 = vpop.f32.mrf.mxu1 }
 0x192   : > { %v2963_v8 = vpop.f32.mrf.mxu3  ;;  %v2628_v54 = vadd.f32 %v2627_v36, %v6844_v58 }
 0x193   : > { %v2964_v4 = vadd.f32 %v2963_v8, %v2795_v21  ;;  %v3134_v34 = vpop.f32.mrf.mxu0  ;;  %v6013_v21 = vld [vmem:[%s6489_s11 + $0x3ec] sm:$0xf0] }
 0x194   : > { %v5007_v58 = vor.u32 %v6013_v21, %v5006_v22 }
 0x195   : > { %v6990_v28 = vadd.f32 %v3132_v0, %v2964_v4  ;;  %v5003_v0 = vor.u32 %v6008_v2, %v5000_v9  ;;  %v6015_v2 = vld [vmem:[%s6489_s11 + $0x404] sm:$0xf] }
 0x197   : > { %v2796_v60 = vpop.f32.mrf.mxu2 }
 0x198   : > { %v2797_v24 = vadd.f32 %v2796_v60, %v2628_v54  ;;  %v5024_v60 = vld [vmem:[%s6489_s11 + $0x420] sm:$0xf0] }
 0x199   : > { %v2630_v62 = vpop.f32.mrf.mxu1 }
 0x19a   : > { %v2965_v57 = vpop.f32.mrf.mxu3  ;;  %v2631_v4 = vadd.f32 %v2630_v62, %v6859_v48  ;;  %v5032_v62 = vld [vmem:[%s6489_s11 + $0x428] sm:$0xf0] }
 0x19b   : > { %v2966_v8 = vadd.f32 %v2965_v57, %v2797_v24  ;;  %v3137_v36 = vpop.f32.mrf.mxu0  ;;  %v5030_v24 = vld [vmem:[%s6489_s11 + $0x408] sm:$0xf] }
 0x19c   : > { %2669 = vmatmul.bf16.gmra.mxu1 %v4995_v50  ;;  %2838 = vmatmul.bf16.gmra.mxu2 %v4999_v37  ;;  %v6020_v57 = vld [vmem:[%s6489_s11 + $0x424] sm:$0xf0]  ;;  %v6016_v37 = vld [vmem:[%s6489_s11 + $0x40c] sm:$0xf] }
 0x19d   : > { %v7002_v33 = vadd.f32 %v3134_v34, %v2966_v8  ;;  %v5027_v8 = vor.u32 %v6015_v2, %v5024_v60  ;;  %v5035_v26 = vor.u32 %v6016_v37, %v5032_v62  ;;  %v6023_v37 = vld [vmem:[%s6489_s11 + $0x444] sm:$0xf] }
 0x19e   : > { %3176 = vmatmul.bf16.gmra.mxu0 %v5007_v58 }
 0x19f   : > { %3007 = vmatmul.bf16.gmra.mxu3 %v5003_v0  ;;  %v2799_v51 = vpop.f32.mrf.mxu2 }
 0x1a0   : > { %v2800_v48 = vadd.f32 %v2799_v51, %v2631_v4  ;;  %v5031_v4 = vor.u32 %v6020_v57, %v5030_v24  ;;  %v6021_v51 = vld [vmem:[%s6489_s11 + $0x42c] sm:$0xf0] }
 0x1a1   : > { %v2632_v34 = vpop.f32.mrf.mxu1 }
 0x1a2   : > { %v2968_v29 = vpop.f32.mrf.mxu3  ;;  %v2633_v50 = vadd.f32 %v2632_v34, %v6871_v16 }
 0x1a3   : > { %v2969_v40 = vadd.f32 %v2968_v29, %v2800_v48  ;;  %v3139_v9 = vpop.f32.mrf.mxu0 }
 0x1a5   : > { %v7007_v54 = vadd.f32 %v3137_v36, %v2969_v40  ;;  %v5038_v36 = vld [vmem:[%s6489_s11 + $0x410] sm:$0xf] }
 0x1a6   : > { %v5039_v16 = vor.u32 %v6021_v51, %v5038_v36 }
 0x1a7   : > { %v2801_v0 = vpop.f32.mrf.mxu2 }
 0x1a8   : > { %v2802_v22 = vadd.f32 %v2801_v0, %v2633_v50  ;;  %v5056_v0 = vld [vmem:[%s6489_s11 + $0x460] sm:$0xf0] }
 0x1a9   : > { %v2635_v58 = vpop.f32.mrf.mxu1  ;;  %v5059_v51 = vor.u32 %v6023_v37, %v5056_v0 }
 0x1aa   : > { %v2970_v21 = vpop.f32.mrf.mxu3  ;;  %v2636_v40 = vadd.f32 %v2635_v58, %v6669_v19 }
 0x1ab   : > { %v2971_v48 = vadd.f32 %v2970_v21, %v2802_v22  ;;  %v3142_v34 = vpop.f32.mrf.mxu0  ;;  %v5062_v22 = vld [vmem:[%s6489_s11 + $0x448] sm:$0xf] }
 0x1ac   : > { %2674 = vmatmul.bf16.gmra.mxu1 %v5027_v8  ;;  %2843 = vmatmul.bf16.gmra.mxu2 %v5031_v4  ;;  %v6028_v21 = vld [vmem:[%s6489_s11 + $0x464] sm:$0xf0]  ;;  %v6024_v4 = vld [vmem:[%s6489_s11 + $0x44c] sm:$0xf] }
 0x1ad   : > { %v7018_v29 = vadd.f32 %v3139_v9, %v2971_v48  ;;  %v5063_v48 = vor.u32 %v6028_v21, %v5062_v22 }
 0x1ae   : > { %3181 = vmatmul.bf16.gmra.mxu0 %v5039_v16 }
 0x1af   : > { %3012 = vmatmul.bf16.gmra.mxu3 %v5035_v26  ;;  %v2804_v2 = vpop.f32.mrf.mxu2  ;;  %v5064_v26 = vld [vmem:[%s6489_s11 + $0x468] sm:$0xf0] }
 0x1b0   : > { %v2805_v60 = vadd.f32 %v2804_v2, %v2636_v40  ;;  %v5067_v40 = vor.u32 %v6024_v4, %v5064_v26  ;;  %v6029_v2 = vld [vmem:[%s6489_s11 + $0x46c] sm:$0xf0]  ;;  %v6031_v4 = vld [vmem:[%s6489_s11 + $0x484] sm:$0xf] }
 0x1b1   : > { %v2637_v57 = vpop.f32.mrf.mxu1 }
 0x1b2   : > { %v2973_v24 = vpop.f32.mrf.mxu3  ;;  %v2638_v8 = vadd.f32 %v2637_v57, %v6679_v27 }
 0x1b3   : > { %v2974_v50 = vadd.f32 %v2973_v24, %v2805_v60  ;;  %v3144_v62 = vpop.f32.mrf.mxu0 }
 0x1b5   : > { %v7021_v9 = vadd.f32 %v3142_v34, %v2974_v50  ;;  %v5070_v34 = vld [vmem:[%s6489_s11 + $0x450] sm:$0xf] }
 0x1b6   : > { %v5071_v27 = vor.u32 %v6029_v2, %v5070_v34 }
 0x1b7   : > { %v2806_v19 = vpop.f32.mrf.mxu2 }
 0x1b8   : > { %v2807_v58 = vadd.f32 %v2806_v19, %v2638_v8  ;;  %v5088_v19 = vld [vmem:[%s6489_s11 + $0x4a0] sm:$0xf0] }
 0x1b9   : > { %v2640_v16 = vpop.f32.mrf.mxu1  ;;  %v5091_v2 = vor.u32 %v6031_v4, %v5088_v19  ;;  %v5881_v4 = vld [vmem:[%s7740_s1 + $0x1d0] sm:$0xff] }
 0x1ba   : > { %v2975_v36 = vpop.f32.mrf.mxu3  ;;  %v2641_v50 = vadd.f32 %v2640_v16, %v6693_v39  ;;  %3605 = vmatpush.bf16.msra.mxu3 %v5881_v4 }
 0x1bb   : > { %v2976_v60 = vadd.f32 %v2975_v36, %v2807_v58  ;;  %v3147_v57 = vpop.f32.mrf.mxu0  ;;  %v5094_v58 = vld [vmem:[%s6489_s11 + $0x488] sm:$0xf] }
 0x1bc   : > { %2679 = vmatmul.bf16.gmra.mxu1 %v5059_v51  ;;  %2848 = vmatmul.bf16.gmra.mxu2 %v5063_v48  ;;  %v6036_v36 = vld [vmem:[%s6489_s11 + $0x4a4] sm:$0xf0]  ;;  %v6032_v48 = vld [vmem:[%s6489_s11 + $0x48c] sm:$0xf] }
 0x1bd   : > { %v7032_v24 = vadd.f32 %v3144_v62, %v2976_v60  ;;  %v5095_v60 = vor.u32 %v6036_v36, %v5094_v58 }
 0x1be   : > { %3186 = vmatmul.bf16.gmra.mxu0 %v5071_v27 }
 0x1bf   : > { %3017 = vmatmul.bf16.gmra.mxu3 %v5067_v40  ;;  %v2809_v37 = vpop.f32.mrf.mxu2  ;;  %v5096_v40 = vld [vmem:[%s6489_s11 + $0x4a8] sm:$0xf0] }
 0x1c0   : > { %v2810_v0 = vadd.f32 %v2809_v37, %v2641_v50  ;;  %v5099_v50 = vor.u32 %v6032_v48, %v5096_v40  ;;  %v6037_v37 = vld [vmem:[%s6489_s11 + $0x4ac] sm:$0xf0] }
 0x1c1   : > { %v2642_v21 = vpop.f32.mrf.mxu1  ;;  %v5865_v40 = vld [vmem:[%s7740_s1 + $0x150] sm:$0xff] }
 0x1c2   : > { %v2978_v22 = vpop.f32.mrf.mxu3  ;;  %v2643_v51 = vadd.f32 %v2642_v21, %v6703_v47  ;;  %v5873_v21 = vld [vmem:[%s7740_s1 + $0x190] sm:$0xff]  ;;  %3267 = vmatpush.bf16.msra.mxu1 %v5865_v40 }
 0x1c3   : > { %v2979_v8 = vadd.f32 %v2978_v22, %v2810_v0  ;;  %v3149_v26 = vpop.f32.mrf.mxu0  ;;  %3436 = vmatpush.bf16.msra.mxu2 %v5873_v21 }
 0x1c5   : > { %v7035_v62 = vadd.f32 %v3147_v57, %v2979_v8  ;;  %v5102_v57 = vld [vmem:[%s6489_s11 + $0x490] sm:$0xf] }
 0x1c6   : > { %v5103_v8 = vor.u32 %v6037_v37, %v5102_v57  ;;  %v5128_v57 = vld [vmem:[%s6489_s11 + $0x4e8] sm:$0xf0] }
 0x1c7   : > { %v2811_v39 = vpop.f32.mrf.mxu2 }
 0x1c8   : > { %v2812_v16 = vadd.f32 %v2811_v39, %v2643_v51 }
 0x1c9   : > { %v2645_v27 = vpop.f32.mrf.mxu1 }
 0x1ca   : > { %v2980_v34 = vpop.f32.mrf.mxu3  ;;  %v2646_v19 = vadd.f32 %v2645_v27, %v6717_v59 }
 0x1cb   : > { %v2981_v0 = vadd.f32 %v2980_v34, %v2812_v16  ;;  %v3152_v47 = vpop.f32.mrf.mxu0  ;;  %v6039_v16 = vld [vmem:[%s6489_s11 + $0x4c4] sm:$0xf] }
 0x1cc   : > { %2684 = vmatmul.bf16.gmra.mxu1 %v5091_v2  ;;  %2853 = vmatmul.bf16.gmra.mxu2 %v5095_v60  ;;  %v5120_v34 = vld [vmem:[%s6489_s11 + $0x4e0] sm:$0xf0]  ;;  %v5126_v2 = vld [vmem:[%s6489_s11 + $0x4c8] sm:$0xf] }
 0x1cd   : > { %v7046_v22 = vadd.f32 %v3149_v26, %v2981_v0  ;;  %v6044_v60 = vld [vmem:[%s6489_s11 + $0x4e4] sm:$0xf0]  ;;  %v5123_v21 = vor.u32 %v6039_v16, %v5120_v34 }
 0x1ce   : > { %3191 = vmatmul.bf16.gmra.mxu0 %v5103_v8  ;;  %v5127_v4 = vor.u32 %v6044_v60, %v5126_v2 }
 0x1cf   : > { %3022 = vmatmul.bf16.gmra.mxu3 %v5099_v50  ;;  %v2814_v26 = vpop.f32.mrf.mxu2  ;;  %v6040_v50 = vld [vmem:[%s6489_s11 + $0x4cc] sm:$0xf] }
 0x1d0   : > { %v2815_v58 = vadd.f32 %v2814_v26, %v2646_v19  ;;  %v5134_v26 = vld [vmem:[%s6489_s11 + $0x4d0] sm:$0xf] }
 0x1d1   : > { %v2647_v51 = vpop.f32.mrf.mxu1 }
 0x1d2   : > { %v2983_v36 = vpop.f32.mrf.mxu3  ;;  %v2648_v27 = vadd.f32 %v2647_v51, %v6736_v6  ;;  %v6147_v51 = vld [vmem:[%s7741_s2 + $0x20] sm:$0xff] }
 0x1d3   : > { %v2984_v48 = vadd.f32 %v2983_v36, %v2815_v58  ;;  %v3154_v59 = vpop.f32.mrf.mxu0  ;;  %v6045_v58 = vld [vmem:[%s6489_s11 + $0x4ec] sm:$0xf0]  ;;  %4067 = vmatpush.bf16.msra.mxu0 %v6147_v51 }
 0x1d4   : > { %v5135_v40 = vor.u32 %v6045_v58, %v5134_v26 }
 0x1d5   : > { %v7058_v39 = vadd.f32 %v3152_v47, %v2984_v48  ;;  %v5131_v47 = vor.u32 %v6040_v50, %v5128_v57  ;;  %v6047_v57 = vld [vmem:[%s6489_s11 + $0x504] sm:$0xf] }
 0x1d7   : > { %v2816_v37 = vpop.f32.mrf.mxu2 }
 0x1d8   : > { %v2817_v0 = vadd.f32 %v2816_v37, %v2648_v27 }
 0x1d9   : > { %v2650_v19 = vpop.f32.mrf.mxu1 }
 0x1da   : > { %v2985_v8 = vpop.f32.mrf.mxu3  ;;  %v2651_v16 = vadd.f32 %v2650_v19, %v6750_v18  ;;  %v6048_v18 = vld [vmem:[%s6489_s11 + $0x50c] sm:$0xf] }
 0x1db   : > { %v2986_v36 = vadd.f32 %v2985_v8, %v2817_v0  ;;  %v3157_v6 = vpop.f32.mrf.mxu0  ;;  %v5152_v0 = vld [vmem:[%s6489_s11 + $0x520] sm:$0xf0]  ;;  %v5158_v8 = vld [vmem:[%s6489_s11 + $0x508] sm:$0xf]  ;;  %v5160_v19 = vld [vmem:[%s6489_s11 + $0x528] sm:$0xf0] }
 0x1dc   : > { %2689 = vmatmul.bf16.gmra.mxu1 %v5123_v21  ;;  %2858 = vmatmul.bf16.gmra.mxu2 %v5127_v4  ;;  %v6052_v21 = vld [vmem:[%s6489_s11 + $0x524] sm:$0xf0] }
 0x1dd   : > { %v7069_v48 = vadd.f32 %v3154_v59, %v2986_v36  ;;  %v5155_v36 = vor.u32 %v6047_v57, %v5152_v0 }
 0x1de   : > { %3196 = vmatmul.bf16.gmra.mxu0 %v5135_v40  ;;  %v5159_v40 = vor.u32 %v6052_v21, %v5158_v8 }
 0x1df   : > { %3027 = vmatmul.bf16.gmra.mxu3 %v5131_v47  ;;  %v2819_v34 = vpop.f32.mrf.mxu2 }
 0x1e0   : > { %v2820_v59 = vadd.f32 %v2819_v34, %v2651_v16  ;;  %v5163_v16 = vor.u32 %v6048_v18, %v5160_v19  ;;  %v6053_v34 = vld [vmem:[%s6489_s11 + $0x52c] sm:$0xf0]  ;;  %v6055_v18 = vld [vmem:[%s6489_s11 + $0x544] sm:$0xf] }
 0x1e1   : > { %v2652_v60 = vpop.f32.mrf.mxu1 }
 0x1e2   : > { %v2988_v2 = vpop.f32.mrf.mxu3  ;;  %v2653_v4 = vadd.f32 %v2652_v60, %v6760_v32 }
 0x1e3   : > { %v2989_v27 = vadd.f32 %v2988_v2, %v2820_v59  ;;  %v3159_v37 = vpop.f32.mrf.mxu0 }
 0x1e5   : > { %v7075_v50 = vadd.f32 %v3157_v6, %v2989_v27  ;;  %v5166_v6 = vld [vmem:[%s6489_s11 + $0x510] sm:$0xf] }
 0x1e6   : > { %v5167_v32 = vor.u32 %v6053_v34, %v5166_v6 }
 0x1e7   : > { %v2821_v47 = vpop.f32.mrf.mxu2 }
 0x1e8   : > { %v2822_v26 = vadd.f32 %v2821_v47, %v2653_v4  ;;  %v5184_v47 = vld [vmem:[%s6489_s11 + $0x560] sm:$0xf0] }
 0x1e9   : > { %v2655_v51 = vpop.f32.mrf.mxu1  ;;  %v5187_v34 = vor.u32 %v6055_v18, %v5184_v47 }
 0x1ea   : > { %v2990_v58 = vpop.f32.mrf.mxu3  ;;  %v2656_v27 = vadd.f32 %v2655_v51, %v6774_v52 }
 0x1eb   : > { %v2991_v59 = vadd.f32 %v2990_v58, %v2822_v26  ;;  %v3162_v60 = vpop.f32.mrf.mxu0  ;;  %v5190_v26 = vld [vmem:[%s6489_s11 + $0x548] sm:$0xf] }
 0x1ec   : > { %2694 = vmatmul.bf16.gmra.mxu1 %v5155_v36  ;;  %2863 = vmatmul.bf16.gmra.mxu2 %v5159_v40  ;;  %v6060_v58 = vld [vmem:[%s6489_s11 + $0x564] sm:$0xf0]  ;;  %v6056_v40 = vld [vmem:[%s6489_s11 + $0x54c] sm:$0xf] }
 0x1ed   : > { %v7086_v2 = vadd.f32 %v3159_v37, %v2991_v59  ;;  %v5191_v59 = vor.u32 %v6060_v58, %v5190_v26 }
 0x1ee   : > { %3201 = vmatmul.bf16.gmra.mxu0 %v5167_v32 }
 0x1ef   : > { %3032 = vmatmul.bf16.gmra.mxu3 %v5163_v16  ;;  %v2824_v57 = vpop.f32.mrf.mxu2  ;;  %v5192_v16 = vld [vmem:[%s6489_s11 + $0x568] sm:$0xf0] }
 0x1f0   : > { %v2825_v0 = vadd.f32 %v2824_v57, %v2656_v27  ;;  %v5195_v27 = vor.u32 %v6056_v40, %v5192_v16  ;;  %v6061_v57 = vld [vmem:[%s6489_s11 + $0x56c] sm:$0xf0]  ;;  %v6063_v40 = vld [vmem:[%s6489_s11 + $0x584] sm:$0xf] }
 0x1f1   : > { %v2657_v21 = vpop.f32.mrf.mxu1 }
 0x1f2   : > { %v2993_v8 = vpop.f32.mrf.mxu3  ;;  %v2658_v36 = vadd.f32 %v2657_v21, %v6784_v63 }
 0x1f3   : > { %v2994_v4 = vadd.f32 %v2993_v8, %v2825_v0  ;;  %v3164_v19 = vpop.f32.mrf.mxu0 }
 0x1f5   : > { %v7089_v37 = vadd.f32 %v3162_v60, %v2994_v4  ;;  %v5198_v60 = vld [vmem:[%s6489_s11 + $0x550] sm:$0xf] }
 0x1f6   : > { %v5199_v63 = vor.u32 %v6061_v57, %v5198_v60 }
 0x1f7   : > { %v2826_v52 = vpop.f32.mrf.mxu2 }
 0x1f8   : > { %v2827_v51 = vadd.f32 %v2826_v52, %v2658_v36  ;;  %v5216_v52 = vld [vmem:[%s6489_s11 + $0x5a0] sm:$0xf0] }
 0x1f9   : > { %v2660_v32 = vpop.f32.mrf.mxu1  ;;  %v5219_v57 = vor.u32 %v6063_v40, %v5216_v52  ;;  %v5880_v40 = vld [vmem:[%s7740_s1 + $0x1c8] sm:$0xff] }
 0x1fa   : > { %v2995_v6 = vpop.f32.mrf.mxu3  ;;  %v2661_v4 = vadd.f32 %v2660_v32, %v6798_v20  ;;  %3606 = vmatpush.bf16.msra.mxu3 %v5880_v40 }
 0x1fb   : > { %v2996_v0 = vadd.f32 %v2995_v6, %v2827_v51  ;;  %v3167_v21 = vpop.f32.mrf.mxu0  ;;  %v5222_v51 = vld [vmem:[%s6489_s11 + $0x588] sm:$0xf] }
 0x1fc   : > { %2699 = vmatmul.bf16.gmra.mxu1 %v5187_v34  ;;  %2868 = vmatmul.bf16.gmra.mxu2 %v5191_v59  ;;  %v6068_v6 = vld [vmem:[%s6489_s11 + $0x5a4] sm:$0xf0]  ;;  %v6064_v59 = vld [vmem:[%s6489_s11 + $0x58c] sm:$0xf] }
 0x1fd   : > { %v7100_v8 = vadd.f32 %v3164_v19, %v2996_v0  ;;  %v5223_v0 = vor.u32 %v6068_v6, %v5222_v51 }
 0x1fe   : > { %3206 = vmatmul.bf16.gmra.mxu0 %v5199_v63 }
 0x1ff   : > { %3037 = vmatmul.bf16.gmra.mxu3 %v5195_v27  ;;  %v2829_v18 = vpop.f32.mrf.mxu2  ;;  %v5224_v27 = vld [vmem:[%s6489_s11 + $0x5a8] sm:$0xf0] }
 0x200   : > { %v2830_v47 = vadd.f32 %v2829_v18, %v2661_v4  ;;  %v5227_v4 = vor.u32 %v6064_v59, %v5224_v27  ;;  %v6069_v18 = vld [vmem:[%s6489_s11 + $0x5ac] sm:$0xf0]  ;;  %v5864_v27 = vld [vmem:[%s7740_s1 + $0x148] sm:$0xff] }
 0x201   : > { %v2662_v58 = vpop.f32.mrf.mxu1  ;;  %3268 = vmatpush.bf16.msra.mxu1 %v5864_v27 }
 0x202   : > { %v2998_v26 = vpop.f32.mrf.mxu3  ;;  %v2663_v34 = vadd.f32 %v2662_v58, %v6808_v41  ;;  %v5872_v58 = vld [vmem:[%s7740_s1 + $0x188] sm:$0xff] }
 0x203   : > { %v2999_v36 = vadd.f32 %v2998_v26, %v2830_v47  ;;  %v3169_v16 = vpop.f32.mrf.mxu0  ;;  %3437 = vmatpush.bf16.msra.mxu2 %v5872_v58 }
 0x205   : > { %v7103_v19 = vadd.f32 %v3167_v21, %v2999_v36  ;;  %v5230_v21 = vld [vmem:[%s6489_s11 + $0x590] sm:$0xf] }
 0x206   : > { %v5231_v36 = vor.u32 %v6069_v18, %v5230_v21  ;;  %v5256_v21 = vld [vmem:[%s6489_s11 + $0x5e8] sm:$0xf0] }
 0x207   : > { %v2831_v20 = vpop.f32.mrf.mxu2 }
 0x208   : > { %v2832_v32 = vadd.f32 %v2831_v20, %v2663_v34 }
 0x209   : > { %v2665_v63 = vpop.f32.mrf.mxu1 }
 0x20a   : > { %v3000_v60 = vpop.f32.mrf.mxu3  ;;  %v2666_v52 = vadd.f32 %v2665_v63, %v6822_v10 }
 0x20b   : > { %v3001_v47 = vadd.f32 %v3000_v60, %v2832_v32  ;;  %v3172_v41 = vpop.f32.mrf.mxu0  ;;  %v6071_v32 = vld [vmem:[%s6489_s11 + $0x5c4] sm:$0xf] }
 0x20c   : > { %2704 = vmatmul.bf16.gmra.mxu1 %v5219_v57  ;;  %2873 = vmatmul.bf16.gmra.mxu2 %v5223_v0  ;;  %v5248_v60 = vld [vmem:[%s6489_s11 + $0x5e0] sm:$0xf0]  ;;  %v5254_v57 = vld [vmem:[%s6489_s11 + $0x5c8] sm:$0xf] }
 0x20d   : > { %v7114_v26 = vadd.f32 %v3169_v16, %v3001_v47  ;;  %v6076_v0 = vld [vmem:[%s6489_s11 + $0x5e4] sm:$0xf0]  ;;  %v5251_v58 = vor.u32 %v6071_v32, %v5248_v60 }
 0x20e   : > { %3211 = vmatmul.bf16.gmra.mxu0 %v5231_v36  ;;  %v5255_v40 = vor.u32 %v6076_v0, %v5254_v57 }
 0x20f   : > { %3042 = vmatmul.bf16.gmra.mxu3 %v5227_v4  ;;  %v2834_v16 = vpop.f32.mrf.mxu2  ;;  %v6072_v4 = vld [vmem:[%s6489_s11 + $0x5cc] sm:$0xf] }
 0x210   : > { %v2835_v51 = vadd.f32 %v2834_v16, %v2666_v52  ;;  %v5262_v16 = vld [vmem:[%s6489_s11 + $0x5d0] sm:$0xf] }
 0x211   : > { %v2667_v34 = vpop.f32.mrf.mxu1 }
 0x212   : > { %v3003_v6 = vpop.f32.mrf.mxu3  ;;  %v2668_v63 = vadd.f32 %v2667_v34, %v6838_v53  ;;  %v6146_v34 = vld [vmem:[%s7741_s2 + $0x18] sm:$0xff] }
 0x213   : > { %v3004_v59 = vadd.f32 %v3003_v6, %v2835_v51  ;;  %v3174_v10 = vpop.f32.mrf.mxu0  ;;  %v6077_v51 = vld [vmem:[%s6489_s11 + $0x5ec] sm:$0xf0]  ;;  %4068 = vmatpush.bf16.msra.mxu0 %v6146_v34 }
 0x214   : > { %v5263_v27 = vor.u32 %v6077_v51, %v5262_v16 }
 0x215   : > { %v7126_v20 = vadd.f32 %v3172_v41, %v3004_v59  ;;  %v5259_v41 = vor.u32 %v6072_v4, %v5256_v21  ;;  %v6079_v21 = vld [vmem:[%s6489_s11 + $0x604] sm:$0xf] }
 0x217   : > { %v2836_v18 = vpop.f32.mrf.mxu2 }
 0x218   : > { %v2837_v47 = vadd.f32 %v2836_v18, %v2668_v63 }
 0x219   : > { %v2670_v52 = vpop.f32.mrf.mxu1 }
 0x21a   : > { %v3005_v36 = vpop.f32.mrf.mxu3  ;;  %v2671_v32 = vadd.f32 %v2670_v52, %v6855_v5  ;;  %v6080_v5 = vld [vmem:[%s6489_s11 + $0x60c] sm:$0xf] }
 0x21b   : > { %v3006_v6 = vadd.f32 %v3005_v36, %v2837_v47  ;;  %v3177_v53 = vpop.f32.mrf.mxu0  ;;  %v5280_v47 = vld [vmem:[%s6489_s11 + $0x620] sm:$0xf0]  ;;  %v5286_v36 = vld [vmem:[%s6489_s11 + $0x608] sm:$0xf]  ;;  %v5288_v52 = vld [vmem:[%s6489_s11 + $0x628] sm:$0xf0] }
 0x21c   : > { %2709 = vmatmul.bf16.gmra.mxu1 %v5251_v58  ;;  %2878 = vmatmul.bf16.gmra.mxu2 %v5255_v40  ;;  %v6084_v58 = vld [vmem:[%s6489_s11 + $0x624] sm:$0xf0] }
 0x21d   : > { %v7137_v59 = vadd.f32 %v3174_v10, %v3006_v6  ;;  %v5283_v6 = vor.u32 %v6079_v21, %v5280_v47 }
 0x21e   : > { %3216 = vmatmul.bf16.gmra.mxu0 %v5263_v27  ;;  %v5287_v27 = vor.u32 %v6084_v58, %v5286_v36 }
 0x21f   : > { %3047 = vmatmul.bf16.gmra.mxu3 %v5259_v41  ;;  %v2839_v60 = vpop.f32.mrf.mxu2 }
 0x220   : > { %v2840_v10 = vadd.f32 %v2839_v60, %v2671_v32  ;;  %v5291_v32 = vor.u32 %v6080_v5, %v5288_v52  ;;  %v6085_v60 = vld [vmem:[%s6489_s11 + $0x62c] sm:$0xf0]  ;;  %v6087_v5 = vld [vmem:[%s6489_s11 + $0x644] sm:$0xf] }
 0x221   : > { %v2672_v0 = vpop.f32.mrf.mxu1 }
 0x222   : > { %v3008_v57 = vpop.f32.mrf.mxu3  ;;  %v2673_v40 = vadd.f32 %v2672_v0, %v6868_v11 }
 0x223   : > { %v3009_v63 = vadd.f32 %v3008_v57, %v2840_v10  ;;  %v3179_v18 = vpop.f32.mrf.mxu0 }
 0x225   : > { %v7143_v4 = vadd.f32 %v3177_v53, %v3009_v63  ;;  %v5294_v53 = vld [vmem:[%s6489_s11 + $0x610] sm:$0xf] }
 0x226   : > { %v5295_v11 = vor.u32 %v6085_v60, %v5294_v53 }
 0x227   : > { %v2841_v41 = vpop.f32.mrf.mxu2 }
 0x228   : > { %v2842_v16 = vadd.f32 %v2841_v41, %v2673_v40  ;;  %v5312_v41 = vld [vmem:[%s6489_s11 + $0x660] sm:$0xf0] }
 0x229   : > { %v2675_v34 = vpop.f32.mrf.mxu1  ;;  %v5315_v60 = vor.u32 %v6087_v5, %v5312_v41 }
 0x22a   : > { %v3010_v51 = vpop.f32.mrf.mxu3  ;;  %v2676_v63 = vadd.f32 %v2675_v34, %v6675_v25 }
 0x22b   : > { %v3011_v10 = vadd.f32 %v3010_v51, %v2842_v16  ;;  %v3182_v0 = vpop.f32.mrf.mxu0  ;;  %v5318_v16 = vld [vmem:[%s6489_s11 + $0x648] sm:$0xf] }
 0x22c   : > { %2714 = vmatmul.bf16.gmra.mxu1 %v5283_v6  ;;  %2883 = vmatmul.bf16.gmra.mxu2 %v5287_v27  ;;  %v6092_v51 = vld [vmem:[%s6489_s11 + $0x664] sm:$0xf0]  ;;  %v6088_v27 = vld [vmem:[%s6489_s11 + $0x64c] sm:$0xf] }
 0x22d   : > { %v7154_v57 = vadd.f32 %v3179_v18, %v3011_v10  ;;  %v5319_v10 = vor.u32 %v6092_v51, %v5318_v16 }
 0x22e   : > { %3221 = vmatmul.bf16.gmra.mxu0 %v5295_v11 }
 0x22f   : > { %3052 = vmatmul.bf16.gmra.mxu3 %v5291_v32  ;;  %v2844_v21 = vpop.f32.mrf.mxu2  ;;  %v5320_v32 = vld [vmem:[%s6489_s11 + $0x668] sm:$0xf0] }
 0x230   : > { %v2845_v47 = vadd.f32 %v2844_v21, %v2676_v63  ;;  %v5323_v63 = vor.u32 %v6088_v27, %v5320_v32  ;;  %v6093_v21 = vld [vmem:[%s6489_s11 + $0x66c] sm:$0xf0]  ;;  %v6095_v27 = vld [vmem:[%s6489_s11 + $0x684] sm:$0xf] }
 0x231   : > { %v2677_v58 = vpop.f32.mrf.mxu1 }
 0x232   : > { %v3013_v36 = vpop.f32.mrf.mxu3  ;;  %v2678_v6 = vadd.f32 %v2677_v58, %v6689_v35 }
 0x233   : > { %v3014_v40 = vadd.f32 %v3013_v36, %v2845_v47  ;;  %v3184_v52 = vpop.f32.mrf.mxu0 }
 0x235   : > { %v7157_v18 = vadd.f32 %v3182_v0, %v3014_v40  ;;  %v5326_v0 = vld [vmem:[%s6489_s11 + $0x650] sm:$0xf] }
 0x236   : > { %v5327_v35 = vor.u32 %v6093_v21, %v5326_v0 }
 0x237   : > { %v2846_v25 = vpop.f32.mrf.mxu2 }
 0x238   : > { %v2847_v34 = vadd.f32 %v2846_v25, %v2678_v6  ;;  %v5344_v25 = vld [vmem:[%s6489_s11 + $0x6a0] sm:$0xf0] }
 0x239   : > { %v2680_v11 = vpop.f32.mrf.mxu1  ;;  %v5347_v21 = vor.u32 %v6095_v27, %v5344_v25  ;;  %v5879_v27 = vld [vmem:[%s7740_s1 + $0x1c0] sm:$0xff] }
 0x23a   : > { %v3015_v53 = vpop.f32.mrf.mxu3  ;;  %v2681_v40 = vadd.f32 %v2680_v11, %v6699_v45  ;;  %3607 = vmatpush.bf16.msra.mxu3 %v5879_v27 }
 0x23b   : > { %v3016_v47 = vadd.f32 %v3015_v53, %v2847_v34  ;;  %v3187_v58 = vpop.f32.mrf.mxu0  ;;  %v5350_v34 = vld [vmem:[%s6489_s11 + $0x688] sm:$0xf] }
 0x23c   : > { %2719 = vmatmul.bf16.gmra.mxu1 %v5315_v60  ;;  %2888 = vmatmul.bf16.gmra.mxu2 %v5319_v10  ;;  %v6100_v53 = vld [vmem:[%s6489_s11 + $0x6a4] sm:$0xf0]  ;;  %v6096_v10 = vld [vmem:[%s6489_s11 + $0x68c] sm:$0xf] }
 0x23d   : > { %v7168_v36 = vadd.f32 %v3184_v52, %v3016_v47  ;;  %v5351_v47 = vor.u32 %v6100_v53, %v5350_v34 }
 0x23e   : > { %3226 = vmatmul.bf16.gmra.mxu0 %v5327_v35 }
 0x23f   : > { %3057 = vmatmul.bf16.gmra.mxu3 %v5323_v63  ;;  %v2849_v5 = vpop.f32.mrf.mxu2  ;;  %v5352_v63 = vld [vmem:[%s6489_s11 + $0x6a8] sm:$0xf0] }
 0x240   : > { %v2850_v41 = vadd.f32 %v2849_v5, %v2681_v40  ;;  %v5355_v40 = vor.u32 %v6096_v10, %v5352_v63  ;;  %v6101_v5 = vld [vmem:[%s6489_s11 + $0x6ac] sm:$0xf0]  ;;  %v5863_v63 = vld [vmem:[%s7740_s1 + $0x140] sm:$0xff] }
 0x241   : > { %v2682_v51 = vpop.f32.mrf.mxu1  ;;  %3269 = vmatpush.bf16.msra.mxu1 %v5863_v63 }
 0x242   : > { %v3018_v16 = vpop.f32.mrf.mxu3  ;;  %v2683_v60 = vadd.f32 %v2682_v51, %v6713_v55  ;;  %v5871_v51 = vld [vmem:[%s7740_s1 + $0x180] sm:$0xff] }
 0x243   : > { %v3019_v6 = vadd.f32 %v3018_v16, %v2850_v41  ;;  %v3189_v32 = vpop.f32.mrf.mxu0  ;;  %3438 = vmatpush.bf16.msra.mxu2 %v5871_v51 }
 0x245   : > { %v7171_v52 = vadd.f32 %v3187_v58, %v3019_v6  ;;  %v5358_v58 = vld [vmem:[%s6489_s11 + $0x690] sm:$0xf] }
 0x246   : > { %v5359_v6 = vor.u32 %v6101_v5, %v5358_v58  ;;  %v5384_v58 = vld [vmem:[%s6489_s11 + $0x6e8] sm:$0xf0] }
 0x247   : > { %v2851_v45 = vpop.f32.mrf.mxu2 }
 0x248   : > { %v2852_v11 = vadd.f32 %v2851_v45, %v2683_v60 }
 0x249   : > { %v2685_v35 = vpop.f32.mrf.mxu1 }
 0x24a   : > { %v3020_v0 = vpop.f32.mrf.mxu3  ;;  %v2686_v25 = vadd.f32 %v2685_v35, %v6729_v3 }
 0x24b   : > { %v3021_v41 = vadd.f32 %v3020_v0, %v2852_v11  ;;  %v3192_v55 = vpop.f32.mrf.mxu0  ;;  %v6103_v11 = vld [vmem:[%s6489_s11 + $0x6c4] sm:$0xf] }
 0x24c   : > { %2724 = vmatmul.bf16.gmra.mxu1 %v5347_v21  ;;  %2893 = vmatmul.bf16.gmra.mxu2 %v5351_v47  ;;  %v5376_v0 = vld [vmem:[%s6489_s11 + $0x6e0] sm:$0xf0]  ;;  %v5382_v21 = vld [vmem:[%s6489_s11 + $0x6c8] sm:$0xf] }
 0x24d   : > { %v7182_v16 = vadd.f32 %v3189_v32, %v3021_v41  ;;  %v6108_v47 = vld [vmem:[%s6489_s11 + $0x6e4] sm:$0xf0]  ;;  %v5379_v51 = vor.u32 %v6103_v11, %v5376_v0 }
 0x24e   : > { %3231 = vmatmul.bf16.gmra.mxu0 %v5359_v6  ;;  %v5383_v27 = vor.u32 %v6108_v47, %v5382_v21 }
 0x24f   : > { %3062 = vmatmul.bf16.gmra.mxu3 %v5355_v40  ;;  %v2854_v32 = vpop.f32.mrf.mxu2  ;;  %v6104_v40 = vld [vmem:[%s6489_s11 + $0x6cc] sm:$0xf] }
 0x250   : > { %v2855_v34 = vadd.f32 %v2854_v32, %v2686_v25  ;;  %v5390_v32 = vld [vmem:[%s6489_s11 + $0x6d0] sm:$0xf] }
 0x251   : > { %v2687_v60 = vpop.f32.mrf.mxu1 }
 0x252   : > { %v3023_v53 = vpop.f32.mrf.mxu3  ;;  %v2688_v35 = vadd.f32 %v2687_v60, %v6746_v14  ;;  %v6145_v60 = vld [vmem:[%s7741_s2 + $0x10] sm:$0xff] }
 0x253   : > { %v3024_v10 = vadd.f32 %v3023_v53, %v2855_v34  ;;  %v3194_v3 = vpop.f32.mrf.mxu0  ;;  %v6109_v34 = vld [vmem:[%s6489_s11 + $0x6ec] sm:$0xf0]  ;;  %4069 = vmatpush.bf16.msra.mxu0 %v6145_v60 }
 0x254   : > { %v5391_v63 = vor.u32 %v6109_v34, %v5390_v32 }
 0x255   : > { %v7194_v45 = vadd.f32 %v3192_v55, %v3024_v10  ;;  %v5387_v55 = vor.u32 %v6104_v40, %v5384_v58  ;;  %v6111_v58 = vld [vmem:[%s6489_s11 + $0x704] sm:$0xf] }
 0x257   : > { %v2856_v5 = vpop.f32.mrf.mxu2 }
 0x258   : > { %v2857_v41 = vadd.f32 %v2856_v5, %v2688_v35 }
 0x259   : > { %v2690_v25 = vpop.f32.mrf.mxu1 }
 0x25a   : > { %v3025_v6 = vpop.f32.mrf.mxu3  ;;  %v2691_v11 = vadd.f32 %v2690_v25, %v6756_v30  ;;  %v6112_v30 = vld [vmem:[%s6489_s11 + $0x70c] sm:$0xf] }
 0x25b   : > { %v3026_v53 = vadd.f32 %v3025_v6, %v2857_v41  ;;  %v3197_v14 = vpop.f32.mrf.mxu0  ;;  %v5408_v41 = vld [vmem:[%s6489_s11 + $0x720] sm:$0xf0]  ;;  %v5414_v6 = vld [vmem:[%s6489_s11 + $0x708] sm:$0xf]  ;;  %v5416_v25 = vld [vmem:[%s6489_s11 + $0x728] sm:$0xf0] }
 0x25c   : > { %2729 = vmatmul.bf16.gmra.mxu1 %v5379_v51  ;;  %2898 = vmatmul.bf16.gmra.mxu2 %v5383_v27  ;;  %v6116_v51 = vld [vmem:[%s6489_s11 + $0x724] sm:$0xf0] }
 0x25d   : > { %v7205_v10 = vadd.f32 %v3194_v3, %v3026_v53  ;;  %v5411_v53 = vor.u32 %v6111_v58, %v5408_v41 }
 0x25e   : > { %3236 = vmatmul.bf16.gmra.mxu0 %v5391_v63  ;;  %v5415_v63 = vor.u32 %v6116_v51, %v5414_v6 }
 0x25f   : > { %3067 = vmatmul.bf16.gmra.mxu3 %v5387_v55  ;;  %v2859_v0 = vpop.f32.mrf.mxu2 }
 0x260   : > { %v2860_v3 = vadd.f32 %v2859_v0, %v2691_v11  ;;  %v5419_v11 = vor.u32 %v6112_v30, %v5416_v25  ;;  %v6117_v0 = vld [vmem:[%s6489_s11 + $0x72c] sm:$0xf0]  ;;  %v6119_v30 = vld [vmem:[%s6489_s11 + $0x744] sm:$0xf] }
 0x261   : > { %v2692_v47 = vpop.f32.mrf.mxu1 }
 0x262   : > { %v3028_v21 = vpop.f32.mrf.mxu3  ;;  %v2693_v27 = vadd.f32 %v2692_v47, %v6770_v43 }
 0x263   : > { %v3029_v35 = vadd.f32 %v3028_v21, %v2860_v3  ;;  %v3199_v5 = vpop.f32.mrf.mxu0 }
 0x265   : > { %v7211_v40 = vadd.f32 %v3197_v14, %v3029_v35  ;;  %v5422_v14 = vld [vmem:[%s6489_s11 + $0x710] sm:$0xf] }
 0x266   : > { %v5423_v43 = vor.u32 %v6117_v0, %v5422_v14 }
 0x267   : > { %v2861_v55 = vpop.f32.mrf.mxu2 }
 0x268   : > { %v2862_v32 = vadd.f32 %v2861_v55, %v2693_v27  ;;  %v5440_v55 = vld [vmem:[%s6489_s11 + $0x760] sm:$0xf0] }
 0x269   : > { %v2695_v60 = vpop.f32.mrf.mxu1  ;;  %v5443_v0 = vor.u32 %v6119_v30, %v5440_v55 }
 0x26a   : > { %v3030_v34 = vpop.f32.mrf.mxu3  ;;  %v2696_v35 = vadd.f32 %v2695_v60, %v6780_v61  ;;  %v5448_v61 = vld [vmem:[%s6489_s11 + $0x768] sm:$0xf0] }
 0x26b   : > { %v3031_v3 = vadd.f32 %v3030_v34, %v2862_v32  ;;  %v3202_v47 = vpop.f32.mrf.mxu0  ;;  %v5446_v32 = vld [vmem:[%s6489_s11 + $0x748] sm:$0xf] }
 0x26c   : > { %2734 = vmatmul.bf16.gmra.mxu1 %v5411_v53  ;;  %2903 = vmatmul.bf16.gmra.mxu2 %v5415_v63  ;;  %v6124_v34 = vld [vmem:[%s6489_s11 + $0x764] sm:$0xf0]  ;;  %v6120_v63 = vld [vmem:[%s6489_s11 + $0x74c] sm:$0xf] }
 0x26d   : > { %v7222_v21 = vadd.f32 %v3199_v5, %v3031_v3  ;;  %v5447_v3 = vor.u32 %v6124_v34, %v5446_v32 }
 0x26e   : > { %3241 = vmatmul.bf16.gmra.mxu0 %v5423_v43 }
 0x26f   : > { %3072 = vmatmul.bf16.gmra.mxu3 %v5419_v11  ;;  %v2864_v58 = vpop.f32.mrf.mxu2 }
 0x270   : > { %v2865_v41 = vadd.f32 %v2864_v58, %v2696_v35  ;;  %v5454_v35 = vld [vmem:[%s6489_s11 + $0x750] sm:$0xf] }
 0x271   : > { %v2697_v51 = vpop.f32.mrf.mxu1  ;;  %v6125_v58 = vld [vmem:[%s6489_s11 + $0x76c] sm:$0xf0] }
 0x272   : > { %v3033_v6 = vpop.f32.mrf.mxu3  ;;  %v2698_v53 = vadd.f32 %v2697_v51, %v6794_v12  ;;  %v5455_v12 = vor.u32 %v6125_v58, %v5454_v35 }
 0x273   : > { %v3034_v27 = vadd.f32 %v3033_v6, %v2865_v41  ;;  %v7228_v25 = vpop.f32.mrf.mxu0 }
 0x275   : > { %v7225_v5 = vadd.f32 %v3202_v47, %v3034_v27  ;;  %v5451_v47 = vor.u32 %v6120_v63, %v5448_v61  ;;  %v6127_v63 = vld [vmem:[%s6489_s11 + $0x784] sm:$0xf] }
 0x277   : > { %v2866_v60 = vpop.f32.mrf.mxu2 }
 0x278   : > { %v2867_v11 = vadd.f32 %v2866_v60, %v2698_v53  ;;  %v5472_v60 = vld [vmem:[%s6489_s11 + $0x7a0] sm:$0xf0] }
 0x279   : > { %v2700_v43 = vpop.f32.mrf.mxu1  ;;  %v5475_v58 = vor.u32 %v6127_v63, %v5472_v60 }
 0x27a   : > { %v3035_v14 = vpop.f32.mrf.mxu3  ;;  %v2701_v51 = vadd.f32 %v2700_v43, %v6804_v38  ;;  %v5480_v38 = vld [vmem:[%s6489_s11 + $0x7a8] sm:$0xf0] }
 0x27b   : > { %v7238_v41 = vadd.f32 %v3035_v14, %v2867_v11  ;;  %v3207_v6 = vpop.f32.mrf.mxu0  ;;  %v5478_v11 = vld [vmem:[%s6489_s11 + $0x788] sm:$0xf] }
 0x27c   : > { %2739 = vmatmul.bf16.gmra.mxu1 %v5443_v0  ;;  %2908 = vmatmul.bf16.gmra.mxu2 %v5447_v3  ;;  %v6132_v14 = vld [vmem:[%s6489_s11 + $0x7a4] sm:$0xf0]  ;;  %v6128_v3 = vld [vmem:[%s6489_s11 + $0x78c] sm:$0xf] }
 0x27e   : > { %3246 = vmatmul.bf16.gmra.mxu0 %v5455_v12  ;;  %v5479_v12 = vor.u32 %v6132_v14, %v5478_v11 }
 0x27f   : > { %3077 = vmatmul.bf16.gmra.mxu3 %v5451_v47  ;;  %v2869_v27 = vpop.f32.mrf.mxu2 }
 0x280   : > { %v2870_v30 = vadd.f32 %v2869_v27, %v2701_v51  ;;  %v5486_v27 = vld [vmem:[%s6489_s11 + $0x790] sm:$0xf] }
 0x281   : > { %v2702_v32 = vpop.f32.mrf.mxu1 }
 0x282   : > { %v3038_v55 = vpop.f32.mrf.mxu3  ;;  %v2703_v0 = vadd.f32 %v2702_v32, %v6818_v1 }
 0x283   : > { %v3039_v34 = vadd.f32 %v3038_v55, %v2870_v30  ;;  %v7244_v61 = vpop.f32.mrf.mxu0  ;;  %v6133_v30 = vld [vmem:[%s6489_s11 + $0x7ac] sm:$0xf0] }
 0x284   : > { %7766 = vst [vmem:[#allocation25_spill] sm:$0xff] %v7244_v61  ;;  %v5487_v1 = vor.u32 %v6133_v30, %v5486_v27  ;;  %v6136_v30 = vld [vmem:[%s6489_s11 + $0x7cc] sm:$0xf] }
 0x285   : > { %v7241_v53 = vadd.f32 %v3207_v6, %v3039_v34  ;;  %v5483_v6 = vor.u32 %v6128_v3, %v5480_v38  ;;  %v7768_v34 = vld [vmem:[#allocation15_spill] sm:$0xff] }
 0x287   : > { %7765 = vst [vmem:[#allocation24_spill] sm:$0xff] %v7241_v53  ;;  %v2871_v43 = vpop.f32.mrf.mxu2 }
 0x288   : > { %v2872_v47 = vadd.f32 %v2871_v43, %v2703_v0  ;;  %v6135_v43 = vld [vmem:[%s6489_s11 + $0x7c4] sm:$0xf] }
 0x289   : > { %v2705_v51 = vpop.f32.mrf.mxu1 }
 0x28a   : > { %v3040_v35 = vpop.f32.mrf.mxu3  ;;  %v2706_v63 = vadd.f32 %v2705_v51, %v7768_v34  ;;  %v5512_v51 = vld [vmem:[%s6489_s11 + $0x7e8] sm:$0xf0] }
 0x28b   : > { %v7254_v55 = vadd.f32 %v3040_v35, %v2872_v47  ;;  %v3212_v32 = vpop.f32.mrf.mxu0  ;;  %v5504_v35 = vld [vmem:[%s6489_s11 + $0x7e0] sm:$0xf0] }
 0x28c   : > { %2744 = vmatmul.bf16.gmra.mxu1 %v5475_v58  ;;  %2913 = vmatmul.bf16.gmra.mxu2 %v5479_v12  ;;  %v5510_v58 = vld [vmem:[%s6489_s11 + $0x7c8] sm:$0xf] }
 0x28d   : > { %7767 = vst [vmem:[#allocation26_spill] sm:$0xff] %v7254_v55  ;;  %v6140_v12 = vld [vmem:[%s6489_s11 + $0x7e4] sm:$0xf0]  ;;  %v5966_v55 = vld [vmem:[%s6489_s11 + $0x274] sm:$0xf0] }
 0x28e   : > { %3251 = vmatmul.bf16.gmra.mxu0 %v5487_v1  ;;  %v5507_v1 = vor.u32 %v6135_v43, %v5504_v35  ;;  %v5511_v53 = vor.u32 %v6140_v12, %v5510_v58  ;;  %v6144_v43 = vld [vmem:[%s7741_s2 + $0x8] sm:$0xff]  ;;  %v7773_v35 = vld [vmem:[#allocation19_spill] sm:$0xff] }
 0x28f   : > { %3082 = vmatmul.bf16.gmra.mxu3 %v5483_v6  ;;  %v2874_v60 = vpop.f32.mrf.mxu2  ;;  %v7771_v6 = vld [vmem:[#allocation17_spill] sm:$0xff]  ;;  %4070 = vmatpush.bf16.msra.mxu0 %v6144_v43 }
 0x290   : > { %v2875_v11 = vadd.f32 %v2874_v60, %v2706_v63 }
 0x291   : > { %v2707_v0 = vpop.f32.mrf.mxu1 }
 0x292   : > { %v3043_v14 = vpop.f32.mrf.mxu3  ;;  %v2708_v27 = vadd.f32 %v2707_v0, %v7771_v6 }
 0x293   : > { %v3044_v3 = vadd.f32 %v3043_v14, %v2875_v11  ;;  %v7260_v47 = vpop.f32.mrf.mxu0  ;;  %v5518_v14 = vld [vmem:[%s6489_s11 + $0x7d0] sm:$0xf] }
 0x294   : > { %7770 = vst [vmem:[#allocation27_spill] sm:$0xff] %v7260_v47 }
 0x295   : > { %v7257_v38 = vadd.f32 %v3212_v32, %v3044_v3  ;;  %v5515_v32 = vor.u32 %v6136_v30, %v5512_v51  ;;  %v6141_v3 = vld [vmem:[%s6489_s11 + $0x7ec] sm:$0xf0] }
 0x296   : > { %v5519_v47 = vor.u32 %v6141_v3, %v5518_v14  ;;  %v7776_v14 = vld [vmem:[#allocation21_spill] sm:$0xff] }
 0x297   : > { %7769 = vst [vmem:[#allocation15_spill] sm:$0xff] %v7257_v38  ;;  %v2876_v34 = vpop.f32.mrf.mxu2 }
 0x298   : > { %v2877_v63 = vadd.f32 %v2876_v34, %v2708_v27  ;;  %v5889_v34 = vld [vmem:[%s6489_s11 + $0x14] sm:$0xf] }
 0x299   : > { %v2710_v11 = vpop.f32.mrf.mxu1 }
 0x29a   : > { %v3045_v60 = vpop.f32.mrf.mxu3  ;;  %v2711_v58 = vadd.f32 %v2710_v11, %v7773_v35  ;;  %v4536_v11 = vld [vmem:[%s6489_s11 + $0x38] sm:$0xf0] }
 0x29b   : > { %v7270_v38 = vadd.f32 %v3045_v60, %v2877_v63  ;;  %v3217_v0 = vpop.f32.mrf.mxu0  ;;  %v4528_v60 = vld [vmem:[%s6489_s11 + $0x30] sm:$0xf0] }
 0x29c   : > { %2749 = vmatmul.bf16.gmra.mxu1 %v5507_v1  ;;  %2918 = vmatmul.bf16.gmra.mxu2 %v5511_v53  ;;  %v4534_v1 = vld [vmem:[%s6489_s11 + $0x18] sm:$0xf] }
 0x29d   : > { %7772 = vst [vmem:[#allocation17_spill] sm:$0xff] %v7270_v38  ;;  %v5890_v38 = vld [vmem:[%s6489_s11 + $0x1c] sm:$0xf] }
 0x29e   : > { %3256 = vmatmul.bf16.gmra.mxu0 %v5519_v47 }
 0x29f   : > { %3087 = vmatmul.bf16.gmra.mxu3 %v5515_v32  ;;  %v2879_v12 = vpop.f32.mrf.mxu2  ;;  %v5894_v32 = vld [vmem:[%s6489_s11 + $0x34] sm:$0xf0] }
 0x2a0   : > { %v2880_v6 = vadd.f32 %v2879_v12, %v2711_v58  ;;  %v4531_v58 = vor.u32 %v5889_v34, %v4528_v60  ;;  %v4535_v47 = vor.u32 %v5894_v32, %v4534_v1 }
 0x2a1   : > { %v2712_v53 = vpop.f32.mrf.mxu1 }
 0x2a2   : > { %v3048_v27 = vpop.f32.mrf.mxu3  ;;  %v2713_v3 = vadd.f32 %v2712_v53, %v7776_v14  ;;  %v7778_v53 = vld [vmem:[#allocation3_spill] sm:$0xff] }
 0x2a3   : > { %v3049_v30 = vadd.f32 %v3048_v27, %v2880_v6  ;;  %v7279_v63 = vpop.f32.mrf.mxu0 }
 0x2a4   : > { %7775 = vst [vmem:[#allocation28_spill] sm:$0xff] %v7279_v63 }
 0x2a5   : > { %v7276_v51 = vadd.f32 %v3217_v0, %v3049_v30  ;;  %v4539_v0 = vor.u32 %v5890_v38, %v4536_v11  ;;  %v5897_v38 = vld [vmem:[%s6489_s11 + $0x54] sm:$0xf] }
 0x2a7   : > { %7774 = vst [vmem:[#allocation19_spill] sm:$0xff] %v7276_v51  ;;  %v2881_v35 = vpop.f32.mrf.mxu2  ;;  %v4568_v51 = vld [vmem:[%s6489_s11 + $0x78] sm:$0xf0] }
 0x2a8   : > { %v2882_v61 = vadd.f32 %v2881_v35, %v2713_v3  ;;  %v4566_v35 = vld [vmem:[%s6489_s11 + $0x58] sm:$0xf] }
 0x2a9   : > { %v2715_v12 = vpop.f32.mrf.mxu1 }
 0x2aa   : > { %v3050_v43 = vpop.f32.mrf.mxu3  ;;  %v2716_v30 = vadd.f32 %v2715_v12, %v7778_v53 }
 0x2ab   : > { %v7287_v6 = vadd.f32 %v3050_v43, %v2882_v61  ;;  %v3222_v27 = vpop.f32.mrf.mxu0  ;;  %v4560_v61 = vld [vmem:[%s6489_s11 + $0x70] sm:$0xf0]  ;;  %v5902_v43 = vld [vmem:[%s6489_s11 + $0x74] sm:$0xf0] }
 0x2ac   : > { %3270 = vmatmul.bf16.vlgmr.msra.gmra.mxu1 %v4531_v58  ;;  %3439 = vmatmul.bf16.vlgmr.msra.gmra.mxu2 %v4535_v47  ;;  %v7781_v58 = vld [vmem:[#allocation4_spill] sm:$0xff]  ;;  %v4563_v53 = vor.u32 %v5897_v38, %v4560_v61 }
 0x2ad   : > { %7777 = vst [vmem:[#allocation21_spill] sm:$0xff] %v7287_v6 }
 0x2af   : > { %3608 = vmatmul.bf16.vlgmr.msra.gmra.mxu3 %v4539_v0  ;;  %v2884_v14 = vpop.f32.mrf.mxu2  ;;  %v5898_v0 = vld [vmem:[%s6489_s11 + $0x5c] sm:$0xf] }
 0x2b0   : > { %v2885_v3 = vadd.f32 %v2884_v14, %v2716_v30  ;;  %v4567_v30 = vor.u32 %v5902_v43, %v4566_v35 }
 0x2b1   : > { %v2717_v60 = vpop.f32.mrf.mxu1 }
 0x2b2   : > { %v3053_v34 = vpop.f32.mrf.mxu3  ;;  %v2718_v47 = vadd.f32 %v2717_v60, %v7781_v58  ;;  %v7783_v60 = vld [vmem:[#allocation5_spill] sm:$0xff] }
 0x2b3   : > { %v3054_v1 = vadd.f32 %v3053_v34, %v2885_v3  ;;  %v7293_v11 = vpop.f32.mrf.mxu0 }
 0x2b4   : > { %7780 = vst [vmem:[#allocation29_spill] sm:$0xff] %v7293_v11 }
 0x2b5   : > { %v7290_v32 = vadd.f32 %v3222_v27, %v3054_v1  ;;  %v4571_v27 = vor.u32 %v5898_v0, %v4568_v51  ;;  %v5905_v51 = vld [vmem:[%s6489_s11 + $0x94] sm:$0xf]  ;;  %v4598_v0 = vld [vmem:[%s6489_s11 + $0x98] sm:$0xf] }
 0x2b7   : > { %7779 = vst [vmem:[#allocation3_spill] sm:$0xff] %v7290_v32  ;;  %v2886_v63 = vpop.f32.mrf.mxu2  ;;  %v4600_v32 = vld [vmem:[%s6489_s11 + $0xb8] sm:$0xf0] }
 0x2b8   : > { %v2887_v6 = vadd.f32 %v2886_v63, %v2718_v47 }
 0x2b9   : > { %v2720_v14 = vpop.f32.mrf.mxu1 }
 0x2ba   : > { %v3055_v12 = vpop.f32.mrf.mxu3  ;;  %v2721_v1 = vadd.f32 %v2720_v14, %v7783_v60 }
 0x2bb   : > { %v7301_v3 = vadd.f32 %v3055_v12, %v2887_v6  ;;  %v3227_v34 = vpop.f32.mrf.mxu0  ;;  %v4592_v6 = vld [vmem:[%s6489_s11 + $0xb0] sm:$0xf0]  ;;  %v5910_v12 = vld [vmem:[%s6489_s11 + $0xb4] sm:$0xf0] }
 0x2bc   : > { %3275 = vmatmul.bf16.gmra.mxu1 %v4563_v53  ;;  %3444 = vmatmul.bf16.gmra.mxu2 %v4567_v30  ;;  %v7786_v53 = vld [vmem:[#allocation6_spill] sm:$0xff]  ;;  %v4595_v60 = vor.u32 %v5905_v51, %v4592_v6 }
 0x2bd   : > { %7782 = vst [vmem:[#allocation4_spill] sm:$0xff] %v7301_v3 }
 0x2bf   : > { %3613 = vmatmul.bf16.gmra.mxu3 %v4571_v27  ;;  %v2889_v63 = vpop.f32.mrf.mxu2  ;;  %v5906_v27 = vld [vmem:[%s6489_s11 + $0x9c] sm:$0xf] }
 0x2c0   : > { %v2890_v58 = vadd.f32 %v2889_v63, %v2721_v1  ;;  %v4599_v1 = vor.u32 %v5910_v12, %v4598_v0 }
 0x2c1   : > { %v2722_v61 = vpop.f32.mrf.mxu1 }
 0x2c2   : > { %v3058_v38 = vpop.f32.mrf.mxu3  ;;  %v2723_v30 = vadd.f32 %v2722_v61, %v7786_v53  ;;  %v7788_v61 = vld [vmem:[#allocation7_spill] sm:$0xff] }
 0x2c3   : > { %v3059_v35 = vadd.f32 %v3058_v38, %v2890_v58  ;;  %v7307_v47 = vpop.f32.mrf.mxu0 }
 0x2c4   : > { %7785 = vst [vmem:[#allocation30_spill] sm:$0xff] %v7307_v47 }
 0x2c5   : > { %v7304_v43 = vadd.f32 %v3227_v34, %v3059_v35  ;;  %v4603_v34 = vor.u32 %v5906_v27, %v4600_v32  ;;  %v5913_v32 = vld [vmem:[%s6489_s11 + $0xd4] sm:$0xf]  ;;  %v4630_v27 = vld [vmem:[%s6489_s11 + $0xd8] sm:$0xf] }
 0x2c7   : > { %7784 = vst [vmem:[#allocation5_spill] sm:$0xff] %v7304_v43  ;;  %v2891_v11 = vpop.f32.mrf.mxu2  ;;  %v4632_v43 = vld [vmem:[%s6489_s11 + $0xf8] sm:$0xf0] }
 0x2c8   : > { %v2892_v3 = vadd.f32 %v2891_v11, %v2723_v30 }
 0x2c9   : > { %v2725_v63 = vpop.f32.mrf.mxu1 }
 0x2ca   : > { %v3060_v14 = vpop.f32.mrf.mxu3  ;;  %v2726_v35 = vadd.f32 %v2725_v63, %v7788_v61 }
 0x2cb   : > { %v7315_v58 = vadd.f32 %v3060_v14, %v2892_v3  ;;  %v3232_v38 = vpop.f32.mrf.mxu0  ;;  %v4624_v3 = vld [vmem:[%s6489_s11 + $0xf0] sm:$0xf0]  ;;  %v5918_v14 = vld [vmem:[%s6489_s11 + $0xf4] sm:$0xf0] }
 0x2cc   : > { %3280 = vmatmul.bf16.gmra.mxu1 %v4595_v60  ;;  %3449 = vmatmul.bf16.gmra.mxu2 %v4599_v1  ;;  %v7791_v60 = vld [vmem:[#allocation8_spill] sm:$0xff]  ;;  %v4627_v61 = vor.u32 %v5913_v32, %v4624_v3 }
 0x2cd   : > { %7787 = vst [vmem:[#allocation6_spill] sm:$0xff] %v7315_v58 }
 0x2cf   : > { %3618 = vmatmul.bf16.gmra.mxu3 %v4603_v34  ;;  %v2894_v11 = vpop.f32.mrf.mxu2  ;;  %v5914_v34 = vld [vmem:[%s6489_s11 + $0xdc] sm:$0xf] }
 0x2d0   : > { %v2895_v53 = vadd.f32 %v2894_v11, %v2726_v35  ;;  %v4631_v35 = vor.u32 %v5918_v14, %v4630_v27 }
 0x2d1   : > { %v2727_v6 = vpop.f32.mrf.mxu1 }
 0x2d2   : > { %v3063_v51 = vpop.f32.mrf.mxu3  ;;  %v2728_v1 = vadd.f32 %v2727_v6, %v7791_v60  ;;  %v7793_v6 = vld [vmem:[#allocation9_spill] sm:$0xff] }
 0x2d3   : > { %v3064_v0 = vadd.f32 %v3063_v51, %v2895_v53  ;;  %v7321_v30 = vpop.f32.mrf.mxu0  ;;  %v4635_v53 = vor.u32 %v5914_v34, %v4632_v43  ;;  %v5921_v60 = vld [vmem:[%s6489_s11 + $0x114] sm:$0xf] }
 0x2d4   : > { %7790 = vst [vmem:[#allocation31_spill] sm:$0xff] %v7321_v30  ;;  %v4656_v34 = vld [vmem:[%s6489_s11 + $0x130] sm:$0xf0]  ;;  %v4664_v30 = vld [vmem:[%s6489_s11 + $0x138] sm:$0xf0] }
 0x2d5   : > { %v7318_v12 = vadd.f32 %v3232_v38, %v3064_v0 }
 0x2d7   : > { %7789 = vst [vmem:[#allocation7_spill] sm:$0xff] %v7318_v12  ;;  %v2896_v47 = vpop.f32.mrf.mxu2  ;;  %v5922_v12 = vld [vmem:[%s6489_s11 + $0x11c] sm:$0xf] }
 0x2d8   : > { %v2897_v58 = vadd.f32 %v2896_v47, %v2728_v1  ;;  %v6143_v47 = vld [vmem:[%s7741_s2] sm:$0xff] }
 0x2d9   : > { %v2730_v11 = vpop.f32.mrf.mxu1  ;;  %4071 = vmatpush.bf16.msra.mxu0 %v6143_v47  ;;  %v4659_v47 = vor.u32 %v5921_v60, %v4656_v34 }
 0x2da   : > { %v3065_v63 = vpop.f32.mrf.mxu3  ;;  %v2731_v0 = vadd.f32 %v2730_v11, %v7793_v6 }
 0x2db   : > { %v7329_v38 = vadd.f32 %v3065_v63, %v2897_v58  ;;  %v3237_v51 = vpop.f32.mrf.mxu0  ;;  %v4662_v63 = vld [vmem:[%s6489_s11 + $0x118] sm:$0xf] }
 0x2dc   : > { %3285 = vmatmul.bf16.gmra.mxu1 %v4627_v61  ;;  %3454 = vmatmul.bf16.gmra.mxu2 %v4631_v35  ;;  %v5926_v61 = vld [vmem:[%s6489_s11 + $0x134] sm:$0xf0] }
 0x2dd   : > { %7792 = vst [vmem:[#allocation8_spill] sm:$0xff] %v7329_v38  ;;  %v7796_v35 = vld [vmem:[#allocation10_spill] sm:$0xff] }
 0x2df   : > { %3623 = vmatmul.bf16.gmra.mxu3 %v4635_v53  ;;  %v2899_v32 = vpop.f32.mrf.mxu2 }
 0x2e0   : > { %v2900_v43 = vadd.f32 %v2899_v32, %v2731_v0  ;;  %v4663_v0 = vor.u32 %v5926_v61, %v4662_v63 }
 0x2e1   : > { %v2732_v3 = vpop.f32.mrf.mxu1 }
 0x2e2   : > { %v3068_v58 = vpop.f32.mrf.mxu3  ;;  %v2733_v53 = vadd.f32 %v2732_v3, %v7796_v35  ;;  %v7798_v3 = vld [vmem:[#allocation11_spill] sm:$0xff] }
 0x2e3   : > { %v3069_v27 = vadd.f32 %v3068_v58, %v2900_v43  ;;  %v7338_v1 = vpop.f32.mrf.mxu0 }
 0x2e4   : > { %7795 = vst [vmem:[#allocation32_spill] sm:$0xff] %v7338_v1 }
 0x2e5   : > { %v7335_v14 = vadd.f32 %v3237_v51, %v3069_v27  ;;  %v4667_v51 = vor.u32 %v5922_v12, %v4664_v30  ;;  %v5929_v12 = vld [vmem:[%s6489_s11 + $0x154] sm:$0xf] }
 0x2e7   : > { %7794 = vst [vmem:[#allocation9_spill] sm:$0xff] %v7335_v14  ;;  %v2901_v38 = vpop.f32.mrf.mxu2  ;;  %v4696_v14 = vld [vmem:[%s6489_s11 + $0x178] sm:$0xf0] }
 0x2e8   : > { %v2902_v11 = vadd.f32 %v2901_v38, %v2733_v53  ;;  %v4688_v53 = vld [vmem:[%s6489_s11 + $0x170] sm:$0xf0] }
 0x2e9   : > { %v2735_v32 = vpop.f32.mrf.mxu1 }
 0x2ea   : > { %v3070_v6 = vpop.f32.mrf.mxu3  ;;  %v2736_v27 = vadd.f32 %v2735_v32, %v7798_v3  ;;  %v4691_v3 = vor.u32 %v5929_v12, %v4688_v53 }
 0x2eb   : > { %v7346_v43 = vadd.f32 %v3070_v6, %v2902_v11  ;;  %v3242_v58 = vpop.f32.mrf.mxu0  ;;  %v4694_v11 = vld [vmem:[%s6489_s11 + $0x158] sm:$0xf] }
 0x2ec   : > { %3290 = vmatmul.bf16.gmra.mxu1 %v4659_v47  ;;  %3459 = vmatmul.bf16.gmra.mxu2 %v4663_v0  ;;  %v5934_v6 = vld [vmem:[%s6489_s11 + $0x174] sm:$0xf0]  ;;  %v7801_v47 = vld [vmem:[#allocation12_spill] sm:$0xff] }
 0x2ed   : > { %7797 = vst [vmem:[#allocation10_spill] sm:$0xff] %v7346_v43 }
 0x2ef   : > { %3628 = vmatmul.bf16.gmra.mxu3 %v4667_v51  ;;  %v2904_v38 = vpop.f32.mrf.mxu2  ;;  %v5930_v51 = vld [vmem:[%s6489_s11 + $0x15c] sm:$0xf] }
 0x2f0   : > { %v2905_v35 = vadd.f32 %v2904_v38, %v2736_v27  ;;  %v4695_v27 = vor.u32 %v5934_v6, %v4694_v11 }
 0x2f1   : > { %v2737_v34 = vpop.f32.mrf.mxu1 }
 0x2f2   : > { %v3073_v60 = vpop.f32.mrf.mxu3  ;;  %v2738_v0 = vadd.f32 %v2737_v34, %v7801_v47  ;;  %v7803_v34 = vld [vmem:[#allocation13_spill] sm:$0xff] }
 0x2f3   : > { %v3074_v63 = vadd.f32 %v3073_v60, %v2905_v35  ;;  %v7352_v30 = vpop.f32.mrf.mxu0 }
 0x2f4   : > { %7800 = vst [vmem:[#allocation33_spill] sm:$0xff] %v7352_v30 }
 0x2f5   : > { %v7349_v61 = vadd.f32 %v3242_v58, %v3074_v63  ;;  %v4699_v58 = vor.u32 %v5930_v51, %v4696_v14  ;;  %v5937_v14 = vld [vmem:[%s6489_s11 + $0x194] sm:$0xf]  ;;  %v4726_v51 = vld [vmem:[%s6489_s11 + $0x198] sm:$0xf] }
 0x2f7   : > { %7799 = vst [vmem:[#allocation11_spill] sm:$0xff] %v7349_v61  ;;  %v2906_v1 = vpop.f32.mrf.mxu2  ;;  %v4728_v61 = vld [vmem:[%s6489_s11 + $0x1b8] sm:$0xf0] }
 0x2f8   : > { %v2907_v43 = vadd.f32 %v2906_v1, %v2738_v0 }
 0x2f9   : > { %v2740_v38 = vpop.f32.mrf.mxu1 }
 0x2fa   : > { %v3075_v32 = vpop.f32.mrf.mxu3  ;;  %v2741_v63 = vadd.f32 %v2740_v38, %v7803_v34 }
 0x2fb   : > { %v7360_v35 = vadd.f32 %v3075_v32, %v2907_v43  ;;  %v3247_v60 = vpop.f32.mrf.mxu0  ;;  %v4720_v43 = vld [vmem:[%s6489_s11 + $0x1b0] sm:$0xf0]  ;;  %v5942_v32 = vld [vmem:[%s6489_s11 + $0x1b4] sm:$0xf0] }
 0x2fc   : > { %3295 = vmatmul.bf16.gmra.mxu1 %v4691_v3  ;;  %3464 = vmatmul.bf16.gmra.mxu2 %v4695_v27  ;;  %v7806_v3 = vld [vmem:[#allocation14_spill] sm:$0xff]  ;;  %v4723_v34 = vor.u32 %v5937_v14, %v4720_v43 }
 0x2fd   : > { %7802 = vst [vmem:[#allocation12_spill] sm:$0xff] %v7360_v35 }
 0x2ff   : > { %3633 = vmatmul.bf16.gmra.mxu3 %v4699_v58  ;;  %v2909_v1 = vpop.f32.mrf.mxu2  ;;  %v5938_v58 = vld [vmem:[%s6489_s11 + $0x19c] sm:$0xf] }
 0x300   : > { %v2910_v47 = vadd.f32 %v2909_v1, %v2741_v63  ;;  %v4727_v63 = vor.u32 %v5942_v32, %v4726_v51 }
 0x301   : > { %v2742_v53 = vpop.f32.mrf.mxu1 }
 0x302   : > { %v3078_v12 = vpop.f32.mrf.mxu3  ;;  %v2743_v27 = vadd.f32 %v2742_v53, %v7806_v3  ;;  %v7808_v53 = vld [vmem:[#allocation16_spill] sm:$0xff] }
 0x303   : > { %v3079_v11 = vadd.f32 %v3078_v12, %v2910_v47  ;;  %v7366_v0 = vpop.f32.mrf.mxu0 }
 0x304   : > { %7805 = vst [vmem:[#allocation34_spill] sm:$0xff] %v7366_v0 }
 0x305   : > { %v7363_v6 = vadd.f32 %v3247_v60, %v3079_v11  ;;  %v4731_v60 = vor.u32 %v5938_v58, %v4728_v61  ;;  %v4752_v61 = vld [vmem:[%s6489_s11 + $0x1f0] sm:$0xf0]  ;;  %v4758_v58 = vld [vmem:[%s6489_s11 + $0x1d8] sm:$0xf] }
 0x307   : > { %7804 = vst [vmem:[#allocation13_spill] sm:$0xff] %v7363_v6  ;;  %v2911_v30 = vpop.f32.mrf.mxu2  ;;  %v5946_v6 = vld [vmem:[%s6489_s11 + $0x1dc] sm:$0xf] }
 0x308   : > { %v2912_v35 = vadd.f32 %v2911_v30, %v2743_v27  ;;  %v5945_v27 = vld [vmem:[%s6489_s11 + $0x1d4] sm:$0xf] }
 0x309   : > { %v2745_v1 = vpop.f32.mrf.mxu1 }
 0x30a   : > { %v3080_v38 = vpop.f32.mrf.mxu3  ;;  %v2746_v11 = vadd.f32 %v2745_v1, %v7808_v53  ;;  %v4755_v53 = vor.u32 %v5945_v27, %v4752_v61 }
 0x30b   : > { %v7374_v47 = vadd.f32 %v3080_v38, %v2912_v35  ;;  %v3252_v12 = vpop.f32.mrf.mxu0  ;;  %v5950_v35 = vld [vmem:[%s6489_s11 + $0x1f4] sm:$0xf0] }
 0x30c   : > { %3300 = vmatmul.bf16.gmra.mxu1 %v4723_v34  ;;  %3469 = vmatmul.bf16.gmra.mxu2 %v4727_v63  ;;  %v7810_v38 = vld [vmem:[#allocation18_spill] sm:$0xff] }
 0x30d   : > { %7807 = vst [vmem:[#allocation14_spill] sm:$0xff] %v7374_v47  ;;  %v4760_v63 = vld [vmem:[%s6489_s11 + $0x1f8] sm:$0xf0] }
 0x30f   : > { %3638 = vmatmul.bf16.gmra.mxu3 %v4731_v60  ;;  %v2914_v30 = vpop.f32.mrf.mxu2 }
 0x310   : > { %v2915_v3 = vadd.f32 %v2914_v30, %v2746_v11  ;;  %v4759_v11 = vor.u32 %v5950_v35, %v4758_v58 }
 0x311   : > { %v2747_v43 = vpop.f32.mrf.mxu1 }
 0x312   : > { %v3083_v14 = vpop.f32.mrf.mxu3  ;;  %v2748_v34 = vadd.f32 %v2747_v43, %v7810_v38 }
 0x313   : > { %v3084_v51 = vadd.f32 %v3083_v14, %v2915_v3  ;;  %v7386_v60 = vpop.f32.mrf.mxu0  ;;  %v7813_v14 = vld [vmem:[#allocation20_spill] sm:$0xff] }
 0x314   : > { %7811 = vst [vmem:[#allocation18_spill] sm:$0xff] %v7386_v60 }
 0x315   : > { %v7377_v32 = vadd.f32 %v3252_v12, %v3084_v51  ;;  %v4763_v12 = vor.u32 %v5946_v6, %v4760_v63  ;;  %v4784_v6 = vld [vmem:[%s6489_s11 + $0x230] sm:$0xf0]  ;;  %v4790_v63 = vld [vmem:[%s6489_s11 + $0x218] sm:$0xf] }
 0x317   : > { %7809 = vst [vmem:[#allocation16_spill] sm:$0xff] %v7377_v32  ;;  %v2916_v0 = vpop.f32.mrf.mxu2  ;;  %v5954_v32 = vld [vmem:[%s6489_s11 + $0x21c] sm:$0xf] }
 0x318   : > { %v2917_v47 = vadd.f32 %v2916_v0, %v2748_v34  ;;  %v5953_v34 = vld [vmem:[%s6489_s11 + $0x214] sm:$0xf] }
 0x319   : > { %v2750_v30 = vpop.f32.mrf.mxu1 }
 0x31a   : > { %v3085_v1 = vpop.f32.mrf.mxu3  ;;  %v2751_v43 = vadd.f32 %v2750_v30, %v7813_v14 }
 0x31b   : > { %v7388_v3 = vadd.f32 %v3085_v1, %v2917_v47  ;;  %v3257_v61 = vpop.f32.mrf.mxu0  ;;  %v5958_v47 = vld [vmem:[%s6489_s11 + $0x234] sm:$0xf0] }
 0x31c   : > { %3305 = vmatmul.bf16.gmra.mxu1 %v4755_v53  ;;  %3474 = vmatmul.bf16.gmra.mxu2 %v4759_v11  ;;  %v7815_v1 = vld [vmem:[#allocation22_spill] sm:$0xff] }
 0x31d   : > { %7812 = vst [vmem:[#allocation35_spill] sm:$0xff] %v7388_v3  ;;  %v4792_v11 = vld [vmem:[%s6489_s11 + $0x238] sm:$0xf0]  ;;  %v4822_v3 = vld [vmem:[%s6489_s11 + $0x258] sm:$0xf] }
 0x31f   : > { %3643 = vmatmul.bf16.gmra.mxu3 %v4763_v12  ;;  %v2919_v51 = vpop.f32.mrf.mxu2 }
 0x320   : > { %v2920_v0 = vadd.f32 %v2919_v51, %v2751_v43  ;;  %v4787_v43 = vor.u32 %v5953_v34, %v4784_v6  ;;  %v4791_v51 = vor.u32 %v5958_v47, %v4790_v63  ;;  %v5962_v63 = vld [vmem:[%s6489_s11 + $0x25c] sm:$0xf] }
 0x321   : > { %v2752_v27 = vpop.f32.mrf.mxu1 }
 0x322   : > { %v3088_v38 = vpop.f32.mrf.mxu3  ;;  %v2753_v53 = vadd.f32 %v2752_v27, %v7815_v1 }
 0x323   : > { %v3089_v58 = vadd.f32 %v3088_v38, %v2920_v0  ;;  %v4795_v38 = vor.u32 %v5954_v32, %v4792_v11  ;;  %v4824_v32 = vld [vmem:[%s6489_s11 + $0x278] sm:$0xf0] }
 0x325   : > { %v7391_v35 = vadd.f32 %v3257_v61, %v3089_v58 }
 0x327   : > { %7814 = vst [vmem:[#allocation20_spill] sm:$0xff] %v7391_v35  ;;  %v2921_v12 = vpop.f32.mrf.mxu2  ;;  %v7817_v35 = vld [vmem:[#allocation23_spill] sm:$0xff] }
 0x328   : > { %v2922_v30 = vadd.f32 %v2921_v12, %v2753_v53  ;;  %v5961_v53 = vld [vmem:[%s6489_s11 + $0x254] sm:$0xf] }
 0x329   : > { %v3271_v0 = vpop.f32.mrf.mxu1  ;;  %v4816_v12 = vld [vmem:[%s6489_s11 + $0x270] sm:$0xf0] }
 0x32a   : > { %v3090_v14 = vpop.f32.mrf.mxu3  ;;  %v3272_v60 = vadd.f32 %v3271_v0, %v7817_v35  ;;  %v4827_v35 = vor.u32 %v5962_v63, %v4824_v32  ;;  %v4856_v63 = vld [vmem:[%s6489_s11 + $0x2b8] sm:$0xf0] }
 0x32b   : > { %v7400_v61 = vadd.f32 %v3090_v14, %v2922_v30  ;;  %v4819_v14 = vor.u32 %v5961_v53, %v4816_v12  ;;  %v5969_v53 = vld [vmem:[%s6489_s11 + $0x294] sm:$0xf]  ;;  %v5974_v12 = vld [vmem:[%s6489_s11 + $0x2b4] sm:$0xf0] }
 0x32c   : > { %3310 = vmatmul.bf16.gmra.mxu1 %v4787_v43  ;;  %3479 = vmatmul.bf16.gmra.mxu2 %v4791_v51  ;;  %v4823_v43 = vor.u32 %v5966_v55, %v4822_v3  ;;  %v4848_v55 = vld [vmem:[%s6489_s11 + $0x2b0] sm:$0xf0]  ;;  %v4854_v3 = vld [vmem:[%s6489_s11 + $0x298] sm:$0xf] }
 0x32d   : > { %7816 = vst [vmem:[#allocation22_spill] sm:$0xff] %v7400_v61 }
 0x32f   : > { %3648 = vmatmul.bf16.gmra.mxu3 %v4795_v38  ;;  %v3440_v27 = vpop.f32.mrf.mxu2 }
 0x330   : > { %v3441_v34 = vadd.f32 %v3440_v27, %v3272_v60 }
 0x331   : > { %v3273_v1 = vpop.f32.mrf.mxu1 }
 0x332   : > { %v3609_v58 = vpop.f32.mrf.mxu3  ;;  %v3274_v6 = vadd.f32 %v3273_v1, %v6897_v42 }
 0x333   : > { %v3610_v0 = vadd.f32 %v3609_v58, %v3441_v34  ;;  %v5970_v34 = vld [vmem:[%s6489_s11 + $0x29c] sm:$0xf] }
 0x337   : > { %v3442_v47 = vpop.f32.mrf.mxu2 }
 0x338   : > { %v3443_v11 = vadd.f32 %v3442_v47, %v3274_v6 }
 0x339   : > { %v3276_v51 = vpop.f32.mrf.mxu1 }
 0x33a   : > { %v3611_v30 = vpop.f32.mrf.mxu3  ;;  %v3277_v1 = vadd.f32 %v3276_v51, %v6899_v15  ;;  %v4859_v15 = vor.u32 %v5970_v34, %v4856_v63 }
 0x33b   : > { %v3612_v38 = vadd.f32 %v3611_v30, %v3443_v11  ;;  %v4851_v30 = vor.u32 %v5969_v53, %v4848_v55  ;;  %v4886_v53 = vld [vmem:[%s6489_s11 + $0x2d8] sm:$0xf] }
 0x33c   : > { %3315 = vmatmul.bf16.gmra.mxu1 %v4819_v14  ;;  %3484 = vmatmul.bf16.gmra.mxu2 %v4823_v43  ;;  %v5982_v55 = vld [vmem:[%s6489_s11 + $0x2f4] sm:$0xf0] }
 0x33d   : > { %v3964_v61 = vpack.c.bf16 %v3612_v38, %v3610_v0 }
 0x33f   : > { %3653 = vmatmul.bf16.gmra.mxu3 %v4827_v35  ;;  %4072 = vmatmul.bf16.vlgmr.msra.gmra.mxu0 %v3964_v61  ;;  %v3445_v42 = vpop.f32.mrf.mxu2  ;;  %v4855_v61 = vor.u32 %v5974_v12, %v4854_v3  ;;  %v5978_v12 = vld [vmem:[%s6489_s11 + $0x2dc] sm:$0xf] }
 0x340   : > { %v3446_v6 = vadd.f32 %v3445_v42, %v3277_v1  ;;  %v4880_v1 = vld [vmem:[%s6489_s11 + $0x2f0] sm:$0xf0] }
 0x341   : > { %v3278_v27 = vpop.f32.mrf.mxu1 }
 0x342   : > { %v3614_v60 = vpop.f32.mrf.mxu3  ;;  %v3279_v58 = vadd.f32 %v3278_v27, %v6911_v7  ;;  %v5977_v27 = vld [vmem:[%s6489_s11 + $0x2d4] sm:$0xf] }
 0x343   : > { %v3615_v43 = vadd.f32 %v3614_v60, %v3446_v6  ;;  %v4888_v6 = vld [vmem:[%s6489_s11 + $0x2f8] sm:$0xf0] }
 0x347   : > { %v3447_v32 = vpop.f32.mrf.mxu2 }
 0x348   : > { %v3448_v47 = vadd.f32 %v3447_v32, %v3279_v58  ;;  %v4883_v32 = vor.u32 %v5977_v27, %v4880_v1  ;;  %v5986_v1 = vld [vmem:[%s6489_s11 + $0x31c] sm:$0xf] }
 0x349   : > { %v3281_v14 = vpop.f32.mrf.mxu1 }
 0x34a   : > { %v3616_v11 = vpop.f32.mrf.mxu3  ;;  %v3282_v42 = vadd.f32 %v3281_v14, %v6922_v31  ;;  %v4891_v31 = vor.u32 %v5978_v12, %v4888_v6 }
 0x34b   : > { %v3617_v51 = vadd.f32 %v3616_v11, %v3448_v47  ;;  %v4887_v47 = vor.u32 %v5982_v55, %v4886_v53  ;;  %v4920_v53 = vld [vmem:[%s6489_s11 + $0x338] sm:$0xf0] }
 0x34c   : > { %3320 = vmatmul.bf16.gmra.mxu1 %v4851_v30  ;;  %3489 = vmatmul.bf16.gmra.mxu2 %v4855_v61 }
 0x34d   : > { %v3965_v35 = vpack.c.bf16 %v3617_v51, %v3615_v43 }
 0x34f   : > { %3658 = vmatmul.bf16.gmra.mxu3 %v4859_v15  ;;  %4077 = vmatmul.bf16.gmra.mxu0 %v3965_v35  ;;  %v3450_v7 = vpop.f32.mrf.mxu2  ;;  %v5985_v35 = vld [vmem:[%s6489_s11 + $0x314] sm:$0xf] }
 0x350   : > { %v3451_v3 = vadd.f32 %v3450_v7, %v3282_v42  ;;  %v4912_v7 = vld [vmem:[%s6489_s11 + $0x330] sm:$0xf0]  ;;  %v5990_v42 = vld [vmem:[%s6489_s11 + $0x334] sm:$0xf0] }
 0x351   : > { %v3283_v38 = vpop.f32.mrf.mxu1  ;;  %v4915_v12 = vor.u32 %v5985_v35, %v4912_v7  ;;  %v4952_v35 = vld [vmem:[%s6489_s11 + $0x378] sm:$0xf0] }
 0x352   : > { %v3619_v0 = vpop.f32.mrf.mxu3  ;;  %v3284_v60 = vadd.f32 %v3283_v38, %v6934_v46  ;;  %v4918_v38 = vld [vmem:[%s6489_s11 + $0x318] sm:$0xf] }
 0x353   : > { %v3620_v30 = vadd.f32 %v3619_v0, %v3451_v3  ;;  %v4919_v6 = vor.u32 %v5990_v42, %v4918_v38 }
 0x357   : > { %v3452_v58 = vpop.f32.mrf.mxu2 }
 0x358   : > { %v3453_v34 = vadd.f32 %v3452_v58, %v3284_v60 }
 0x359   : > { %v3286_v11 = vpop.f32.mrf.mxu1 }
 0x35a   : > { %v3621_v63 = vpop.f32.mrf.mxu3  ;;  %v3287_v51 = vadd.f32 %v3286_v11, %v6939_v17  ;;  %v4923_v17 = vor.u32 %v5986_v1, %v4920_v53 }
 0x35b   : > { %v3622_v61 = vadd.f32 %v3621_v63, %v3453_v34 }
 0x35c   : > { %3325 = vmatmul.bf16.gmra.mxu1 %v4883_v32  ;;  %3494 = vmatmul.bf16.gmra.mxu2 %v4887_v47 }
 0x35d   : > { %v3966_v14 = vpack.c.bf16 %v3622_v61, %v3620_v30  ;;  %v5993_v30 = vld [vmem:[%s6489_s11 + $0x354] sm:$0xf] }
 0x35e   : > { %v4944_v61 = vld [vmem:[%s6489_s11 + $0x370] sm:$0xf0] }
 0x35f   : > { %3663 = vmatmul.bf16.gmra.mxu3 %v4891_v31  ;;  %4082 = vmatmul.bf16.gmra.mxu0 %v3966_v14  ;;  %v3455_v46 = vpop.f32.mrf.mxu2  ;;  %v4950_v14 = vld [vmem:[%s6489_s11 + $0x358] sm:$0xf] }
 0x360   : > { %v3456_v27 = vadd.f32 %v3455_v46, %v3287_v51  ;;  %v5998_v46 = vld [vmem:[%s6489_s11 + $0x374] sm:$0xf0]  ;;  %v5994_v51 = vld [vmem:[%s6489_s11 + $0x35c] sm:$0xf] }
 0x361   : > { %v3288_v43 = vpop.f32.mrf.mxu1 }
 0x362   : > { %v3624_v15 = vpop.f32.mrf.mxu3  ;;  %v3289_v0 = vadd.f32 %v3288_v43, %v6951_v13 }
 0x363   : > { %v3625_v34 = vadd.f32 %v3624_v15, %v3456_v27  ;;  %v4947_v27 = vor.u32 %v5993_v30, %v4944_v61 }
 0x367   : > { %v3457_v55 = vpop.f32.mrf.mxu2 }
 0x368   : > { %v3458_v3 = vadd.f32 %v3457_v55, %v3289_v0  ;;  %v4951_v0 = vor.u32 %v5998_v46, %v4950_v14 }
 0x369   : > { %v3291_v58 = vpop.f32.mrf.mxu1 }
 0x36a   : > { %v3626_v60 = vpop.f32.mrf.mxu3  ;;  %v3292_v31 = vadd.f32 %v3291_v58, %v6953_v44  ;;  %v4955_v44 = vor.u32 %v5994_v51, %v4952_v35  ;;  %v6001_v58 = vld [vmem:[%s6489_s11 + $0x394] sm:$0xf] }
 0x36b   : > { %v3627_v63 = vadd.f32 %v3626_v60, %v3458_v3 }
 0x36c   : > { %3330 = vmatmul.bf16.gmra.mxu1 %v4915_v12  ;;  %3499 = vmatmul.bf16.gmra.mxu2 %v4919_v6 }
 0x36d   : > { %v3967_v32 = vpack.c.bf16 %v3627_v63, %v3625_v34  ;;  %v4982_v34 = vld [vmem:[%s6489_s11 + $0x398] sm:$0xf] }
 0x36e   : > { %v6006_v63 = vld [vmem:[%s6489_s11 + $0x3b4] sm:$0xf0] }
 0x36f   : > { %3668 = vmatmul.bf16.gmra.mxu3 %v4923_v17  ;;  %4087 = vmatmul.bf16.gmra.mxu0 %v3967_v32  ;;  %v3460_v13 = vpop.f32.mrf.mxu2  ;;  %v4976_v17 = vld [vmem:[%s6489_s11 + $0x3b0] sm:$0xf0]  ;;  %v4983_v46 = vor.u32 %v6006_v63, %v4982_v34 }
 0x370   : > { %v3461_v43 = vadd.f32 %v3460_v13, %v3292_v31  ;;  %v4979_v14 = vor.u32 %v6001_v58, %v4976_v17 }
 0x371   : > { %v3293_v11 = vpop.f32.mrf.mxu1 }
 0x372   : > { %v3629_v47 = vpop.f32.mrf.mxu3  ;;  %v3294_v15 = vadd.f32 %v3293_v11, %v6965_v49  ;;  %v4984_v11 = vld [vmem:[%s6489_s11 + $0x3b8] sm:$0xf0] }
 0x373   : > { %v3630_v53 = vadd.f32 %v3629_v47, %v3461_v43  ;;  %v6002_v47 = vld [vmem:[%s6489_s11 + $0x39c] sm:$0xf] }
 0x377   : > { %v3462_v7 = vpop.f32.mrf.mxu2 }
 0x378   : > { %v3463_v38 = vadd.f32 %v3462_v7, %v3294_v15 }
 0x379   : > { %v3296_v1 = vpop.f32.mrf.mxu1 }
 0x37a   : > { %v3631_v42 = vpop.f32.mrf.mxu3  ;;  %v3297_v6 = vadd.f32 %v3296_v1, %v6967_v56  ;;  %v4987_v56 = vor.u32 %v6002_v47, %v4984_v11  ;;  %v5014_v1 = vld [vmem:[%s6489_s11 + $0x3d8] sm:$0xf] }
 0x37b   : > { %v3632_v55 = vadd.f32 %v3631_v42, %v3463_v38 }
 0x37c   : > { %3335 = vmatmul.bf16.gmra.mxu1 %v4947_v27  ;;  %3504 = vmatmul.bf16.gmra.mxu2 %v4951_v0  ;;  %v6009_v27 = vld [vmem:[%s6489_s11 + $0x3d4] sm:$0xf] }
 0x37d   : > { %v3968_v3 = vpack.c.bf16 %v3632_v55, %v3630_v53  ;;  %v5008_v0 = vld [vmem:[%s6489_s11 + $0x3f0] sm:$0xf0] }
 0x37e   : > { %v5011_v58 = vor.u32 %v6009_v27, %v5008_v0 }
 0x37f   : > { %3673 = vmatmul.bf16.gmra.mxu3 %v4955_v44  ;;  %4092 = vmatmul.bf16.gmra.mxu0 %v3968_v3  ;;  %v3465_v49 = vpop.f32.mrf.mxu2  ;;  %v6014_v44 = vld [vmem:[%s6489_s11 + $0x3f4] sm:$0xf0]  ;;  %v6010_v3 = vld [vmem:[%s6489_s11 + $0x3dc] sm:$0xf] }
 0x380   : > { %v3466_v32 = vadd.f32 %v3465_v49, %v3297_v6  ;;  %v5016_v49 = vld [vmem:[%s6489_s11 + $0x3f8] sm:$0xf0]  ;;  %v5015_v17 = vor.u32 %v6014_v44, %v5014_v1 }
 0x381   : > { %v3298_v12 = vpop.f32.mrf.mxu1 }
 0x382   : > { %v3634_v60 = vpop.f32.mrf.mxu3  ;;  %v3299_v13 = vadd.f32 %v3298_v12, %v6979_v23 }
 0x383   : > { %v3635_v15 = vadd.f32 %v3634_v60, %v3466_v32 }
 0x387   : > { %v3467_v31 = vpop.f32.mrf.mxu2 }
 0x388   : > { %v3468_v30 = vadd.f32 %v3467_v31, %v3299_v13 }
 0x389   : > { %v3301_v43 = vpop.f32.mrf.mxu1 }
 0x38a   : > { %v3636_v61 = vpop.f32.mrf.mxu3  ;;  %v3302_v42 = vadd.f32 %v3301_v43, %v6990_v28  ;;  %v5019_v28 = vor.u32 %v6010_v3, %v5016_v49  ;;  %v7466_v3 = vpop.f32.mrf.mxu0 }
 0x38b   : > { %v3637_v51 = vadd.f32 %v3636_v61, %v3468_v30  ;;  %v6017_v30 = vld [vmem:[%s6489_s11 + $0x414] sm:$0xf] }
 0x38c   : > { %3340 = vmatmul.bf16.gmra.mxu1 %v4979_v14  ;;  %3509 = vmatmul.bf16.gmra.mxu2 %v4983_v46  ;;  %v5040_v61 = vld [vmem:[%s6489_s11 + $0x430] sm:$0xf0]  ;;  %v5046_v14 = vld [vmem:[%s6489_s11 + $0x418] sm:$0xf] }
 0x38d   : > { %v3969_v35 = vpack.c.bf16 %v3637_v51, %v3635_v15  ;;  %v6022_v46 = vld [vmem:[%s6489_s11 + $0x434] sm:$0xf0]  ;;  %v6018_v15 = vld [vmem:[%s6489_s11 + $0x41c] sm:$0xf] }
 0x38e   : > { %v5048_v51 = vld [vmem:[%s6489_s11 + $0x438] sm:$0xf0] }
 0x38f   : > { %3678 = vmatmul.bf16.gmra.mxu3 %v4987_v56  ;;  %4097 = vmatmul.bf16.gmra.mxu0 %v3969_v35  ;;  %v3470_v23 = vpop.f32.mrf.mxu2  ;;  %v5051_v0 = vor.u32 %v6018_v15, %v5048_v51 }
 0x390   : > { %v3471_v53 = vadd.f32 %v3470_v23, %v3302_v42  ;;  %v5047_v42 = vor.u32 %v6022_v46, %v5046_v14 }
 0x391   : > { %v3303_v38 = vpop.f32.mrf.mxu1 }
 0x392   : > { %v3639_v7 = vpop.f32.mrf.mxu3  ;;  %v3304_v55 = vadd.f32 %v3303_v38, %v7002_v33  ;;  %v5043_v38 = vor.u32 %v6017_v30, %v5040_v61 }
 0x393   : > { %v3640_v63 = vadd.f32 %v3639_v7, %v3471_v53 }
 0x397   : > { %v3472_v60 = vpop.f32.mrf.mxu2 }
 0x398   : > { %v3473_v12 = vadd.f32 %v3472_v60, %v3304_v55  ;;  %v6025_v60 = vld [vmem:[%s6489_s11 + $0x454] sm:$0xf] }
 0x399   : > { %v3306_v34 = vpop.f32.mrf.mxu1 }
 0x39a   : > { %v3641_v6 = vpop.f32.mrf.mxu3  ;;  %v3307_v31 = vadd.f32 %v3306_v34, %v7007_v54 }
 0x39b   : > { %v3642_v32 = vadd.f32 %v3641_v6, %v3473_v12  ;;  %v5072_v12 = vld [vmem:[%s6489_s11 + $0x470] sm:$0xf0]  ;;  %v5078_v6 = vld [vmem:[%s6489_s11 + $0x458] sm:$0xf] }
 0x39c   : > { %3345 = vmatmul.bf16.gmra.mxu1 %v5011_v58  ;;  %3514 = vmatmul.bf16.gmra.mxu2 %v5015_v17  ;;  %v6030_v58 = vld [vmem:[%s6489_s11 + $0x474] sm:$0xf0] }
 0x39d   : > { %v3970_v13 = vpack.c.bf16 %v3642_v32, %v3640_v63  ;;  %v5080_v63 = vld [vmem:[%s6489_s11 + $0x478] sm:$0xf0] }
 0x39f   : > { %3683 = vmatmul.bf16.gmra.mxu3 %v5019_v28  ;;  %4102 = vmatmul.bf16.gmra.mxu0 %v3970_v13  ;;  %v3475_v33 = vpop.f32.mrf.mxu2  ;;  %v6026_v28 = vld [vmem:[%s6489_s11 + $0x45c] sm:$0xf] }
 0x3a0   : > { %v3476_v43 = vadd.f32 %v3475_v33, %v3307_v31  ;;  %v5083_v30 = vor.u32 %v6026_v28, %v5080_v63 }
 0x3a1   : > { %v3308_v11 = vpop.f32.mrf.mxu1 }
 0x3a2   : > { %v3644_v47 = vpop.f32.mrf.mxu3  ;;  %v3309_v56 = vadd.f32 %v3308_v11, %v7018_v29  ;;  %v5079_v11 = vor.u32 %v6030_v58, %v5078_v6 }
 0x3a3   : > { %v3645_v54 = vadd.f32 %v3644_v47, %v3476_v43  ;;  %v5075_v47 = vor.u32 %v6025_v60, %v5072_v12 }
 0x3a7   : > { %v3477_v35 = vpop.f32.mrf.mxu2 }
 0x3a8   : > { %v3478_v23 = vadd.f32 %v3477_v35, %v3309_v56 }
 0x3a9   : > { %v3311_v27 = vpop.f32.mrf.mxu1 }
 0x3aa   : > { %v3646_v7 = vpop.f32.mrf.mxu3  ;;  %v3312_v49 = vadd.f32 %v3311_v27, %v7021_v9  ;;  %v5110_v27 = vld [vmem:[%s6489_s11 + $0x498] sm:$0xf] }
 0x3ab   : > { %v3647_v1 = vadd.f32 %v3646_v7, %v3478_v23 }
 0x3ac   : > { %3350 = vmatmul.bf16.gmra.mxu1 %v5043_v38  ;;  %3519 = vmatmul.bf16.gmra.mxu2 %v5047_v42  ;;  %v6033_v38 = vld [vmem:[%s6489_s11 + $0x494] sm:$0xf] }
 0x3ad   : > { %v3971_v44 = vpack.c.bf16 %v3647_v1, %v3645_v54  ;;  %v5104_v42 = vld [vmem:[%s6489_s11 + $0x4b0] sm:$0xf0] }
 0x3ae   : > { %v5107_v6 = vor.u32 %v6033_v38, %v5104_v42 }
 0x3af   : > { %3688 = vmatmul.bf16.gmra.mxu3 %v5051_v0  ;;  %4107 = vmatmul.bf16.gmra.mxu0 %v3971_v44  ;;  %v3480_v29 = vpop.f32.mrf.mxu2  ;;  %v6038_v0 = vld [vmem:[%s6489_s11 + $0x4b4] sm:$0xf0] }
 0x3b0   : > { %v3481_v17 = vadd.f32 %v3480_v29, %v3312_v49  ;;  %v5111_v58 = vor.u32 %v6038_v0, %v5110_v27 }
 0x3b1   : > { %v3313_v55 = vpop.f32.mrf.mxu1 }
 0x3b2   : > { %v3649_v53 = vpop.f32.mrf.mxu3  ;;  %v3314_v34 = vadd.f32 %v3313_v55, %v7032_v24  ;;  %v7479_v24 = vld [vmem:[%s7742_s3] ss:$0 sm:$0xff]  ;;  %v5112_v55 = vld [vmem:[%s6489_s11 + $0x4b8] sm:$0xf0] }
 0x3b3   : > { %v3650_v61 = vadd.f32 %v3649_v53, %v3481_v17  ;;  %v6034_v53 = vld [vmem:[%s6489_s11 + $0x49c] sm:$0xf] }
 0x3b7   : > { %v3482_v32 = vpop.f32.mrf.mxu2 }
 0x3b8   : > { %v3483_v13 = vadd.f32 %v3482_v32, %v3314_v34  ;;  %v5115_v34 = vor.u32 %v6034_v53, %v5112_v55 }
 0x3b9   : > { %v3316_v31 = vpop.f32.mrf.mxu1 }
 0x3ba   : > { %v3651_v33 = vpop.f32.mrf.mxu3  ;;  %v3317_v23 = vadd.f32 %v3316_v31, %v7035_v62 }
 0x3bb   : > { %v3652_v14 = vadd.f32 %v3651_v33, %v3483_v13 }
 0x3bc   : > { %v4073_v9 = vpop.f32.mrf.mxu0  ;;  %3355 = vmatmul.bf16.gmra.mxu1 %v5075_v47  ;;  %3524 = vmatmul.bf16.gmra.mxu2 %v5079_v11 }
 0x3bd   : > { %v3972_v46 = vpack.c.bf16 %v3652_v14, %v3650_v61  ;;  %v4074_v51 = vadd.f32 %v7479_v24, %v4073_v9  ;;  %v6041_v14 = vld [vmem:[%s6489_s11 + $0x4d4] sm:$0xf] }
 0x3be   : > { %v5136_v9 = vld [vmem:[%s6489_s11 + $0x4f0] sm:$0xf0] }
 0x3bf   : > { %3693 = vmatmul.bf16.gmra.mxu3 %v5083_v30  ;;  %4112 = vmatmul.bf16.gmra.mxu0 %v3972_v46  ;;  %v3485_v43 = vpop.f32.mrf.mxu2  ;;  %v4233_v54 = vmax.f32 %v4074_v51, 0.0  ;;  %v5142_v46 = vld [vmem:[%s6489_s11 + $0x4d8] sm:$0xf] }
 0x3c0   : > { %v3486_v1 = vadd.f32 %v3485_v43, %v3317_v23  ;;  %v6046_v43 = vld [vmem:[%s6489_s11 + $0x4f4] sm:$0xf0]  ;;  %v6042_v23 = vld [vmem:[%s6489_s11 + $0x4dc] sm:$0xf] }
 0x3c1   : > { %v3318_v15 = vpop.f32.mrf.mxu1 }
 0x3c2   : > { %v3654_v56 = vpop.f32.mrf.mxu3  ;;  %v3319_v44 = vadd.f32 %v3318_v15, %v7046_v22 }
 0x3c3   : > { %v3655_v28 = vadd.f32 %v3654_v56, %v3486_v1 }
 0x3c4   : > { %v4075_v35 = vpop.f32.mrf.mxu0 }
 0x3c5   : > { %v4076_v7 = vadd.f32 %v7479_v24, %v4075_v35 }
 0x3c7   : > { %v4234_v29 = vmax.f32 %v4076_v7, 0.0  ;;  %v3487_v62 = vpop.f32.mrf.mxu2  ;;  %v5144_v7 = vld [vmem:[%s6489_s11 + $0x4f8] sm:$0xf0] }
 0x3c8   : > { %v3488_v60 = vadd.f32 %v3487_v62, %v3319_v44  ;;  %v5147_v44 = vor.u32 %v6042_v23, %v5144_v7 }
 0x3c9   : > { %v6154_v49 = vpack.c.bf16 %v4234_v29, %v4233_v54  ;;  %v3321_v17 = vpop.f32.mrf.mxu1  ;;  %v5139_v54 = vor.u32 %v6041_v14, %v5136_v9 }
 0x3ca   : > { %v3656_v12 = vpop.f32.mrf.mxu3  ;;  %v3322_v30 = vadd.f32 %v3321_v17, %v7058_v39  ;;  %v5143_v39 = vor.u32 %v6046_v43, %v5142_v46 }
 0x3cb   : > { %6155 = vst [vmem:[%s7495_s24] sm:$0xff] %v6154_v49   ;;  %v3657_v22 = vadd.f32 %v3656_v12, %v3488_v60 }
 0x3cc   : > { %v4078_v63 = vpop.f32.mrf.mxu0  ;;  %3360 = vmatmul.bf16.gmra.mxu1 %v5107_v6  ;;  %3529 = vmatmul.bf16.gmra.mxu2 %v5111_v58 }
 0x3cd   : > { %v3973_v32 = vpack.c.bf16 %v3657_v22, %v3655_v28  ;;  %v4079_v11 = vadd.f32 %v7479_v24, %v4078_v63  ;;  %v5168_v28 = vld [vmem:[%s6489_s11 + $0x530] sm:$0xf0]  ;;  %v5174_v22 = vld [vmem:[%s6489_s11 + $0x518] sm:$0xf] }
 0x3ce   : > { %v6054_v63 = vld [vmem:[%s6489_s11 + $0x534] sm:$0xf0] }
 0x3cf   : > { %3698 = vmatmul.bf16.gmra.mxu3 %v5115_v34  ;;  %4117 = vmatmul.bf16.gmra.mxu0 %v3973_v32  ;;  %v3490_v13 = vpop.f32.mrf.mxu2  ;;  %v4235_v56 = vmax.f32 %v4079_v11, 0.0  ;;  %v6049_v34 = vld [vmem:[%s6489_s11 + $0x514] sm:$0xf]  ;;  %v6050_v11 = vld [vmem:[%s6489_s11 + $0x51c] sm:$0xf] }
 0x3d0   : > { %v3491_v15 = vadd.f32 %v3490_v13, %v3322_v30  ;;  %v5171_v46 = vor.u32 %v6049_v34, %v5168_v28 }
 0x3d1   : > { %v3323_v47 = vpop.f32.mrf.mxu1 }
 0x3d2   : > { %v3659_v33 = vpop.f32.mrf.mxu3  ;;  %v3324_v51 = vadd.f32 %v3323_v47, %v7069_v48 }
 0x3d3   : > { %v3660_v29 = vadd.f32 %v3659_v33, %v3491_v15 }
 0x3d4   : > { %v4080_v31 = vpop.f32.mrf.mxu0 }
 0x3d5   : > { %v4081_v61 = vadd.f32 %v7479_v24, %v4080_v31  ;;  %v5176_v31 = vld [vmem:[%s6489_s11 + $0x538] sm:$0xf0] }
 0x3d7   : > { %v4236_v35 = vmax.f32 %v4081_v61, 0.0  ;;  %v3492_v38 = vpop.f32.mrf.mxu2 }
 0x3d8   : > { %v3493_v27 = vadd.f32 %v3492_v38, %v3324_v51 }
 0x3d9   : > { %v6159_v42 = vpack.c.bf16 %v4236_v35, %v4235_v56  ;;  %v3326_v1 = vpop.f32.mrf.mxu1  ;;  %v5179_v56 = vor.u32 %v6050_v11, %v5176_v31 }
 0x3da   : > { %v3661_v0 = vpop.f32.mrf.mxu3  ;;  %v3327_v58 = vadd.f32 %v3326_v1, %v7075_v50  ;;  %v5175_v50 = vor.u32 %v6054_v63, %v5174_v22  ;;  %v5200_v1 = vld [vmem:[%s6489_s11 + $0x570] sm:$0xf0] }
 0x3db   : > { %6311 = vst [vmem:[%s7495_s24 + $0x8] sm:$0xff] %v6159_v42   ;;  %v3662_v53 = vadd.f32 %v3661_v0, %v3493_v27 }
 0x3dc   : > { %v4083_v55 = vpop.f32.mrf.mxu0  ;;  %3365 = vmatmul.bf16.gmra.mxu1 %v5139_v54  ;;  %3534 = vmatmul.bf16.gmra.mxu2 %v5143_v39  ;;  %v6057_v39 = vld [vmem:[%s6489_s11 + $0x554] sm:$0xf] }
 0x3dd   : > { %v3974_v48 = vpack.c.bf16 %v3662_v53, %v3660_v29  ;;  %v4084_v12 = vadd.f32 %v7479_v24, %v4083_v55  ;;  %v6062_v29 = vld [vmem:[%s6489_s11 + $0x574] sm:$0xf0]  ;;  %v5203_v34 = vor.u32 %v6057_v39, %v5200_v1 }
 0x3df   : > { %3703 = vmatmul.bf16.gmra.mxu3 %v5147_v44  ;;  %4122 = vmatmul.bf16.gmra.mxu0 %v3974_v48  ;;  %v3495_v62 = vpop.f32.mrf.mxu2  ;;  %v4237_v32 = vmax.f32 %v4084_v12, 0.0  ;;  %v5206_v44 = vld [vmem:[%s6489_s11 + $0x558] sm:$0xf] }
 0x3e0   : > { %v3496_v13 = vadd.f32 %v3495_v62, %v3327_v58 }
 0x3e1   : > { %v3328_v60 = vpop.f32.mrf.mxu1 }
 0x3e2   : > { %v3664_v49 = vpop.f32.mrf.mxu3  ;;  %v3329_v33 = vadd.f32 %v3328_v60, %v7086_v2  ;;  %v5208_v60 = vld [vmem:[%s6489_s11 + $0x578] sm:$0xf0] }
 0x3e3   : > { %v3665_v15 = vadd.f32 %v3664_v49, %v3496_v13  ;;  %v6058_v49 = vld [vmem:[%s6489_s11 + $0x55c] sm:$0xf] }
 0x3e4   : > { %v4085_v6 = vpop.f32.mrf.mxu0  ;;  %v5211_v22 = vor.u32 %v6058_v49, %v5208_v60 }
 0x3e5   : > { %v4086_v17 = vadd.f32 %v7479_v24, %v4085_v6 }
 0x3e7   : > { %v4238_v47 = vmax.f32 %v4086_v17, 0.0  ;;  %v3497_v30 = vpop.f32.mrf.mxu2 }
 0x3e8   : > { %v3498_v14 = vadd.f32 %v3497_v30, %v3329_v33 }
 0x3e9   : > { %v6164_v61 = vpack.c.bf16 %v4238_v47, %v4237_v32  ;;  %v3331_v43 = vpop.f32.mrf.mxu1 }
 0x3ea   : > { %v3666_v9 = vpop.f32.mrf.mxu3  ;;  %v3332_v0 = vadd.f32 %v3331_v43, %v7089_v37  ;;  %v5207_v37 = vor.u32 %v6062_v29, %v5206_v44  ;;  %v6070_v43 = vld [vmem:[%s6489_s11 + $0x5b4] sm:$0xf0] }
 0x3eb   : > { %6312 = vst [vmem:[%s7495_s24 + $0x10] sm:$0xff] %v6164_v61   ;;  %v3667_v51 = vadd.f32 %v3666_v9, %v3498_v14  ;;  %v6065_v9 = vld [vmem:[%s6489_s11 + $0x594] sm:$0xf] }
 0x3ec   : > { %v4088_v35 = vpop.f32.mrf.mxu0  ;;  %3370 = vmatmul.bf16.gmra.mxu1 %v5171_v46  ;;  %3539 = vmatmul.bf16.gmra.mxu2 %v5175_v50  ;;  %v5232_v46 = vld [vmem:[%s6489_s11 + $0x5b0] sm:$0xf0]  ;;  %v5238_v50 = vld [vmem:[%s6489_s11 + $0x598] sm:$0xf] }
 0x3ed   : > { %v3975_v2 = vpack.c.bf16 %v3667_v51, %v3665_v15  ;;  %v4089_v42 = vadd.f32 %v7479_v24, %v4088_v35 }
 0x3ef   : > { %3708 = vmatmul.bf16.gmra.mxu3 %v5179_v56  ;;  %4127 = vmatmul.bf16.gmra.mxu0 %v3975_v2  ;;  %v3500_v23 = vpop.f32.mrf.mxu2  ;;  %v4239_v53 = vmax.f32 %v4089_v42, 0.0  ;;  %v6066_v2 = vld [vmem:[%s6489_s11 + $0x59c] sm:$0xf] }
 0x3f0   : > { %v3501_v55 = vadd.f32 %v3500_v23, %v3332_v0  ;;  %v5240_v23 = vld [vmem:[%s6489_s11 + $0x5b8] sm:$0xf0]  ;;  %v5235_v0 = vor.u32 %v6065_v9, %v5232_v46 }
 0x3f1   : > { %v3333_v38 = vpop.f32.mrf.mxu1  ;;  %v5243_v39 = vor.u32 %v6066_v2, %v5240_v23  ;;  %v6081_v23 = vld [vmem:[%s6489_s11 + $0x614] sm:$0xf] }
 0x3f2   : > { %v3669_v7 = vpop.f32.mrf.mxu3  ;;  %v3334_v48 = vadd.f32 %v3333_v38, %v7100_v8 }
 0x3f3   : > { %v3670_v63 = vadd.f32 %v3669_v7, %v3501_v55 }
 0x3f4   : > { %v4090_v27 = vpop.f32.mrf.mxu0 }
 0x3f5   : > { %v4091_v54 = vadd.f32 %v7479_v24, %v4090_v27 }
 0x3f7   : > { %v4240_v62 = vmax.f32 %v4091_v54, 0.0  ;;  %v3502_v12 = vpop.f32.mrf.mxu2 }
 0x3f8   : > { %v3503_v58 = vadd.f32 %v3502_v12, %v3334_v48 }
 0x3f9   : > { %v6169_v6 = vpack.c.bf16 %v4240_v62, %v4239_v53  ;;  %v3336_v28 = vpop.f32.mrf.mxu1 }
 0x3fa   : > { %v3671_v17 = vpop.f32.mrf.mxu3  ;;  %v3337_v61 = vadd.f32 %v3336_v28, %v7103_v19  ;;  %v5239_v19 = vor.u32 %v6070_v43, %v5238_v50 }
 0x3fb   : > { %6313 = vst [vmem:[%s7495_s24 + $0x18] sm:$0xff] %v6169_v6   ;;  %v3672_v32 = vadd.f32 %v3671_v17, %v3503_v58  ;;  %v6073_v6 = vld [vmem:[%s6489_s11 + $0x5d4] sm:$0xf]  ;;  %v5270_v17 = vld [vmem:[%s6489_s11 + $0x5d8] sm:$0xf] }
 0x3fc   : > { %v4093_v13 = vpop.f32.mrf.mxu0  ;;  %3375 = vmatmul.bf16.gmra.mxu1 %v5203_v34  ;;  %3544 = vmatmul.bf16.gmra.mxu2 %v5207_v37  ;;  %v5264_v58 = vld [vmem:[%s6489_s11 + $0x5f0] sm:$0xf0]  ;;  %v6078_v34 = vld [vmem:[%s6489_s11 + $0x5f4] sm:$0xf0] }
 0x3fd   : > { %v3976_v8 = vpack.c.bf16 %v3672_v32, %v3670_v63  ;;  %v4094_v31 = vadd.f32 %v7479_v24, %v4093_v13  ;;  %v6074_v32 = vld [vmem:[%s6489_s11 + $0x5dc] sm:$0xf] }
 0x3fe   : > { %v5272_v13 = vld [vmem:[%s6489_s11 + $0x5f8] sm:$0xf0] }
 0x3ff   : > { %3713 = vmatmul.bf16.gmra.mxu3 %v5211_v22  ;;  %4132 = vmatmul.bf16.gmra.mxu0 %v3976_v8  ;;  %v3505_v33 = vpop.f32.mrf.mxu2  ;;  %v4241_v56 = vmax.f32 %v4094_v31, 0.0  ;;  %v5267_v31 = vor.u32 %v6073_v6, %v5264_v58 }
 0x400   : > { %v3506_v15 = vadd.f32 %v3505_v33, %v3337_v61  ;;  %v5275_v61 = vor.u32 %v6074_v32, %v5272_v13  ;;  %v5328_v32 = vld [vmem:[%s6489_s11 + $0x670] sm:$0xf0]  ;;  %v5334_v13 = vld [vmem:[%s6489_s11 + $0x658] sm:$0xf] }
 0x401   : > { %v3338_v11 = vpop.f32.mrf.mxu1 }
 0x402   : > { %v3674_v47 = vpop.f32.mrf.mxu3  ;;  %v3339_v51 = vadd.f32 %v3338_v11, %v7114_v26 }
 0x403   : > { %v3675_v1 = vadd.f32 %v3674_v47, %v3506_v15 }
 0x404   : > { %v4095_v30 = vpop.f32.mrf.mxu0 }
 0x405   : > { %v4096_v14 = vadd.f32 %v7479_v24, %v4095_v30 }
 0x407   : > { %v4242_v35 = vmax.f32 %v4096_v14, 0.0  ;;  %v3507_v7 = vpop.f32.mrf.mxu2 }
 0x408   : > { %v3508_v42 = vadd.f32 %v3507_v7, %v3339_v51  ;;  %v5296_v7 = vld [vmem:[%s6489_s11 + $0x630] sm:$0xf0] }
 0x409   : > { %v6174_v38 = vpack.c.bf16 %v4242_v35, %v4241_v56  ;;  %v3341_v54 = vpop.f32.mrf.mxu1 }
 0x40a   : > { %v3676_v27 = vpop.f32.mrf.mxu3  ;;  %v3342_v60 = vadd.f32 %v3341_v54, %v7126_v20  ;;  %v5271_v20 = vor.u32 %v6078_v34, %v5270_v17 }
 0x40b   : > { %6314 = vst [vmem:[%s7495_s24 + $0x20] sm:$0xff] %v6174_v38   ;;  %v3677_v44 = vadd.f32 %v3676_v27, %v3508_v42  ;;  %v5302_v38 = vld [vmem:[%s6489_s11 + $0x618] sm:$0xf] }
 0x40c   : > { %v4098_v29 = vpop.f32.mrf.mxu0  ;;  %3380 = vmatmul.bf16.gmra.mxu1 %v5235_v0  ;;  %3549 = vmatmul.bf16.gmra.mxu2 %v5239_v19  ;;  %v6086_v42 = vld [vmem:[%s6489_s11 + $0x634] sm:$0xf0] }
 0x40d   : > { %v3977_v26 = vpack.c.bf16 %v3677_v44, %v3675_v1  ;;  %v4099_v62 = vadd.f32 %v7479_v24, %v4098_v29  ;;  %v5304_v1 = vld [vmem:[%s6489_s11 + $0x638] sm:$0xf0] }
 0x40f   : > { %3718 = vmatmul.bf16.gmra.mxu3 %v5243_v39  ;;  %4137 = vmatmul.bf16.gmra.mxu0 %v3977_v26  ;;  %v3510_v53 = vpop.f32.mrf.mxu2  ;;  %v4243_v37 = vmax.f32 %v4099_v62, 0.0  ;;  %v6082_v39 = vld [vmem:[%s6489_s11 + $0x61c] sm:$0xf] }
 0x410   : > { %v3511_v28 = vadd.f32 %v3510_v53, %v3342_v60  ;;  %v5307_v62 = vor.u32 %v6082_v39, %v5304_v1  ;;  %v6102_v39 = vld [vmem:[%s6489_s11 + $0x6b4] sm:$0xf0] }
 0x411   : > { %v3343_v48 = vpop.f32.mrf.mxu1 }
 0x412   : > { %v3679_v55 = vpop.f32.mrf.mxu3  ;;  %v3344_v22 = vadd.f32 %v3343_v48, %v7137_v59 }
 0x413   : > { %v3680_v14 = vadd.f32 %v3679_v55, %v3511_v28  ;;  %v5299_v55 = vor.u32 %v6081_v23, %v5296_v7 }
 0x414   : > { %v4100_v49 = vpop.f32.mrf.mxu0 }
 0x415   : > { %v4101_v12 = vadd.f32 %v7479_v24, %v4100_v49 }
 0x417   : > { %v4244_v63 = vmax.f32 %v4101_v12, 0.0  ;;  %v3512_v8 = vpop.f32.mrf.mxu2 }
 0x418   : > { %v3513_v47 = vadd.f32 %v3512_v8, %v3344_v22  ;;  %v6094_v8 = vld [vmem:[%s6489_s11 + $0x674] sm:$0xf0] }
 0x419   : > { %v6179_v33 = vpack.c.bf16 %v4244_v63, %v4243_v37  ;;  %v3346_v30 = vpop.f32.mrf.mxu1  ;;  %v6089_v63 = vld [vmem:[%s6489_s11 + $0x654] sm:$0xf] }
 0x41a   : > { %v3681_v11 = vpop.f32.mrf.mxu3  ;;  %v3347_v35 = vadd.f32 %v3346_v30, %v7143_v4  ;;  %v5303_v4 = vor.u32 %v6086_v42, %v5302_v38  ;;  %v5336_v30 = vld [vmem:[%s6489_s11 + $0x678] sm:$0xf0] }
 0x41b   : > { %6315 = vst [vmem:[%s7495_s24 + $0x28] sm:$0xff] %v6179_v33   ;;  %v3682_v9 = vadd.f32 %v3681_v11, %v3513_v47 }
 0x41c   : > { %v4103_v46 = vpop.f32.mrf.mxu0  ;;  %3385 = vmatmul.bf16.gmra.mxu1 %v5267_v31  ;;  %3554 = vmatmul.bf16.gmra.mxu2 %v5271_v20  ;;  %v6090_v20 = vld [vmem:[%s6489_s11 + $0x65c] sm:$0xf] }
 0x41d   : > { %v3978_v59 = vpack.c.bf16 %v3682_v9, %v3680_v14  ;;  %v4104_v15 = vadd.f32 %v7479_v24, %v4103_v46 }
 0x41f   : > { %3723 = vmatmul.bf16.gmra.mxu3 %v5275_v61  ;;  %4142 = vmatmul.bf16.gmra.mxu0 %v3978_v59  ;;  %v3515_v50 = vpop.f32.mrf.mxu2  ;;  %v4245_v27 = vmax.f32 %v4104_v15, 0.0  ;;  %v5331_v59 = vor.u32 %v6089_v63, %v5328_v32 }
 0x420   : > { %v3516_v0 = vadd.f32 %v3515_v50, %v3347_v35 }
 0x421   : > { %v3348_v56 = vpop.f32.mrf.mxu1 }
 0x422   : > { %v3684_v43 = vpop.f32.mrf.mxu3  ;;  %v3349_v19 = vadd.f32 %v3348_v56, %v7154_v57 }
 0x423   : > { %v3685_v49 = vadd.f32 %v3684_v43, %v3516_v0  ;;  %v5339_v43 = vor.u32 %v6090_v20, %v5336_v30  ;;  %v6097_v0 = vld [vmem:[%s6489_s11 + $0x694] sm:$0xf] }
 0x424   : > { %v4105_v51 = vpop.f32.mrf.mxu0 }
 0x425   : > { %v4106_v2 = vadd.f32 %v7479_v24, %v4105_v51 }
 0x427   : > { %v4246_v54 = vmax.f32 %v4106_v2, 0.0  ;;  %v3517_v44 = vpop.f32.mrf.mxu2 }
 0x428   : > { %v3518_v26 = vadd.f32 %v3517_v44, %v3349_v19  ;;  %v5360_v19 = vld [vmem:[%s6489_s11 + $0x6b0] sm:$0xf0] }
 0x429   : > { %v6184_v29 = vpack.c.bf16 %v4246_v54, %v4245_v27  ;;  %v3351_v48 = vpop.f32.mrf.mxu1  ;;  %v5366_v54 = vld [vmem:[%s6489_s11 + $0x698] sm:$0xf] }
 0x42a   : > { %v3686_v53 = vpop.f32.mrf.mxu3  ;;  %v3352_v28 = vadd.f32 %v3351_v48, %v7157_v18  ;;  %v5335_v18 = vor.u32 %v6094_v8, %v5334_v13  ;;  %v6105_v8 = vld [vmem:[%s6489_s11 + $0x6d4] sm:$0xf] }
 0x42b   : > { %6316 = vst [vmem:[%s7495_s24 + $0x30] sm:$0xff] %v6184_v29   ;;  %v3687_v60 = vadd.f32 %v3686_v53, %v3518_v26  ;;  %v6098_v53 = vld [vmem:[%s6489_s11 + $0x69c] sm:$0xf] }
 0x42c   : > { %v4108_v12 = vpop.f32.mrf.mxu0  ;;  %3390 = vmatmul.bf16.gmra.mxu1 %v5299_v55  ;;  %3559 = vmatmul.bf16.gmra.mxu2 %v5303_v4  ;;  %v5368_v55 = vld [vmem:[%s6489_s11 + $0x6b8] sm:$0xf0] }
 0x42d   : > { %v3979_v57 = vpack.c.bf16 %v3687_v60, %v3685_v49  ;;  %v4109_v34 = vadd.f32 %v7479_v24, %v4108_v12  ;;  %v5363_v60 = vor.u32 %v6097_v0, %v5360_v19  ;;  %v6113_v19 = vld [vmem:[%s6489_s11 + $0x714] sm:$0xf] }
 0x42f   : > { %3728 = vmatmul.bf16.gmra.mxu3 %v5307_v62  ;;  %4147 = vmatmul.bf16.gmra.mxu0 %v3979_v57  ;;  %v3520_v6 = vpop.f32.mrf.mxu2  ;;  %v4247_v33 = vmax.f32 %v4109_v34, 0.0  ;;  %v5371_v57 = vor.u32 %v6098_v53, %v5368_v55  ;;  %v6114_v55 = vld [vmem:[%s6489_s11 + $0x71c] sm:$0xf] }
 0x430   : > { %v3521_v47 = vadd.f32 %v3520_v6, %v3352_v28 }
 0x431   : > { %v3353_v17 = vpop.f32.mrf.mxu1 }
 0x432   : > { %v3689_v58 = vpop.f32.mrf.mxu3  ;;  %v3354_v11 = vadd.f32 %v3353_v17, %v7168_v36 }
 0x433   : > { %v3690_v56 = vadd.f32 %v3689_v58, %v3521_v47  ;;  %v5398_v47 = vld [vmem:[%s6489_s11 + $0x6d8] sm:$0xf] }
 0x434   : > { %v4110_v37 = vpop.f32.mrf.mxu0 }
 0x435   : > { %v4111_v22 = vadd.f32 %v7479_v24, %v4110_v37 }
 0x437   : > { %v4248_v31 = vmax.f32 %v4111_v22, 0.0  ;;  %v3522_v61 = vpop.f32.mrf.mxu2 }
 0x438   : > { %v3523_v9 = vadd.f32 %v3522_v61, %v3354_v11  ;;  %v6110_v11 = vld [vmem:[%s6489_s11 + $0x6f4] sm:$0xf0] }
 0x439   : > { %v6189_v14 = vpack.c.bf16 %v4248_v31, %v4247_v33  ;;  %v3356_v50 = vpop.f32.mrf.mxu1  ;;  %v5392_v33 = vld [vmem:[%s6489_s11 + $0x6f0] sm:$0xf0] }
 0x43a   : > { %v3691_v46 = vpop.f32.mrf.mxu3  ;;  %v3357_v42 = vadd.f32 %v3356_v50, %v7171_v52  ;;  %v5367_v52 = vor.u32 %v6102_v39, %v5366_v54  ;;  %v5424_v54 = vld [vmem:[%s6489_s11 + $0x730] sm:$0xf0]  ;;  %v5430_v39 = vld [vmem:[%s6489_s11 + $0x718] sm:$0xf] }
 0x43b   : > { %6317 = vst [vmem:[%s7495_s24 + $0x38] sm:$0xff] %v6189_v14   ;;  %v3692_v15 = vadd.f32 %v3691_v46, %v3523_v9  ;;  %v6106_v14 = vld [vmem:[%s6489_s11 + $0x6dc] sm:$0xf] }
 0x43c   : > { %v4113_v51 = vpop.f32.mrf.mxu0  ;;  %3395 = vmatmul.bf16.gmra.mxu1 %v5331_v59  ;;  %3564 = vmatmul.bf16.gmra.mxu2 %v5335_v18  ;;  %v5400_v9 = vld [vmem:[%s6489_s11 + $0x6f8] sm:$0xf0] }
 0x43d   : > { %v3980_v36 = vpack.c.bf16 %v3692_v15, %v3690_v56  ;;  %v4114_v7 = vadd.f32 %v7479_v24, %v4113_v51  ;;  %v5403_v15 = vor.u32 %v6106_v14, %v5400_v9  ;;  %v6122_v14 = vld [vmem:[%s6489_s11 + $0x75c] sm:$0xf] }
 0x43e   : > { %v5464_v9 = vld [vmem:[%s6489_s11 + $0x778] sm:$0xf0] }
 0x43f   : > { %3733 = vmatmul.bf16.gmra.mxu3 %v5339_v43  ;;  %4152 = vmatmul.bf16.gmra.mxu0 %v3980_v36  ;;  %v3525_v35 = vpop.f32.mrf.mxu2  ;;  %v4249_v1 = vmax.f32 %v4114_v7, 0.0  ;;  %v5395_v43 = vor.u32 %v6105_v8, %v5392_v33  ;;  %v6121_v8 = vld [vmem:[%s6489_s11 + $0x754] sm:$0xf] }
 0x440   : > { %v3526_v44 = vadd.f32 %v3525_v35, %v3357_v42  ;;  %v5456_v33 = vld [vmem:[%s6489_s11 + $0x770] sm:$0xf0] }
 0x441   : > { %v3358_v23 = vpop.f32.mrf.mxu1 }
 0x442   : > { %v3694_v2 = vpop.f32.mrf.mxu3  ;;  %v3359_v29 = vadd.f32 %v3358_v23, %v7182_v16 }
 0x443   : > { %v3695_v6 = vadd.f32 %v3694_v2, %v3526_v44 }
 0x444   : > { %v4115_v38 = vpop.f32.mrf.mxu0 }
 0x445   : > { %v4116_v27 = vadd.f32 %v7479_v24, %v4115_v38 }
 0x447   : > { %v4250_v26 = vmax.f32 %v4116_v27, 0.0  ;;  %v3527_v4 = vpop.f32.mrf.mxu2 }
 0x448   : > { %v3528_v62 = vadd.f32 %v3527_v4, %v3359_v29  ;;  %v5432_v4 = vld [vmem:[%s6489_s11 + $0x738] sm:$0xf0] }
 0x449   : > { %v6194_v48 = vpack.c.bf16 %v4250_v26, %v4249_v1  ;;  %v3361_v12 = vpop.f32.mrf.mxu1  ;;  %v6118_v1 = vld [vmem:[%s6489_s11 + $0x734] sm:$0xf0] }
 0x44a   : > { %v3696_v49 = vpop.f32.mrf.mxu3  ;;  %v3362_v32 = vadd.f32 %v3361_v12, %v7194_v45  ;;  %v5399_v45 = vor.u32 %v6110_v11, %v5398_v47  ;;  %v5462_v47 = vld [vmem:[%s6489_s11 + $0x758] sm:$0xf] }
 0x44b   : > { %6318 = vst [vmem:[%s7495_s24 + $0x40] sm:$0xff] %v6194_v48   ;;  %v3697_v58 = vadd.f32 %v3696_v49, %v3528_v62  ;;  %v6126_v11 = vld [vmem:[%s6489_s11 + $0x774] sm:$0xf0] }
 0x44c   : > { %v4118_v17 = vpop.f32.mrf.mxu0  ;;  %3400 = vmatmul.bf16.gmra.mxu1 %v5363_v60  ;;  %3569 = vmatmul.bf16.gmra.mxu2 %v5367_v52  ;;  %v5427_v52 = vor.u32 %v6113_v19, %v5424_v54  ;;  %v6129_v54 = vld [vmem:[%s6489_s11 + $0x794] sm:$0xf] }
 0x44d   : > { %v3981_v16 = vpack.c.bf16 %v3697_v58, %v3695_v6  ;;  %v4119_v22 = vadd.f32 %v7479_v24, %v4118_v17 }
 0x44f   : > { %3738 = vmatmul.bf16.gmra.mxu3 %v5371_v57  ;;  %4157 = vmatmul.bf16.gmra.mxu0 %v3981_v16  ;;  %v3530_v34 = vpop.f32.mrf.mxu2  ;;  %v4251_v31 = vmax.f32 %v4119_v22, 0.0  ;;  %v5435_v57 = vor.u32 %v6114_v55, %v5432_v4  ;;  %v6130_v4 = vld [vmem:[%s6489_s11 + $0x79c] sm:$0xf] }
 0x450   : > { %v3531_v20 = vadd.f32 %v3530_v34, %v3362_v32 }
 0x451   : > { %v3363_v28 = vpop.f32.mrf.mxu1 }
 0x452   : > { %v3699_v37 = vpop.f32.mrf.mxu3  ;;  %v3364_v30 = vadd.f32 %v3363_v28, %v7205_v10 }
 0x453   : > { %v3700_v51 = vadd.f32 %v3699_v37, %v3531_v20 }
 0x454   : > { %v4120_v63 = vpop.f32.mrf.mxu0 }
 0x455   : > { %v4121_v13 = vadd.f32 %v7479_v24, %v4120_v63  ;;  %v3205_v63 = vadd.f32 %v7228_v25, %v7238_v41  ;;  %v5459_v25 = vor.u32 %v6121_v8, %v5456_v33  ;;  %v5463_v41 = vor.u32 %v6126_v11, %v5462_v47  ;;  %v7823_v33 = vld [vmem:[#allocation15_spill] sm:$0xff] }
 0x457   : > { %v4252_v61 = vmax.f32 %v4121_v13, 0.0  ;;  %v3532_v46 = vpop.f32.mrf.mxu2 }
 0x458   : > { %v3533_v18 = vadd.f32 %v3532_v46, %v3364_v30 }
 0x459   : > { %v6199_v59 = vpack.c.bf16 %v4252_v61, %v4251_v31  ;;  %v3366_v56 = vpop.f32.mrf.mxu1 }
 0x45a   : > { %v3701_v50 = vpop.f32.mrf.mxu3  ;;  %v3367_v27 = vadd.f32 %v3366_v56, %v7211_v40  ;;  %v5431_v40 = vor.u32 %v6118_v1, %v5430_v39  ;;  %v5488_v39 = vld [vmem:[%s6489_s11 + $0x7b0] sm:$0xf0]  ;;  %v5494_v1 = vld [vmem:[%s6489_s11 + $0x798] sm:$0xf] }
 0x45b   : > { %6319 = vst [vmem:[%s7495_s24 + $0x48] sm:$0xff] %v6199_v59   ;;  %v3702_v36 = vadd.f32 %v3701_v50, %v3533_v18 }
 0x45c   : > { %v4123_v35 = vpop.f32.mrf.mxu0  ;;  %3405 = vmatmul.bf16.gmra.mxu1 %v5395_v43  ;;  %3574 = vmatmul.bf16.gmra.mxu2 %v5399_v45  ;;  %v5467_v43 = vor.u32 %v6122_v14, %v5464_v9 }
 0x45d   : > { %v3982_v10 = vpack.c.bf16 %v3702_v36, %v3700_v51  ;;  %v4124_v38 = vadd.f32 %v7479_v24, %v4123_v35 }
 0x45f   : > { %3743 = vmatmul.bf16.gmra.mxu3 %v5403_v15  ;;  %4162 = vmatmul.bf16.gmra.mxu0 %v3982_v10  ;;  %v3535_v2 = vpop.f32.mrf.mxu2  ;;  %v4253_v44 = vmax.f32 %v4124_v38, 0.0  ;;  %v7819_v38 = vld [vmem:[#allocation25_spill] sm:$0xff] }
 0x460   : > { %v3536_v29 = vadd.f32 %v3535_v2, %v3367_v27  ;;  %v7820_v27 = vld [vmem:[#allocation24_spill] sm:$0xff] }
 0x461   : > { %v3368_v7 = vpop.f32.mrf.mxu1 }
 0x462   : > { %v3704_v23 = vpop.f32.mrf.mxu3  ;;  %v3369_v26 = vadd.f32 %v3368_v7, %v7222_v21  ;;  %v7818_v7 = vld [vmem:[#allocation26_spill] sm:$0xff] }
 0x463   : > { %v3705_v6 = vadd.f32 %v3704_v23, %v3536_v29 }
 0x464   : > { %v4125_v42 = vpop.f32.mrf.mxu0 }
 0x465   : > { %v4126_v0 = vadd.f32 %v7479_v24, %v4125_v42  ;;  %v3210_v42 = vadd.f32 %v7819_v38, %v7818_v7 }
 0x467   : > { %v4254_v53 = vmax.f32 %v4126_v0, 0.0  ;;  %v3537_v48 = vpop.f32.mrf.mxu2 }
 0x468   : > { %v3538_v49 = vadd.f32 %v3537_v48, %v3369_v26  ;;  %v5496_v48 = vld [vmem:[%s6489_s11 + $0x7b8] sm:$0xf0] }
 0x469   : > { %v6204_v62 = vpack.c.bf16 %v4254_v53, %v4253_v44  ;;  %v3371_v12 = vpop.f32.mrf.mxu1  ;;  %v6134_v44 = vld [vmem:[%s6489_s11 + $0x7b4] sm:$0xf0] }
 0x46a   : > { %v3706_v60 = vpop.f32.mrf.mxu3  ;;  %v3372_v32 = vadd.f32 %v3371_v12, %v7225_v5  ;;  %v5495_v12 = vor.u32 %v6134_v44, %v5494_v1 }
 0x46b   : > { %6320 = vst [vmem:[%s7495_s24 + $0x50] sm:$0xff] %v6204_v62   ;;  %v3707_v58 = vadd.f32 %v3706_v60, %v3538_v49 }
 0x46c   : > { %v4128_v17 = vpop.f32.mrf.mxu0  ;;  %3410 = vmatmul.bf16.gmra.mxu1 %v5427_v52  ;;  %3579 = vmatmul.bf16.gmra.mxu2 %v5431_v40  ;;  %v5491_v40 = vor.u32 %v6129_v54, %v5488_v39  ;;  %v7826_v39 = vld [vmem:[#allocation19_spill] sm:$0xff] }
 0x46d   : > { %v3983_v16 = vpack.c.bf16 %v3707_v58, %v3705_v6  ;;  %v4129_v28 = vadd.f32 %v7479_v24, %v4128_v17  ;;  %v5499_v6 = vor.u32 %v6130_v4, %v5496_v48 }
 0x46f   : > { %3748 = vmatmul.bf16.gmra.mxu3 %v5435_v57  ;;  %4167 = vmatmul.bf16.gmra.mxu0 %v3983_v16  ;;  %v3540_v21 = vpop.f32.mrf.mxu2  ;;  %v4255_v31 = vmax.f32 %v4129_v28, 0.0 }
 0x470   : > { %v3541_v20 = vadd.f32 %v3540_v21, %v3372_v32  ;;  %v7821_v32 = vld [vmem:[#allocation17_spill] sm:$0xff] }
 0x471   : > { %v3373_v37 = vpop.f32.mrf.mxu1 }
 0x472   : > { %v3709_v34 = vpop.f32.mrf.mxu3  ;;  %v3374_v30 = vadd.f32 %v3373_v37, %v3205_v63 }
 0x473   : > { %v3710_v45 = vadd.f32 %v3709_v34, %v3541_v20  ;;  %v5520_v20 = vld [vmem:[%s6489_s11 + $0x7f0] sm:$0xf0] }
 0x474   : > { %v4130_v22 = vpop.f32.mrf.mxu0 }
 0x475   : > { %v4131_v13 = vadd.f32 %v7479_v24, %v4130_v22 }
 0x477   : > { %v4256_v61 = vmax.f32 %v4131_v13, 0.0  ;;  %v3542_v46 = vpop.f32.mrf.mxu2  ;;  %v7822_v13 = vld [vmem:[#allocation27_spill] sm:$0xff] }
 0x478   : > { %v3543_v18 = vadd.f32 %v3542_v46, %v3374_v30  ;;  %v3215_v8 = vadd.f32 %v7822_v13, %v7821_v32  ;;  %v5526_v30 = vld [vmem:[%s6489_s11 + $0x7d8] sm:$0xf]  ;;  %v7657_v32 = vld [vmem:[%s7742_s3] ss:$0 sm:$0xff] }
 0x479   : > { %v6209_v59 = vpack.c.bf16 %v4256_v61, %v4255_v31  ;;  %v3376_v5 = vpop.f32.mrf.mxu1  ;;  %v6137_v31 = vld [vmem:[%s6489_s11 + $0x7d4] sm:$0xf]  ;;  %v6142_v61 = vld [vmem:[%s6489_s11 + $0x7f4] sm:$0xf0] }
 0x47a   : > { %v3711_v50 = vpop.f32.mrf.mxu3  ;;  %v3377_v0 = vadd.f32 %v3376_v5, %v7820_v27 }
 0x47b   : > { %6321 = vst [vmem:[%s7495_s24 + $0x58] sm:$0xff] %v6209_v59   ;;  %v3712_v56 = vadd.f32 %v3711_v50, %v3543_v18  ;;  %v6138_v18 = vld [vmem:[%s6489_s11 + $0x7dc] sm:$0xf] }
 0x47c   : > { %v4133_v15 = vpop.f32.mrf.mxu0  ;;  %3415 = vmatmul.bf16.gmra.mxu1 %v5459_v25  ;;  %3584 = vmatmul.bf16.gmra.mxu2 %v5463_v41  ;;  %v5528_v50 = vld [vmem:[%s6489_s11 + $0x7f8] sm:$0xf0] }
 0x47d   : > { %v3984_v51 = vpack.c.bf16 %v3712_v56, %v3710_v45  ;;  %v4134_v2 = vadd.f32 %v7479_v24, %v4133_v15  ;;  %v5523_v45 = vor.u32 %v6137_v31, %v5520_v20  ;;  %v5527_v56 = vor.u32 %v6142_v61, %v5526_v30 }
 0x47f   : > { %3753 = vmatmul.bf16.gmra.mxu3 %v5467_v43  ;;  %4172 = vmatmul.bf16.gmra.mxu0 %v3984_v51  ;;  %v3545_v36 = vpop.f32.mrf.mxu2  ;;  %v4257_v29 = vmax.f32 %v4134_v2, 0.0  ;;  %v5531_v51 = vor.u32 %v6138_v18, %v5528_v50 }
 0x480   : > { %v3546_v26 = vadd.f32 %v3545_v36, %v3377_v0  ;;  %v7824_v0 = vld [vmem:[#allocation21_spill] sm:$0xff] }
 0x481   : > { %v3378_v10 = vpop.f32.mrf.mxu1 }
 0x482   : > { %v3714_v35 = vpop.f32.mrf.mxu3  ;;  %v3379_v53 = vadd.f32 %v3378_v10, %v3210_v42 }
 0x483   : > { %v3715_v58 = vadd.f32 %v3714_v35, %v3546_v26 }
 0x484   : > { %v4135_v23 = vpop.f32.mrf.mxu0 }
 0x485   : > { %v4136_v19 = vadd.f32 %v7479_v24, %v4135_v23 }
 0x487   : > { %v4258_v55 = vmax.f32 %v4136_v19, 0.0  ;;  %v3547_v62 = vpop.f32.mrf.mxu2  ;;  %v7825_v19 = vld [vmem:[#allocation28_spill] sm:$0xff] }
 0x488   : > { %v3548_v60 = vadd.f32 %v3547_v62, %v3379_v53  ;;  %v3220_v54 = vadd.f32 %v7825_v19, %v7824_v0 }
 0x489   : > { %v6214_v49 = vpack.c.bf16 %v4258_v55, %v4257_v29  ;;  %v3381_v57 = vpop.f32.mrf.mxu1 }
 0x48a   : > { %v3716_v52 = vpop.f32.mrf.mxu3  ;;  %v3382_v47 = vadd.f32 %v3381_v57, %v7823_v33 }
 0x48b   : > { %6322 = vst [vmem:[%s7495_s24 + $0x60] sm:$0xff] %v6214_v49   ;;  %v3717_v17 = vadd.f32 %v3716_v52, %v3548_v60 }
 0x48c   : > { %v4138_v16 = vpop.f32.mrf.mxu0  ;;  %3420 = vmatmul.bf16.gmra.mxu1 %v5491_v40  ;;  %3589 = vmatmul.bf16.gmra.mxu2 %v5495_v12 }
 0x48d   : > { %v3985_v21 = vpack.c.bf16 %v3717_v17, %v3715_v58  ;;  %v4139_v22 = vadd.f32 %v7479_v24, %v4138_v16 }
 0x48f   : > { %3758 = vmatmul.bf16.gmra.mxu3 %v5499_v6  ;;  %4177 = vmatmul.bf16.gmra.mxu0 %v3985_v21  ;;  %v3550_v34 = vpop.f32.mrf.mxu2  ;;  %v4259_v14 = vmax.f32 %v4139_v22, 0.0  ;;  %v7829_v22 = vld [vmem:[#allocation3_spill] sm:$0xff] }
 0x490   : > { %v3551_v9 = vadd.f32 %v3550_v34, %v3382_v47  ;;  %v7827_v34 = vld [vmem:[#allocation4_spill] sm:$0xff] }
 0x491   : > { %v3383_v28 = vpop.f32.mrf.mxu1 }
 0x492   : > { %v3719_v37 = vpop.f32.mrf.mxu3  ;;  %v3384_v46 = vadd.f32 %v3383_v28, %v3215_v8 }
 0x493   : > { %v3720_v36 = vadd.f32 %v3719_v37, %v3551_v9  ;;  %v7828_v37 = vld [vmem:[#allocation29_spill] sm:$0xff] }
 0x494   : > { %v4140_v63 = vpop.f32.mrf.mxu0  ;;  %v3225_v28 = vadd.f32 %v7828_v37, %v7827_v34 }
 0x495   : > { %v4141_v11 = vadd.f32 %v7479_v24, %v4140_v63 }
 0x497   : > { %v4260_v59 = vmax.f32 %v4141_v11, 0.0  ;;  %v3552_v25 = vpop.f32.mrf.mxu2 }
 0x498   : > { %v3553_v5 = vadd.f32 %v3552_v25, %v3384_v46 }
 0x499   : > { %v6219_v41 = vpack.c.bf16 %v4260_v59, %v4259_v14  ;;  %v3386_v15 = vpop.f32.mrf.mxu1 }
 0x49a   : > { %v3721_v43 = vpop.f32.mrf.mxu3  ;;  %v3387_v1 = vadd.f32 %v3386_v15, %v7826_v39  ;;  %v7832_v15 = vld [vmem:[#allocation5_spill] sm:$0xff] }
 0x49b   : > { %6323 = vst [vmem:[%s7495_s24 + $0x68] sm:$0xff] %v6219_v41   ;;  %v3722_v35 = vadd.f32 %v3721_v43, %v3553_v5  ;;  %v7830_v43 = vld [vmem:[#allocation6_spill] sm:$0xff] }
 0x49c   : > { %v4143_v10 = vpop.f32.mrf.mxu0  ;;  %3425 = vmatmul.bf16.gmra.mxu1 %v5523_v45  ;;  %3594 = vmatmul.bf16.gmra.mxu2 %v5527_v56  ;;  %v7831_v45 = vld [vmem:[#allocation30_spill] sm:$0xff] }
 0x49d   : > { %v3986_v2 = vpack.c.bf16 %v3722_v35, %v3720_v36  ;;  %v4144_v42 = vadd.f32 %v7479_v24, %v4143_v10  ;;  %v3230_v56 = vadd.f32 %v7831_v45, %v7830_v43 }
 0x49f   : > { %3763 = vmatmul.bf16.gmra.mxu3 %v5531_v51  ;;  %4182 = vmatmul.bf16.gmra.mxu0 %v3986_v2  ;;  %v3555_v23 = vpop.f32.mrf.mxu2  ;;  %v4261_v29 = vmax.f32 %v4144_v42, 0.0 }
 0x4a0   : > { %v3556_v26 = vadd.f32 %v3555_v23, %v3387_v1 }
 0x4a1   : > { %v3388_v38 = vpop.f32.mrf.mxu1 }
 0x4a2   : > { %v3724_v7 = vpop.f32.mrf.mxu3  ;;  %v3389_v53 = vadd.f32 %v3388_v38, %v3220_v54 }
 0x4a3   : > { %v3725_v52 = vadd.f32 %v3724_v7, %v3556_v26 }
 0x4a4   : > { %v4145_v27 = vpop.f32.mrf.mxu0 }
 0x4a5   : > { %v4146_v44 = vadd.f32 %v7479_v24, %v4145_v27 }
 0x4a7   : > { %v4262_v55 = vmax.f32 %v4146_v44, 0.0  ;;  %v3557_v4 = vpop.f32.mrf.mxu2 }
 0x4a8   : > { %v3558_v62 = vadd.f32 %v3557_v4, %v3389_v53  ;;  %v7833_v4 = vld [vmem:[#allocation8_spill] sm:$0xff] }
 0x4a9   : > { %v6224_v48 = vpack.c.bf16 %v4262_v55, %v4261_v29  ;;  %v3391_v60 = vpop.f32.mrf.mxu1 }
 0x4aa   : > { %v3726_v49 = vpop.f32.mrf.mxu3  ;;  %v3392_v63 = vadd.f32 %v3391_v60, %v7829_v22 }
 0x4ab   : > { %6324 = vst [vmem:[%s7495_s24 + $0x70] sm:$0xff] %v6224_v48   ;;  %v3727_v40 = vadd.f32 %v3726_v49, %v3558_v62  ;;  %v7834_v48 = vld [vmem:[#allocation31_spill] sm:$0xff] }
 0x4ac   : > { %v4148_v12 = vpop.f32.mrf.mxu0  ;;  %v3235_v62 = vadd.f32 %v7834_v48, %v7833_v4  ;;  %v7835_v49 = vld [vmem:[#allocation7_spill] sm:$0xff] }
 0x4ad   : > { %v3987_v57 = vpack.c.bf16 %v3727_v40, %v3725_v52  ;;  %v4149_v16 = vadd.f32 %v7479_v24, %v4148_v12 }
 0x4af   : > { %4187 = vmatmul.bf16.gmra.mxu0 %v3987_v57  ;;  %v3560_v6 = vpop.f32.mrf.mxu2  ;;  %v4263_v8 = vmax.f32 %v4149_v16, 0.0 }
 0x4b0   : > { %v3561_v33 = vadd.f32 %v3560_v6, %v3392_v63 }
 0x4b1   : > { %v3393_v17 = vpop.f32.mrf.mxu1 }
 0x4b2   : > { %v3729_v58 = vpop.f32.mrf.mxu3  ;;  %v3394_v47 = vadd.f32 %v3393_v17, %v3225_v28 }
 0x4b3   : > { %v3730_v14 = vadd.f32 %v3729_v58, %v3561_v33 }
 0x4b4   : > { %v4150_v21 = vpop.f32.mrf.mxu0 }
 0x4b5   : > { %v4151_v13 = vadd.f32 %v7657_v32, %v4150_v21 }
 0x4b7   : > { %v4264_v11 = vmax.f32 %v4151_v13, 0.0  ;;  %v3562_v31 = vpop.f32.mrf.mxu2 }
 0x4b8   : > { %v3563_v20 = vadd.f32 %v3562_v31, %v3394_v47  ;;  %v7836_v31 = vld [vmem:[#allocation10_spill] sm:$0xff] }
 0x4b9   : > { %v6229_v24 = vpack.c.bf16 %v4264_v11, %v4263_v8  ;;  %v3396_v61 = vpop.f32.mrf.mxu1 }
 0x4ba   : > { %v3731_v30 = vpop.f32.mrf.mxu3  ;;  %v3397_v51 = vadd.f32 %v3396_v61, %v7832_v15 }
 0x4bb   : > { %6325 = vst [vmem:[%s7495_s24 + $0x78] sm:$0xff] %v6229_v24   ;;  %v3732_v9 = vadd.f32 %v3731_v30, %v3563_v20  ;;  %v7837_v24 = vld [vmem:[#allocation32_spill] sm:$0xff]  ;;  %v7838_v30 = vld [vmem:[#allocation9_spill] sm:$0xff] }
 0x4bc   : > { %v4153_v46 = vpop.f32.mrf.mxu0  ;;  %v3240_v20 = vadd.f32 %v7837_v24, %v7836_v31 }
 0x4bd   : > { %v3988_v59 = vpack.c.bf16 %v3732_v9, %v3730_v14  ;;  %v4154_v41 = vadd.f32 %v7657_v32, %v4153_v46 }
 0x4bf   : > { %4192 = vmatmul.bf16.gmra.mxu0 %v3988_v59  ;;  %v3565_v18 = vpop.f32.mrf.mxu2  ;;  %v4265_v35 = vmax.f32 %v4154_v41, 0.0 }
 0x4c0   : > { %v3566_v10 = vadd.f32 %v3565_v18, %v3397_v51 }
 0x4c1   : > { %v3398_v25 = vpop.f32.mrf.mxu1 }
 0x4c2   : > { %v3734_v50 = vpop.f32.mrf.mxu3  ;;  %v3399_v2 = vadd.f32 %v3398_v25, %v3230_v56 }
 0x4c3   : > { %v3735_v19 = vadd.f32 %v3734_v50, %v3566_v10 }
 0x4c4   : > { %v4155_v5 = vpop.f32.mrf.mxu0 }
 0x4c5   : > { %v4156_v36 = vadd.f32 %v7657_v32, %v4155_v5 }
 0x4c7   : > { %v4266_v23 = vmax.f32 %v4156_v36, 0.0  ;;  %v3567_v7 = vpop.f32.mrf.mxu2 }
 0x4c8   : > { %v3568_v42 = vadd.f32 %v3567_v7, %v3399_v2  ;;  %v7839_v7 = vld [vmem:[#allocation12_spill] sm:$0xff] }
 0x4c9   : > { %v6234_v38 = vpack.c.bf16 %v4266_v23, %v4265_v35  ;;  %v3401_v0 = vpop.f32.mrf.mxu1 }
 0x4ca   : > { %v3736_v27 = vpop.f32.mrf.mxu3  ;;  %v3402_v60 = vadd.f32 %v3401_v0, %v7835_v49 }
 0x4cb   : > { %6326 = vst [vmem:[%s7495_s24 + $0x80] sm:$0xff] %v6234_v38   ;;  %v3737_v54 = vadd.f32 %v3736_v27, %v3568_v42  ;;  %v7840_v38 = vld [vmem:[#allocation33_spill] sm:$0xff]  ;;  %v7841_v27 = vld [vmem:[#allocation11_spill] sm:$0xff] }
 0x4cc   : > { %v4158_v39 = vpop.f32.mrf.mxu0  ;;  %v3245_v42 = vadd.f32 %v7840_v38, %v7839_v7 }
 0x4cd   : > { %v3989_v1 = vpack.c.bf16 %v3737_v54, %v3735_v19  ;;  %v4159_v53 = vadd.f32 %v7657_v32, %v4158_v39 }
 0x4cf   : > { %4197 = vmatmul.bf16.gmra.mxu0 %v3989_v1  ;;  %v3570_v44 = vpop.f32.mrf.mxu2  ;;  %v4267_v40 = vmax.f32 %v4159_v53, 0.0 }
 0x4d0   : > { %v3571_v12 = vadd.f32 %v3570_v44, %v3402_v60 }
 0x4d1   : > { %v3403_v26 = vpop.f32.mrf.mxu1 }
 0x4d2   : > { %v3739_v29 = vpop.f32.mrf.mxu3  ;;  %v3404_v57 = vadd.f32 %v3403_v26, %v3235_v62 }
 0x4d3   : > { %v3740_v37 = vadd.f32 %v3739_v29, %v3571_v12 }
 0x4d4   : > { %v4160_v55 = vpop.f32.mrf.mxu0 }
 0x4d5   : > { %v4161_v52 = vadd.f32 %v7657_v32, %v4160_v55 }
 0x4d7   : > { %v4268_v6 = vmax.f32 %v4161_v52, 0.0  ;;  %v3572_v58 = vpop.f32.mrf.mxu2 }
 0x4d8   : > { %v3573_v16 = vadd.f32 %v3572_v58, %v3404_v57  ;;  %v7842_v58 = vld [vmem:[#allocation14_spill] sm:$0xff] }
 0x4d9   : > { %v6239_v17 = vpack.c.bf16 %v4268_v6, %v4267_v40  ;;  %v3406_v34 = vpop.f32.mrf.mxu1 }
 0x4da   : > { %v3741_v21 = vpop.f32.mrf.mxu3  ;;  %v3407_v61 = vadd.f32 %v3406_v34, %v7838_v30 }
 0x4db   : > { %6327 = vst [vmem:[%s7495_s24 + $0x88] sm:$0xff] %v6239_v17   ;;  %v3742_v28 = vadd.f32 %v3741_v21, %v3573_v16  ;;  %v7843_v17 = vld [vmem:[#allocation34_spill] sm:$0xff]  ;;  %v7844_v21 = vld [vmem:[#allocation13_spill] sm:$0xff] }
 0x4dc   : > { %v4163_v22 = vpop.f32.mrf.mxu0  ;;  %v3250_v16 = vadd.f32 %v7843_v17, %v7842_v58 }
 0x4dd   : > { %v3990_v63 = vpack.c.bf16 %v3742_v28, %v3740_v37  ;;  %v4164_v47 = vadd.f32 %v7657_v32, %v4163_v22 }
 0x4df   : > { %4202 = vmatmul.bf16.gmra.mxu0 %v3990_v63  ;;  %v3575_v13 = vpop.f32.mrf.mxu2  ;;  %v4269_v9 = vmax.f32 %v4164_v47, 0.0 }
 0x4e0   : > { %v3576_v46 = vadd.f32 %v3575_v13, %v3407_v61 }
 0x4e1   : > { %v3408_v33 = vpop.f32.mrf.mxu1 }
 0x4e2   : > { %v3744_v8 = vpop.f32.mrf.mxu3  ;;  %v3409_v59 = vadd.f32 %v3408_v33, %v3240_v20 }
 0x4e3   : > { %v3745_v45 = vadd.f32 %v3744_v8, %v3576_v46 }
 0x4e4   : > { %v4165_v11 = vpop.f32.mrf.mxu0 }
 0x4e5   : > { %v4166_v14 = vadd.f32 %v7657_v32, %v4165_v11 }
 0x4e7   : > { %v4270_v18 = vmax.f32 %v4166_v14, 0.0  ;;  %v3577_v50 = vpop.f32.mrf.mxu2 }
 0x4e8   : > { %v3578_v41 = vadd.f32 %v3577_v50, %v3409_v59  ;;  %v7845_v50 = vld [vmem:[#allocation35_spill] sm:$0xff] }
 0x4e9   : > { %v6244_v25 = vpack.c.bf16 %v4270_v18, %v4269_v9  ;;  %v3411_v43 = vpop.f32.mrf.mxu1 }
 0x4ea   : > { %v3746_v5 = vpop.f32.mrf.mxu3  ;;  %v3412_v0 = vadd.f32 %v3411_v43, %v7841_v27 }
 0x4eb   : > { %6328 = vst [vmem:[%s7495_s24 + $0x90] sm:$0xff] %v6244_v25   ;;  %v3747_v56 = vadd.f32 %v3746_v5, %v3578_v41  ;;  %v7846_v25 = vld [vmem:[#allocation18_spill] sm:$0xff]  ;;  %v7847_v5 = vld [vmem:[#allocation16_spill] sm:$0xff] }
 0x4ec   : > { %v4168_v15 = vpop.f32.mrf.mxu0  ;;  %v3255_v41 = vadd.f32 %v7846_v25, %v7845_v50 }
 0x4ed   : > { %v3991_v51 = vpack.c.bf16 %v3747_v56, %v3745_v45  ;;  %v4169_v2 = vadd.f32 %v7657_v32, %v4168_v15 }
 0x4ef   : > { %4207 = vmatmul.bf16.gmra.mxu0 %v3991_v51  ;;  %v3580_v36 = vpop.f32.mrf.mxu2  ;;  %v4271_v54 = vmax.f32 %v4169_v2, 0.0 }
 0x4f0   : > { %v3581_v39 = vadd.f32 %v3580_v36, %v3412_v0 }
 0x4f1   : > { %v3413_v10 = vpop.f32.mrf.mxu1 }
 0x4f2   : > { %v3749_v35 = vpop.f32.mrf.mxu3  ;;  %v3414_v1 = vadd.f32 %v3413_v10, %v3245_v42 }
 0x4f3   : > { %v3750_v48 = vadd.f32 %v3749_v35, %v3581_v39 }
 0x4f4   : > { %v4170_v23 = vpop.f32.mrf.mxu0 }
 0x4f5   : > { %v4171_v19 = vadd.f32 %v7657_v32, %v4170_v23 }
 0x4f7   : > { %v4272_v44 = vmax.f32 %v4171_v19, 0.0  ;;  %v3582_v29 = vpop.f32.mrf.mxu2 }
 0x4f8   : > { %v3583_v53 = vadd.f32 %v3582_v29, %v3414_v1  ;;  %v7848_v29 = vld [vmem:[#allocation22_spill] sm:$0xff] }
 0x4f9   : > { %v6249_v26 = vpack.c.bf16 %v4272_v44, %v4271_v54  ;;  %v3416_v4 = vpop.f32.mrf.mxu1 }
 0x4fa   : > { %v3751_v55 = vpop.f32.mrf.mxu3  ;;  %v3417_v34 = vadd.f32 %v3416_v4, %v7844_v21 }
 0x4fb   : > { %6329 = vst [vmem:[%s7495_s24 + $0x98] sm:$0xff] %v6249_v26   ;;  %v3752_v62 = vadd.f32 %v3751_v55, %v3583_v53  ;;  %v3260_v26 = vadd.f32 %v7466_v3, %v7848_v29  ;;  %v7849_v53 = vld [vmem:[#allocation20_spill] sm:$0xff] }
 0x4fc   : > { %v4173_v49 = vpop.f32.mrf.mxu0 }
 0x4fd   : > { %v3992_v60 = vpack.c.bf16 %v3752_v62, %v3750_v48  ;;  %v4174_v57 = vadd.f32 %v7657_v32, %v4173_v49 }
 0x4ff   : > { %4212 = vmatmul.bf16.gmra.mxu0 %v3992_v60  ;;  %v3585_v52 = vpop.f32.mrf.mxu2  ;;  %v4273_v28 = vmax.f32 %v4174_v57, 0.0 }
 0x500   : > { %v3586_v22 = vadd.f32 %v3585_v52, %v3417_v34 }
 0x501   : > { %v3418_v12 = vpop.f32.mrf.mxu1 }
 0x502   : > { %v3754_v40 = vpop.f32.mrf.mxu3  ;;  %v3419_v63 = vadd.f32 %v3418_v12, %v3250_v16 }
 0x503   : > { %v3755_v24 = vadd.f32 %v3754_v40, %v3586_v22 }
 0x504   : > { %v4175_v6 = vpop.f32.mrf.mxu0 }
 0x505   : > { %v4176_v37 = vadd.f32 %v7657_v32, %v4175_v6 }
 0x507   : > { %v4274_v13 = vmax.f32 %v4176_v37, 0.0  ;;  %v3587_v8 = vpop.f32.mrf.mxu2 }
 0x508   : > { %v3588_v47 = vadd.f32 %v3587_v8, %v3419_v63 }
 0x509   : > { %v6254_v33 = vpack.c.bf16 %v4274_v13, %v4273_v28  ;;  %v3421_v31 = vpop.f32.mrf.mxu1 }
 0x50a   : > { %v3756_v11 = vpop.f32.mrf.mxu3  ;;  %v3422_v43 = vadd.f32 %v3421_v31, %v7847_v5 }
 0x50b   : > { %6330 = vst [vmem:[%s7495_s24 + $0xa0] sm:$0xff] %v6254_v33   ;;  %v3757_v20 = vadd.f32 %v3756_v11, %v3588_v47 }
 0x50c   : > { %v4178_v30 = vpop.f32.mrf.mxu0 }
 0x50d   : > { %v3993_v61 = vpack.c.bf16 %v3757_v20, %v3755_v24  ;;  %v4179_v59 = vadd.f32 %v7657_v32, %v4178_v30 }
 0x50f   : > { %4217 = vmatmul.bf16.gmra.mxu0 %v3993_v61  ;;  %v3590_v14 = vpop.f32.mrf.mxu2  ;;  %v4275_v56 = vmax.f32 %v4179_v59, 0.0 }
 0x510   : > { %v3591_v15 = vadd.f32 %v3590_v14, %v3422_v43 }
 0x511   : > { %v3423_v46 = vpop.f32.mrf.mxu1 }
 0x512   : > { %v3759_v9 = vpop.f32.mrf.mxu3  ;;  %v3424_v51 = vadd.f32 %v3423_v46, %v3255_v41 }
 0x513   : > { %v3760_v38 = vadd.f32 %v3759_v9, %v3591_v15 }
 0x514   : > { %v4180_v18 = vpop.f32.mrf.mxu0 }
 0x515   : > { %v4181_v45 = vadd.f32 %v7657_v32, %v4180_v18 }
 0x517   : > { %v4276_v36 = vmax.f32 %v4181_v45, 0.0  ;;  %v3592_v35 = vpop.f32.mrf.mxu2 }
 0x518   : > { %v3593_v2 = vadd.f32 %v3592_v35, %v3424_v51 }
 0x519   : > { %v6259_v10 = vpack.c.bf16 %v4276_v36, %v4275_v56  ;;  %v3426_v7 = vpop.f32.mrf.mxu1 }
 0x51a   : > { %v3761_v23 = vpop.f32.mrf.mxu3  ;;  %v3427_v55 = vadd.f32 %v3426_v7, %v7849_v53 }
 0x51b   : > { %6331 = vst [vmem:[%s7495_s24 + $0xa8] sm:$0xff] %v6259_v10   ;;  %v3762_v42 = vadd.f32 %v3761_v23, %v3593_v2 }
 0x51c   : > { %v4183_v27 = vpop.f32.mrf.mxu0 }
 0x51d   : > { %v3994_v0 = vpack.c.bf16 %v3762_v42, %v3760_v38  ;;  %v4184_v39 = vadd.f32 %v7657_v32, %v4183_v27 }
 0x51f   : > { %4222 = vmatmul.bf16.gmra.mxu0 %v3994_v0  ;;  %v3595_v19 = vpop.f32.mrf.mxu2  ;;  %v4277_v48 = vmax.f32 %v4184_v39, 0.0 }
 0x520   : > { %v3596_v62 = vadd.f32 %v3595_v19, %v3427_v55 }
 0x521   : > { %v3428_v1 = vpop.f32.mrf.mxu1 }
 0x522   : > { %v3764_v54 = vpop.f32.mrf.mxu3  ;;  %v3429_v49 = vadd.f32 %v3428_v1, %v3260_v26 }
 0x523   : > { %v3765_v6 = vadd.f32 %v3764_v54, %v3596_v62 }
 0x524   : > { %v4185_v44 = vpop.f32.mrf.mxu0 }
 0x525   : > { %v4186_v4 = vadd.f32 %v7657_v32, %v4185_v44 }
 0x527   : > { %v4278_v60 = vmax.f32 %v4186_v4, 0.0  ;;  %v3597_v52 = vpop.f32.mrf.mxu2 }
 0x528   : > { %v3598_v12 = vadd.f32 %v3597_v52, %v3429_v49 }
 0x529   : > { %v6264_v40 = vpack.c.bf16 %v4278_v60, %v4277_v48 }
 0x52a   : > { %v3766_v57 = vpop.f32.mrf.mxu3 }
 0x52b   : > { %6332 = vst [vmem:[%s7495_s24 + $0xb0] sm:$0xff] %v6264_v40   ;;  %v3767_v58 = vadd.f32 %v3766_v57, %v3598_v12 }
 0x52c   : > { %v4188_v17 = vpop.f32.mrf.mxu0 }
 0x52d   : > { %v3995_v16 = vpack.c.bf16 %v3767_v58, %v3765_v6  ;;  %v4189_v3 = vadd.f32 %v7657_v32, %v4188_v17 }
 0x52f   : > { %4227 = vmatmul.bf16.gmra.mxu0 %v3995_v16  ;;  %v4279_v37 = vmax.f32 %v4189_v3, 0.0 }
 0x534   : > { %v4190_v21 = vpop.f32.mrf.mxu0 }
 0x535   : > { %v4191_v34 = vadd.f32 %v7657_v32, %v4190_v21 }
 0x537   : > { %v4280_v28 = vmax.f32 %v4191_v34, 0.0 }
 0x539   : > { %v6269_v22 = vpack.c.bf16 %v4280_v28, %v4279_v37 }
 0x53b   : > { %6333 = vst [vmem:[%s7495_s24 + $0xb8] sm:$0xff] %v6269_v22  }
 0x53c   : > { %v4193_v63 = vpop.f32.mrf.mxu0 }
 0x53d   : > { %v4194_v13 = vadd.f32 %v7657_v32, %v4193_v63 }
 0x53f   : > { %v4281_v47 = vmax.f32 %v4194_v13, 0.0 }
 0x544   : > { %v4195_v8 = vpop.f32.mrf.mxu0 }
 0x545   : > { %v4196_v33 = vadd.f32 %v7657_v32, %v4195_v8 }
 0x547   : > { %v4282_v11 = vmax.f32 %v4196_v33, 0.0 }
 0x549   : > { %v6274_v31 = vpack.c.bf16 %v4282_v11, %v4281_v47 }
 0x54b   : > { %6334 = vst [vmem:[%s7495_s24 + $0xc0] sm:$0xff] %v6274_v31  }
 0x54c   : > { %v4198_v24 = vpop.f32.mrf.mxu0 }
 0x54d   : > { %v4199_v20 = vadd.f32 %v7657_v32, %v4198_v24 }
 0x54f   : > { %v4283_v14 = vmax.f32 %v4199_v20, 0.0 }
 0x554   : > { %v4200_v30 = vpop.f32.mrf.mxu0 }
 0x555   : > { %v4201_v61 = vadd.f32 %v7657_v32, %v4200_v30 }
 0x557   : > { %v4284_v9 = vmax.f32 %v4201_v61, 0.0 }
 0x559   : > { %v6279_v46 = vpack.c.bf16 %v4284_v9, %v4283_v14 }
 0x55b   : > { %6335 = vst [vmem:[%s7495_s24 + $0xc8] sm:$0xff] %v6279_v46  }
 0x55c   : > { %v4203_v59 = vpop.f32.mrf.mxu0 }
 0x55d   : > { %v4204_v18 = vadd.f32 %v7657_v32, %v4203_v59 }
 0x55f   : > { %v4285_v41 = vmax.f32 %v4204_v18, 0.0 }
 0x564   : > { %v4205_v50 = vpop.f32.mrf.mxu0 }
 0x565   : > { %v4206_v25 = vadd.f32 %v7657_v32, %v4205_v50 }
 0x567   : > { %v4286_v5 = vmax.f32 %v4206_v25, 0.0 }
 0x569   : > { %v6284_v43 = vpack.c.bf16 %v4286_v5, %v4285_v41 }
 0x56b   : > { %6336 = vst [vmem:[%s7495_s24 + $0xd0] sm:$0xff] %v6284_v43  }
 0x56c   : > { %v4208_v45 = vpop.f32.mrf.mxu0 }
 0x56d   : > { %v4209_v56 = vadd.f32 %v7657_v32, %v4208_v45 }
 0x56f   : > { %v4287_v36 = vmax.f32 %v4209_v56, 0.0 }
 0x574   : > { %v4210_v15 = vpop.f32.mrf.mxu0 }
 0x575   : > { %v4211_v51 = vadd.f32 %v7657_v32, %v4210_v15 }
 0x577   : > { %v4288_v35 = vmax.f32 %v4211_v51, 0.0 }
 0x579   : > { %v6289_v10 = vpack.c.bf16 %v4288_v35, %v4287_v36 }
 0x57b   : > { %6337 = vst [vmem:[%s7495_s24 + $0xd8] sm:$0xff] %v6289_v10  }
 0x57c   : > { %v4213_v2 = vpop.f32.mrf.mxu0 }
 0x57d   : > { %v4214_v23 = vadd.f32 %v7657_v32, %v4213_v2 }
 0x57f   : > { %v4289_v42 = vmax.f32 %v4214_v23, 0.0 }
 0x584   : > { %v4215_v7 = vpop.f32.mrf.mxu0 }
 0x585   : > { %v4216_v38 = vadd.f32 %v7657_v32, %v4215_v7 }
 0x587   : > { %v4290_v27 = vmax.f32 %v4216_v38, 0.0 }
 0x589   : > { %v6294_v0 = vpack.c.bf16 %v4290_v27, %v4289_v42 }
 0x58b   : > { %6338 = vst [vmem:[%s7495_s24 + $0xe0] sm:$0xff] %v6294_v0  }
 0x58c   : > { %v4218_v19 = vpop.f32.mrf.mxu0 }
 0x58d   : > { %v4219_v54 = vadd.f32 %v7657_v32, %v4218_v19 }
 0x58f   : > { %v4291_v44 = vmax.f32 %v4219_v54, 0.0 }
 0x594   : > { %v4220_v39 = vpop.f32.mrf.mxu0 }
 0x595   : > { %v4221_v1 = vadd.f32 %v7657_v32, %v4220_v39 }
 0x597   : > { %v4292_v29 = vmax.f32 %v4221_v1, 0.0 }
 0x599   : > { %v6299_v26 = vpack.c.bf16 %v4292_v29, %v4291_v44 }
 0x59b   : > { %6339 = vst [vmem:[%s7495_s24 + $0xe8] sm:$0xff] %v6299_v26  }
 0x59c   : > { %v4223_v53 = vpop.f32.mrf.mxu0 }
 0x59d   : > { %v4224_v55 = vadd.f32 %v7657_v32, %v4223_v53 }
 0x59f   : > { %v4293_v62 = vmax.f32 %v4224_v55, 0.0 }
 0x5a4   : > { %v4225_v4 = vpop.f32.mrf.mxu0 }
 0x5a5   : > { %v4226_v48 = vadd.f32 %v7657_v32, %v4225_v4 }
 0x5a7   : > { %v4294_v49 = vmax.f32 %v4226_v48, 0.0 }
 0x5a9   : > { %v6304_v60 = vpack.c.bf16 %v4294_v49, %v4293_v62 }
 0x5ab   : > { %6340 = vst [vmem:[%s7495_s24 + $0xf0] sm:$0xff] %v6304_v60  }
 0x5ac   : > { %v4228_v52 = vpop.f32.mrf.mxu0 }
 0x5ad   : > { %v4229_v40 = vadd.f32 %v7657_v32, %v4228_v52 }
 0x5af   : > { %v4295_v6 = vmax.f32 %v4229_v40, 0.0 }
 0x5b4   : > { %v4230_v12 = vpop.f32.mrf.mxu0 }
 0x5b5   : > { %v4231_v57 = vadd.f32 %v7657_v32, %v4230_v12 }
 0x5b7   : > { %v4296_v58 = vmax.f32 %v4231_v57, 0.0 }
 0x5b9   : > { %v6309_v17 = vpack.c.bf16 %v4296_v58, %v4295_v6 }
 0x5bb   : > { %6341 = vst [vmem:[%s7495_s24 + $0xf8] sm:$0xff] %v6309_v17  }
 0x5bc PF: > { %s14_s17 = sadd.s32 1, %s6414_s17   ;;  %s7850_s15 = smov %s6410_s16 }
 0x5bd   : > { %p11_p5 = scmp.ge.s32.totalorder %s14_s17, 4   ;;  %s7851_s16 = smov %s7853_s18 }
 0x5bf   :  { %13 = sbr.rel (!%p11_p5) target bundleno = 2 (0x2), region = 75 }

// kernel: gcn_forward.3
= control target key start
LH: loop header
LB: loop body
LE: loop exit
PB: predicated region body
PF: predicated region fallthrough
CT: control target
= control target key end

     0   :  { %s7150_s15 = smov 0   ;;  %s7152_s16 = smov 0   ;;  %s9128_s0 = inlined_call_operand.vmem [shape: bf16[1024,1024], index: 0, kind: input, shape index: {}]   ;;  %s9129_s1 = inlined_call_operand.vmem [shape: bf16[1024,128], index: 1, kind: input, shape index: {}]   ;;  %s9130_s2 = inlined_call_operand.vmem [shape: bf16[128,128], index: 2, kind: input, shape index: {}]   ;;  %s9131_s3 = inlined_call_operand.vmem [shape: f32[1,128], index: 3, kind: input, shape index: {}]   ;;  %s9132_s4 = inlined_call_operand.vmem [shape: f32[1024,128], index: 4, kind: output, shape index: {}]  }
   0x1   :  { %s7154_s17 = smov 0  }
   0x2 LB: > { %s26_s18 = sadd.s32 1, %s7119_s16  ;;  %p5145_p0 = scmp.ge.s32.totalorder %s7123_s17, 1  ;;  %s7123_s17 = sphi %s7154_s17, %s14_s17   ;;  %s7119_s16 = sphi %s7152_s16, %s9240_s16   ;;  %s7115_s15 = sphi %s7150_s15, %s9239_s15  }
   0x3   : > { %p28_p1 = scmp.ge.s32.totalorder %s26_s18, 2  ;;  %p183_p2 = scmp.lt.s32.totalorder %s7123_s17, 3 }
   0x5   : > { %s9242_s18 = smov (%p28_p1, %s26_s18), 0  ;;  %p184_p3 = pnand %p5145_p0, %p183_p2 }
   0x7   : > { %187 = sbr.rel (%p184_p3) target bundleno = 1723 (0x6bb), region = 36 }
   0xc   : > { %v6473_v0 = vld [vmem:[%s9129_s1 + $0x38] sm:$0xff]  ;;  %v6472_v1 = vld [vmem:[%s9129_s1 + $0x30] sm:$0xff]  ;;  %v6471_v2 = vld [vmem:[%s9129_s1 + $0x28] sm:$0xff]  ;;  %s5146_s25 = sshll.u32 %s7115_s15, 6 }
   0xd   : > { %6794 = vmatpush.bf16.msra.mxu1 %v6473_v0  ;;  %6795 = vmatpush.bf16.msra.mxu2 %v6473_v0  ;;  %v6470_v3 = vld [vmem:[%s9129_s1 + $0x20] sm:$0xff]  ;;  %p216_p4 = scmp.lt.s32.totalorder %s5146_s25, 127  ;;  %v6469_v4 = vld [vmem:[%s9129_s1 + $0x18] sm:$0xff]  ;;  %v6468_v5 = vld [vmem:[%s9129_s1 + $0x10] sm:$0xff] }
   0xe   : > { %6796 = vmatpush.bf16.msra.mxu3 %v6473_v0  ;;  %2417 = vmatpush.bf16.msra.mxu0 %v6473_v0  ;;  %v6467_v6 = vld [vmem:[%s9129_s1 + $0x8] sm:$0xff]  ;;  %v6466_v7 = vld [vmem:[%s9129_s1] sm:$0xff]  ;;  %v6489_v14 = vld [vmem:[%s9129_s1 + $0xb8] sm:$0xff] }
   0xf   : > { %s9244_s25 = smov (!%p216_p4, %s5146_s25), 127  ;;  %v6497_v15 = vld [vmem:[%s9129_s1 + $0xf8] sm:$0xff]  ;;  %v6488_v22 = vld [vmem:[%s9129_s1 + $0xb0] sm:$0xff]  ;;  %v6487_v26 = vld [vmem:[%s9129_s1 + $0xa8] sm:$0xff] }
  0x10   : > { %s6465_s6 = sshll.u32 %s9244_s25, 5  ;;  %v6481_v16 = vld [vmem:[%s9129_s1 + $0x78] sm:$0xff]  ;;  %v6496_v23 = vld [vmem:[%s9129_s1 + $0xf0] sm:$0xff]  ;;  %v6495_v27 = vld [vmem:[%s9129_s1 + $0xe8] sm:$0xff] }
  0x11   : > { %6797 = vmatpush.bf16.msra.mxu1 %v6472_v1  ;;  %6798 = vmatpush.bf16.msra.mxu2 %v6472_v1  ;;  %s7198_s11 = scalar_lea.vmem %s9128_s0, %s6465_s6  ;;  %v6480_v24 = vld [vmem:[%s9129_s1 + $0x70] sm:$0xff]  ;;  %v6479_v28 = vld [vmem:[%s9129_s1 + $0x68] sm:$0xff]  ;;  %v6486_v41 = vld [vmem:[%s9129_s1 + $0xa0] sm:$0xff] }
  0x12   : > { %6799 = vmatpush.bf16.msra.mxu3 %v6472_v1  ;;  %2418 = vmatpush.bf16.msra.mxu0 %v6472_v1  ;;  %v5409_v8 = vld [vmem:[%s7198_s11 + $0x200] sm:$0xf]  ;;  %v6485_v56 = vld [vmem:[%s9129_s1 + $0x98] sm:$0xff] }
  0x13   : > { %v6598_v9 = vld [vmem:[%s7198_s11 + $0x21c] sm:$0xf0]  ;;  %v6493_v57 = vld [vmem:[%s9129_s1 + $0xd8] sm:$0xff] }
  0x14   : > { %v5665_v10 = vld [vmem:[%s7198_s11 + $0x400] sm:$0xf]  ;;  %v5410_v17 = vor.u32 %v6598_v9, %v5409_v8  ;;  %v6477_v58 = vld [vmem:[%s9129_s1 + $0x58] sm:$0xff]  ;;  %v6492_v8 = vld [vmem:[%s9129_s1 + $0xd0] sm:$0xff] }
  0x15   : > { %6800 = vmatpush.bf16.msra.mxu1 %v6471_v2  ;;  %6801 = vmatpush.bf16.msra.mxu2 %v6471_v2  ;;  %v6662_v11 = vld [vmem:[%s7198_s11 + $0x41c] sm:$0xf0]  ;;  %v6476_v9 = vld [vmem:[%s9129_s1 + $0x50] sm:$0xff] }
  0x16   : > { %6802 = vmatpush.bf16.msra.mxu3 %v6471_v2  ;;  %2419 = vmatpush.bf16.msra.mxu0 %v6471_v2  ;;  %v5921_v12 = vld [vmem:[%s7198_s11 + $0x600] sm:$0xf]  ;;  %v5666_v18 = vor.u32 %v6662_v11, %v5665_v10 }
  0x17   : > { %v6726_v13 = vld [vmem:[%s7198_s11 + $0x61c] sm:$0xf0] }
  0x18   : > { %v5922_v19 = vor.u32 %v6726_v13, %v5921_v12  ;;  %v5153_v20 = vld [vmem:[%s7198_s11] sm:$0xf] }
  0x19   : > { %6803 = vmatpush.bf16.msra.mxu1 %v6470_v3  ;;  %6804 = vmatpush.bf16.msra.mxu2 %v6470_v3  ;;  %v6534_v21 = vld [vmem:[%s7198_s11 + $0x1c] sm:$0xf0] }
  0x1a   : > { %6805 = vmatpush.bf16.msra.mxu3 %v6470_v3  ;;  %2420 = vmatpush.bf16.msra.mxu0 %v6470_v3  ;;  %v5154_v25 = vor.u32 %v6534_v21, %v5153_v20  ;;  %v5441_v29 = vld [vmem:[%s7198_s11 + $0x240] sm:$0xf] }
  0x1b   : > { %v6606_v30 = vld [vmem:[%s7198_s11 + $0x25c] sm:$0xf0] }
  0x1c   : > { %v5697_v31 = vld [vmem:[%s7198_s11 + $0x440] sm:$0xf]  ;;  %v5442_v35 = vor.u32 %v6606_v30, %v5441_v29 }
  0x1d   : > { %6806 = vmatpush.bf16.msra.mxu1 %v6469_v4  ;;  %6807 = vmatpush.bf16.msra.mxu2 %v6469_v4  ;;  %v6670_v32 = vld [vmem:[%s7198_s11 + $0x45c] sm:$0xf0] }
  0x1e   : > { %6808 = vmatpush.bf16.msra.mxu3 %v6469_v4  ;;  %2421 = vmatpush.bf16.msra.mxu0 %v6469_v4  ;;  %v5953_v33 = vld [vmem:[%s7198_s11 + $0x640] sm:$0xf]  ;;  %v5698_v36 = vor.u32 %v6670_v32, %v5697_v31 }
  0x1f   : > { %v6734_v34 = vld [vmem:[%s7198_s11 + $0x65c] sm:$0xf0] }
  0x20   : > { %v5954_v37 = vor.u32 %v6734_v34, %v5953_v33  ;;  %v5185_v38 = vld [vmem:[%s7198_s11 + $0x40] sm:$0xf] }
  0x21   : > { %6809 = vmatpush.bf16.msra.mxu1 %v6468_v5  ;;  %6810 = vmatpush.bf16.msra.mxu2 %v6468_v5  ;;  %v6542_v39 = vld [vmem:[%s7198_s11 + $0x5c] sm:$0xf0] }
  0x22   : > { %6811 = vmatpush.bf16.msra.mxu3 %v6468_v5  ;;  %2422 = vmatpush.bf16.msra.mxu0 %v6468_v5  ;;  %v5186_v40 = vor.u32 %v6542_v39, %v5185_v38  ;;  %v6494_v42 = vld [vmem:[%s9129_s1 + $0xe0] sm:$0xff] }
  0x23   : > { %v6478_v43 = vld [vmem:[%s9129_s1 + $0x60] sm:$0xff] }
  0x24   : > { %v5473_v44 = vld [vmem:[%s7198_s11 + $0x280] sm:$0xf] }
  0x25   : > { %6812 = vmatpush.bf16.msra.mxu1 %v6467_v6  ;;  %6813 = vmatpush.bf16.msra.mxu2 %v6467_v6  ;;  %v6614_v45 = vld [vmem:[%s7198_s11 + $0x29c] sm:$0xf0] }
  0x26   : > { %6814 = vmatpush.bf16.msra.mxu3 %v6467_v6  ;;  %2423 = vmatpush.bf16.msra.mxu0 %v6467_v6  ;;  %v5729_v46 = vld [vmem:[%s7198_s11 + $0x480] sm:$0xf]  ;;  %v5474_v50 = vor.u32 %v6614_v45, %v5473_v44 }
  0x27   : > { %v6678_v47 = vld [vmem:[%s7198_s11 + $0x49c] sm:$0xf0] }
  0x28   : > { %v5985_v48 = vld [vmem:[%s7198_s11 + $0x680] sm:$0xf]  ;;  %v5730_v51 = vor.u32 %v6678_v47, %v5729_v46 }
  0x29   : > { %6815 = vmatpush.bf16.msra.mxu1 %v6466_v7  ;;  %6816 = vmatpush.bf16.msra.mxu2 %v6466_v7  ;;  %v6742_v49 = vld [vmem:[%s7198_s11 + $0x69c] sm:$0xf0] }
  0x2a   : > { %6817 = vmatpush.bf16.msra.mxu3 %v6466_v7  ;;  %2424 = vmatpush.bf16.msra.mxu0 %v6466_v7  ;;  %v5986_v52 = vor.u32 %v6742_v49, %v5985_v48  ;;  %v5217_v53 = vld [vmem:[%s7198_s11 + $0x80] sm:$0xf]  ;;  %v6484_v7 = vld [vmem:[%s9129_s1 + $0x90] sm:$0xff]  ;;  %v6501_v48 = vld [vmem:[%s9129_s1 + $0x118] sm:$0xff] }
  0x2b   : > { %v6550_v54 = vld [vmem:[%s7198_s11 + $0x9c] sm:$0xf0] }
  0x2c   : > { %2465 = vmatmul.bf16.vlgmr.msra.gmra.mxu1 %v5410_v17  ;;  %2505 = vmatmul.bf16.vlgmr.msra.gmra.mxu2 %v5666_v18  ;;  %v5218_v55 = vor.u32 %v6550_v54, %v5217_v53  ;;  %v5505_v59 = vld [vmem:[%s7198_s11 + $0x2c0] sm:$0xf] }
  0x2d   : > { %2755 = vmatpush.bf16.msrb.mxu2 %v6489_v14  ;;  %2586 = vmatpush.bf16.msrb.mxu1 %v6481_v16  ;;  %v6622_v60 = vld [vmem:[%s7198_s11 + $0x2dc] sm:$0xf0] }
  0x2e   : > { %2924 = vmatpush.bf16.msrb.mxu3 %v6497_v15  ;;  %2425 = vmatmul.bf16.vlgmr.msra.gmra.mxu0 %v5154_v25  ;;  %v5761_v61 = vld [vmem:[%s7198_s11 + $0x4c0] sm:$0xf]  ;;  %v5506_v1 = vor.u32 %v6622_v60, %v5505_v59  ;;  %v6505_v25 = vld [vmem:[%s9129_s1 + $0x138] sm:$0xff]  ;;  %v6499_v60 = vld [vmem:[%s9129_s1 + $0x108] sm:$0xff] }
  0x2f   : > { %2545 = vmatmul.bf16.vlgmr.msra.gmra.mxu3 %v5922_v19  ;;  %v6686_v62 = vld [vmem:[%s7198_s11 + $0x4dc] sm:$0xf0]  ;;  %3093 = vmatpush.bf16.msrb.mxu0 %v6505_v25  ;;  %v6529_v59 = vld [vmem:[%s9129_s1 + $0x1f8] sm:$0xff] }
  0x30   : > { %v6017_v63 = vld [vmem:[%s7198_s11 + $0x6c0] sm:$0xf]  ;;  %v5762_v2 = vor.u32 %v6686_v62, %v5761_v61  ;;  %v6513_v61 = vld [vmem:[%s9129_s1 + $0x178] sm:$0xff] }
  0x31   : > { %2756 = vmatpush.bf16.msrb.mxu2 %v6488_v22  ;;  %2587 = vmatpush.bf16.msrb.mxu1 %v6480_v24  ;;  %v6750_v0 = vld [vmem:[%s7198_s11 + $0x6dc] sm:$0xf0]  ;;  %v6483_v22 = vld [vmem:[%s9129_s1 + $0x88] sm:$0xff] }
  0x32   : > { %2925 = vmatpush.bf16.msrb.mxu3 %v6496_v23  ;;  %v6018_v3 = vor.u32 %v6750_v0, %v6017_v63  ;;  %v5249_v4 = vld [vmem:[%s7198_s11 + $0xc0] sm:$0xf]  ;;  %v6491_v23 = vld [vmem:[%s9129_s1 + $0xc8] sm:$0xff] }
  0x33   : > { %v6558_v5 = vld [vmem:[%s7198_s11 + $0xdc] sm:$0xf0]  ;;  %v6475_v24 = vld [vmem:[%s9129_s1 + $0x48] sm:$0xff] }
  0x34   : > { %v5250_v6 = vor.u32 %v6558_v5, %v5249_v4  ;;  %v5537_v10 = vld [vmem:[%s7198_s11 + $0x300] sm:$0xf] }
  0x35   : > { %2757 = vmatpush.bf16.msrb.mxu2 %v6487_v26  ;;  %2588 = vmatpush.bf16.msrb.mxu1 %v6479_v28  ;;  %v6630_v11 = vld [vmem:[%s7198_s11 + $0x31c] sm:$0xf0]  ;;  %v6504_v26 = vld [vmem:[%s9129_s1 + $0x130] sm:$0xff] }
  0x36   : > { %2926 = vmatpush.bf16.msrb.mxu3 %v6495_v27  ;;  %v5793_v12 = vld [vmem:[%s7198_s11 + $0x500] sm:$0xf]  ;;  %v5538_v16 = vor.u32 %v6630_v11, %v5537_v10  ;;  %3094 = vmatpush.bf16.msrb.mxu0 %v6504_v26  ;;  %v6530_v11 = vld [vmem:[%s7198_s11 + $0x4] sm:$0xf] }
  0x37   : > { %v6694_v13 = vld [vmem:[%s7198_s11 + $0x51c] sm:$0xf0] }
  0x38   : > { %v6049_v14 = vld [vmem:[%s7198_s11 + $0x700] sm:$0xf]  ;;  %v5794_v17 = vor.u32 %v6694_v13, %v5793_v12  ;;  %v5155_v12 = vld [vmem:[%s7198_s11 + $0x20] sm:$0xf0]  ;;  %v5161_v13 = vld [vmem:[%s7198_s11 + $0x8] sm:$0xf] }
  0x39   : > { %2758 = vmatpush.bf16.msrb.mxu2 %v6486_v41  ;;  %2589 = vmatpush.bf16.msrb.mxu1 %v6478_v43  ;;  %v6758_v15 = vld [vmem:[%s7198_s11 + $0x71c] sm:$0xf0]  ;;  %v6503_v41 = vld [vmem:[%s9129_s1 + $0x128] sm:$0xff] }
  0x3a   : > { %2927 = vmatpush.bf16.msrb.mxu3 %v6494_v42  ;;  %v6050_v18 = vor.u32 %v6758_v15, %v6049_v14  ;;  %v5281_v19 = vld [vmem:[%s7198_s11 + $0x100] sm:$0xf]  ;;  %3095 = vmatpush.bf16.msrb.mxu0 %v6503_v41  ;;  %v6535_v14 = vld [vmem:[%s7198_s11 + $0x24] sm:$0xf0]  ;;  %v6531_v15 = vld [vmem:[%s7198_s11 + $0xc] sm:$0xf] }
  0x3b   : > { %v6566_v20 = vld [vmem:[%s7198_s11 + $0x11c] sm:$0xf0]  ;;  %v5201_v41 = vld [vmem:[%s7198_s11 + $0x50] sm:$0xf] }
  0x3c   : > { %2470 = vmatmul.bf16.gmra.mxu1 %v5442_v35  ;;  %2510 = vmatmul.bf16.gmra.mxu2 %v5698_v36  ;;  %v5282_v21 = vor.u32 %v6566_v20, %v5281_v19  ;;  %v5569_v27 = vld [vmem:[%s7198_s11 + $0x340] sm:$0xf] }
  0x3d   : > { %2759 = vmatpush.bf16.msrb.mxu2 %v6485_v56  ;;  %2590 = vmatpush.bf16.msrb.mxu1 %v6477_v58  ;;  %v6638_v28 = vld [vmem:[%s7198_s11 + $0x35c] sm:$0xf0]  ;;  %v6500_v56 = vld [vmem:[%s9129_s1 + $0x110] sm:$0xff]  ;;  %v6521_v58 = vld [vmem:[%s9129_s1 + $0x1b8] sm:$0xff] }
  0x3e   : > { %2430 = vmatmul.bf16.gmra.mxu0 %v5186_v40  ;;  %2928 = vmatpush.bf16.msrb.mxu3 %v6493_v57  ;;  %v5825_v29 = vld [vmem:[%s7198_s11 + $0x540] sm:$0xf]  ;;  %v5570_v33 = vor.u32 %v6638_v28, %v5569_v27  ;;  %v6538_v28 = vld [vmem:[%s7198_s11 + $0x44] sm:$0xf] }
  0x3f   : > { %2550 = vmatmul.bf16.gmra.mxu3 %v5954_v37  ;;  %v6702_v30 = vld [vmem:[%s7198_s11 + $0x55c] sm:$0xf0] }
  0x40   : > { %v6081_v31 = vld [vmem:[%s7198_s11 + $0x740] sm:$0xf]  ;;  %v5826_v34 = vor.u32 %v6702_v30, %v5825_v29  ;;  %v5187_v30 = vld [vmem:[%s7198_s11 + $0x60] sm:$0xf0] }
  0x41   : > { %2760 = vmatpush.bf16.msrb.mxu2 %v6484_v7  ;;  %2591 = vmatpush.bf16.msrb.mxu1 %v6476_v9  ;;  %v6766_v32 = vld [vmem:[%s7198_s11 + $0x75c] sm:$0xf0] }
  0x42   : > { %2929 = vmatpush.bf16.msrb.mxu3 %v6492_v8  ;;  %v6082_v35 = vor.u32 %v6766_v32, %v6081_v31  ;;  %v5313_v36 = vld [vmem:[%s7198_s11 + $0x140] sm:$0xf]  ;;  %v5193_v31 = vld [vmem:[%s7198_s11 + $0x48] sm:$0xf] }
  0x43   : > { %v6574_v37 = vld [vmem:[%s7198_s11 + $0x15c] sm:$0xf0]  ;;  %v6543_v32 = vld [vmem:[%s7198_s11 + $0x64] sm:$0xf0] }
  0x44   : > { %v5314_v38 = vor.u32 %v6574_v37, %v5313_v36  ;;  %v6482_v39 = vld [vmem:[%s9129_s1 + $0x80] sm:$0xff]  ;;  %v5190_v37 = vor.u32 %v6538_v28, %v5187_v30 }
  0x45   : > { %2761 = vmatpush.bf16.msrb.mxu2 %v6483_v22  ;;  %2592 = vmatpush.bf16.msrb.mxu1 %v6475_v24  ;;  %v6490_v40 = vld [vmem:[%s9129_s1 + $0xc0] sm:$0xff]  ;;  %v6536_v22 = vld [vmem:[%s7198_s11 + $0x2c] sm:$0xf0] }
  0x46   : > { %2930 = vmatpush.bf16.msrb.mxu3 %v6491_v23  ;;  %v6474_v42 = vld [vmem:[%s9129_s1 + $0x40] sm:$0xff] }
  0x47   : > { %v6502_v43 = vld [vmem:[%s9129_s1 + $0x120] sm:$0xff] }
  0x48   : > { %v5601_v44 = vld [vmem:[%s7198_s11 + $0x380] sm:$0xf]  ;;  %3096 = vmatpush.bf16.msrb.mxu0 %v6502_v43 }
  0x49   : > { %2762 = vmatpush.bf16.msrb.mxu2 %v6482_v39  ;;  %2593 = vmatpush.bf16.msrb.mxu1 %v6474_v42  ;;  %v6646_v45 = vld [vmem:[%s7198_s11 + $0x39c] sm:$0xf0]  ;;  %v6544_v42 = vld [vmem:[%s7198_s11 + $0x6c] sm:$0xf0] }
  0x4a   : > { %2931 = vmatpush.bf16.msrb.mxu3 %v6490_v40  ;;  %v5857_v46 = vld [vmem:[%s7198_s11 + $0x580] sm:$0xf]  ;;  %v5202_v43 = vor.u32 %v6544_v42, %v5201_v41  ;;  %v6563_v41 = vld [vmem:[%s7198_s11 + $0x10c] sm:$0xf] }
  0x4b   : > { %v6710_v47 = vld [vmem:[%s7198_s11 + $0x59c] sm:$0xf0]  ;;  %v5291_v42 = vld [vmem:[%s7198_s11 + $0x128] sm:$0xf0] }
  0x4c   : > { %2475 = vmatmul.bf16.gmra.mxu1 %v5474_v50  ;;  %2515 = vmatmul.bf16.gmra.mxu2 %v5730_v51  ;;  %v6113_v49 = vld [vmem:[%s7198_s11 + $0x780] sm:$0xf]  ;;  %v5602_v51 = vor.u32 %v6646_v45, %v5601_v44 }
  0x4d   : > { %v6774_v50 = vld [vmem:[%s7198_s11 + $0x79c] sm:$0xf0]  ;;  %3097 = vmatpush.bf16.msrb.mxu0 %v6501_v48  ;;  %3431 = vmatpush.bf16.msra.mxu2 %v6521_v58  ;;  %v6546_v48 = vld [vmem:[%s7198_s11 + $0x84] sm:$0xf] }
  0x4e   : > { %2435 = vmatmul.bf16.gmra.mxu0 %v5218_v55  ;;  %v6114_v53 = vor.u32 %v6774_v50, %v6113_v49  ;;  %v5345_v54 = vld [vmem:[%s7198_s11 + $0x180] sm:$0xf]  ;;  %3600 = vmatpush.bf16.msra.mxu3 %v6529_v59  ;;  %v5219_v50 = vld [vmem:[%s7198_s11 + $0xa0] sm:$0xf0] }
  0x4f   : > { %2555 = vmatmul.bf16.gmra.mxu3 %v5986_v52  ;;  %v5858_v52 = vor.u32 %v6710_v47, %v5857_v46  ;;  %v6582_v55 = vld [vmem:[%s7198_s11 + $0x19c] sm:$0xf0]  ;;  %3262 = vmatpush.bf16.msra.mxu1 %v6513_v61  ;;  %v5233_v61 = vld [vmem:[%s7198_s11 + $0x90] sm:$0xf] }
  0x50   : > { %v5346_v57 = vor.u32 %v6582_v55, %v5345_v54  ;;  %v6498_v62 = vld [vmem:[%s9129_s1 + $0x100] sm:$0xff]  ;;  %v5227_v54 = vld [vmem:[%s7198_s11 + $0xa8] sm:$0xf0] }
  0x51   : > { %3098 = vmatpush.bf16.msrb.mxu0 %v6500_v56  ;;  %v5633_v63 = vld [vmem:[%s7198_s11 + $0x3c0] sm:$0xf] }
  0x52   : > { %v6654_v0 = vld [vmem:[%s7198_s11 + $0x3dc] sm:$0xf0] }
  0x53   : > { %v6782_v4 = vld [vmem:[%s7198_s11 + $0x7dc] sm:$0xf0]  ;;  %v5634_v5 = vor.u32 %v6654_v0, %v5633_v63 }
  0x54   : > { %v5377_v8 = vld [vmem:[%s7198_s11 + $0x1c0] sm:$0xf] }
  0x55   : > { %3099 = vmatpush.bf16.msrb.mxu0 %v6499_v60  ;;  %v6590_v9 = vld [vmem:[%s7198_s11 + $0x1dc] sm:$0xf0] }
  0x56   : > { %v5378_v10 = vor.u32 %v6590_v9, %v5377_v8  ;;  %v5251_v9 = vld [vmem:[%s7198_s11 + $0xe0] sm:$0xf0] }
  0x59   : > { %3100 = vmatpush.bf16.msrb.mxu0 %v6498_v62  ;;  %v6552_v62 = vld [vmem:[%s7198_s11 + $0xac] sm:$0xf0] }
  0x5a   : > { %v5234_v63 = vor.u32 %v6552_v62, %v5233_v61 }
  0x5c   : > { %2480 = vmatmul.bf16.gmra.mxu1 %v5506_v1  ;;  %2520 = vmatmul.bf16.gmra.mxu2 %v5762_v2  ;;  %v5889_v1 = vld [vmem:[%s7198_s11 + $0x5c0] sm:$0xf] }
  0x5d   : > { %v6718_v2 = vld [vmem:[%s7198_s11 + $0x5dc] sm:$0xf0] }
  0x5e   : > { %2440 = vmatmul.bf16.gmra.mxu0 %v5250_v6  ;;  %v5890_v6 = vor.u32 %v6718_v2, %v5889_v1  ;;  %v6520_v1 = vld [vmem:[%s9129_s1 + $0x1b0] sm:$0xff] }
  0x5f   : > { %2560 = vmatmul.bf16.gmra.mxu3 %v6018_v3  ;;  %v6145_v3 = vld [vmem:[%s7198_s11 + $0x7c0] sm:$0xf]  ;;  %v6528_v2 = vld [vmem:[%s9129_s1 + $0x1f0] sm:$0xff]  ;;  %3432 = vmatpush.bf16.msra.mxu2 %v6520_v1  ;;  %v6570_v1 = vld [vmem:[%s7198_s11 + $0x144] sm:$0xf] }
  0x60   : > { %v6146_v7 = vor.u32 %v6782_v4, %v6145_v3  ;;  %3601 = vmatpush.bf16.msra.mxu3 %v6528_v2 }
  0x6c   : > { %2485 = vmatmul.bf16.gmra.mxu1 %v5538_v16  ;;  %2525 = vmatmul.bf16.gmra.mxu2 %v5794_v17  ;;  %v5163_v16 = vld [vmem:[%s7198_s11 + $0x28] sm:$0xf0]  ;;  %v5158_v17 = vor.u32 %v6530_v11, %v5155_v12  ;;  %v6559_v11 = vld [vmem:[%s7198_s11 + $0xe4] sm:$0xf0] }
  0x6d   : > { %v5166_v20 = vor.u32 %v6531_v15, %v5163_v16  ;;  %v6555_v12 = vld [vmem:[%s7198_s11 + $0xcc] sm:$0xf] }
  0x6e   : > { %2445 = vmatmul.bf16.gmra.mxu0 %v5282_v21  ;;  %v5169_v21 = vld [vmem:[%s7198_s11 + $0x10] sm:$0xf] }
  0x6f   : > { %2565 = vmatmul.bf16.gmra.mxu3 %v6050_v18  ;;  %v5162_v18 = vor.u32 %v6535_v14, %v5161_v13  ;;  %v5170_v23 = vor.u32 %v6536_v22, %v5169_v21  ;;  %v5259_v13 = vld [vmem:[%s7198_s11 + $0xe8] sm:$0xf0]  ;;  %v5265_v21 = vld [vmem:[%s7198_s11 + $0xd0] sm:$0xf] }
  0x70   : > { %v6560_v22 = vld [vmem:[%s7198_s11 + $0xec] sm:$0xf0] }
  0x7c   : > { %2490 = vmatmul.bf16.gmra.mxu1 %v5570_v33  ;;  %2530 = vmatmul.bf16.gmra.mxu2 %v5826_v34  ;;  %v6539_v33 = vld [vmem:[%s7198_s11 + $0x4c] sm:$0xf] }
  0x7d   : > { %v5195_v34 = vld [vmem:[%s7198_s11 + $0x68] sm:$0xf0] }
  0x7e   : > { %2450 = vmatmul.bf16.gmra.mxu0 %v5314_v38  ;;  %v5194_v38 = vor.u32 %v6543_v32, %v5193_v31  ;;  %v5198_v40 = vor.u32 %v6539_v33, %v5195_v34  ;;  %v6562_v33 = vld [vmem:[%s7198_s11 + $0x104] sm:$0xf] }
  0x7f   : > { %2570 = vmatmul.bf16.gmra.mxu3 %v6082_v35 }
  0x8c   : > { %2495 = vmatmul.bf16.gmra.mxu1 %v5602_v51  ;;  %2535 = vmatmul.bf16.gmra.mxu2 %v5858_v52  ;;  %v5225_v51 = vld [vmem:[%s7198_s11 + $0x88] sm:$0xf] }
  0x8d   : > { %v6551_v52 = vld [vmem:[%s7198_s11 + $0xa4] sm:$0xf0] }
  0x8e   : > { %2455 = vmatmul.bf16.gmra.mxu0 %v5346_v57  ;;  %v5222_v57 = vor.u32 %v6546_v48, %v5219_v50  ;;  %v5226_v58 = vor.u32 %v6551_v52, %v5225_v51 }
  0x8f   : > { %2575 = vmatmul.bf16.gmra.mxu3 %v6114_v53  ;;  %v6547_v53 = vld [vmem:[%s7198_s11 + $0x8c] sm:$0xf] }
  0x90   : > { %v5230_v60 = vor.u32 %v6547_v53, %v5227_v54  ;;  %v5294_v53 = vor.u32 %v6563_v41, %v5291_v42  ;;  %v5297_v54 = vld [vmem:[%s7198_s11 + $0x110] sm:$0xf]  ;;  %v6578_v42 = vld [vmem:[%s7198_s11 + $0x184] sm:$0xf] }
  0x9c   : > { %2500 = vmatmul.bf16.gmra.mxu1 %v5634_v5  ;;  %2540 = vmatmul.bf16.gmra.mxu2 %v5890_v6  ;;  %v6512_v5 = vld [vmem:[%s9129_s1 + $0x170] sm:$0xff] }
  0x9d   : > { %3263 = vmatpush.bf16.msra.mxu1 %v6512_v5  ;;  %v5315_v5 = vld [vmem:[%s7198_s11 + $0x160] sm:$0xf0] }
  0x9e   : > { %2460 = vmatmul.bf16.gmra.mxu0 %v5378_v10  ;;  %v5257_v10 = vld [vmem:[%s7198_s11 + $0xc8] sm:$0xf] }
  0x9f   : > { %2580 = vmatmul.bf16.gmra.mxu3 %v6146_v7  ;;  %v6554_v7 = vld [vmem:[%s7198_s11 + $0xc4] sm:$0xf] }
  0xa0   : > { %v5254_v16 = vor.u32 %v6554_v7, %v5251_v9  ;;  %v5321_v7 = vld [vmem:[%s7198_s11 + $0x148] sm:$0xf] }
  0xa1   : > { %v6575_v9 = vld [vmem:[%s7198_s11 + $0x164] sm:$0xf0] }
  0xa9   : > { %v7378_v19 = vpop.f32.mrf.mxu1 }
  0xab   : > { %v7382_v24 = vpop.f32.mrf.mxu0 }
  0xac   : > { %2594 = vmatmul.bf16.vlgmr.msrb.gmra.mxu1 %v5158_v17  ;;  %2763 = vmatmul.bf16.vlgmr.msrb.gmra.mxu2 %v5162_v18  ;;  %v5258_v17 = vor.u32 %v6559_v11, %v5257_v10  ;;  %v6571_v10 = vld [vmem:[%s7198_s11 + $0x14c] sm:$0xf] }
  0xad   : > { %v5323_v11 = vld [vmem:[%s7198_s11 + $0x168] sm:$0xf0] }
  0xae   : > { %3101 = vmatmul.bf16.vlgmr.msrb.gmra.mxu0 %v5170_v23  ;;  %v5266_v23 = vor.u32 %v6560_v22, %v5265_v21  ;;  %v5326_v21 = vor.u32 %v6571_v10, %v5323_v11  ;;  %v5329_v22 = vld [vmem:[%s7198_s11 + $0x150] sm:$0xf] }
  0xaf   : > { %2932 = vmatmul.bf16.vlgmr.msrb.gmra.mxu3 %v5166_v20  ;;  %v7384_v25 = vpop.f32.mrf.mxu2  ;;  %v5262_v20 = vor.u32 %v6555_v12, %v5259_v13 }
  0xb1   : > { %v7388_v27 = vpop.f32.mrf.mxu1 }
  0xb2   : > { %v7386_v26 = vpop.f32.mrf.mxu3 }
  0xb3   : > { %9133 = vst [vmem:[#allocation3_spill] sm:$0xff] %v7386_v26  ;;  %v7391_v29 = vpop.f32.mrf.mxu0 }
  0xb7   : > { %v7398_v35 = vpop.f32.mrf.mxu2 }
  0xb9   : > { %v7402_v39 = vpop.f32.mrf.mxu1 }
  0xba   : > { %v7400_v36 = vpop.f32.mrf.mxu3 }
  0xbb   : > { %9134 = vst [vmem:[#allocation4_spill] sm:$0xff] %v7400_v36  ;;  %v7406_v44 = vpop.f32.mrf.mxu0 }
  0xbc   : > { %2599 = vmatmul.bf16.gmra.mxu1 %v5190_v37  ;;  %2768 = vmatmul.bf16.gmra.mxu2 %v5194_v38  ;;  %v5283_v37 = vld [vmem:[%s7198_s11 + $0x120] sm:$0xf0]  ;;  %v5289_v38 = vld [vmem:[%s7198_s11 + $0x108] sm:$0xf] }
  0xbd   : > { %v5286_v50 = vor.u32 %v6562_v33, %v5283_v37 }
  0xbe   : > { %3106 = vmatmul.bf16.gmra.mxu0 %v5202_v43 }
  0xbf   : > { %2937 = vmatmul.bf16.gmra.mxu3 %v5198_v40  ;;  %v7408_v45 = vpop.f32.mrf.mxu2  ;;  %v6567_v40 = vld [vmem:[%s7198_s11 + $0x124] sm:$0xf0] }
  0xc0   : > { %v5290_v51 = vor.u32 %v6567_v40, %v5289_v38 }
  0xc1   : > { %v7412_v47 = vpop.f32.mrf.mxu1 }
  0xc2   : > { %v7410_v46 = vpop.f32.mrf.mxu3 }
  0xc3   : > { %9135 = vst [vmem:[#allocation5_spill] sm:$0xff] %v7410_v46  ;;  %v7415_v49 = vpop.f32.mrf.mxu0 }
  0xc7   : > { %v7422_v55 = vpop.f32.mrf.mxu2 }
  0xc9   : > { %v7426_v59 = vpop.f32.mrf.mxu1 }
  0xca   : > { %v7424_v56 = vpop.f32.mrf.mxu3 }
  0xcb   : > { %9136 = vst [vmem:[#allocation6_spill] sm:$0xff] %v7424_v56  ;;  %v7430_v0 = vpop.f32.mrf.mxu0  ;;  %v6600_v56 = vld [vmem:[%s7198_s11 + $0x22c] sm:$0xf0] }
  0xcc   : > { %2604 = vmatmul.bf16.gmra.mxu1 %v5222_v57  ;;  %2773 = vmatmul.bf16.gmra.mxu2 %v5226_v58  ;;  %v6568_v57 = vld [vmem:[%s7198_s11 + $0x12c] sm:$0xf0] }
  0xcd   : > { %v5298_v58 = vor.u32 %v6568_v57, %v5297_v54  ;;  %v6583_v54 = vld [vmem:[%s7198_s11 + $0x1a4] sm:$0xf0]  ;;  %v6579_v57 = vld [vmem:[%s7198_s11 + $0x18c] sm:$0xf] }
  0xce   : > { %3111 = vmatmul.bf16.gmra.mxu0 %v5234_v63 }
  0xcf   : > { %2942 = vmatmul.bf16.gmra.mxu3 %v5230_v60  ;;  %v7438_v3 = vpop.f32.mrf.mxu2 }
  0xd1   : > { %v7445_v6 = vpop.f32.mrf.mxu1 }
  0xd2   : > { %v7440_v4 = vpop.f32.mrf.mxu3 }
  0xd3   : > { %9137 = vst [vmem:[#allocation7_spill] sm:$0xff] %v7440_v4  ;;  %v7448_v8 = vpop.f32.mrf.mxu0 }
  0xd7   : > { %v7455_v14 = vpop.f32.mrf.mxu2 }
  0xd9   : > { %v7459_v18 = vpop.f32.mrf.mxu1 }
  0xda   : > { %v7457_v15 = vpop.f32.mrf.mxu3 }
  0xdb   : > { %9138 = vst [vmem:[#allocation8_spill] sm:$0xff] %v7457_v15  ;;  %v7463_v28 = vpop.f32.mrf.mxu0 }
  0xdc   : > { %2609 = vmatmul.bf16.gmra.mxu1 %v5254_v16  ;;  %2778 = vmatmul.bf16.gmra.mxu2 %v5258_v17  ;;  %v5318_v16 = vor.u32 %v6570_v1, %v5315_v5  ;;  %v5322_v17 = vor.u32 %v6575_v9, %v5321_v7 }
  0xde   : > { %3116 = vmatmul.bf16.gmra.mxu0 %v5266_v23  ;;  %v6576_v23 = vld [vmem:[%s7198_s11 + $0x16c] sm:$0xf0] }
  0xdf   : > { %2947 = vmatmul.bf16.gmra.mxu3 %v5262_v20  ;;  %v7465_v30 = vpop.f32.mrf.mxu2  ;;  %v5330_v33 = vor.u32 %v6576_v23, %v5329_v22  ;;  %v6519_v23 = vld [vmem:[%s9129_s1 + $0x1a8] sm:$0xff] }
  0xe0   : > { %3433 = vmatpush.bf16.msra.mxu2 %v6519_v23 }
  0xe1   : > { %v7469_v32 = vpop.f32.mrf.mxu1 }
  0xe2   : > { %v7467_v31 = vpop.f32.mrf.mxu3 }
  0xe3   : > { %9139 = vst [vmem:[#allocation9_spill] sm:$0xff] %v7467_v31  ;;  %v7472_v34 = vpop.f32.mrf.mxu0 }
  0xe7   : > { %v7479_v43 = vpop.f32.mrf.mxu2 }
  0xe9   : > { %v7483_v52 = vpop.f32.mrf.mxu1 }
  0xea   : > { %v7481_v48 = vpop.f32.mrf.mxu3 }
  0xeb   : > { %9140 = vst [vmem:[#allocation10_spill] sm:$0xff] %v7481_v48  ;;  %v7487_v60 = vpop.f32.mrf.mxu0 }
  0xec   : > { %2614 = vmatmul.bf16.gmra.mxu1 %v5286_v50  ;;  %2783 = vmatmul.bf16.gmra.mxu2 %v5290_v51  ;;  %v5347_v51 = vld [vmem:[%s7198_s11 + $0x1a0] sm:$0xf0] }
  0xed   : > { %v5350_v7 = vor.u32 %v6578_v42, %v5347_v51 }
  0xee   : > { %3121 = vmatmul.bf16.gmra.mxu0 %v5298_v58  ;;  %v5355_v58 = vld [vmem:[%s7198_s11 + $0x1a8] sm:$0xf0] }
  0xef   : > { %2952 = vmatmul.bf16.gmra.mxu3 %v5294_v53  ;;  %v7489_v61 = vpop.f32.mrf.mxu2  ;;  %v5353_v53 = vld [vmem:[%s7198_s11 + $0x188] sm:$0xf]  ;;  %v5358_v11 = vor.u32 %v6579_v57, %v5355_v58  ;;  %v6586_v57 = vld [vmem:[%s7198_s11 + $0x1c4] sm:$0xf] }
  0xf0   : > { %v5354_v9 = vor.u32 %v6583_v54, %v5353_v53  ;;  %v6511_v54 = vld [vmem:[%s9129_s1 + $0x168] sm:$0xff] }
  0xf1   : > { %v7493_v63 = vpop.f32.mrf.mxu1  ;;  %3264 = vmatpush.bf16.msra.mxu1 %v6511_v54  ;;  %v6592_v54 = vld [vmem:[%s7198_s11 + $0x1ec] sm:$0xf0] }
  0xf2   : > { %v7491_v62 = vpop.f32.mrf.mxu3 }
  0xf3   : > { %9141 = vst [vmem:[#allocation11_spill] sm:$0xff] %v7491_v62  ;;  %v7496_v2 = vpop.f32.mrf.mxu0 }
  0xf7   : > { %v7503_v12 = vpop.f32.mrf.mxu2 }
  0xf9   : > { %v7507_v20 = vpop.f32.mrf.mxu1 }
  0xfa   : > { %v7505_v13 = vpop.f32.mrf.mxu3 }
  0xfb   : > { %9142 = vst [vmem:[#allocation12_spill] sm:$0xff] %v7505_v13  ;;  %v7511_v37 = vpop.f32.mrf.mxu0  ;;  %v5393_v13 = vld [vmem:[%s7198_s11 + $0x1d0] sm:$0xf] }
  0xfc   : > { %2619 = vmatmul.bf16.gmra.mxu1 %v5318_v16  ;;  %2788 = vmatmul.bf16.gmra.mxu2 %v5322_v17  ;;  %v5361_v16 = vld [vmem:[%s7198_s11 + $0x190] sm:$0xf]  ;;  %v5394_v62 = vor.u32 %v6592_v54, %v5393_v13  ;;  %v5411_v13 = vld [vmem:[%s7198_s11 + $0x220] sm:$0xf0]  ;;  %v5419_v54 = vld [vmem:[%s7198_s11 + $0x228] sm:$0xf0] }
  0xfd   : > { %v6584_v17 = vld [vmem:[%s7198_s11 + $0x1ac] sm:$0xf0] }
  0xfe   : > { %3126 = vmatmul.bf16.gmra.mxu0 %v5330_v33  ;;  %v6527_v33 = vld [vmem:[%s9129_s1 + $0x1e8] sm:$0xff] }
  0xff   : > { %2957 = vmatmul.bf16.gmra.mxu3 %v5326_v21  ;;  %v7513_v38 = vpop.f32.mrf.mxu2  ;;  %v5362_v21 = vor.u32 %v6584_v17, %v5361_v16  ;;  %v6587_v16 = vld [vmem:[%s7198_s11 + $0x1cc] sm:$0xf] }
 0x100   : > { %3602 = vmatpush.bf16.msra.mxu3 %v6527_v33  ;;  %v5387_v17 = vld [vmem:[%s7198_s11 + $0x1e8] sm:$0xf0] }
 0x101   : > { %v7517_v41 = vpop.f32.mrf.mxu1 }
 0x102   : > { %v7515_v40 = vpop.f32.mrf.mxu3 }
 0x103   : > { %9143 = vst [vmem:[#allocation13_spill] sm:$0xff] %v7515_v40  ;;  %v7520_v50 = vpop.f32.mrf.mxu0  ;;  %v5390_v40 = vor.u32 %v6587_v16, %v5387_v17  ;;  %v6599_v17 = vld [vmem:[%s7198_s11 + $0x224] sm:$0xf0] }
 0x107   : > { %v7527_v1 = vpop.f32.mrf.mxu2 }
 0x109   : > { %v7531_v10 = vpop.f32.mrf.mxu1 }
 0x10a   : > { %v7529_v5 = vpop.f32.mrf.mxu3 }
 0x10b   : > { %9144 = vst [vmem:[#allocation14_spill] sm:$0xff] %v7529_v5  ;;  %v7535_v22 = vpop.f32.mrf.mxu0 }
 0x10c   : > { %2624 = vmatmul.bf16.gmra.mxu1 %v5350_v7  ;;  %2793 = vmatmul.bf16.gmra.mxu2 %v5354_v9  ;;  %v5379_v7 = vld [vmem:[%s7198_s11 + $0x1e0] sm:$0xf0]  ;;  %v5385_v9 = vld [vmem:[%s7198_s11 + $0x1c8] sm:$0xf] }
 0x10d   : > { %v5382_v33 = vor.u32 %v6586_v57, %v5379_v7  ;;  %v6793_v57 = vld [vmem:[%s9130_s2 + $0x38] sm:$0xff] }
 0x10e   : > { %3131 = vmatmul.bf16.gmra.mxu0 %v5362_v21 }
 0x10f   : > { %2962 = vmatmul.bf16.gmra.mxu3 %v5358_v11  ;;  %v7543_v42 = vpop.f32.mrf.mxu2  ;;  %v6591_v11 = vld [vmem:[%s7198_s11 + $0x1e4] sm:$0xf0]  ;;  %4064 = vmatpush.bf16.msra.mxu0 %v6793_v57 }
 0x110   : > { %9145 = vst [vmem:[#allocation15_spill] sm:$0xff] %v7543_v42 }
 0x111   : > { %v7547_v53 = vpop.f32.mrf.mxu1 }
 0x112   : > { %v7545_v51 = vpop.f32.mrf.mxu3 }
 0x113   : > { %9146 = vst [vmem:[#allocation16_spill] sm:$0xff] %v7545_v51  ;;  %v7553_v58 = vpop.f32.mrf.mxu0  ;;  %v5386_v51 = vor.u32 %v6591_v11, %v5385_v9 }
 0x117   : > { %v7560_v23 = vpop.f32.mrf.mxu2 }
 0x118   : > { %9147 = vst [vmem:[#allocation17_spill] sm:$0xff] %v7560_v23 }
 0x119   : > { %v7564_v5 = vpop.f32.mrf.mxu1 }
 0x11a   : > { %v7562_v21 = vpop.f32.mrf.mxu3 }
 0x11b   : > { %9148 = vst [vmem:[#allocation18_spill] sm:$0xff] %v7562_v21  ;;  %v7568_v48 = vpop.f32.mrf.mxu0 }
 0x11c   : > { %2629 = vmatmul.bf16.gmra.mxu1 %v5382_v33  ;;  %2798 = vmatmul.bf16.gmra.mxu2 %v5386_v51  ;;  %v6594_v51 = vld [vmem:[%s7198_s11 + $0x204] sm:$0xf]  ;;  %v6595_v33 = vld [vmem:[%s7198_s11 + $0x20c] sm:$0xf] }
 0x11d   : > { %v5414_v57 = vor.u32 %v6594_v51, %v5411_v13  ;;  %v5422_v4 = vor.u32 %v6595_v33, %v5419_v54  ;;  %v6602_v54 = vld [vmem:[%s7198_s11 + $0x244] sm:$0xf] }
 0x11e   : > { %3136 = vmatmul.bf16.gmra.mxu0 %v5394_v62  ;;  %v5425_v62 = vld [vmem:[%s7198_s11 + $0x210] sm:$0xf] }
 0x11f   : > { %2967 = vmatmul.bf16.gmra.mxu3 %v5390_v40  ;;  %v7573_v7 = vpop.f32.mrf.mxu2  ;;  %v5417_v40 = vld [vmem:[%s7198_s11 + $0x208] sm:$0xf]  ;;  %v5426_v36 = vor.u32 %v6600_v56, %v5425_v62  ;;  %v5451_v62 = vld [vmem:[%s7198_s11 + $0x268] sm:$0xf0] }
 0x120   : > { %9149 = vst [vmem:[#allocation19_spill] sm:$0xff] %v7573_v7  ;;  %v5418_v15 = vor.u32 %v6599_v17, %v5417_v40 }
 0x121   : > { %v7577_v11 = vpop.f32.mrf.mxu1 }
 0x122   : > { %v7575_v9 = vpop.f32.mrf.mxu3 }
 0x123   : > { %9150 = vst [vmem:[#allocation20_spill] sm:$0xff] %v7575_v9  ;;  %v7580_v16 = vpop.f32.mrf.mxu0 }
 0x127   : > { %v7587_v21 = vpop.f32.mrf.mxu2 }
 0x128   : > { %9151 = vst [vmem:[#allocation21_spill] sm:$0xff] %v7587_v21 }
 0x129   : > { %v2595_v9 = vpop.f32.mrf.mxu1 }
 0x12a   : > { %v7589_v31 = vpop.f32.mrf.mxu3  ;;  %v2596_v46 = vadd.f32 %v2595_v9, %v7382_v24  ;;  %v5443_v9 = vld [vmem:[%s7198_s11 + $0x260] sm:$0xf0] }
 0x12b   : > { %9152 = vst [vmem:[#allocation22_spill] sm:$0xff] %v7589_v31  ;;  %v3102_v26 = vpop.f32.mrf.mxu0 }
 0x12c   : > { %2634 = vmatmul.bf16.gmra.mxu1 %v5414_v57  ;;  %2803 = vmatmul.bf16.gmra.mxu2 %v5418_v15  ;;  %v5449_v57 = vld [vmem:[%s7198_s11 + $0x248] sm:$0xf] }
 0x12d   : > { %v6607_v15 = vld [vmem:[%s7198_s11 + $0x264] sm:$0xf0] }
 0x12e   : > { %3141 = vmatmul.bf16.gmra.mxu0 %v5426_v36  ;;  %v5450_v36 = vor.u32 %v6607_v15, %v5449_v57 }
 0x12f   : > { %2972 = vmatmul.bf16.gmra.mxu3 %v5422_v4  ;;  %v2764_v31 = vpop.f32.mrf.mxu2  ;;  %v6603_v4 = vld [vmem:[%s7198_s11 + $0x24c] sm:$0xf] }
 0x130   : > { %v2765_v51 = vadd.f32 %v2764_v31, %v2596_v46  ;;  %v5446_v31 = vor.u32 %v6602_v54, %v5443_v9 }
 0x131   : > { %v2597_v40 = vpop.f32.mrf.mxu1 }
 0x132   : > { %v2933_v13 = vpop.f32.mrf.mxu3  ;;  %v2598_v56 = vadd.f32 %v2597_v40, %v7391_v29 }
 0x133   : > { %v2934_v17 = vadd.f32 %v2933_v13, %v2765_v51  ;;  %v3104_v24 = vpop.f32.mrf.mxu0  ;;  %v5454_v51 = vor.u32 %v6603_v4, %v5451_v62  ;;  %v6608_v13 = vld [vmem:[%s7198_s11 + $0x26c] sm:$0xf0]  ;;  %v6615_v4 = vld [vmem:[%s7198_s11 + $0x2a4] sm:$0xf0] }
 0x135   : > { %v7594_v33 = vadd.f32 %v3102_v26, %v2934_v17  ;;  %v5457_v26 = vld [vmem:[%s7198_s11 + $0x250] sm:$0xf] }
 0x136   : > { %v5458_v29 = vor.u32 %v6608_v13, %v5457_v26 }
 0x137   : > { %9153 = vst [vmem:[#allocation23_spill] sm:$0xff] %v7594_v33  ;;  %v2766_v21 = vpop.f32.mrf.mxu2 }
 0x138   : > { %v2767_v7 = vadd.f32 %v2766_v21, %v2598_v56  ;;  %v5481_v56 = vld [vmem:[%s7198_s11 + $0x288] sm:$0xf] }
 0x139   : > { %v2600_v23 = vpop.f32.mrf.mxu1  ;;  %v5482_v13 = vor.u32 %v6615_v4, %v5481_v56 }
 0x13a   : > { %v2935_v46 = vpop.f32.mrf.mxu3  ;;  %v2601_v33 = vadd.f32 %v2600_v23, %v7406_v44  ;;  %v6610_v44 = vld [vmem:[%s7198_s11 + $0x284] sm:$0xf] }
 0x13b   : > { %v2936_v17 = vadd.f32 %v2935_v46, %v2767_v7  ;;  %v3107_v21 = vpop.f32.mrf.mxu0  ;;  %v6611_v46 = vld [vmem:[%s7198_s11 + $0x28c] sm:$0xf] }
 0x13c   : > { %2639 = vmatmul.bf16.gmra.mxu1 %v5446_v31  ;;  %2808 = vmatmul.bf16.gmra.mxu2 %v5450_v36  ;;  %v5483_v31 = vld [vmem:[%s7198_s11 + $0x2a8] sm:$0xf0] }
 0x13d   : > { %v7606_v42 = vadd.f32 %v3104_v24, %v2936_v17  ;;  %v5475_v24 = vld [vmem:[%s7198_s11 + $0x2a0] sm:$0xf0] }
 0x13e   : > { %3146 = vmatmul.bf16.gmra.mxu0 %v5458_v29  ;;  %v5478_v26 = vor.u32 %v6610_v44, %v5475_v24  ;;  %v5486_v29 = vor.u32 %v6611_v46, %v5483_v31  ;;  %v6518_v44 = vld [vmem:[%s9129_s1 + $0x1a0] sm:$0xff] }
 0x13f   : > { %2977 = vmatmul.bf16.gmra.mxu3 %v5454_v51  ;;  %v2769_v40 = vpop.f32.mrf.mxu2  ;;  %v6526_v24 = vld [vmem:[%s9129_s1 + $0x1e0] sm:$0xff]  ;;  %3434 = vmatpush.bf16.msra.mxu2 %v6518_v44 }
 0x140   : > { %v2770_v54 = vadd.f32 %v2769_v40, %v2601_v33  ;;  %v6616_v40 = vld [vmem:[%s7198_s11 + $0x2ac] sm:$0xf0]  ;;  %3603 = vmatpush.bf16.msra.mxu3 %v6526_v24  ;;  %v6510_v46 = vld [vmem:[%s9129_s1 + $0x160] sm:$0xff] }
 0x141   : > { %v2602_v57 = vpop.f32.mrf.mxu1  ;;  %3265 = vmatpush.bf16.msra.mxu1 %v6510_v46 }
 0x142   : > { %v2938_v9 = vpop.f32.mrf.mxu3  ;;  %v2603_v62 = vadd.f32 %v2602_v57, %v7415_v49 }
 0x143   : > { %v2939_v7 = vadd.f32 %v2938_v9, %v2770_v54  ;;  %v3109_v23 = vpop.f32.mrf.mxu0 }
 0x145   : > { %v7608_v15 = vadd.f32 %v3107_v21, %v2939_v7  ;;  %v5489_v21 = vld [vmem:[%s7198_s11 + $0x290] sm:$0xf] }
 0x146   : > { %v5490_v49 = vor.u32 %v6616_v40, %v5489_v21  ;;  %v5515_v21 = vld [vmem:[%s7198_s11 + $0x2e8] sm:$0xf0] }
 0x147   : > { %v2771_v36 = vpop.f32.mrf.mxu2 }
 0x148   : > { %v2772_v51 = vadd.f32 %v2771_v36, %v2603_v62  ;;  %v6618_v36 = vld [vmem:[%s7198_s11 + $0x2c4] sm:$0xf] }
 0x149   : > { %v2605_v17 = vpop.f32.mrf.mxu1 }
 0x14a   : > { %v2940_v33 = vpop.f32.mrf.mxu3  ;;  %v2606_v9 = vadd.f32 %v2605_v17, %v7430_v0 }
 0x14b   : > { %v2941_v54 = vadd.f32 %v2940_v33, %v2772_v51  ;;  %v3112_v57 = vpop.f32.mrf.mxu0  ;;  %v5507_v33 = vld [vmem:[%s7198_s11 + $0x2e0] sm:$0xf0] }
 0x14c   : > { %2644 = vmatmul.bf16.gmra.mxu1 %v5478_v26  ;;  %2813 = vmatmul.bf16.gmra.mxu2 %v5482_v13  ;;  %v5513_v26 = vld [vmem:[%s7198_s11 + $0x2c8] sm:$0xf] }
 0x14d   : > { %v7620_v7 = vadd.f32 %v3109_v23, %v2941_v54  ;;  %v6623_v13 = vld [vmem:[%s7198_s11 + $0x2e4] sm:$0xf0] }
 0x14e   : > { %3151 = vmatmul.bf16.gmra.mxu0 %v5490_v49  ;;  %v5510_v49 = vor.u32 %v6618_v36, %v5507_v33  ;;  %v5514_v44 = vor.u32 %v6623_v13, %v5513_v26  ;;  %v6792_v36 = vld [vmem:[%s9130_s2 + $0x30] sm:$0xff] }
 0x14f   : > { %2982 = vmatmul.bf16.gmra.mxu3 %v5486_v29  ;;  %v2774_v0 = vpop.f32.mrf.mxu2  ;;  %v6619_v29 = vld [vmem:[%s7198_s11 + $0x2cc] sm:$0xf]  ;;  %4065 = vmatpush.bf16.msra.mxu0 %v6792_v36 }
 0x150   : > { %v2775_v23 = vadd.f32 %v2774_v0, %v2606_v9  ;;  %v5521_v0 = vld [vmem:[%s7198_s11 + $0x2d0] sm:$0xf] }
 0x151   : > { %v2607_v4 = vpop.f32.mrf.mxu1 }
 0x152   : > { %v2943_v56 = vpop.f32.mrf.mxu3  ;;  %v2608_v17 = vadd.f32 %v2607_v4, %v7448_v8 }
 0x153   : > { %v2944_v62 = vadd.f32 %v2943_v56, %v2775_v23  ;;  %v3114_v51 = vpop.f32.mrf.mxu0  ;;  %v6624_v23 = vld [vmem:[%s7198_s11 + $0x2ec] sm:$0xf0] }
 0x154   : > { %v5522_v8 = vor.u32 %v6624_v23, %v5521_v0 }
 0x155   : > { %v7631_v31 = vadd.f32 %v3112_v57, %v2944_v62  ;;  %v5518_v57 = vor.u32 %v6619_v29, %v5515_v21  ;;  %v6626_v29 = vld [vmem:[%s7198_s11 + $0x304] sm:$0xf] }
 0x157   : > { %v2776_v40 = vpop.f32.mrf.mxu2 }
 0x158   : > { %v2777_v54 = vadd.f32 %v2776_v40, %v2608_v17  ;;  %v5539_v40 = vld [vmem:[%s7198_s11 + $0x320] sm:$0xf0] }
 0x159   : > { %v2610_v24 = vpop.f32.mrf.mxu1 }
 0x15a   : > { %v2945_v9 = vpop.f32.mrf.mxu3  ;;  %v2611_v62 = vadd.f32 %v2610_v24, %v7463_v28  ;;  %v5547_v24 = vld [vmem:[%s7198_s11 + $0x328] sm:$0xf0] }
 0x15b   : > { %v2946_v56 = vadd.f32 %v2945_v9, %v2777_v54  ;;  %v3117_v4 = vpop.f32.mrf.mxu0  ;;  %v5545_v54 = vld [vmem:[%s7198_s11 + $0x308] sm:$0xf] }
 0x15c   : > { %2649 = vmatmul.bf16.gmra.mxu1 %v5510_v49  ;;  %2818 = vmatmul.bf16.gmra.mxu2 %v5514_v44  ;;  %v6631_v9 = vld [vmem:[%s7198_s11 + $0x324] sm:$0xf0]  ;;  %v6627_v44 = vld [vmem:[%s7198_s11 + $0x30c] sm:$0xf] }
 0x15d   : > { %v7643_v46 = vadd.f32 %v3114_v51, %v2946_v56  ;;  %v5542_v56 = vor.u32 %v6626_v29, %v5539_v40  ;;  %v5550_v36 = vor.u32 %v6627_v44, %v5547_v24  ;;  %v5571_v24 = vld [vmem:[%s7198_s11 + $0x360] sm:$0xf0] }
 0x15e   : > { %3156 = vmatmul.bf16.gmra.mxu0 %v5522_v8 }
 0x15f   : > { %2987 = vmatmul.bf16.gmra.mxu3 %v5518_v57  ;;  %v2779_v33 = vpop.f32.mrf.mxu2 }
 0x160   : > { %v2780_v28 = vadd.f32 %v2779_v33, %v2611_v62  ;;  %v5546_v62 = vor.u32 %v6631_v9, %v5545_v54  ;;  %v6632_v33 = vld [vmem:[%s7198_s11 + $0x32c] sm:$0xf0] }
 0x161   : > { %v2612_v51 = vpop.f32.mrf.mxu1 }
 0x162   : > { %v2948_v26 = vpop.f32.mrf.mxu3  ;;  %v2613_v49 = vadd.f32 %v2612_v51, %v7472_v34 }
 0x163   : > { %v2949_v13 = vadd.f32 %v2948_v26, %v2780_v28  ;;  %v3119_v21 = vpop.f32.mrf.mxu0 }
 0x165   : > { %v7648_v17 = vadd.f32 %v3117_v4, %v2949_v13  ;;  %v5553_v4 = vld [vmem:[%s7198_s11 + $0x310] sm:$0xf] }
 0x166   : > { %v5554_v34 = vor.u32 %v6632_v33, %v5553_v4 }
 0x167   : > { %v2781_v57 = vpop.f32.mrf.mxu2 }
 0x168   : > { %v2782_v0 = vadd.f32 %v2781_v57, %v2613_v49  ;;  %v5577_v57 = vld [vmem:[%s7198_s11 + $0x348] sm:$0xf] }
 0x169   : > { %v2615_v8 = vpop.f32.mrf.mxu1 }
 0x16a   : > { %v2950_v23 = vpop.f32.mrf.mxu3  ;;  %v2616_v26 = vadd.f32 %v2615_v8, %v7487_v60  ;;  %v6634_v60 = vld [vmem:[%s7198_s11 + $0x344] sm:$0xf] }
 0x16b   : > { %v2951_v28 = vadd.f32 %v2950_v23, %v2782_v0  ;;  %v3122_v51 = vpop.f32.mrf.mxu0  ;;  %v6639_v0 = vld [vmem:[%s7198_s11 + $0x364] sm:$0xf0]  ;;  %v5574_v33 = vor.u32 %v6634_v60, %v5571_v24 }
 0x16c   : > { %2654 = vmatmul.bf16.gmra.mxu1 %v5542_v56  ;;  %2823 = vmatmul.bf16.gmra.mxu2 %v5546_v62  ;;  %v6635_v56 = vld [vmem:[%s7198_s11 + $0x34c] sm:$0xf] }
 0x16d   : > { %v7660_v13 = vadd.f32 %v3119_v21, %v2951_v28  ;;  %v5579_v62 = vld [vmem:[%s7198_s11 + $0x368] sm:$0xf0]  ;;  %v5578_v28 = vor.u32 %v6639_v0, %v5577_v57 }
 0x16e   : > { %3161 = vmatmul.bf16.gmra.mxu0 %v5554_v34  ;;  %v5582_v34 = vor.u32 %v6635_v56, %v5579_v62  ;;  %v5603_v62 = vld [vmem:[%s7198_s11 + $0x3a0] sm:$0xf0] }
 0x16f   : > { %2992 = vmatmul.bf16.gmra.mxu3 %v5550_v36  ;;  %v2784_v29 = vpop.f32.mrf.mxu2 }
 0x170   : > { %v2785_v40 = vadd.f32 %v2784_v29, %v2616_v26  ;;  %v6640_v29 = vld [vmem:[%s7198_s11 + $0x36c] sm:$0xf0] }
 0x171   : > { %v2617_v9 = vpop.f32.mrf.mxu1 }
 0x172   : > { %v2953_v54 = vpop.f32.mrf.mxu3  ;;  %v2618_v23 = vadd.f32 %v2617_v9, %v7496_v2 }
 0x173   : > { %v2954_v49 = vadd.f32 %v2953_v54, %v2785_v40  ;;  %v3124_v21 = vpop.f32.mrf.mxu0 }
 0x175   : > { %v7662_v44 = vadd.f32 %v3122_v51, %v2954_v49  ;;  %v5585_v51 = vld [vmem:[%s7198_s11 + $0x350] sm:$0xf] }
 0x176   : > { %v5586_v2 = vor.u32 %v6640_v29, %v5585_v51 }
 0x177   : > { %v2786_v8 = vpop.f32.mrf.mxu2 }
 0x178   : > { %v2787_v36 = vadd.f32 %v2786_v8, %v2618_v23  ;;  %v5609_v8 = vld [vmem:[%s7198_s11 + $0x388] sm:$0xf] }
 0x179   : > { %v2620_v26 = vpop.f32.mrf.mxu1 }
 0x17a   : > { %v2955_v4 = vpop.f32.mrf.mxu3  ;;  %v2621_v54 = vadd.f32 %v2620_v26, %v7511_v37  ;;  %v6642_v37 = vld [vmem:[%s7198_s11 + $0x384] sm:$0xf] }
 0x17b   : > { %v2956_v40 = vadd.f32 %v2955_v4, %v2787_v36  ;;  %v3127_v9 = vpop.f32.mrf.mxu0  ;;  %v6647_v36 = vld [vmem:[%s7198_s11 + $0x3a4] sm:$0xf0]  ;;  %v5606_v29 = vor.u32 %v6642_v37, %v5603_v62  ;;  %v6517_v37 = vld [vmem:[%s9129_s1 + $0x198] sm:$0xff] }
 0x17c   : > { %2659 = vmatmul.bf16.gmra.mxu1 %v5574_v33  ;;  %2828 = vmatmul.bf16.gmra.mxu2 %v5578_v28  ;;  %v6643_v33 = vld [vmem:[%s7198_s11 + $0x38c] sm:$0xf]  ;;  %v6525_v62 = vld [vmem:[%s9129_s1 + $0x1d8] sm:$0xff] }
 0x17d   : > { %v7674_v49 = vadd.f32 %v3124_v21, %v2956_v40  ;;  %v5611_v28 = vld [vmem:[%s7198_s11 + $0x3a8] sm:$0xf0]  ;;  %v5610_v40 = vor.u32 %v6647_v36, %v5609_v8  ;;  %3435 = vmatpush.bf16.msra.mxu2 %v6517_v37  ;;  %3604 = vmatpush.bf16.msra.mxu3 %v6525_v62 }
 0x17e   : > { %3166 = vmatmul.bf16.gmra.mxu0 %v5586_v2  ;;  %v5614_v2 = vor.u32 %v6643_v33, %v5611_v28  ;;  %v6509_v33 = vld [vmem:[%s9129_s1 + $0x158] sm:$0xff] }
 0x17f   : > { %2997 = vmatmul.bf16.gmra.mxu3 %v5582_v34  ;;  %v2789_v60 = vpop.f32.mrf.mxu2  ;;  %3266 = vmatpush.bf16.msra.mxu1 %v6509_v33 }
 0x180   : > { %v2790_v24 = vadd.f32 %v2789_v60, %v2621_v54  ;;  %v6648_v60 = vld [vmem:[%s7198_s11 + $0x3ac] sm:$0xf0] }
 0x181   : > { %v2622_v0 = vpop.f32.mrf.mxu1 }
 0x182   : > { %v2958_v57 = vpop.f32.mrf.mxu3  ;;  %v2623_v4 = vadd.f32 %v2622_v0, %v7520_v50 }
 0x183   : > { %v2959_v23 = vadd.f32 %v2958_v57, %v2790_v24  ;;  %v3129_v21 = vpop.f32.mrf.mxu0 }
 0x185   : > { %v7676_v56 = vadd.f32 %v3127_v9, %v2959_v23  ;;  %v5617_v9 = vld [vmem:[%s7198_s11 + $0x390] sm:$0xf] }
 0x186   : > { %v5618_v50 = vor.u32 %v6648_v60, %v5617_v9  ;;  %v5643_v9 = vld [vmem:[%s7198_s11 + $0x3e8] sm:$0xf0] }
 0x187   : > { %v2791_v26 = vpop.f32.mrf.mxu2 }
 0x188   : > { %v2792_v34 = vadd.f32 %v2791_v26, %v2623_v4  ;;  %v6650_v26 = vld [vmem:[%s7198_s11 + $0x3c4] sm:$0xf] }
 0x189   : > { %v2625_v54 = vpop.f32.mrf.mxu1 }
 0x18a   : > { %v2960_v51 = vpop.f32.mrf.mxu3  ;;  %v2626_v57 = vadd.f32 %v2625_v54, %v7535_v22 }
 0x18b   : > { %v2961_v24 = vadd.f32 %v2960_v51, %v2792_v34  ;;  %v3132_v0 = vpop.f32.mrf.mxu0  ;;  %v5635_v51 = vld [vmem:[%s7198_s11 + $0x3e0] sm:$0xf0] }
 0x18c   : > { %2664 = vmatmul.bf16.gmra.mxu1 %v5606_v29  ;;  %2833 = vmatmul.bf16.gmra.mxu2 %v5610_v40  ;;  %v5641_v29 = vld [vmem:[%s7198_s11 + $0x3c8] sm:$0xf] }
 0x18d   : > { %v7688_v23 = vadd.f32 %v3129_v21, %v2961_v24  ;;  %v6655_v40 = vld [vmem:[%s7198_s11 + $0x3e4] sm:$0xf0] }
 0x18e   : > { %3171 = vmatmul.bf16.gmra.mxu0 %v5618_v50  ;;  %v5638_v50 = vor.u32 %v6650_v26, %v5635_v51  ;;  %v5642_v37 = vor.u32 %v6655_v40, %v5641_v29  ;;  %v6791_v26 = vld [vmem:[%s9130_s2 + $0x28] sm:$0xff] }
 0x18f   : > { %3002 = vmatmul.bf16.gmra.mxu3 %v5614_v2  ;;  %v2794_v22 = vpop.f32.mrf.mxu2  ;;  %v6651_v2 = vld [vmem:[%s7198_s11 + $0x3cc] sm:$0xf]  ;;  %4066 = vmatpush.bf16.msra.mxu0 %v6791_v26 }
 0x190   : > { %v2795_v21 = vadd.f32 %v2794_v22, %v2626_v57  ;;  %v5649_v22 = vld [vmem:[%s7198_s11 + $0x3d0] sm:$0xf] }
 0x191   : > { %v2627_v36 = vpop.f32.mrf.mxu1 }
 0x192   : > { %v2963_v8 = vpop.f32.mrf.mxu3  ;;  %v2628_v54 = vadd.f32 %v2627_v36, %v7553_v58 }
 0x193   : > { %v2964_v4 = vadd.f32 %v2963_v8, %v2795_v21  ;;  %v3134_v34 = vpop.f32.mrf.mxu0  ;;  %v6656_v21 = vld [vmem:[%s7198_s11 + $0x3ec] sm:$0xf0] }
 0x194   : > { %v5650_v58 = vor.u32 %v6656_v21, %v5649_v22 }
 0x195   : > { %v7699_v28 = vadd.f32 %v3132_v0, %v2964_v4  ;;  %v5646_v0 = vor.u32 %v6651_v2, %v5643_v9  ;;  %v6658_v2 = vld [vmem:[%s7198_s11 + $0x404] sm:$0xf] }
 0x197   : > { %v2796_v60 = vpop.f32.mrf.mxu2 }
 0x198   : > { %v2797_v24 = vadd.f32 %v2796_v60, %v2628_v54  ;;  %v5667_v60 = vld [vmem:[%s7198_s11 + $0x420] sm:$0xf0] }
 0x199   : > { %v2630_v62 = vpop.f32.mrf.mxu1 }
 0x19a   : > { %v2965_v57 = vpop.f32.mrf.mxu3  ;;  %v2631_v4 = vadd.f32 %v2630_v62, %v7568_v48  ;;  %v5675_v62 = vld [vmem:[%s7198_s11 + $0x428] sm:$0xf0] }
 0x19b   : > { %v2966_v8 = vadd.f32 %v2965_v57, %v2797_v24  ;;  %v3137_v36 = vpop.f32.mrf.mxu0  ;;  %v5673_v24 = vld [vmem:[%s7198_s11 + $0x408] sm:$0xf] }
 0x19c   : > { %2669 = vmatmul.bf16.gmra.mxu1 %v5638_v50  ;;  %2838 = vmatmul.bf16.gmra.mxu2 %v5642_v37  ;;  %v6663_v57 = vld [vmem:[%s7198_s11 + $0x424] sm:$0xf0]  ;;  %v6659_v37 = vld [vmem:[%s7198_s11 + $0x40c] sm:$0xf] }
 0x19d   : > { %v7711_v33 = vadd.f32 %v3134_v34, %v2966_v8  ;;  %v5670_v8 = vor.u32 %v6658_v2, %v5667_v60  ;;  %v5678_v26 = vor.u32 %v6659_v37, %v5675_v62  ;;  %v6666_v37 = vld [vmem:[%s7198_s11 + $0x444] sm:$0xf] }
 0x19e   : > { %3176 = vmatmul.bf16.gmra.mxu0 %v5650_v58 }
 0x19f   : > { %3007 = vmatmul.bf16.gmra.mxu3 %v5646_v0  ;;  %v2799_v51 = vpop.f32.mrf.mxu2 }
 0x1a0   : > { %v2800_v48 = vadd.f32 %v2799_v51, %v2631_v4  ;;  %v5674_v4 = vor.u32 %v6663_v57, %v5673_v24  ;;  %v6664_v51 = vld [vmem:[%s7198_s11 + $0x42c] sm:$0xf0] }
 0x1a1   : > { %v2632_v34 = vpop.f32.mrf.mxu1 }
 0x1a2   : > { %v2968_v29 = vpop.f32.mrf.mxu3  ;;  %v2633_v50 = vadd.f32 %v2632_v34, %v7580_v16 }
 0x1a3   : > { %v2969_v40 = vadd.f32 %v2968_v29, %v2800_v48  ;;  %v3139_v9 = vpop.f32.mrf.mxu0 }
 0x1a5   : > { %v7716_v54 = vadd.f32 %v3137_v36, %v2969_v40  ;;  %v5681_v36 = vld [vmem:[%s7198_s11 + $0x410] sm:$0xf] }
 0x1a6   : > { %v5682_v16 = vor.u32 %v6664_v51, %v5681_v36 }
 0x1a7   : > { %v2801_v0 = vpop.f32.mrf.mxu2 }
 0x1a8   : > { %v2802_v22 = vadd.f32 %v2801_v0, %v2633_v50  ;;  %v5699_v0 = vld [vmem:[%s7198_s11 + $0x460] sm:$0xf0] }
 0x1a9   : > { %v2635_v58 = vpop.f32.mrf.mxu1  ;;  %v5702_v51 = vor.u32 %v6666_v37, %v5699_v0 }
 0x1aa   : > { %v2970_v21 = vpop.f32.mrf.mxu3  ;;  %v2636_v40 = vadd.f32 %v2635_v58, %v7378_v19 }
 0x1ab   : > { %v2971_v48 = vadd.f32 %v2970_v21, %v2802_v22  ;;  %v3142_v34 = vpop.f32.mrf.mxu0  ;;  %v5705_v22 = vld [vmem:[%s7198_s11 + $0x448] sm:$0xf] }
 0x1ac   : > { %2674 = vmatmul.bf16.gmra.mxu1 %v5670_v8  ;;  %2843 = vmatmul.bf16.gmra.mxu2 %v5674_v4  ;;  %v6671_v21 = vld [vmem:[%s7198_s11 + $0x464] sm:$0xf0]  ;;  %v6667_v4 = vld [vmem:[%s7198_s11 + $0x44c] sm:$0xf] }
 0x1ad   : > { %v7727_v29 = vadd.f32 %v3139_v9, %v2971_v48  ;;  %v5706_v48 = vor.u32 %v6671_v21, %v5705_v22 }
 0x1ae   : > { %3181 = vmatmul.bf16.gmra.mxu0 %v5682_v16 }
 0x1af   : > { %3012 = vmatmul.bf16.gmra.mxu3 %v5678_v26  ;;  %v2804_v2 = vpop.f32.mrf.mxu2  ;;  %v5707_v26 = vld [vmem:[%s7198_s11 + $0x468] sm:$0xf0] }
 0x1b0   : > { %v2805_v60 = vadd.f32 %v2804_v2, %v2636_v40  ;;  %v5710_v40 = vor.u32 %v6667_v4, %v5707_v26  ;;  %v6672_v2 = vld [vmem:[%s7198_s11 + $0x46c] sm:$0xf0]  ;;  %v6674_v4 = vld [vmem:[%s7198_s11 + $0x484] sm:$0xf] }
 0x1b1   : > { %v2637_v57 = vpop.f32.mrf.mxu1 }
 0x1b2   : > { %v2973_v24 = vpop.f32.mrf.mxu3  ;;  %v2638_v8 = vadd.f32 %v2637_v57, %v7388_v27 }
 0x1b3   : > { %v2974_v50 = vadd.f32 %v2973_v24, %v2805_v60  ;;  %v3144_v62 = vpop.f32.mrf.mxu0 }
 0x1b5   : > { %v7730_v9 = vadd.f32 %v3142_v34, %v2974_v50  ;;  %v5713_v34 = vld [vmem:[%s7198_s11 + $0x450] sm:$0xf] }
 0x1b6   : > { %v5714_v27 = vor.u32 %v6672_v2, %v5713_v34 }
 0x1b7   : > { %v2806_v19 = vpop.f32.mrf.mxu2 }
 0x1b8   : > { %v2807_v58 = vadd.f32 %v2806_v19, %v2638_v8  ;;  %v5731_v19 = vld [vmem:[%s7198_s11 + $0x4a0] sm:$0xf0] }
 0x1b9   : > { %v2640_v16 = vpop.f32.mrf.mxu1  ;;  %v5734_v2 = vor.u32 %v6674_v4, %v5731_v19  ;;  %v6524_v4 = vld [vmem:[%s9129_s1 + $0x1d0] sm:$0xff] }
 0x1ba   : > { %v2975_v36 = vpop.f32.mrf.mxu3  ;;  %v2641_v50 = vadd.f32 %v2640_v16, %v7402_v39  ;;  %3605 = vmatpush.bf16.msra.mxu3 %v6524_v4 }
 0x1bb   : > { %v2976_v60 = vadd.f32 %v2975_v36, %v2807_v58  ;;  %v3147_v57 = vpop.f32.mrf.mxu0  ;;  %v5737_v58 = vld [vmem:[%s7198_s11 + $0x488] sm:$0xf] }
 0x1bc   : > { %2679 = vmatmul.bf16.gmra.mxu1 %v5702_v51  ;;  %2848 = vmatmul.bf16.gmra.mxu2 %v5706_v48  ;;  %v6679_v36 = vld [vmem:[%s7198_s11 + $0x4a4] sm:$0xf0]  ;;  %v6675_v48 = vld [vmem:[%s7198_s11 + $0x48c] sm:$0xf] }
 0x1bd   : > { %v7741_v24 = vadd.f32 %v3144_v62, %v2976_v60  ;;  %v5738_v60 = vor.u32 %v6679_v36, %v5737_v58 }
 0x1be   : > { %3186 = vmatmul.bf16.gmra.mxu0 %v5714_v27 }
 0x1bf   : > { %3017 = vmatmul.bf16.gmra.mxu3 %v5710_v40  ;;  %v2809_v37 = vpop.f32.mrf.mxu2  ;;  %v5739_v40 = vld [vmem:[%s7198_s11 + $0x4a8] sm:$0xf0] }
 0x1c0   : > { %v2810_v0 = vadd.f32 %v2809_v37, %v2641_v50  ;;  %v5742_v50 = vor.u32 %v6675_v48, %v5739_v40  ;;  %v6680_v37 = vld [vmem:[%s7198_s11 + $0x4ac] sm:$0xf0] }
 0x1c1   : > { %v2642_v21 = vpop.f32.mrf.mxu1  ;;  %v6508_v40 = vld [vmem:[%s9129_s1 + $0x150] sm:$0xff] }
 0x1c2   : > { %v2978_v22 = vpop.f32.mrf.mxu3  ;;  %v2643_v51 = vadd.f32 %v2642_v21, %v7412_v47  ;;  %v6516_v21 = vld [vmem:[%s9129_s1 + $0x190] sm:$0xff]  ;;  %3267 = vmatpush.bf16.msra.mxu1 %v6508_v40 }
 0x1c3   : > { %v2979_v8 = vadd.f32 %v2978_v22, %v2810_v0  ;;  %v3149_v26 = vpop.f32.mrf.mxu0  ;;  %3436 = vmatpush.bf16.msra.mxu2 %v6516_v21 }
 0x1c5   : > { %v7744_v62 = vadd.f32 %v3147_v57, %v2979_v8  ;;  %v5745_v57 = vld [vmem:[%s7198_s11 + $0x490] sm:$0xf] }
 0x1c6   : > { %v5746_v8 = vor.u32 %v6680_v37, %v5745_v57  ;;  %v5771_v57 = vld [vmem:[%s7198_s11 + $0x4e8] sm:$0xf0] }
 0x1c7   : > { %v2811_v39 = vpop.f32.mrf.mxu2 }
 0x1c8   : > { %v2812_v16 = vadd.f32 %v2811_v39, %v2643_v51 }
 0x1c9   : > { %v2645_v27 = vpop.f32.mrf.mxu1 }
 0x1ca   : > { %v2980_v34 = vpop.f32.mrf.mxu3  ;;  %v2646_v19 = vadd.f32 %v2645_v27, %v7426_v59 }
 0x1cb   : > { %v2981_v0 = vadd.f32 %v2980_v34, %v2812_v16  ;;  %v3152_v47 = vpop.f32.mrf.mxu0  ;;  %v6682_v16 = vld [vmem:[%s7198_s11 + $0x4c4] sm:$0xf] }
 0x1cc   : > { %2684 = vmatmul.bf16.gmra.mxu1 %v5734_v2  ;;  %2853 = vmatmul.bf16.gmra.mxu2 %v5738_v60  ;;  %v5763_v34 = vld [vmem:[%s7198_s11 + $0x4e0] sm:$0xf0]  ;;  %v5769_v2 = vld [vmem:[%s7198_s11 + $0x4c8] sm:$0xf] }
 0x1cd   : > { %v7755_v22 = vadd.f32 %v3149_v26, %v2981_v0  ;;  %v6687_v60 = vld [vmem:[%s7198_s11 + $0x4e4] sm:$0xf0]  ;;  %v5766_v21 = vor.u32 %v6682_v16, %v5763_v34 }
 0x1ce   : > { %3191 = vmatmul.bf16.gmra.mxu0 %v5746_v8  ;;  %v5770_v4 = vor.u32 %v6687_v60, %v5769_v2 }
 0x1cf   : > { %3022 = vmatmul.bf16.gmra.mxu3 %v5742_v50  ;;  %v2814_v26 = vpop.f32.mrf.mxu2  ;;  %v6683_v50 = vld [vmem:[%s7198_s11 + $0x4cc] sm:$0xf] }
 0x1d0   : > { %v2815_v58 = vadd.f32 %v2814_v26, %v2646_v19  ;;  %v5777_v26 = vld [vmem:[%s7198_s11 + $0x4d0] sm:$0xf] }
 0x1d1   : > { %v2647_v51 = vpop.f32.mrf.mxu1 }
 0x1d2   : > { %v2983_v36 = vpop.f32.mrf.mxu3  ;;  %v2648_v27 = vadd.f32 %v2647_v51, %v7445_v6  ;;  %v6790_v51 = vld [vmem:[%s9130_s2 + $0x20] sm:$0xff] }
 0x1d3   : > { %v2984_v48 = vadd.f32 %v2983_v36, %v2815_v58  ;;  %v3154_v59 = vpop.f32.mrf.mxu0  ;;  %v6688_v58 = vld [vmem:[%s7198_s11 + $0x4ec] sm:$0xf0]  ;;  %4067 = vmatpush.bf16.msra.mxu0 %v6790_v51 }
 0x1d4   : > { %v5778_v40 = vor.u32 %v6688_v58, %v5777_v26 }
 0x1d5   : > { %v7767_v39 = vadd.f32 %v3152_v47, %v2984_v48  ;;  %v5774_v47 = vor.u32 %v6683_v50, %v5771_v57  ;;  %v6690_v57 = vld [vmem:[%s7198_s11 + $0x504] sm:$0xf] }
 0x1d7   : > { %v2816_v37 = vpop.f32.mrf.mxu2 }
 0x1d8   : > { %v2817_v0 = vadd.f32 %v2816_v37, %v2648_v27 }
 0x1d9   : > { %v2650_v19 = vpop.f32.mrf.mxu1 }
 0x1da   : > { %v2985_v8 = vpop.f32.mrf.mxu3  ;;  %v2651_v16 = vadd.f32 %v2650_v19, %v7459_v18  ;;  %v6691_v18 = vld [vmem:[%s7198_s11 + $0x50c] sm:$0xf] }
 0x1db   : > { %v2986_v36 = vadd.f32 %v2985_v8, %v2817_v0  ;;  %v3157_v6 = vpop.f32.mrf.mxu0  ;;  %v5795_v0 = vld [vmem:[%s7198_s11 + $0x520] sm:$0xf0]  ;;  %v5801_v8 = vld [vmem:[%s7198_s11 + $0x508] sm:$0xf]  ;;  %v5803_v19 = vld [vmem:[%s7198_s11 + $0x528] sm:$0xf0] }
 0x1dc   : > { %2689 = vmatmul.bf16.gmra.mxu1 %v5766_v21  ;;  %2858 = vmatmul.bf16.gmra.mxu2 %v5770_v4  ;;  %v6695_v21 = vld [vmem:[%s7198_s11 + $0x524] sm:$0xf0] }
 0x1dd   : > { %v7778_v48 = vadd.f32 %v3154_v59, %v2986_v36  ;;  %v5798_v36 = vor.u32 %v6690_v57, %v5795_v0 }
 0x1de   : > { %3196 = vmatmul.bf16.gmra.mxu0 %v5778_v40  ;;  %v5802_v40 = vor.u32 %v6695_v21, %v5801_v8 }
 0x1df   : > { %3027 = vmatmul.bf16.gmra.mxu3 %v5774_v47  ;;  %v2819_v34 = vpop.f32.mrf.mxu2 }
 0x1e0   : > { %v2820_v59 = vadd.f32 %v2819_v34, %v2651_v16  ;;  %v5806_v16 = vor.u32 %v6691_v18, %v5803_v19  ;;  %v6696_v34 = vld [vmem:[%s7198_s11 + $0x52c] sm:$0xf0]  ;;  %v6698_v18 = vld [vmem:[%s7198_s11 + $0x544] sm:$0xf] }
 0x1e1   : > { %v2652_v60 = vpop.f32.mrf.mxu1 }
 0x1e2   : > { %v2988_v2 = vpop.f32.mrf.mxu3  ;;  %v2653_v4 = vadd.f32 %v2652_v60, %v7469_v32 }
 0x1e3   : > { %v2989_v27 = vadd.f32 %v2988_v2, %v2820_v59  ;;  %v3159_v37 = vpop.f32.mrf.mxu0 }
 0x1e5   : > { %v7784_v50 = vadd.f32 %v3157_v6, %v2989_v27  ;;  %v5809_v6 = vld [vmem:[%s7198_s11 + $0x510] sm:$0xf] }
 0x1e6   : > { %v5810_v32 = vor.u32 %v6696_v34, %v5809_v6 }
 0x1e7   : > { %v2821_v47 = vpop.f32.mrf.mxu2 }
 0x1e8   : > { %v2822_v26 = vadd.f32 %v2821_v47, %v2653_v4  ;;  %v5827_v47 = vld [vmem:[%s7198_s11 + $0x560] sm:$0xf0] }
 0x1e9   : > { %v2655_v51 = vpop.f32.mrf.mxu1  ;;  %v5830_v34 = vor.u32 %v6698_v18, %v5827_v47 }
 0x1ea   : > { %v2990_v58 = vpop.f32.mrf.mxu3  ;;  %v2656_v27 = vadd.f32 %v2655_v51, %v7483_v52 }
 0x1eb   : > { %v2991_v59 = vadd.f32 %v2990_v58, %v2822_v26  ;;  %v3162_v60 = vpop.f32.mrf.mxu0  ;;  %v5833_v26 = vld [vmem:[%s7198_s11 + $0x548] sm:$0xf] }
 0x1ec   : > { %2694 = vmatmul.bf16.gmra.mxu1 %v5798_v36  ;;  %2863 = vmatmul.bf16.gmra.mxu2 %v5802_v40  ;;  %v6703_v58 = vld [vmem:[%s7198_s11 + $0x564] sm:$0xf0]  ;;  %v6699_v40 = vld [vmem:[%s7198_s11 + $0x54c] sm:$0xf] }
 0x1ed   : > { %v7795_v2 = vadd.f32 %v3159_v37, %v2991_v59  ;;  %v5834_v59 = vor.u32 %v6703_v58, %v5833_v26 }
 0x1ee   : > { %3201 = vmatmul.bf16.gmra.mxu0 %v5810_v32 }
 0x1ef   : > { %3032 = vmatmul.bf16.gmra.mxu3 %v5806_v16  ;;  %v2824_v57 = vpop.f32.mrf.mxu2  ;;  %v5835_v16 = vld [vmem:[%s7198_s11 + $0x568] sm:$0xf0] }
 0x1f0   : > { %v2825_v0 = vadd.f32 %v2824_v57, %v2656_v27  ;;  %v5838_v27 = vor.u32 %v6699_v40, %v5835_v16  ;;  %v6704_v57 = vld [vmem:[%s7198_s11 + $0x56c] sm:$0xf0]  ;;  %v6706_v40 = vld [vmem:[%s7198_s11 + $0x584] sm:$0xf] }
 0x1f1   : > { %v2657_v21 = vpop.f32.mrf.mxu1 }
 0x1f2   : > { %v2993_v8 = vpop.f32.mrf.mxu3  ;;  %v2658_v36 = vadd.f32 %v2657_v21, %v7493_v63 }
 0x1f3   : > { %v2994_v4 = vadd.f32 %v2993_v8, %v2825_v0  ;;  %v3164_v19 = vpop.f32.mrf.mxu0 }
 0x1f5   : > { %v7798_v37 = vadd.f32 %v3162_v60, %v2994_v4  ;;  %v5841_v60 = vld [vmem:[%s7198_s11 + $0x550] sm:$0xf] }
 0x1f6   : > { %v5842_v63 = vor.u32 %v6704_v57, %v5841_v60 }
 0x1f7   : > { %v2826_v52 = vpop.f32.mrf.mxu2 }
 0x1f8   : > { %v2827_v51 = vadd.f32 %v2826_v52, %v2658_v36  ;;  %v5859_v52 = vld [vmem:[%s7198_s11 + $0x5a0] sm:$0xf0] }
 0x1f9   : > { %v2660_v32 = vpop.f32.mrf.mxu1  ;;  %v5862_v57 = vor.u32 %v6706_v40, %v5859_v52  ;;  %v6523_v40 = vld [vmem:[%s9129_s1 + $0x1c8] sm:$0xff] }
 0x1fa   : > { %v2995_v6 = vpop.f32.mrf.mxu3  ;;  %v2661_v4 = vadd.f32 %v2660_v32, %v7507_v20  ;;  %3606 = vmatpush.bf16.msra.mxu3 %v6523_v40 }
 0x1fb   : > { %v2996_v0 = vadd.f32 %v2995_v6, %v2827_v51  ;;  %v3167_v21 = vpop.f32.mrf.mxu0  ;;  %v5865_v51 = vld [vmem:[%s7198_s11 + $0x588] sm:$0xf] }
 0x1fc   : > { %2699 = vmatmul.bf16.gmra.mxu1 %v5830_v34  ;;  %2868 = vmatmul.bf16.gmra.mxu2 %v5834_v59  ;;  %v6711_v6 = vld [vmem:[%s7198_s11 + $0x5a4] sm:$0xf0]  ;;  %v6707_v59 = vld [vmem:[%s7198_s11 + $0x58c] sm:$0xf] }
 0x1fd   : > { %v7809_v8 = vadd.f32 %v3164_v19, %v2996_v0  ;;  %v5866_v0 = vor.u32 %v6711_v6, %v5865_v51 }
 0x1fe   : > { %3206 = vmatmul.bf16.gmra.mxu0 %v5842_v63 }
 0x1ff   : > { %3037 = vmatmul.bf16.gmra.mxu3 %v5838_v27  ;;  %v2829_v18 = vpop.f32.mrf.mxu2  ;;  %v5867_v27 = vld [vmem:[%s7198_s11 + $0x5a8] sm:$0xf0] }
 0x200   : > { %v2830_v47 = vadd.f32 %v2829_v18, %v2661_v4  ;;  %v5870_v4 = vor.u32 %v6707_v59, %v5867_v27  ;;  %v6712_v18 = vld [vmem:[%s7198_s11 + $0x5ac] sm:$0xf0]  ;;  %v6507_v27 = vld [vmem:[%s9129_s1 + $0x148] sm:$0xff] }
 0x201   : > { %v2662_v58 = vpop.f32.mrf.mxu1  ;;  %3268 = vmatpush.bf16.msra.mxu1 %v6507_v27 }
 0x202   : > { %v2998_v26 = vpop.f32.mrf.mxu3  ;;  %v2663_v34 = vadd.f32 %v2662_v58, %v7517_v41  ;;  %v6515_v58 = vld [vmem:[%s9129_s1 + $0x188] sm:$0xff] }
 0x203   : > { %v2999_v36 = vadd.f32 %v2998_v26, %v2830_v47  ;;  %v3169_v16 = vpop.f32.mrf.mxu0  ;;  %3437 = vmatpush.bf16.msra.mxu2 %v6515_v58 }
 0x205   : > { %v7812_v19 = vadd.f32 %v3167_v21, %v2999_v36  ;;  %v5873_v21 = vld [vmem:[%s7198_s11 + $0x590] sm:$0xf] }
 0x206   : > { %v5874_v36 = vor.u32 %v6712_v18, %v5873_v21  ;;  %v5899_v21 = vld [vmem:[%s7198_s11 + $0x5e8] sm:$0xf0] }
 0x207   : > { %v2831_v20 = vpop.f32.mrf.mxu2 }
 0x208   : > { %v2832_v32 = vadd.f32 %v2831_v20, %v2663_v34 }
 0x209   : > { %v2665_v63 = vpop.f32.mrf.mxu1 }
 0x20a   : > { %v3000_v60 = vpop.f32.mrf.mxu3  ;;  %v2666_v52 = vadd.f32 %v2665_v63, %v7531_v10 }
 0x20b   : > { %v3001_v47 = vadd.f32 %v3000_v60, %v2832_v32  ;;  %v3172_v41 = vpop.f32.mrf.mxu0  ;;  %v6714_v32 = vld [vmem:[%s7198_s11 + $0x5c4] sm:$0xf] }
 0x20c   : > { %2704 = vmatmul.bf16.gmra.mxu1 %v5862_v57  ;;  %2873 = vmatmul.bf16.gmra.mxu2 %v5866_v0  ;;  %v5891_v60 = vld [vmem:[%s7198_s11 + $0x5e0] sm:$0xf0]  ;;  %v5897_v57 = vld [vmem:[%s7198_s11 + $0x5c8] sm:$0xf] }
 0x20d   : > { %v7823_v26 = vadd.f32 %v3169_v16, %v3001_v47  ;;  %v6719_v0 = vld [vmem:[%s7198_s11 + $0x5e4] sm:$0xf0]  ;;  %v5894_v58 = vor.u32 %v6714_v32, %v5891_v60 }
 0x20e   : > { %3211 = vmatmul.bf16.gmra.mxu0 %v5874_v36  ;;  %v5898_v40 = vor.u32 %v6719_v0, %v5897_v57 }
 0x20f   : > { %3042 = vmatmul.bf16.gmra.mxu3 %v5870_v4  ;;  %v2834_v16 = vpop.f32.mrf.mxu2  ;;  %v6715_v4 = vld [vmem:[%s7198_s11 + $0x5cc] sm:$0xf] }
 0x210   : > { %v2835_v51 = vadd.f32 %v2834_v16, %v2666_v52  ;;  %v5905_v16 = vld [vmem:[%s7198_s11 + $0x5d0] sm:$0xf] }
 0x211   : > { %v2667_v34 = vpop.f32.mrf.mxu1 }
 0x212   : > { %v3003_v6 = vpop.f32.mrf.mxu3  ;;  %v2668_v63 = vadd.f32 %v2667_v34, %v7547_v53  ;;  %v6789_v34 = vld [vmem:[%s9130_s2 + $0x18] sm:$0xff] }
 0x213   : > { %v3004_v59 = vadd.f32 %v3003_v6, %v2835_v51  ;;  %v3174_v10 = vpop.f32.mrf.mxu0  ;;  %v6720_v51 = vld [vmem:[%s7198_s11 + $0x5ec] sm:$0xf0]  ;;  %4068 = vmatpush.bf16.msra.mxu0 %v6789_v34 }
 0x214   : > { %v5906_v27 = vor.u32 %v6720_v51, %v5905_v16 }
 0x215   : > { %v7835_v20 = vadd.f32 %v3172_v41, %v3004_v59  ;;  %v5902_v41 = vor.u32 %v6715_v4, %v5899_v21  ;;  %v6722_v21 = vld [vmem:[%s7198_s11 + $0x604] sm:$0xf] }
 0x217   : > { %v2836_v18 = vpop.f32.mrf.mxu2 }
 0x218   : > { %v2837_v47 = vadd.f32 %v2836_v18, %v2668_v63 }
 0x219   : > { %v2670_v52 = vpop.f32.mrf.mxu1 }
 0x21a   : > { %v3005_v36 = vpop.f32.mrf.mxu3  ;;  %v2671_v32 = vadd.f32 %v2670_v52, %v7564_v5  ;;  %v6723_v5 = vld [vmem:[%s7198_s11 + $0x60c] sm:$0xf] }
 0x21b   : > { %v3006_v6 = vadd.f32 %v3005_v36, %v2837_v47  ;;  %v3177_v53 = vpop.f32.mrf.mxu0  ;;  %v5923_v47 = vld [vmem:[%s7198_s11 + $0x620] sm:$0xf0]  ;;  %v5929_v36 = vld [vmem:[%s7198_s11 + $0x608] sm:$0xf]  ;;  %v5931_v52 = vld [vmem:[%s7198_s11 + $0x628] sm:$0xf0] }
 0x21c   : > { %2709 = vmatmul.bf16.gmra.mxu1 %v5894_v58  ;;  %2878 = vmatmul.bf16.gmra.mxu2 %v5898_v40  ;;  %v6727_v58 = vld [vmem:[%s7198_s11 + $0x624] sm:$0xf0] }
 0x21d   : > { %v7846_v59 = vadd.f32 %v3174_v10, %v3006_v6  ;;  %v5926_v6 = vor.u32 %v6722_v21, %v5923_v47 }
 0x21e   : > { %3216 = vmatmul.bf16.gmra.mxu0 %v5906_v27  ;;  %v5930_v27 = vor.u32 %v6727_v58, %v5929_v36 }
 0x21f   : > { %3047 = vmatmul.bf16.gmra.mxu3 %v5902_v41  ;;  %v2839_v60 = vpop.f32.mrf.mxu2 }
 0x220   : > { %v2840_v10 = vadd.f32 %v2839_v60, %v2671_v32  ;;  %v5934_v32 = vor.u32 %v6723_v5, %v5931_v52  ;;  %v6728_v60 = vld [vmem:[%s7198_s11 + $0x62c] sm:$0xf0]  ;;  %v6730_v5 = vld [vmem:[%s7198_s11 + $0x644] sm:$0xf] }
 0x221   : > { %v2672_v0 = vpop.f32.mrf.mxu1 }
 0x222   : > { %v3008_v57 = vpop.f32.mrf.mxu3  ;;  %v2673_v40 = vadd.f32 %v2672_v0, %v7577_v11 }
 0x223   : > { %v3009_v63 = vadd.f32 %v3008_v57, %v2840_v10  ;;  %v3179_v18 = vpop.f32.mrf.mxu0 }
 0x225   : > { %v7852_v4 = vadd.f32 %v3177_v53, %v3009_v63  ;;  %v5937_v53 = vld [vmem:[%s7198_s11 + $0x610] sm:$0xf] }
 0x226   : > { %v5938_v11 = vor.u32 %v6728_v60, %v5937_v53 }
 0x227   : > { %v2841_v41 = vpop.f32.mrf.mxu2 }
 0x228   : > { %v2842_v16 = vadd.f32 %v2841_v41, %v2673_v40  ;;  %v5955_v41 = vld [vmem:[%s7198_s11 + $0x660] sm:$0xf0] }
 0x229   : > { %v2675_v34 = vpop.f32.mrf.mxu1  ;;  %v5958_v60 = vor.u32 %v6730_v5, %v5955_v41 }
 0x22a   : > { %v3010_v51 = vpop.f32.mrf.mxu3  ;;  %v2676_v63 = vadd.f32 %v2675_v34, %v7384_v25 }
 0x22b   : > { %v3011_v10 = vadd.f32 %v3010_v51, %v2842_v16  ;;  %v3182_v0 = vpop.f32.mrf.mxu0  ;;  %v5961_v16 = vld [vmem:[%s7198_s11 + $0x648] sm:$0xf] }
 0x22c   : > { %2714 = vmatmul.bf16.gmra.mxu1 %v5926_v6  ;;  %2883 = vmatmul.bf16.gmra.mxu2 %v5930_v27  ;;  %v6735_v51 = vld [vmem:[%s7198_s11 + $0x664] sm:$0xf0]  ;;  %v6731_v27 = vld [vmem:[%s7198_s11 + $0x64c] sm:$0xf] }
 0x22d   : > { %v7863_v57 = vadd.f32 %v3179_v18, %v3011_v10  ;;  %v5962_v10 = vor.u32 %v6735_v51, %v5961_v16 }
 0x22e   : > { %3221 = vmatmul.bf16.gmra.mxu0 %v5938_v11 }
 0x22f   : > { %3052 = vmatmul.bf16.gmra.mxu3 %v5934_v32  ;;  %v2844_v21 = vpop.f32.mrf.mxu2  ;;  %v5963_v32 = vld [vmem:[%s7198_s11 + $0x668] sm:$0xf0] }
 0x230   : > { %v2845_v47 = vadd.f32 %v2844_v21, %v2676_v63  ;;  %v5966_v63 = vor.u32 %v6731_v27, %v5963_v32  ;;  %v6736_v21 = vld [vmem:[%s7198_s11 + $0x66c] sm:$0xf0]  ;;  %v6738_v27 = vld [vmem:[%s7198_s11 + $0x684] sm:$0xf] }
 0x231   : > { %v2677_v58 = vpop.f32.mrf.mxu1 }
 0x232   : > { %v3013_v36 = vpop.f32.mrf.mxu3  ;;  %v2678_v6 = vadd.f32 %v2677_v58, %v7398_v35 }
 0x233   : > { %v3014_v40 = vadd.f32 %v3013_v36, %v2845_v47  ;;  %v3184_v52 = vpop.f32.mrf.mxu0 }
 0x235   : > { %v7866_v18 = vadd.f32 %v3182_v0, %v3014_v40  ;;  %v5969_v0 = vld [vmem:[%s7198_s11 + $0x650] sm:$0xf] }
 0x236   : > { %v5970_v35 = vor.u32 %v6736_v21, %v5969_v0 }
 0x237   : > { %v2846_v25 = vpop.f32.mrf.mxu2 }
 0x238   : > { %v2847_v34 = vadd.f32 %v2846_v25, %v2678_v6  ;;  %v5987_v25 = vld [vmem:[%s7198_s11 + $0x6a0] sm:$0xf0] }
 0x239   : > { %v2680_v11 = vpop.f32.mrf.mxu1  ;;  %v5990_v21 = vor.u32 %v6738_v27, %v5987_v25  ;;  %v6522_v27 = vld [vmem:[%s9129_s1 + $0x1c0] sm:$0xff] }
 0x23a   : > { %v3015_v53 = vpop.f32.mrf.mxu3  ;;  %v2681_v40 = vadd.f32 %v2680_v11, %v7408_v45  ;;  %3607 = vmatpush.bf16.msra.mxu3 %v6522_v27 }
 0x23b   : > { %v3016_v47 = vadd.f32 %v3015_v53, %v2847_v34  ;;  %v3187_v58 = vpop.f32.mrf.mxu0  ;;  %v5993_v34 = vld [vmem:[%s7198_s11 + $0x688] sm:$0xf] }
 0x23c   : > { %2719 = vmatmul.bf16.gmra.mxu1 %v5958_v60  ;;  %2888 = vmatmul.bf16.gmra.mxu2 %v5962_v10  ;;  %v6743_v53 = vld [vmem:[%s7198_s11 + $0x6a4] sm:$0xf0]  ;;  %v6739_v10 = vld [vmem:[%s7198_s11 + $0x68c] sm:$0xf] }
 0x23d   : > { %v7877_v36 = vadd.f32 %v3184_v52, %v3016_v47  ;;  %v5994_v47 = vor.u32 %v6743_v53, %v5993_v34 }
 0x23e   : > { %3226 = vmatmul.bf16.gmra.mxu0 %v5970_v35 }
 0x23f   : > { %3057 = vmatmul.bf16.gmra.mxu3 %v5966_v63  ;;  %v2849_v5 = vpop.f32.mrf.mxu2  ;;  %v5995_v63 = vld [vmem:[%s7198_s11 + $0x6a8] sm:$0xf0] }
 0x240   : > { %v2850_v41 = vadd.f32 %v2849_v5, %v2681_v40  ;;  %v5998_v40 = vor.u32 %v6739_v10, %v5995_v63  ;;  %v6744_v5 = vld [vmem:[%s7198_s11 + $0x6ac] sm:$0xf0]  ;;  %v6506_v63 = vld [vmem:[%s9129_s1 + $0x140] sm:$0xff] }
 0x241   : > { %v2682_v51 = vpop.f32.mrf.mxu1  ;;  %3269 = vmatpush.bf16.msra.mxu1 %v6506_v63 }
 0x242   : > { %v3018_v16 = vpop.f32.mrf.mxu3  ;;  %v2683_v60 = vadd.f32 %v2682_v51, %v7422_v55  ;;  %v6514_v51 = vld [vmem:[%s9129_s1 + $0x180] sm:$0xff] }
 0x243   : > { %v3019_v6 = vadd.f32 %v3018_v16, %v2850_v41  ;;  %v3189_v32 = vpop.f32.mrf.mxu0  ;;  %3438 = vmatpush.bf16.msra.mxu2 %v6514_v51 }
 0x245   : > { %v7880_v52 = vadd.f32 %v3187_v58, %v3019_v6  ;;  %v6001_v58 = vld [vmem:[%s7198_s11 + $0x690] sm:$0xf] }
 0x246   : > { %v6002_v6 = vor.u32 %v6744_v5, %v6001_v58  ;;  %v6027_v58 = vld [vmem:[%s7198_s11 + $0x6e8] sm:$0xf0] }
 0x247   : > { %v2851_v45 = vpop.f32.mrf.mxu2 }
 0x248   : > { %v2852_v11 = vadd.f32 %v2851_v45, %v2683_v60 }
 0x249   : > { %v2685_v35 = vpop.f32.mrf.mxu1 }
 0x24a   : > { %v3020_v0 = vpop.f32.mrf.mxu3  ;;  %v2686_v25 = vadd.f32 %v2685_v35, %v7438_v3 }
 0x24b   : > { %v3021_v41 = vadd.f32 %v3020_v0, %v2852_v11  ;;  %v3192_v55 = vpop.f32.mrf.mxu0  ;;  %v6746_v11 = vld [vmem:[%s7198_s11 + $0x6c4] sm:$0xf] }
 0x24c   : > { %2724 = vmatmul.bf16.gmra.mxu1 %v5990_v21  ;;  %2893 = vmatmul.bf16.gmra.mxu2 %v5994_v47  ;;  %v6019_v0 = vld [vmem:[%s7198_s11 + $0x6e0] sm:$0xf0]  ;;  %v6025_v21 = vld [vmem:[%s7198_s11 + $0x6c8] sm:$0xf] }
 0x24d   : > { %v7891_v16 = vadd.f32 %v3189_v32, %v3021_v41  ;;  %v6751_v47 = vld [vmem:[%s7198_s11 + $0x6e4] sm:$0xf0]  ;;  %v6022_v51 = vor.u32 %v6746_v11, %v6019_v0 }
 0x24e   : > { %3231 = vmatmul.bf16.gmra.mxu0 %v6002_v6  ;;  %v6026_v27 = vor.u32 %v6751_v47, %v6025_v21 }
 0x24f   : > { %3062 = vmatmul.bf16.gmra.mxu3 %v5998_v40  ;;  %v2854_v32 = vpop.f32.mrf.mxu2  ;;  %v6747_v40 = vld [vmem:[%s7198_s11 + $0x6cc] sm:$0xf] }
 0x250   : > { %v2855_v34 = vadd.f32 %v2854_v32, %v2686_v25  ;;  %v6033_v32 = vld [vmem:[%s7198_s11 + $0x6d0] sm:$0xf] }
 0x251   : > { %v2687_v60 = vpop.f32.mrf.mxu1 }
 0x252   : > { %v3023_v53 = vpop.f32.mrf.mxu3  ;;  %v2688_v35 = vadd.f32 %v2687_v60, %v7455_v14  ;;  %v6788_v60 = vld [vmem:[%s9130_s2 + $0x10] sm:$0xff] }
 0x253   : > { %v3024_v10 = vadd.f32 %v3023_v53, %v2855_v34  ;;  %v3194_v3 = vpop.f32.mrf.mxu0  ;;  %v6752_v34 = vld [vmem:[%s7198_s11 + $0x6ec] sm:$0xf0]  ;;  %4069 = vmatpush.bf16.msra.mxu0 %v6788_v60 }
 0x254   : > { %v6034_v63 = vor.u32 %v6752_v34, %v6033_v32 }
 0x255   : > { %v7903_v45 = vadd.f32 %v3192_v55, %v3024_v10  ;;  %v6030_v55 = vor.u32 %v6747_v40, %v6027_v58  ;;  %v6754_v58 = vld [vmem:[%s7198_s11 + $0x704] sm:$0xf] }
 0x257   : > { %v2856_v5 = vpop.f32.mrf.mxu2 }
 0x258   : > { %v2857_v41 = vadd.f32 %v2856_v5, %v2688_v35 }
 0x259   : > { %v2690_v25 = vpop.f32.mrf.mxu1 }
 0x25a   : > { %v3025_v6 = vpop.f32.mrf.mxu3  ;;  %v2691_v11 = vadd.f32 %v2690_v25, %v7465_v30  ;;  %v6755_v30 = vld [vmem:[%s7198_s11 + $0x70c] sm:$0xf] }
 0x25b   : > { %v3026_v53 = vadd.f32 %v3025_v6, %v2857_v41  ;;  %v3197_v14 = vpop.f32.mrf.mxu0  ;;  %v6051_v41 = vld [vmem:[%s7198_s11 + $0x720] sm:$0xf0]  ;;  %v6057_v6 = vld [vmem:[%s7198_s11 + $0x708] sm:$0xf]  ;;  %v6059_v25 = vld [vmem:[%s7198_s11 + $0x728] sm:$0xf0] }
 0x25c   : > { %2729 = vmatmul.bf16.gmra.mxu1 %v6022_v51  ;;  %2898 = vmatmul.bf16.gmra.mxu2 %v6026_v27  ;;  %v6759_v51 = vld [vmem:[%s7198_s11 + $0x724] sm:$0xf0] }
 0x25d   : > { %v7914_v10 = vadd.f32 %v3194_v3, %v3026_v53  ;;  %v6054_v53 = vor.u32 %v6754_v58, %v6051_v41 }
 0x25e   : > { %3236 = vmatmul.bf16.gmra.mxu0 %v6034_v63  ;;  %v6058_v63 = vor.u32 %v6759_v51, %v6057_v6 }
 0x25f   : > { %3067 = vmatmul.bf16.gmra.mxu3 %v6030_v55  ;;  %v2859_v0 = vpop.f32.mrf.mxu2 }
 0x260   : > { %v2860_v3 = vadd.f32 %v2859_v0, %v2691_v11  ;;  %v6062_v11 = vor.u32 %v6755_v30, %v6059_v25  ;;  %v6760_v0 = vld [vmem:[%s7198_s11 + $0x72c] sm:$0xf0]  ;;  %v6762_v30 = vld [vmem:[%s7198_s11 + $0x744] sm:$0xf] }
 0x261   : > { %v2692_v47 = vpop.f32.mrf.mxu1 }
 0x262   : > { %v3028_v21 = vpop.f32.mrf.mxu3  ;;  %v2693_v27 = vadd.f32 %v2692_v47, %v7479_v43 }
 0x263   : > { %v3029_v35 = vadd.f32 %v3028_v21, %v2860_v3  ;;  %v3199_v5 = vpop.f32.mrf.mxu0 }
 0x265   : > { %v7920_v40 = vadd.f32 %v3197_v14, %v3029_v35  ;;  %v6065_v14 = vld [vmem:[%s7198_s11 + $0x710] sm:$0xf] }
 0x266   : > { %v6066_v43 = vor.u32 %v6760_v0, %v6065_v14 }
 0x267   : > { %v2861_v55 = vpop.f32.mrf.mxu2 }
 0x268   : > { %v2862_v32 = vadd.f32 %v2861_v55, %v2693_v27  ;;  %v6083_v55 = vld [vmem:[%s7198_s11 + $0x760] sm:$0xf0] }
 0x269   : > { %v2695_v60 = vpop.f32.mrf.mxu1  ;;  %v6086_v0 = vor.u32 %v6762_v30, %v6083_v55 }
 0x26a   : > { %v3030_v34 = vpop.f32.mrf.mxu3  ;;  %v2696_v35 = vadd.f32 %v2695_v60, %v7489_v61  ;;  %v6091_v61 = vld [vmem:[%s7198_s11 + $0x768] sm:$0xf0] }
 0x26b   : > { %v3031_v3 = vadd.f32 %v3030_v34, %v2862_v32  ;;  %v3202_v47 = vpop.f32.mrf.mxu0  ;;  %v6089_v32 = vld [vmem:[%s7198_s11 + $0x748] sm:$0xf] }
 0x26c   : > { %2734 = vmatmul.bf16.gmra.mxu1 %v6054_v53  ;;  %2903 = vmatmul.bf16.gmra.mxu2 %v6058_v63  ;;  %v6767_v34 = vld [vmem:[%s7198_s11 + $0x764] sm:$0xf0]  ;;  %v6763_v63 = vld [vmem:[%s7198_s11 + $0x74c] sm:$0xf] }
 0x26d   : > { %v7931_v21 = vadd.f32 %v3199_v5, %v3031_v3  ;;  %v6090_v3 = vor.u32 %v6767_v34, %v6089_v32 }
 0x26e   : > { %3241 = vmatmul.bf16.gmra.mxu0 %v6066_v43 }
 0x26f   : > { %3072 = vmatmul.bf16.gmra.mxu3 %v6062_v11  ;;  %v2864_v58 = vpop.f32.mrf.mxu2 }
 0x270   : > { %v2865_v41 = vadd.f32 %v2864_v58, %v2696_v35  ;;  %v6097_v35 = vld [vmem:[%s7198_s11 + $0x750] sm:$0xf] }
 0x271   : > { %v2697_v51 = vpop.f32.mrf.mxu1  ;;  %v6768_v58 = vld [vmem:[%s7198_s11 + $0x76c] sm:$0xf0] }
 0x272   : > { %v3033_v6 = vpop.f32.mrf.mxu3  ;;  %v2698_v53 = vadd.f32 %v2697_v51, %v7503_v12  ;;  %v6098_v12 = vor.u32 %v6768_v58, %v6097_v35 }
 0x273   : > { %v3034_v27 = vadd.f32 %v3033_v6, %v2865_v41  ;;  %v7937_v25 = vpop.f32.mrf.mxu0 }
 0x275   : > { %v7934_v5 = vadd.f32 %v3202_v47, %v3034_v27  ;;  %v6094_v47 = vor.u32 %v6763_v63, %v6091_v61  ;;  %v6770_v63 = vld [vmem:[%s7198_s11 + $0x784] sm:$0xf] }
 0x277   : > { %v2866_v60 = vpop.f32.mrf.mxu2 }
 0x278   : > { %v2867_v11 = vadd.f32 %v2866_v60, %v2698_v53  ;;  %v6115_v60 = vld [vmem:[%s7198_s11 + $0x7a0] sm:$0xf0] }
 0x279   : > { %v2700_v43 = vpop.f32.mrf.mxu1  ;;  %v6118_v58 = vor.u32 %v6770_v63, %v6115_v60 }
 0x27a   : > { %v3035_v14 = vpop.f32.mrf.mxu3  ;;  %v2701_v51 = vadd.f32 %v2700_v43, %v7513_v38  ;;  %v6123_v38 = vld [vmem:[%s7198_s11 + $0x7a8] sm:$0xf0] }
 0x27b   : > { %v7947_v41 = vadd.f32 %v3035_v14, %v2867_v11  ;;  %v3207_v6 = vpop.f32.mrf.mxu0  ;;  %v6121_v11 = vld [vmem:[%s7198_s11 + $0x788] sm:$0xf] }
 0x27c   : > { %2739 = vmatmul.bf16.gmra.mxu1 %v6086_v0  ;;  %2908 = vmatmul.bf16.gmra.mxu2 %v6090_v3  ;;  %v6775_v14 = vld [vmem:[%s7198_s11 + $0x7a4] sm:$0xf0]  ;;  %v6771_v3 = vld [vmem:[%s7198_s11 + $0x78c] sm:$0xf] }
 0x27e   : > { %3246 = vmatmul.bf16.gmra.mxu0 %v6098_v12  ;;  %v6122_v12 = vor.u32 %v6775_v14, %v6121_v11 }
 0x27f   : > { %3077 = vmatmul.bf16.gmra.mxu3 %v6094_v47  ;;  %v2869_v27 = vpop.f32.mrf.mxu2 }
 0x280   : > { %v2870_v30 = vadd.f32 %v2869_v27, %v2701_v51  ;;  %v6129_v27 = vld [vmem:[%s7198_s11 + $0x790] sm:$0xf] }
 0x281   : > { %v2702_v32 = vpop.f32.mrf.mxu1 }
 0x282   : > { %v3038_v55 = vpop.f32.mrf.mxu3  ;;  %v2703_v0 = vadd.f32 %v2702_v32, %v7527_v1 }
 0x283   : > { %v3039_v34 = vadd.f32 %v3038_v55, %v2870_v30  ;;  %v7953_v61 = vpop.f32.mrf.mxu0  ;;  %v6776_v30 = vld [vmem:[%s7198_s11 + $0x7ac] sm:$0xf0] }
 0x284   : > { %9155 = vst [vmem:[#allocation25_spill] sm:$0xff] %v7953_v61  ;;  %v6130_v1 = vor.u32 %v6776_v30, %v6129_v27  ;;  %v6779_v30 = vld [vmem:[%s7198_s11 + $0x7cc] sm:$0xf] }
 0x285   : > { %v7950_v53 = vadd.f32 %v3207_v6, %v3039_v34  ;;  %v6126_v6 = vor.u32 %v6771_v3, %v6123_v38  ;;  %v9157_v34 = vld [vmem:[#allocation15_spill] sm:$0xff] }
 0x287   : > { %9154 = vst [vmem:[#allocation24_spill] sm:$0xff] %v7950_v53  ;;  %v2871_v43 = vpop.f32.mrf.mxu2 }
 0x288   : > { %v2872_v47 = vadd.f32 %v2871_v43, %v2703_v0  ;;  %v6778_v43 = vld [vmem:[%s7198_s11 + $0x7c4] sm:$0xf] }
 0x289   : > { %v2705_v51 = vpop.f32.mrf.mxu1 }
 0x28a   : > { %v3040_v35 = vpop.f32.mrf.mxu3  ;;  %v2706_v63 = vadd.f32 %v2705_v51, %v9157_v34  ;;  %v6155_v51 = vld [vmem:[%s7198_s11 + $0x7e8] sm:$0xf0] }
 0x28b   : > { %v7963_v55 = vadd.f32 %v3040_v35, %v2872_v47  ;;  %v3212_v32 = vpop.f32.mrf.mxu0  ;;  %v6147_v35 = vld [vmem:[%s7198_s11 + $0x7e0] sm:$0xf0] }
 0x28c   : > { %2744 = vmatmul.bf16.gmra.mxu1 %v6118_v58  ;;  %2913 = vmatmul.bf16.gmra.mxu2 %v6122_v12  ;;  %v6153_v58 = vld [vmem:[%s7198_s11 + $0x7c8] sm:$0xf] }
 0x28d   : > { %9156 = vst [vmem:[#allocation26_spill] sm:$0xff] %v7963_v55  ;;  %v6783_v12 = vld [vmem:[%s7198_s11 + $0x7e4] sm:$0xf0]  ;;  %v6609_v55 = vld [vmem:[%s7198_s11 + $0x274] sm:$0xf0] }
 0x28e   : > { %3251 = vmatmul.bf16.gmra.mxu0 %v6130_v1  ;;  %v6150_v1 = vor.u32 %v6778_v43, %v6147_v35  ;;  %v6154_v53 = vor.u32 %v6783_v12, %v6153_v58  ;;  %v6787_v43 = vld [vmem:[%s9130_s2 + $0x8] sm:$0xff]  ;;  %v9162_v35 = vld [vmem:[#allocation19_spill] sm:$0xff] }
 0x28f   : > { %3082 = vmatmul.bf16.gmra.mxu3 %v6126_v6  ;;  %v2874_v60 = vpop.f32.mrf.mxu2  ;;  %v9160_v6 = vld [vmem:[#allocation17_spill] sm:$0xff]  ;;  %4070 = vmatpush.bf16.msra.mxu0 %v6787_v43 }
 0x290   : > { %v2875_v11 = vadd.f32 %v2874_v60, %v2706_v63 }
 0x291   : > { %v2707_v0 = vpop.f32.mrf.mxu1 }
 0x292   : > { %v3043_v14 = vpop.f32.mrf.mxu3  ;;  %v2708_v27 = vadd.f32 %v2707_v0, %v9160_v6 }
 0x293   : > { %v3044_v3 = vadd.f32 %v3043_v14, %v2875_v11  ;;  %v7969_v47 = vpop.f32.mrf.mxu0  ;;  %v6161_v14 = vld [vmem:[%s7198_s11 + $0x7d0] sm:$0xf] }
 0x294   : > { %9159 = vst [vmem:[#allocation27_spill] sm:$0xff] %v7969_v47 }
 0x295   : > { %v7966_v38 = vadd.f32 %v3212_v32, %v3044_v3  ;;  %v6158_v32 = vor.u32 %v6779_v30, %v6155_v51  ;;  %v6784_v3 = vld [vmem:[%s7198_s11 + $0x7ec] sm:$0xf0] }
 0x296   : > { %v6162_v47 = vor.u32 %v6784_v3, %v6161_v14  ;;  %v9165_v14 = vld [vmem:[#allocation21_spill] sm:$0xff] }
 0x297   : > { %9158 = vst [vmem:[#allocation15_spill] sm:$0xff] %v7966_v38  ;;  %v2876_v34 = vpop.f32.mrf.mxu2 }
 0x298   : > { %v2877_v63 = vadd.f32 %v2876_v34, %v2708_v27  ;;  %v6532_v34 = vld [vmem:[%s7198_s11 + $0x14] sm:$0xf] }
 0x299   : > { %v2710_v11 = vpop.f32.mrf.mxu1 }
 0x29a   : > { %v3045_v60 = vpop.f32.mrf.mxu3  ;;  %v2711_v58 = vadd.f32 %v2710_v11, %v9162_v35  ;;  %v5179_v11 = vld [vmem:[%s7198_s11 + $0x38] sm:$0xf0] }
 0x29b   : > { %v7979_v38 = vadd.f32 %v3045_v60, %v2877_v63  ;;  %v3217_v0 = vpop.f32.mrf.mxu0  ;;  %v5171_v60 = vld [vmem:[%s7198_s11 + $0x30] sm:$0xf0] }
 0x29c   : > { %2749 = vmatmul.bf16.gmra.mxu1 %v6150_v1  ;;  %2918 = vmatmul.bf16.gmra.mxu2 %v6154_v53  ;;  %v5177_v1 = vld [vmem:[%s7198_s11 + $0x18] sm:$0xf] }
 0x29d   : > { %9161 = vst [vmem:[#allocation17_spill] sm:$0xff] %v7979_v38  ;;  %v6533_v38 = vld [vmem:[%s7198_s11 + $0x1c] sm:$0xf] }
 0x29e   : > { %3256 = vmatmul.bf16.gmra.mxu0 %v6162_v47 }
 0x29f   : > { %3087 = vmatmul.bf16.gmra.mxu3 %v6158_v32  ;;  %v2879_v12 = vpop.f32.mrf.mxu2  ;;  %v6537_v32 = vld [vmem:[%s7198_s11 + $0x34] sm:$0xf0] }
 0x2a0   : > { %v2880_v6 = vadd.f32 %v2879_v12, %v2711_v58  ;;  %v5174_v58 = vor.u32 %v6532_v34, %v5171_v60  ;;  %v5178_v47 = vor.u32 %v6537_v32, %v5177_v1 }
 0x2a1   : > { %v2712_v53 = vpop.f32.mrf.mxu1 }
 0x2a2   : > { %v3048_v27 = vpop.f32.mrf.mxu3  ;;  %v2713_v3 = vadd.f32 %v2712_v53, %v9165_v14  ;;  %v9167_v53 = vld [vmem:[#allocation3_spill] sm:$0xff] }
 0x2a3   : > { %v3049_v30 = vadd.f32 %v3048_v27, %v2880_v6  ;;  %v7988_v63 = vpop.f32.mrf.mxu0 }
 0x2a4   : > { %9164 = vst [vmem:[#allocation28_spill] sm:$0xff] %v7988_v63 }
 0x2a5   : > { %v7985_v51 = vadd.f32 %v3217_v0, %v3049_v30  ;;  %v5182_v0 = vor.u32 %v6533_v38, %v5179_v11  ;;  %v6540_v38 = vld [vmem:[%s7198_s11 + $0x54] sm:$0xf] }
 0x2a7   : > { %9163 = vst [vmem:[#allocation19_spill] sm:$0xff] %v7985_v51  ;;  %v2881_v35 = vpop.f32.mrf.mxu2  ;;  %v5211_v51 = vld [vmem:[%s7198_s11 + $0x78] sm:$0xf0] }
 0x2a8   : > { %v2882_v61 = vadd.f32 %v2881_v35, %v2713_v3  ;;  %v5209_v35 = vld [vmem:[%s7198_s11 + $0x58] sm:$0xf] }
 0x2a9   : > { %v2715_v12 = vpop.f32.mrf.mxu1 }
 0x2aa   : > { %v3050_v43 = vpop.f32.mrf.mxu3  ;;  %v2716_v30 = vadd.f32 %v2715_v12, %v9167_v53 }
 0x2ab   : > { %v7996_v6 = vadd.f32 %v3050_v43, %v2882_v61  ;;  %v3222_v27 = vpop.f32.mrf.mxu0  ;;  %v5203_v61 = vld [vmem:[%s7198_s11 + $0x70] sm:$0xf0]  ;;  %v6545_v43 = vld [vmem:[%s7198_s11 + $0x74] sm:$0xf0] }
 0x2ac   : > { %3270 = vmatmul.bf16.vlgmr.msra.gmra.mxu1 %v5174_v58  ;;  %3439 = vmatmul.bf16.vlgmr.msra.gmra.mxu2 %v5178_v47  ;;  %v9170_v58 = vld [vmem:[#allocation4_spill] sm:$0xff]  ;;  %v5206_v53 = vor.u32 %v6540_v38, %v5203_v61 }
 0x2ad   : > { %9166 = vst [vmem:[#allocation21_spill] sm:$0xff] %v7996_v6 }
 0x2af   : > { %3608 = vmatmul.bf16.vlgmr.msra.gmra.mxu3 %v5182_v0  ;;  %v2884_v14 = vpop.f32.mrf.mxu2  ;;  %v6541_v0 = vld [vmem:[%s7198_s11 + $0x5c] sm:$0xf] }
 0x2b0   : > { %v2885_v3 = vadd.f32 %v2884_v14, %v2716_v30  ;;  %v5210_v30 = vor.u32 %v6545_v43, %v5209_v35 }
 0x2b1   : > { %v2717_v60 = vpop.f32.mrf.mxu1 }
 0x2b2   : > { %v3053_v34 = vpop.f32.mrf.mxu3  ;;  %v2718_v47 = vadd.f32 %v2717_v60, %v9170_v58  ;;  %v9172_v60 = vld [vmem:[#allocation5_spill] sm:$0xff] }
 0x2b3   : > { %v3054_v1 = vadd.f32 %v3053_v34, %v2885_v3  ;;  %v8002_v11 = vpop.f32.mrf.mxu0 }
 0x2b4   : > { %9169 = vst [vmem:[#allocation29_spill] sm:$0xff] %v8002_v11 }
 0x2b5   : > { %v7999_v32 = vadd.f32 %v3222_v27, %v3054_v1  ;;  %v5214_v27 = vor.u32 %v6541_v0, %v5211_v51  ;;  %v6548_v51 = vld [vmem:[%s7198_s11 + $0x94] sm:$0xf]  ;;  %v5241_v0 = vld [vmem:[%s7198_s11 + $0x98] sm:$0xf] }
 0x2b7   : > { %9168 = vst [vmem:[#allocation3_spill] sm:$0xff] %v7999_v32  ;;  %v2886_v63 = vpop.f32.mrf.mxu2  ;;  %v5243_v32 = vld [vmem:[%s7198_s11 + $0xb8] sm:$0xf0] }
 0x2b8   : > { %v2887_v6 = vadd.f32 %v2886_v63, %v2718_v47 }
 0x2b9   : > { %v2720_v14 = vpop.f32.mrf.mxu1 }
 0x2ba   : > { %v3055_v12 = vpop.f32.mrf.mxu3  ;;  %v2721_v1 = vadd.f32 %v2720_v14, %v9172_v60 }
 0x2bb   : > { %v8010_v3 = vadd.f32 %v3055_v12, %v2887_v6  ;;  %v3227_v34 = vpop.f32.mrf.mxu0  ;;  %v5235_v6 = vld [vmem:[%s7198_s11 + $0xb0] sm:$0xf0]  ;;  %v6553_v12 = vld [vmem:[%s7198_s11 + $0xb4] sm:$0xf0] }
 0x2bc   : > { %3275 = vmatmul.bf16.gmra.mxu1 %v5206_v53  ;;  %3444 = vmatmul.bf16.gmra.mxu2 %v5210_v30  ;;  %v9175_v53 = vld [vmem:[#allocation6_spill] sm:$0xff]  ;;  %v5238_v60 = vor.u32 %v6548_v51, %v5235_v6 }
 0x2bd   : > { %9171 = vst [vmem:[#allocation4_spill] sm:$0xff] %v8010_v3 }
 0x2bf   : > { %3613 = vmatmul.bf16.gmra.mxu3 %v5214_v27  ;;  %v2889_v63 = vpop.f32.mrf.mxu2  ;;  %v6549_v27 = vld [vmem:[%s7198_s11 + $0x9c] sm:$0xf] }
 0x2c0   : > { %v2890_v58 = vadd.f32 %v2889_v63, %v2721_v1  ;;  %v5242_v1 = vor.u32 %v6553_v12, %v5241_v0 }
 0x2c1   : > { %v2722_v61 = vpop.f32.mrf.mxu1 }
 0x2c2   : > { %v3058_v38 = vpop.f32.mrf.mxu3  ;;  %v2723_v30 = vadd.f32 %v2722_v61, %v9175_v53  ;;  %v9177_v61 = vld [vmem:[#allocation7_spill] sm:$0xff] }
 0x2c3   : > { %v3059_v35 = vadd.f32 %v3058_v38, %v2890_v58  ;;  %v8016_v47 = vpop.f32.mrf.mxu0 }
 0x2c4   : > { %9174 = vst [vmem:[#allocation30_spill] sm:$0xff] %v8016_v47 }
 0x2c5   : > { %v8013_v43 = vadd.f32 %v3227_v34, %v3059_v35  ;;  %v5246_v34 = vor.u32 %v6549_v27, %v5243_v32  ;;  %v6556_v32 = vld [vmem:[%s7198_s11 + $0xd4] sm:$0xf]  ;;  %v5273_v27 = vld [vmem:[%s7198_s11 + $0xd8] sm:$0xf] }
 0x2c7   : > { %9173 = vst [vmem:[#allocation5_spill] sm:$0xff] %v8013_v43  ;;  %v2891_v11 = vpop.f32.mrf.mxu2  ;;  %v5275_v43 = vld [vmem:[%s7198_s11 + $0xf8] sm:$0xf0] }
 0x2c8   : > { %v2892_v3 = vadd.f32 %v2891_v11, %v2723_v30 }
 0x2c9   : > { %v2725_v63 = vpop.f32.mrf.mxu1 }
 0x2ca   : > { %v3060_v14 = vpop.f32.mrf.mxu3  ;;  %v2726_v35 = vadd.f32 %v2725_v63, %v9177_v61 }
 0x2cb   : > { %v8024_v58 = vadd.f32 %v3060_v14, %v2892_v3  ;;  %v3232_v38 = vpop.f32.mrf.mxu0  ;;  %v5267_v3 = vld [vmem:[%s7198_s11 + $0xf0] sm:$0xf0]  ;;  %v6561_v14 = vld [vmem:[%s7198_s11 + $0xf4] sm:$0xf0] }
 0x2cc   : > { %3280 = vmatmul.bf16.gmra.mxu1 %v5238_v60  ;;  %3449 = vmatmul.bf16.gmra.mxu2 %v5242_v1  ;;  %v9180_v60 = vld [vmem:[#allocation8_spill] sm:$0xff]  ;;  %v5270_v61 = vor.u32 %v6556_v32, %v5267_v3 }
 0x2cd   : > { %9176 = vst [vmem:[#allocation6_spill] sm:$0xff] %v8024_v58 }
 0x2cf   : > { %3618 = vmatmul.bf16.gmra.mxu3 %v5246_v34  ;;  %v2894_v11 = vpop.f32.mrf.mxu2  ;;  %v6557_v34 = vld [vmem:[%s7198_s11 + $0xdc] sm:$0xf] }
 0x2d0   : > { %v2895_v53 = vadd.f32 %v2894_v11, %v2726_v35  ;;  %v5274_v35 = vor.u32 %v6561_v14, %v5273_v27 }
 0x2d1   : > { %v2727_v6 = vpop.f32.mrf.mxu1 }
 0x2d2   : > { %v3063_v51 = vpop.f32.mrf.mxu3  ;;  %v2728_v1 = vadd.f32 %v2727_v6, %v9180_v60  ;;  %v9182_v6 = vld [vmem:[#allocation9_spill] sm:$0xff] }
 0x2d3   : > { %v3064_v0 = vadd.f32 %v3063_v51, %v2895_v53  ;;  %v8030_v30 = vpop.f32.mrf.mxu0  ;;  %v5278_v53 = vor.u32 %v6557_v34, %v5275_v43  ;;  %v6564_v60 = vld [vmem:[%s7198_s11 + $0x114] sm:$0xf] }
 0x2d4   : > { %9179 = vst [vmem:[#allocation31_spill] sm:$0xff] %v8030_v30  ;;  %v5299_v34 = vld [vmem:[%s7198_s11 + $0x130] sm:$0xf0]  ;;  %v5307_v30 = vld [vmem:[%s7198_s11 + $0x138] sm:$0xf0] }
 0x2d5   : > { %v8027_v12 = vadd.f32 %v3232_v38, %v3064_v0 }
 0x2d7   : > { %9178 = vst [vmem:[#allocation7_spill] sm:$0xff] %v8027_v12  ;;  %v2896_v47 = vpop.f32.mrf.mxu2  ;;  %v6565_v12 = vld [vmem:[%s7198_s11 + $0x11c] sm:$0xf] }
 0x2d8   : > { %v2897_v58 = vadd.f32 %v2896_v47, %v2728_v1  ;;  %v6786_v47 = vld [vmem:[%s9130_s2] sm:$0xff] }
 0x2d9   : > { %v2730_v11 = vpop.f32.mrf.mxu1  ;;  %4071 = vmatpush.bf16.msra.mxu0 %v6786_v47  ;;  %v5302_v47 = vor.u32 %v6564_v60, %v5299_v34 }
 0x2da   : > { %v3065_v63 = vpop.f32.mrf.mxu3  ;;  %v2731_v0 = vadd.f32 %v2730_v11, %v9182_v6 }
 0x2db   : > { %v8038_v38 = vadd.f32 %v3065_v63, %v2897_v58  ;;  %v3237_v51 = vpop.f32.mrf.mxu0  ;;  %v5305_v63 = vld [vmem:[%s7198_s11 + $0x118] sm:$0xf] }
 0x2dc   : > { %3285 = vmatmul.bf16.gmra.mxu1 %v5270_v61  ;;  %3454 = vmatmul.bf16.gmra.mxu2 %v5274_v35  ;;  %v6569_v61 = vld [vmem:[%s7198_s11 + $0x134] sm:$0xf0] }
 0x2dd   : > { %9181 = vst [vmem:[#allocation8_spill] sm:$0xff] %v8038_v38  ;;  %v9185_v35 = vld [vmem:[#allocation10_spill] sm:$0xff] }
 0x2df   : > { %3623 = vmatmul.bf16.gmra.mxu3 %v5278_v53  ;;  %v2899_v32 = vpop.f32.mrf.mxu2 }
 0x2e0   : > { %v2900_v43 = vadd.f32 %v2899_v32, %v2731_v0  ;;  %v5306_v0 = vor.u32 %v6569_v61, %v5305_v63 }
 0x2e1   : > { %v2732_v3 = vpop.f32.mrf.mxu1 }
 0x2e2   : > { %v3068_v58 = vpop.f32.mrf.mxu3  ;;  %v2733_v53 = vadd.f32 %v2732_v3, %v9185_v35  ;;  %v9187_v3 = vld [vmem:[#allocation11_spill] sm:$0xff] }
 0x2e3   : > { %v3069_v27 = vadd.f32 %v3068_v58, %v2900_v43  ;;  %v8047_v1 = vpop.f32.mrf.mxu0 }
 0x2e4   : > { %9184 = vst [vmem:[#allocation32_spill] sm:$0xff] %v8047_v1 }
 0x2e5   : > { %v8044_v14 = vadd.f32 %v3237_v51, %v3069_v27  ;;  %v5310_v51 = vor.u32 %v6565_v12, %v5307_v30  ;;  %v6572_v12 = vld [vmem:[%s7198_s11 + $0x154] sm:$0xf] }
 0x2e7   : > { %9183 = vst [vmem:[#allocation9_spill] sm:$0xff] %v8044_v14  ;;  %v2901_v38 = vpop.f32.mrf.mxu2  ;;  %v5339_v14 = vld [vmem:[%s7198_s11 + $0x178] sm:$0xf0] }
 0x2e8   : > { %v2902_v11 = vadd.f32 %v2901_v38, %v2733_v53  ;;  %v5331_v53 = vld [vmem:[%s7198_s11 + $0x170] sm:$0xf0] }
 0x2e9   : > { %v2735_v32 = vpop.f32.mrf.mxu1 }
 0x2ea   : > { %v3070_v6 = vpop.f32.mrf.mxu3  ;;  %v2736_v27 = vadd.f32 %v2735_v32, %v9187_v3  ;;  %v5334_v3 = vor.u32 %v6572_v12, %v5331_v53 }
 0x2eb   : > { %v8055_v43 = vadd.f32 %v3070_v6, %v2902_v11  ;;  %v3242_v58 = vpop.f32.mrf.mxu0  ;;  %v5337_v11 = vld [vmem:[%s7198_s11 + $0x158] sm:$0xf] }
 0x2ec   : > { %3290 = vmatmul.bf16.gmra.mxu1 %v5302_v47  ;;  %3459 = vmatmul.bf16.gmra.mxu2 %v5306_v0  ;;  %v6577_v6 = vld [vmem:[%s7198_s11 + $0x174] sm:$0xf0]  ;;  %v9190_v47 = vld [vmem:[#allocation12_spill] sm:$0xff] }
 0x2ed   : > { %9186 = vst [vmem:[#allocation10_spill] sm:$0xff] %v8055_v43 }
 0x2ef   : > { %3628 = vmatmul.bf16.gmra.mxu3 %v5310_v51  ;;  %v2904_v38 = vpop.f32.mrf.mxu2  ;;  %v6573_v51 = vld [vmem:[%s7198_s11 + $0x15c] sm:$0xf] }
 0x2f0   : > { %v2905_v35 = vadd.f32 %v2904_v38, %v2736_v27  ;;  %v5338_v27 = vor.u32 %v6577_v6, %v5337_v11 }
 0x2f1   : > { %v2737_v34 = vpop.f32.mrf.mxu1 }
 0x2f2   : > { %v3073_v60 = vpop.f32.mrf.mxu3  ;;  %v2738_v0 = vadd.f32 %v2737_v34, %v9190_v47  ;;  %v9192_v34 = vld [vmem:[#allocation13_spill] sm:$0xff] }
 0x2f3   : > { %v3074_v63 = vadd.f32 %v3073_v60, %v2905_v35  ;;  %v8061_v30 = vpop.f32.mrf.mxu0 }
 0x2f4   : > { %9189 = vst [vmem:[#allocation33_spill] sm:$0xff] %v8061_v30 }
 0x2f5   : > { %v8058_v61 = vadd.f32 %v3242_v58, %v3074_v63  ;;  %v5342_v58 = vor.u32 %v6573_v51, %v5339_v14  ;;  %v6580_v14 = vld [vmem:[%s7198_s11 + $0x194] sm:$0xf]  ;;  %v5369_v51 = vld [vmem:[%s7198_s11 + $0x198] sm:$0xf] }
 0x2f7   : > { %9188 = vst [vmem:[#allocation11_spill] sm:$0xff] %v8058_v61  ;;  %v2906_v1 = vpop.f32.mrf.mxu2  ;;  %v5371_v61 = vld [vmem:[%s7198_s11 + $0x1b8] sm:$0xf0] }
 0x2f8   : > { %v2907_v43 = vadd.f32 %v2906_v1, %v2738_v0 }
 0x2f9   : > { %v2740_v38 = vpop.f32.mrf.mxu1 }
 0x2fa   : > { %v3075_v32 = vpop.f32.mrf.mxu3  ;;  %v2741_v63 = vadd.f32 %v2740_v38, %v9192_v34 }
 0x2fb   : > { %v8069_v35 = vadd.f32 %v3075_v32, %v2907_v43  ;;  %v3247_v60 = vpop.f32.mrf.mxu0  ;;  %v5363_v43 = vld [vmem:[%s7198_s11 + $0x1b0] sm:$0xf0]  ;;  %v6585_v32 = vld [vmem:[%s7198_s11 + $0x1b4] sm:$0xf0] }
 0x2fc   : > { %3295 = vmatmul.bf16.gmra.mxu1 %v5334_v3  ;;  %3464 = vmatmul.bf16.gmra.mxu2 %v5338_v27  ;;  %v9195_v3 = vld [vmem:[#allocation14_spill] sm:$0xff]  ;;  %v5366_v34 = vor.u32 %v6580_v14, %v5363_v43 }
 0x2fd   : > { %9191 = vst [vmem:[#allocation12_spill] sm:$0xff] %v8069_v35 }
 0x2ff   : > { %3633 = vmatmul.bf16.gmra.mxu3 %v5342_v58  ;;  %v2909_v1 = vpop.f32.mrf.mxu2  ;;  %v6581_v58 = vld [vmem:[%s7198_s11 + $0x19c] sm:$0xf] }
 0x300   : > { %v2910_v47 = vadd.f32 %v2909_v1, %v2741_v63  ;;  %v5370_v63 = vor.u32 %v6585_v32, %v5369_v51 }
 0x301   : > { %v2742_v53 = vpop.f32.mrf.mxu1 }
 0x302   : > { %v3078_v12 = vpop.f32.mrf.mxu3  ;;  %v2743_v27 = vadd.f32 %v2742_v53, %v9195_v3  ;;  %v9197_v53 = vld [vmem:[#allocation16_spill] sm:$0xff] }
 0x303   : > { %v3079_v11 = vadd.f32 %v3078_v12, %v2910_v47  ;;  %v8075_v0 = vpop.f32.mrf.mxu0 }
 0x304   : > { %9194 = vst [vmem:[#allocation34_spill] sm:$0xff] %v8075_v0 }
 0x305   : > { %v8072_v6 = vadd.f32 %v3247_v60, %v3079_v11  ;;  %v5374_v60 = vor.u32 %v6581_v58, %v5371_v61  ;;  %v5395_v61 = vld [vmem:[%s7198_s11 + $0x1f0] sm:$0xf0]  ;;  %v5401_v58 = vld [vmem:[%s7198_s11 + $0x1d8] sm:$0xf] }
 0x307   : > { %9193 = vst [vmem:[#allocation13_spill] sm:$0xff] %v8072_v6  ;;  %v2911_v30 = vpop.f32.mrf.mxu2  ;;  %v6589_v6 = vld [vmem:[%s7198_s11 + $0x1dc] sm:$0xf] }
 0x308   : > { %v2912_v35 = vadd.f32 %v2911_v30, %v2743_v27  ;;  %v6588_v27 = vld [vmem:[%s7198_s11 + $0x1d4] sm:$0xf] }
 0x309   : > { %v2745_v1 = vpop.f32.mrf.mxu1 }
 0x30a   : > { %v3080_v38 = vpop.f32.mrf.mxu3  ;;  %v2746_v11 = vadd.f32 %v2745_v1, %v9197_v53  ;;  %v5398_v53 = vor.u32 %v6588_v27, %v5395_v61 }
 0x30b   : > { %v8083_v47 = vadd.f32 %v3080_v38, %v2912_v35  ;;  %v3252_v12 = vpop.f32.mrf.mxu0  ;;  %v6593_v35 = vld [vmem:[%s7198_s11 + $0x1f4] sm:$0xf0] }
 0x30c   : > { %3300 = vmatmul.bf16.gmra.mxu1 %v5366_v34  ;;  %3469 = vmatmul.bf16.gmra.mxu2 %v5370_v63  ;;  %v9199_v38 = vld [vmem:[#allocation18_spill] sm:$0xff] }
 0x30d   : > { %9196 = vst [vmem:[#allocation14_spill] sm:$0xff] %v8083_v47  ;;  %v5403_v63 = vld [vmem:[%s7198_s11 + $0x1f8] sm:$0xf0] }
 0x30f   : > { %3638 = vmatmul.bf16.gmra.mxu3 %v5374_v60  ;;  %v2914_v30 = vpop.f32.mrf.mxu2 }
 0x310   : > { %v2915_v3 = vadd.f32 %v2914_v30, %v2746_v11  ;;  %v5402_v11 = vor.u32 %v6593_v35, %v5401_v58 }
 0x311   : > { %v2747_v43 = vpop.f32.mrf.mxu1 }
 0x312   : > { %v3083_v14 = vpop.f32.mrf.mxu3  ;;  %v2748_v34 = vadd.f32 %v2747_v43, %v9199_v38 }
 0x313   : > { %v3084_v51 = vadd.f32 %v3083_v14, %v2915_v3  ;;  %v8095_v60 = vpop.f32.mrf.mxu0  ;;  %v9202_v14 = vld [vmem:[#allocation20_spill] sm:$0xff] }
 0x314   : > { %9200 = vst [vmem:[#allocation18_spill] sm:$0xff] %v8095_v60 }
 0x315   : > { %v8086_v32 = vadd.f32 %v3252_v12, %v3084_v51  ;;  %v5406_v12 = vor.u32 %v6589_v6, %v5403_v63  ;;  %v5427_v6 = vld [vmem:[%s7198_s11 + $0x230] sm:$0xf0]  ;;  %v5433_v63 = vld [vmem:[%s7198_s11 + $0x218] sm:$0xf] }
 0x317   : > { %9198 = vst [vmem:[#allocation16_spill] sm:$0xff] %v8086_v32  ;;  %v2916_v0 = vpop.f32.mrf.mxu2  ;;  %v6597_v32 = vld [vmem:[%s7198_s11 + $0x21c] sm:$0xf] }
 0x318   : > { %v2917_v47 = vadd.f32 %v2916_v0, %v2748_v34  ;;  %v6596_v34 = vld [vmem:[%s7198_s11 + $0x214] sm:$0xf] }
 0x319   : > { %v2750_v30 = vpop.f32.mrf.mxu1 }
 0x31a   : > { %v3085_v1 = vpop.f32.mrf.mxu3  ;;  %v2751_v43 = vadd.f32 %v2750_v30, %v9202_v14 }
 0x31b   : > { %v8097_v3 = vadd.f32 %v3085_v1, %v2917_v47  ;;  %v3257_v61 = vpop.f32.mrf.mxu0  ;;  %v6601_v47 = vld [vmem:[%s7198_s11 + $0x234] sm:$0xf0] }
 0x31c   : > { %3305 = vmatmul.bf16.gmra.mxu1 %v5398_v53  ;;  %3474 = vmatmul.bf16.gmra.mxu2 %v5402_v11  ;;  %v9204_v1 = vld [vmem:[#allocation22_spill] sm:$0xff] }
 0x31d   : > { %9201 = vst [vmem:[#allocation35_spill] sm:$0xff] %v8097_v3  ;;  %v5435_v11 = vld [vmem:[%s7198_s11 + $0x238] sm:$0xf0]  ;;  %v5465_v3 = vld [vmem:[%s7198_s11 + $0x258] sm:$0xf] }
 0x31f   : > { %3643 = vmatmul.bf16.gmra.mxu3 %v5406_v12  ;;  %v2919_v51 = vpop.f32.mrf.mxu2 }
 0x320   : > { %v2920_v0 = vadd.f32 %v2919_v51, %v2751_v43  ;;  %v5430_v43 = vor.u32 %v6596_v34, %v5427_v6  ;;  %v5434_v51 = vor.u32 %v6601_v47, %v5433_v63  ;;  %v6605_v63 = vld [vmem:[%s7198_s11 + $0x25c] sm:$0xf] }
 0x321   : > { %v2752_v27 = vpop.f32.mrf.mxu1 }
 0x322   : > { %v3088_v38 = vpop.f32.mrf.mxu3  ;;  %v2753_v53 = vadd.f32 %v2752_v27, %v9204_v1 }
 0x323   : > { %v3089_v58 = vadd.f32 %v3088_v38, %v2920_v0  ;;  %v5438_v38 = vor.u32 %v6597_v32, %v5435_v11  ;;  %v5467_v32 = vld [vmem:[%s7198_s11 + $0x278] sm:$0xf0] }
 0x325   : > { %v8100_v35 = vadd.f32 %v3257_v61, %v3089_v58 }
 0x327   : > { %9203 = vst [vmem:[#allocation20_spill] sm:$0xff] %v8100_v35  ;;  %v2921_v12 = vpop.f32.mrf.mxu2  ;;  %v9206_v35 = vld [vmem:[#allocation23_spill] sm:$0xff] }
 0x328   : > { %v2922_v30 = vadd.f32 %v2921_v12, %v2753_v53  ;;  %v6604_v53 = vld [vmem:[%s7198_s11 + $0x254] sm:$0xf] }
 0x329   : > { %v3271_v0 = vpop.f32.mrf.mxu1  ;;  %v5459_v12 = vld [vmem:[%s7198_s11 + $0x270] sm:$0xf0] }
 0x32a   : > { %v3090_v14 = vpop.f32.mrf.mxu3  ;;  %v3272_v60 = vadd.f32 %v3271_v0, %v9206_v35  ;;  %v5470_v35 = vor.u32 %v6605_v63, %v5467_v32  ;;  %v5499_v63 = vld [vmem:[%s7198_s11 + $0x2b8] sm:$0xf0] }
 0x32b   : > { %v8109_v61 = vadd.f32 %v3090_v14, %v2922_v30  ;;  %v5462_v14 = vor.u32 %v6604_v53, %v5459_v12  ;;  %v6612_v53 = vld [vmem:[%s7198_s11 + $0x294] sm:$0xf]  ;;  %v6617_v12 = vld [vmem:[%s7198_s11 + $0x2b4] sm:$0xf0] }
 0x32c   : > { %3310 = vmatmul.bf16.gmra.mxu1 %v5430_v43  ;;  %3479 = vmatmul.bf16.gmra.mxu2 %v5434_v51  ;;  %v5466_v43 = vor.u32 %v6609_v55, %v5465_v3  ;;  %v5491_v55 = vld [vmem:[%s7198_s11 + $0x2b0] sm:$0xf0]  ;;  %v5497_v3 = vld [vmem:[%s7198_s11 + $0x298] sm:$0xf] }
 0x32d   : > { %9205 = vst [vmem:[#allocation22_spill] sm:$0xff] %v8109_v61 }
 0x32f   : > { %3648 = vmatmul.bf16.gmra.mxu3 %v5438_v38  ;;  %v3440_v27 = vpop.f32.mrf.mxu2 }
 0x330   : > { %v3441_v34 = vadd.f32 %v3440_v27, %v3272_v60 }
 0x331   : > { %v3273_v1 = vpop.f32.mrf.mxu1 }
 0x332   : > { %v3609_v58 = vpop.f32.mrf.mxu3  ;;  %v3274_v6 = vadd.f32 %v3273_v1, %v7606_v42 }
 0x333   : > { %v3610_v0 = vadd.f32 %v3609_v58, %v3441_v34  ;;  %v6613_v34 = vld [vmem:[%s7198_s11 + $0x29c] sm:$0xf] }
 0x337   : > { %v3442_v47 = vpop.f32.mrf.mxu2 }
 0x338   : > { %v3443_v11 = vadd.f32 %v3442_v47, %v3274_v6 }
 0x339   : > { %v3276_v51 = vpop.f32.mrf.mxu1 }
 0x33a   : > { %v3611_v30 = vpop.f32.mrf.mxu3  ;;  %v3277_v1 = vadd.f32 %v3276_v51, %v7608_v15  ;;  %v5502_v15 = vor.u32 %v6613_v34, %v5499_v63 }
 0x33b   : > { %v3612_v38 = vadd.f32 %v3611_v30, %v3443_v11  ;;  %v5494_v30 = vor.u32 %v6612_v53, %v5491_v55  ;;  %v5529_v53 = vld [vmem:[%s7198_s11 + $0x2d8] sm:$0xf] }
 0x33c   : > { %3315 = vmatmul.bf16.gmra.mxu1 %v5462_v14  ;;  %3484 = vmatmul.bf16.gmra.mxu2 %v5466_v43  ;;  %v6625_v55 = vld [vmem:[%s7198_s11 + $0x2f4] sm:$0xf0] }
 0x33d   : > { %v3964_v61 = vpack.c.bf16 %v3612_v38, %v3610_v0 }
 0x33f   : > { %3653 = vmatmul.bf16.gmra.mxu3 %v5470_v35  ;;  %4072 = vmatmul.bf16.vlgmr.msra.gmra.mxu0 %v3964_v61  ;;  %v3445_v42 = vpop.f32.mrf.mxu2  ;;  %v5498_v61 = vor.u32 %v6617_v12, %v5497_v3  ;;  %v6621_v12 = vld [vmem:[%s7198_s11 + $0x2dc] sm:$0xf] }
 0x340   : > { %v3446_v6 = vadd.f32 %v3445_v42, %v3277_v1  ;;  %v5523_v1 = vld [vmem:[%s7198_s11 + $0x2f0] sm:$0xf0] }
 0x341   : > { %v3278_v27 = vpop.f32.mrf.mxu1 }
 0x342   : > { %v3614_v60 = vpop.f32.mrf.mxu3  ;;  %v3279_v58 = vadd.f32 %v3278_v27, %v7620_v7  ;;  %v6620_v27 = vld [vmem:[%s7198_s11 + $0x2d4] sm:$0xf] }
 0x343   : > { %v3615_v43 = vadd.f32 %v3614_v60, %v3446_v6  ;;  %v5531_v6 = vld [vmem:[%s7198_s11 + $0x2f8] sm:$0xf0] }
 0x347   : > { %v3447_v32 = vpop.f32.mrf.mxu2 }
 0x348   : > { %v3448_v47 = vadd.f32 %v3447_v32, %v3279_v58  ;;  %v5526_v32 = vor.u32 %v6620_v27, %v5523_v1  ;;  %v6629_v1 = vld [vmem:[%s7198_s11 + $0x31c] sm:$0xf] }
 0x349   : > { %v3281_v14 = vpop.f32.mrf.mxu1 }
 0x34a   : > { %v3616_v11 = vpop.f32.mrf.mxu3  ;;  %v3282_v42 = vadd.f32 %v3281_v14, %v7631_v31  ;;  %v5534_v31 = vor.u32 %v6621_v12, %v5531_v6 }
 0x34b   : > { %v3617_v51 = vadd.f32 %v3616_v11, %v3448_v47  ;;  %v5530_v47 = vor.u32 %v6625_v55, %v5529_v53  ;;  %v5563_v53 = vld [vmem:[%s7198_s11 + $0x338] sm:$0xf0] }
 0x34c   : > { %3320 = vmatmul.bf16.gmra.mxu1 %v5494_v30  ;;  %3489 = vmatmul.bf16.gmra.mxu2 %v5498_v61 }
 0x34d   : > { %v3965_v35 = vpack.c.bf16 %v3617_v51, %v3615_v43 }
 0x34f   : > { %3658 = vmatmul.bf16.gmra.mxu3 %v5502_v15  ;;  %4077 = vmatmul.bf16.gmra.mxu0 %v3965_v35  ;;  %v3450_v7 = vpop.f32.mrf.mxu2  ;;  %v6628_v35 = vld [vmem:[%s7198_s11 + $0x314] sm:$0xf] }
 0x350   : > { %v3451_v3 = vadd.f32 %v3450_v7, %v3282_v42  ;;  %v5555_v7 = vld [vmem:[%s7198_s11 + $0x330] sm:$0xf0]  ;;  %v6633_v42 = vld [vmem:[%s7198_s11 + $0x334] sm:$0xf0] }
 0x351   : > { %v3283_v38 = vpop.f32.mrf.mxu1  ;;  %v5558_v12 = vor.u32 %v6628_v35, %v5555_v7  ;;  %v5595_v35 = vld [vmem:[%s7198_s11 + $0x378] sm:$0xf0] }
 0x352   : > { %v3619_v0 = vpop.f32.mrf.mxu3  ;;  %v3284_v60 = vadd.f32 %v3283_v38, %v7643_v46  ;;  %v5561_v38 = vld [vmem:[%s7198_s11 + $0x318] sm:$0xf] }
 0x353   : > { %v3620_v30 = vadd.f32 %v3619_v0, %v3451_v3  ;;  %v5562_v6 = vor.u32 %v6633_v42, %v5561_v38 }
 0x357   : > { %v3452_v58 = vpop.f32.mrf.mxu2 }
 0x358   : > { %v3453_v34 = vadd.f32 %v3452_v58, %v3284_v60 }
 0x359   : > { %v3286_v11 = vpop.f32.mrf.mxu1 }
 0x35a   : > { %v3621_v63 = vpop.f32.mrf.mxu3  ;;  %v3287_v51 = vadd.f32 %v3286_v11, %v7648_v17  ;;  %v5566_v17 = vor.u32 %v6629_v1, %v5563_v53 }
 0x35b   : > { %v3622_v61 = vadd.f32 %v3621_v63, %v3453_v34 }
 0x35c   : > { %3325 = vmatmul.bf16.gmra.mxu1 %v5526_v32  ;;  %3494 = vmatmul.bf16.gmra.mxu2 %v5530_v47 }
 0x35d   : > { %v3966_v14 = vpack.c.bf16 %v3622_v61, %v3620_v30  ;;  %v6636_v30 = vld [vmem:[%s7198_s11 + $0x354] sm:$0xf] }
 0x35e   : > { %v5587_v61 = vld [vmem:[%s7198_s11 + $0x370] sm:$0xf0] }
 0x35f   : > { %3663 = vmatmul.bf16.gmra.mxu3 %v5534_v31  ;;  %4082 = vmatmul.bf16.gmra.mxu0 %v3966_v14  ;;  %v3455_v46 = vpop.f32.mrf.mxu2  ;;  %v5593_v14 = vld [vmem:[%s7198_s11 + $0x358] sm:$0xf] }
 0x360   : > { %v3456_v27 = vadd.f32 %v3455_v46, %v3287_v51  ;;  %v6641_v46 = vld [vmem:[%s7198_s11 + $0x374] sm:$0xf0]  ;;  %v6637_v51 = vld [vmem:[%s7198_s11 + $0x35c] sm:$0xf] }
 0x361   : > { %v3288_v43 = vpop.f32.mrf.mxu1 }
 0x362   : > { %v3624_v15 = vpop.f32.mrf.mxu3  ;;  %v3289_v0 = vadd.f32 %v3288_v43, %v7660_v13 }
 0x363   : > { %v3625_v34 = vadd.f32 %v3624_v15, %v3456_v27  ;;  %v5590_v27 = vor.u32 %v6636_v30, %v5587_v61 }
 0x367   : > { %v3457_v55 = vpop.f32.mrf.mxu2 }
 0x368   : > { %v3458_v3 = vadd.f32 %v3457_v55, %v3289_v0  ;;  %v5594_v0 = vor.u32 %v6641_v46, %v5593_v14 }
 0x369   : > { %v3291_v58 = vpop.f32.mrf.mxu1 }
 0x36a   : > { %v3626_v60 = vpop.f32.mrf.mxu3  ;;  %v3292_v31 = vadd.f32 %v3291_v58, %v7662_v44  ;;  %v5598_v44 = vor.u32 %v6637_v51, %v5595_v35  ;;  %v6644_v58 = vld [vmem:[%s7198_s11 + $0x394] sm:$0xf] }
 0x36b   : > { %v3627_v63 = vadd.f32 %v3626_v60, %v3458_v3 }
 0x36c   : > { %3330 = vmatmul.bf16.gmra.mxu1 %v5558_v12  ;;  %3499 = vmatmul.bf16.gmra.mxu2 %v5562_v6 }
 0x36d   : > { %v3967_v32 = vpack.c.bf16 %v3627_v63, %v3625_v34  ;;  %v5625_v34 = vld [vmem:[%s7198_s11 + $0x398] sm:$0xf] }
 0x36e   : > { %v6649_v63 = vld [vmem:[%s7198_s11 + $0x3b4] sm:$0xf0] }
 0x36f   : > { %3668 = vmatmul.bf16.gmra.mxu3 %v5566_v17  ;;  %4087 = vmatmul.bf16.gmra.mxu0 %v3967_v32  ;;  %v3460_v13 = vpop.f32.mrf.mxu2  ;;  %v5619_v17 = vld [vmem:[%s7198_s11 + $0x3b0] sm:$0xf0]  ;;  %v5626_v46 = vor.u32 %v6649_v63, %v5625_v34 }
 0x370   : > { %v3461_v43 = vadd.f32 %v3460_v13, %v3292_v31  ;;  %v5622_v14 = vor.u32 %v6644_v58, %v5619_v17 }
 0x371   : > { %v3293_v11 = vpop.f32.mrf.mxu1 }
 0x372   : > { %v3629_v47 = vpop.f32.mrf.mxu3  ;;  %v3294_v15 = vadd.f32 %v3293_v11, %v7674_v49  ;;  %v5627_v11 = vld [vmem:[%s7198_s11 + $0x3b8] sm:$0xf0] }
 0x373   : > { %v3630_v53 = vadd.f32 %v3629_v47, %v3461_v43  ;;  %v6645_v47 = vld [vmem:[%s7198_s11 + $0x39c] sm:$0xf] }
 0x377   : > { %v3462_v7 = vpop.f32.mrf.mxu2 }
 0x378   : > { %v3463_v38 = vadd.f32 %v3462_v7, %v3294_v15 }
 0x379   : > { %v3296_v1 = vpop.f32.mrf.mxu1 }
 0x37a   : > { %v3631_v42 = vpop.f32.mrf.mxu3  ;;  %v3297_v6 = vadd.f32 %v3296_v1, %v7676_v56  ;;  %v5630_v56 = vor.u32 %v6645_v47, %v5627_v11  ;;  %v5657_v1 = vld [vmem:[%s7198_s11 + $0x3d8] sm:$0xf] }
 0x37b   : > { %v3632_v55 = vadd.f32 %v3631_v42, %v3463_v38 }
 0x37c   : > { %3335 = vmatmul.bf16.gmra.mxu1 %v5590_v27  ;;  %3504 = vmatmul.bf16.gmra.mxu2 %v5594_v0  ;;  %v6652_v27 = vld [vmem:[%s7198_s11 + $0x3d4] sm:$0xf] }
 0x37d   : > { %v3968_v3 = vpack.c.bf16 %v3632_v55, %v3630_v53  ;;  %v5651_v0 = vld [vmem:[%s7198_s11 + $0x3f0] sm:$0xf0] }
 0x37e   : > { %v5654_v58 = vor.u32 %v6652_v27, %v5651_v0 }
 0x37f   : > { %3673 = vmatmul.bf16.gmra.mxu3 %v5598_v44  ;;  %4092 = vmatmul.bf16.gmra.mxu0 %v3968_v3  ;;  %v3465_v49 = vpop.f32.mrf.mxu2  ;;  %v6657_v44 = vld [vmem:[%s7198_s11 + $0x3f4] sm:$0xf0]  ;;  %v6653_v3 = vld [vmem:[%s7198_s11 + $0x3dc] sm:$0xf] }
 0x380   : > { %v3466_v32 = vadd.f32 %v3465_v49, %v3297_v6  ;;  %v5659_v49 = vld [vmem:[%s7198_s11 + $0x3f8] sm:$0xf0]  ;;  %v5658_v17 = vor.u32 %v6657_v44, %v5657_v1 }
 0x381   : > { %v3298_v12 = vpop.f32.mrf.mxu1 }
 0x382   : > { %v3634_v60 = vpop.f32.mrf.mxu3  ;;  %v3299_v13 = vadd.f32 %v3298_v12, %v7688_v23 }
 0x383   : > { %v3635_v15 = vadd.f32 %v3634_v60, %v3466_v32 }
 0x387   : > { %v3467_v31 = vpop.f32.mrf.mxu2 }
 0x388   : > { %v3468_v30 = vadd.f32 %v3467_v31, %v3299_v13 }
 0x389   : > { %v3301_v43 = vpop.f32.mrf.mxu1 }
 0x38a   : > { %v3636_v61 = vpop.f32.mrf.mxu3  ;;  %v3302_v42 = vadd.f32 %v3301_v43, %v7699_v28  ;;  %v5662_v28 = vor.u32 %v6653_v3, %v5659_v49  ;;  %v8175_v3 = vpop.f32.mrf.mxu0 }
 0x38b   : > { %v3637_v51 = vadd.f32 %v3636_v61, %v3468_v30  ;;  %v6660_v30 = vld [vmem:[%s7198_s11 + $0x414] sm:$0xf] }
 0x38c   : > { %3340 = vmatmul.bf16.gmra.mxu1 %v5622_v14  ;;  %3509 = vmatmul.bf16.gmra.mxu2 %v5626_v46  ;;  %v5683_v61 = vld [vmem:[%s7198_s11 + $0x430] sm:$0xf0]  ;;  %v5689_v14 = vld [vmem:[%s7198_s11 + $0x418] sm:$0xf] }
 0x38d   : > { %v3969_v35 = vpack.c.bf16 %v3637_v51, %v3635_v15  ;;  %v6665_v46 = vld [vmem:[%s7198_s11 + $0x434] sm:$0xf0]  ;;  %v6661_v15 = vld [vmem:[%s7198_s11 + $0x41c] sm:$0xf] }
 0x38e   : > { %v5691_v51 = vld [vmem:[%s7198_s11 + $0x438] sm:$0xf0] }
 0x38f   : > { %3678 = vmatmul.bf16.gmra.mxu3 %v5630_v56  ;;  %4097 = vmatmul.bf16.gmra.mxu0 %v3969_v35  ;;  %v3470_v23 = vpop.f32.mrf.mxu2  ;;  %v5694_v0 = vor.u32 %v6661_v15, %v5691_v51 }
 0x390   : > { %v3471_v53 = vadd.f32 %v3470_v23, %v3302_v42  ;;  %v5690_v42 = vor.u32 %v6665_v46, %v5689_v14 }
 0x391   : > { %v3303_v38 = vpop.f32.mrf.mxu1 }
 0x392   : > { %v3639_v7 = vpop.f32.mrf.mxu3  ;;  %v3304_v55 = vadd.f32 %v3303_v38, %v7711_v33  ;;  %v5686_v38 = vor.u32 %v6660_v30, %v5683_v61 }
 0x393   : > { %v3640_v63 = vadd.f32 %v3639_v7, %v3471_v53 }
 0x397   : > { %v3472_v60 = vpop.f32.mrf.mxu2 }
 0x398   : > { %v3473_v12 = vadd.f32 %v3472_v60, %v3304_v55  ;;  %v6668_v60 = vld [vmem:[%s7198_s11 + $0x454] sm:$0xf] }
 0x399   : > { %v3306_v34 = vpop.f32.mrf.mxu1 }
 0x39a   : > { %v3641_v6 = vpop.f32.mrf.mxu3  ;;  %v3307_v31 = vadd.f32 %v3306_v34, %v7716_v54 }
 0x39b   : > { %v3642_v32 = vadd.f32 %v3641_v6, %v3473_v12  ;;  %v5715_v12 = vld [vmem:[%s7198_s11 + $0x470] sm:$0xf0]  ;;  %v5721_v6 = vld [vmem:[%s7198_s11 + $0x458] sm:$0xf] }
 0x39c   : > { %3345 = vmatmul.bf16.gmra.mxu1 %v5654_v58  ;;  %3514 = vmatmul.bf16.gmra.mxu2 %v5658_v17  ;;  %v6673_v58 = vld [vmem:[%s7198_s11 + $0x474] sm:$0xf0]  ;;  %v4297_v17 = vlaneseq }
 0x39d   : > { %v3970_v13 = vpack.c.bf16 %v3642_v32, %v3640_v63  ;;  %v6669_v63 = vld [vmem:[%s7198_s11 + $0x45c] sm:$0xf] }
 0x39e   : > { %v5723_v32 = vld [vmem:[%s7198_s11 + $0x478] sm:$0xf0]  ;;  %v8190_v14 = vand.u32 127, %v4297_v17 }
 0x39f   : > { %3683 = vmatmul.bf16.gmra.mxu3 %v5662_v28  ;;  %4102 = vmatmul.bf16.gmra.mxu0 %v3970_v13  ;;  %v3475_v33 = vpop.f32.mrf.mxu2  ;;  %v5726_v61 = vor.u32 %v6669_v63, %v5723_v32 }
 0x3a0   : > { %v3476_v43 = vadd.f32 %v3475_v33, %v3307_v31  ;;  %v5718_v31 = vor.u32 %v6668_v60, %v5715_v12  ;;  %vm4299_vm0 = vcmp.lt.s32.totalorder %v8190_v14, 8  ;;  %v6677_v60 = vld [vmem:[%s7198_s11 + $0x49c] sm:$0xf] }
 0x3a1   : > { %v3308_v11 = vpop.f32.mrf.mxu1  ;;  %v5755_v12 = vld [vmem:[%s7198_s11 + $0x4b8] sm:$0xf0] }
 0x3a2   : > { %v3644_v47 = vpop.f32.mrf.mxu3  ;;  %v3309_v56 = vadd.f32 %v3308_v11, %v7727_v29  ;;  %v8188_v11 = vld [vmem:[%s9131_s3] ss:$0 sm:$0xff]  ;;  %v5758_v32 = vor.u32 %v6677_v60, %v5755_v12 }
 0x3a3   : > { %v3645_v54 = vadd.f32 %v3644_v47, %v3476_v43 }
 0x3a7   : > { %v3477_v35 = vpop.f32.mrf.mxu2 }
 0x3a8   : > { %v3478_v23 = vadd.f32 %v3477_v35, %v3309_v56 }
 0x3a9   : > { %v3311_v27 = vpop.f32.mrf.mxu1 }
 0x3aa   : > { %v3646_v7 = vpop.f32.mrf.mxu3  ;;  %v3312_v49 = vadd.f32 %v3311_v27, %v7730_v9  ;;  %v5722_v9 = vor.u32 %v6673_v58, %v5721_v6 }
 0x3ab   : > { %v3647_v1 = vadd.f32 %v3646_v7, %v3478_v23 }
 0x3ac   : > { %3350 = vmatmul.bf16.gmra.mxu1 %v5686_v38  ;;  %3519 = vmatmul.bf16.gmra.mxu2 %v5690_v42 }
 0x3ad   : > { %v3971_v44 = vpack.c.bf16 %v3647_v1, %v3645_v54  ;;  %v6676_v54 = vld [vmem:[%s7198_s11 + $0x494] sm:$0xf] }
 0x3ae   : > { %v5747_v1 = vld [vmem:[%s7198_s11 + $0x4b0] sm:$0xf0] }
 0x3af   : > { %3688 = vmatmul.bf16.gmra.mxu3 %v5694_v0  ;;  %4107 = vmatmul.bf16.gmra.mxu0 %v3971_v44  ;;  %v3480_v29 = vpop.f32.mrf.mxu2  ;;  %v5753_v44 = vld [vmem:[%s7198_s11 + $0x498] sm:$0xf] }
 0x3b0   : > { %v3481_v34 = vadd.f32 %v3480_v29, %v3312_v49  ;;  %v6681_v29 = vld [vmem:[%s7198_s11 + $0x4b4] sm:$0xf0] }
 0x3b1   : > { %v3313_v55 = vpop.f32.mrf.mxu1 }
 0x3b2   : > { %v3649_v53 = vpop.f32.mrf.mxu3  ;;  %v3314_v28 = vadd.f32 %v3313_v55, %v7741_v24 }
 0x3b3   : > { %v3650_v46 = vadd.f32 %v3649_v53, %v3481_v34 }
 0x3b7   : > { %v3482_v13 = vpop.f32.mrf.mxu2 }
 0x3b8   : > { %v3483_v33 = vadd.f32 %v3482_v13, %v3314_v28  ;;  %v5754_v28 = vor.u32 %v6681_v29, %v5753_v44 }
 0x3b9   : > { %v3316_v30 = vpop.f32.mrf.mxu1 }
 0x3ba   : > { %v3651_v47 = vpop.f32.mrf.mxu3  ;;  %v3317_v27 = vadd.f32 %v3316_v30, %v7744_v62  ;;  %v5750_v62 = vor.u32 %v6676_v54, %v5747_v1  ;;  %v6685_v54 = vld [vmem:[%s7198_s11 + $0x4dc] sm:$0xf] }
 0x3bb   : > { %v3652_v43 = vadd.f32 %v3651_v47, %v3483_v33  ;;  %v5787_v1 = vld [vmem:[%s7198_s11 + $0x4f8] sm:$0xf0] }
 0x3bc   : > { %v4073_v56 = vpop.f32.mrf.mxu0  ;;  %3355 = vmatmul.bf16.gmra.mxu1 %v5718_v31  ;;  %3524 = vmatmul.bf16.gmra.mxu2 %v5722_v9  ;;  %v5790_v12 = vor.u32 %v6685_v54, %v5787_v1 }
 0x3bd   : > { %v3972_v24 = vpack.c.bf16 %v3652_v43, %v3650_v46  ;;  %v4074_v15 = vadd.f32 %v8188_v11, %v4073_v56 }
 0x3bf   : > { %3693 = vmatmul.bf16.gmra.mxu3 %v5726_v61  ;;  %v4233_v51 = vmax.f32 %v4074_v15, 0.0  ;;  %4112 = vmatmul.bf16.gmra.mxu0 %v3972_v24  ;;  %v3485_v35 = vpop.f32.mrf.mxu2 }
 0x3c0   : > { %v3486_v53 = vadd.f32 %v3485_v35, %v3317_v27  ;;  %v5779_v35 = vld [vmem:[%s7198_s11 + $0x4f0] sm:$0xf0] }
 0x3c1   : > { %v8196_v7 = vsel %vm4299_vm0, %v4233_v51, -1e+30  ;;  %v3318_v38 = vpop.f32.mrf.mxu1  ;;  %v6684_v51 = vld [vmem:[%s7198_s11 + $0x4d4] sm:$0xf] }
 0x3c2   : > { %v3654_v23 = vpop.f32.mrf.mxu3  ;;  %4364 = vmax.xlane.f32.xlu0 %v8196_v7  ;;  %v3319_v55 = vadd.f32 %v3318_v38, %v7755_v22  ;;  %v6689_v38 = vld [vmem:[%s7198_s11 + $0x4f4] sm:$0xf0] }
 0x3c3   : > { %v3655_v13 = vadd.f32 %v3654_v23, %v3486_v53  ;;  %v5785_v23 = vld [vmem:[%s7198_s11 + $0x4d8] sm:$0xf] }
 0x3c4   : > { %v4075_v42 = vpop.f32.mrf.mxu0 }
 0x3c5   : > { %v4076_v0 = vadd.f32 %v8188_v11, %v4075_v42 }
 0x3c7   : > { %v4234_v49 = vmax.f32 %v4076_v0, 0.0  ;;  %v3487_v6 = vpop.f32.mrf.mxu2 }
 0x3c8   : > { %v3488_v58 = vadd.f32 %v3487_v6, %v3319_v55 }
 0x3c9   : > { %v8210_v34 = vsel %vm4299_vm0, %v4234_v49, -1e+30  ;;  %v3321_v63 = vpop.f32.mrf.mxu1  ;;  %v5786_v49 = vor.u32 %v6689_v38, %v5785_v23 }
 0x3ca   : > { %v3656_v17 = vpop.f32.mrf.mxu3  ;;  %4366 = vmax.xlane.f32.xlu0 %v8210_v34  ;;  %v3322_v24 = vadd.f32 %v3321_v63, %v7767_v39  ;;  %v5782_v39 = vor.u32 %v6684_v51, %v5779_v35  ;;  %v6693_v51 = vld [vmem:[%s7198_s11 + $0x51c] sm:$0xf] }
 0x3cb   : > { %v3657_v33 = vadd.f32 %v3656_v17, %v3488_v58  ;;  %v5819_v35 = vld [vmem:[%s7198_s11 + $0x538] sm:$0xf0] }
 0x3cc   : > { %v4078_v47 = vpop.f32.mrf.mxu0  ;;  %3360 = vmatmul.bf16.gmra.mxu1 %v5750_v62  ;;  %3529 = vmatmul.bf16.gmra.mxu2 %v5754_v28  ;;  %v5822_v1 = vor.u32 %v6693_v51, %v5819_v35 }
 0x3cd   : > { %v3973_v22 = vpack.c.bf16 %v3657_v33, %v3655_v13  ;;  %v4079_v31 = vadd.f32 %v8188_v11, %v4078_v47 }
 0x3cf   : > { %3698 = vmatmul.bf16.gmra.mxu3 %v5758_v32  ;;  %v4235_v9 = vmax.f32 %v4079_v31, 0.0  ;;  %4117 = vmatmul.bf16.gmra.mxu0 %v3973_v22  ;;  %v3490_v30 = vpop.f32.mrf.mxu2 }
 0x3d0   : > { %v3491_v42 = vadd.f32 %v3490_v30, %v3322_v24  ;;  %v5811_v30 = vld [vmem:[%s7198_s11 + $0x530] sm:$0xf0] }
 0x3d1   : > { %v8216_v46 = vsel %vm4299_vm0, %v4235_v9, -1e+30  ;;  %v3323_v43 = vpop.f32.mrf.mxu1  ;;  %v6692_v9 = vld [vmem:[%s7198_s11 + $0x514] sm:$0xf] }
 0x3d2   : > { %v3659_v61 = vpop.f32.mrf.mxu3  ;;  %4368 = vmax.xlane.f32.xlu1 %v8216_v46  ;;  %v3324_v27 = vadd.f32 %v3323_v43, %v7778_v48  ;;  %v6697_v43 = vld [vmem:[%s7198_s11 + $0x534] sm:$0xf0] }
 0x3d3   : > { %v3660_v6 = vadd.f32 %v3659_v61, %v3491_v42  ;;  %v5817_v61 = vld [vmem:[%s7198_s11 + $0x518] sm:$0xf] }
 0x3d4   : > { %v4080_v56 = vpop.f32.mrf.mxu0 }
 0x3d5   : > { %v4081_v15 = vadd.f32 %v8188_v11, %v4080_v56 }
 0x3d7   : > { %v4236_v0 = vmax.f32 %v4081_v15, 0.0  ;;  %v3492_v44 = vpop.f32.mrf.mxu2 }
 0x3d8   : > { %v3493_v29 = vadd.f32 %v3492_v44, %v3324_v27 }
 0x3d9   : > { %v8230_v55 = vsel %vm4299_vm0, %v4236_v0, -1e+30  ;;  %v3326_v60 = vpop.f32.mrf.mxu1  ;;  %v5818_v0 = vor.u32 %v6697_v43, %v5817_v61 }
 0x3da   : > { %v3661_v53 = vpop.f32.mrf.mxu3  ;;  %4370 = vmax.xlane.f32.xlu1 %v8230_v55  ;;  %v3327_v22 = vadd.f32 %v3326_v60, %v7784_v50  ;;  %v5814_v50 = vor.u32 %v6692_v9, %v5811_v30  ;;  %v6701_v9 = vld [vmem:[%s7198_s11 + $0x55c] sm:$0xf] }
 0x3db   : > { %v3662_v58 = vadd.f32 %v3661_v53, %v3493_v29  ;;  %v5851_v30 = vld [vmem:[%s7198_s11 + $0x578] sm:$0xf0] }
 0x3dc   : > { %v4083_v17 = vpop.f32.mrf.mxu0  ;;  %3365 = vmatmul.bf16.gmra.mxu1 %v5782_v39  ;;  %3534 = vmatmul.bf16.gmra.mxu2 %v5786_v49  ;;  %v5854_v35 = vor.u32 %v6701_v9, %v5851_v30 }
 0x3dd   : > { %v3974_v48 = vpack.c.bf16 %v3662_v58, %v3660_v6  ;;  %v4084_v62 = vadd.f32 %v8188_v11, %v4083_v17 }
 0x3df   : > { %3703 = vmatmul.bf16.gmra.mxu3 %v5790_v12  ;;  %v4237_v28 = vmax.f32 %v4084_v62, 0.0  ;;  %4122 = vmatmul.bf16.gmra.mxu0 %v3974_v48  ;;  %v3495_v63 = vpop.f32.mrf.mxu2 }
 0x3e0   : > { %v3496_v56 = vadd.f32 %v3495_v63, %v3327_v22  ;;  %v5843_v63 = vld [vmem:[%s7198_s11 + $0x570] sm:$0xf0] }
 0x3e1   : > { %v8236_v13 = vsel %vm4299_vm0, %v4237_v28, -1e+30  ;;  %v3328_v33 = vpop.f32.mrf.mxu1  ;;  %v6700_v28 = vld [vmem:[%s7198_s11 + $0x554] sm:$0xf] }
 0x3e2   : > { %v3664_v32 = vpop.f32.mrf.mxu3  ;;  %4372 = vmax.xlane.f32.xlu2 %v8236_v13  ;;  %v3329_v24 = vadd.f32 %v3328_v33, %v7795_v2  ;;  %v6705_v33 = vld [vmem:[%s7198_s11 + $0x574] sm:$0xf0] }
 0x3e3   : > { %v3665_v44 = vadd.f32 %v3664_v32, %v3496_v56  ;;  %v5849_v32 = vld [vmem:[%s7198_s11 + $0x558] sm:$0xf] }
 0x3e4   : > { %v4085_v47 = vpop.f32.mrf.mxu0 }
 0x3e5   : > { %v4086_v31 = vadd.f32 %v8188_v11, %v4085_v47 }
 0x3e7   : > { %v4238_v15 = vmax.f32 %v4086_v31, 0.0  ;;  %v3497_v23 = vpop.f32.mrf.mxu2 }
 0x3e8   : > { %v3498_v38 = vadd.f32 %v3497_v23, %v3329_v24 }
 0x3e9   : > { %v8250_v27 = vsel %vm4299_vm0, %v4238_v15, -1e+30  ;;  %v3331_v54 = vpop.f32.mrf.mxu1  ;;  %v5850_v15 = vor.u32 %v6705_v33, %v5849_v32 }
 0x3ea   : > { %v3666_v42 = vpop.f32.mrf.mxu3  ;;  %4374 = vmax.xlane.f32.xlu2 %v8250_v27  ;;  %v3332_v48 = vadd.f32 %v3331_v54, %v7798_v37  ;;  %v5846_v37 = vor.u32 %v6700_v28, %v5843_v63  ;;  %v6709_v28 = vld [vmem:[%s7198_s11 + $0x59c] sm:$0xf] }
 0x3eb   : > { %v3667_v29 = vadd.f32 %v3666_v42, %v3498_v38  ;;  %v5883_v63 = vld [vmem:[%s7198_s11 + $0x5b8] sm:$0xf0] }
 0x3ec   : > { %v4088_v53 = vpop.f32.mrf.mxu0  ;;  %3370 = vmatmul.bf16.gmra.mxu1 %v5814_v50  ;;  %3539 = vmatmul.bf16.gmra.mxu2 %v5818_v0  ;;  %v5886_v30 = vor.u32 %v6709_v28, %v5883_v63 }
 0x3ed   : > { %v3975_v2 = vpack.c.bf16 %v3667_v29, %v3665_v44  ;;  %v4089_v39 = vadd.f32 %v8188_v11, %v4088_v53 }
 0x3ef   : > { %3708 = vmatmul.bf16.gmra.mxu3 %v5822_v1  ;;  %v4239_v49 = vmax.f32 %v4089_v39, 0.0  ;;  %4127 = vmatmul.bf16.gmra.mxu0 %v3975_v2  ;;  %v3500_v60 = vpop.f32.mrf.mxu2 }
 0x3f0   : > { %v3501_v47 = vadd.f32 %v3500_v60, %v3332_v48  ;;  %v5875_v60 = vld [vmem:[%s7198_s11 + $0x5b0] sm:$0xf0] }
 0x3f1   : > { %v8256_v6 = vsel %vm4299_vm0, %v4239_v49, -1e+30  ;;  %v3333_v58 = vpop.f32.mrf.mxu1  ;;  %v6708_v49 = vld [vmem:[%s7198_s11 + $0x594] sm:$0xf] }
 0x3f2   : > { %v3669_v12 = vpop.f32.mrf.mxu3  ;;  %4376 = vmax.xlane.f32.xlu0 %v8256_v6  ;;  %v3334_v22 = vadd.f32 %v3333_v58, %v7809_v8  ;;  %v6713_v58 = vld [vmem:[%s7198_s11 + $0x5b4] sm:$0xf0] }
 0x3f3   : > { %v3670_v23 = vadd.f32 %v3669_v12, %v3501_v47  ;;  %v5881_v12 = vld [vmem:[%s7198_s11 + $0x598] sm:$0xf] }
 0x3f4   : > { %v4090_v17 = vpop.f32.mrf.mxu0 }
 0x3f5   : > { %v4091_v62 = vadd.f32 %v8188_v11, %v4090_v17 }
 0x3f7   : > { %v4240_v31 = vmax.f32 %v4091_v62, 0.0  ;;  %v3502_v61 = vpop.f32.mrf.mxu2 }
 0x3f8   : > { %v3503_v43 = vadd.f32 %v3502_v61, %v3334_v22 }
 0x3f9   : > { %v8270_v24 = vsel %vm4299_vm0, %v4240_v31, -1e+30  ;;  %v3336_v51 = vpop.f32.mrf.mxu1  ;;  %v5882_v31 = vor.u32 %v6713_v58, %v5881_v12 }
 0x3fa   : > { %v3671_v56 = vpop.f32.mrf.mxu3  ;;  %4378 = vmax.xlane.f32.xlu1 %v8270_v24  ;;  %v3337_v2 = vadd.f32 %v3336_v51, %v7812_v19  ;;  %v5878_v19 = vor.u32 %v6708_v49, %v5875_v60  ;;  %v6717_v49 = vld [vmem:[%s7198_s11 + $0x5dc] sm:$0xf] }
 0x3fb   : > { %v3672_v38 = vadd.f32 %v3671_v56, %v3503_v43  ;;  %v5915_v60 = vld [vmem:[%s7198_s11 + $0x5f8] sm:$0xf0] }
 0x3fc   : > { %v4093_v42 = vpop.f32.mrf.mxu0  ;;  %3375 = vmatmul.bf16.gmra.mxu1 %v5846_v37  ;;  %3544 = vmatmul.bf16.gmra.mxu2 %v5850_v15  ;;  %v5918_v63 = vor.u32 %v6717_v49, %v5915_v60 }
 0x3fd   : > { %v3976_v8 = vpack.c.bf16 %v3672_v38, %v3670_v23  ;;  %v4094_v50 = vadd.f32 %v8188_v11, %v4093_v42 }
 0x3ff   : > { %3713 = vmatmul.bf16.gmra.mxu3 %v5854_v35  ;;  %v4241_v0 = vmax.f32 %v4094_v50, 0.0  ;;  %4132 = vmatmul.bf16.gmra.mxu0 %v3976_v8  ;;  %v3505_v54 = vpop.f32.mrf.mxu2 }
 0x400   : > { %v3506_v17 = vadd.f32 %v3505_v54, %v3337_v2  ;;  %v5907_v54 = vld [vmem:[%s7198_s11 + $0x5f0] sm:$0xf0] }
 0x401   : > { %v8276_v44 = vsel %vm4299_vm0, %v4241_v0, -1e+30  ;;  %v3338_v29 = vpop.f32.mrf.mxu1  ;;  %v6716_v0 = vld [vmem:[%s7198_s11 + $0x5d4] sm:$0xf] }
 0x402   : > { %v3674_v1 = vpop.f32.mrf.mxu3  ;;  %4380 = vmax.xlane.f32.xlu2 %v8276_v44  ;;  %v3339_v48 = vadd.f32 %v3338_v29, %v7823_v26  ;;  %v6721_v29 = vld [vmem:[%s7198_s11 + $0x5f4] sm:$0xf0] }
 0x403   : > { %v3675_v61 = vadd.f32 %v3674_v1, %v3506_v17  ;;  %v5913_v1 = vld [vmem:[%s7198_s11 + $0x5d8] sm:$0xf] }
 0x404   : > { %v4095_v53 = vpop.f32.mrf.mxu0 }
 0x405   : > { %v4096_v39 = vadd.f32 %v8188_v11, %v4095_v53 }
 0x407   : > { %v4242_v62 = vmax.f32 %v4096_v39, 0.0  ;;  %v3507_v32 = vpop.f32.mrf.mxu2 }
 0x408   : > { %v3508_v33 = vadd.f32 %v3507_v32, %v3339_v48 }
 0x409   : > { %v8290_v22 = vsel %vm4299_vm0, %v4242_v62, -1e+30  ;;  %v3341_v9 = vpop.f32.mrf.mxu1  ;;  %v5914_v62 = vor.u32 %v6721_v29, %v5913_v1 }
 0x40a   : > { %v3676_v47 = vpop.f32.mrf.mxu3  ;;  %4382 = vmax.xlane.f32.xlu0 %v8290_v22  ;;  %v3342_v8 = vadd.f32 %v3341_v9, %v7835_v20  ;;  %v5910_v20 = vor.u32 %v6716_v0, %v5907_v54  ;;  %v6725_v0 = vld [vmem:[%s7198_s11 + $0x61c] sm:$0xf] }
 0x40b   : > { %v3677_v43 = vadd.f32 %v3676_v47, %v3508_v33  ;;  %v5947_v54 = vld [vmem:[%s7198_s11 + $0x638] sm:$0xf0] }
 0x40c   : > { %v4098_v56 = vpop.f32.mrf.mxu0  ;;  %3380 = vmatmul.bf16.gmra.mxu1 %v5878_v19  ;;  %3549 = vmatmul.bf16.gmra.mxu2 %v5882_v31  ;;  %v5950_v60 = vor.u32 %v6725_v0, %v5947_v54 }
 0x40d   : > { %v3977_v26 = vpack.c.bf16 %v3677_v43, %v3675_v61  ;;  %v4099_v37 = vadd.f32 %v8188_v11, %v4098_v56 }
 0x40f   : > { %3718 = vmatmul.bf16.gmra.mxu3 %v5886_v30  ;;  %v4243_v15 = vmax.f32 %v4099_v37, 0.0  ;;  %4137 = vmatmul.bf16.gmra.mxu0 %v3977_v26  ;;  %v3510_v51 = vpop.f32.mrf.mxu2 }
 0x410   : > { %v3511_v53 = vadd.f32 %v3510_v51, %v3342_v8  ;;  %v5939_v51 = vld [vmem:[%s7198_s11 + $0x630] sm:$0xf0] }
 0x411   : > { %v8296_v23 = vsel %vm4299_vm0, %v4243_v15, -1e+30  ;;  %v3343_v38 = vpop.f32.mrf.mxu1  ;;  %v6724_v15 = vld [vmem:[%s7198_s11 + $0x614] sm:$0xf] }
 0x412   : > { %v3679_v35 = vpop.f32.mrf.mxu3  ;;  %4384 = vmax.xlane.f32.xlu1 %v8296_v23  ;;  %v3344_v2 = vadd.f32 %v3343_v38, %v7846_v59  ;;  %v6729_v38 = vld [vmem:[%s7198_s11 + $0x634] sm:$0xf0] }
 0x413   : > { %v3680_v32 = vadd.f32 %v3679_v35, %v3511_v53  ;;  %v5945_v35 = vld [vmem:[%s7198_s11 + $0x618] sm:$0xf] }
 0x414   : > { %v4100_v42 = vpop.f32.mrf.mxu0 }
 0x415   : > { %v4101_v50 = vadd.f32 %v8188_v11, %v4100_v42 }
 0x417   : > { %v4244_v39 = vmax.f32 %v4101_v50, 0.0  ;;  %v3512_v12 = vpop.f32.mrf.mxu2 }
 0x418   : > { %v3513_v58 = vadd.f32 %v3512_v12, %v3344_v2 }
 0x419   : > { %v8310_v48 = vsel %vm4299_vm0, %v4244_v39, -1e+30  ;;  %v3346_v28 = vpop.f32.mrf.mxu1  ;;  %v5946_v39 = vor.u32 %v6729_v38, %v5945_v35  ;;  %v6733_v35 = vld [vmem:[%s7198_s11 + $0x65c] sm:$0xf] }
 0x41a   : > { %v3681_v17 = vpop.f32.mrf.mxu3  ;;  %4386 = vmax.xlane.f32.xlu2 %v8310_v48  ;;  %v3347_v26 = vadd.f32 %v3346_v28, %v7852_v4  ;;  %v5942_v4 = vor.u32 %v6724_v15, %v5939_v51  ;;  %v5979_v38 = vld [vmem:[%s7198_s11 + $0x678] sm:$0xf0] }
 0x41b   : > { %v3682_v33 = vadd.f32 %v3681_v17, %v3513_v58 }
 0x41c   : > { %v4103_v47 = vpop.f32.mrf.mxu0  ;;  %3385 = vmatmul.bf16.gmra.mxu1 %v5910_v20  ;;  %3554 = vmatmul.bf16.gmra.mxu2 %v5914_v62 }
 0x41d   : > { %v3978_v59 = vpack.c.bf16 %v3682_v33, %v3680_v32  ;;  %v4104_v19 = vadd.f32 %v8188_v11, %v4103_v47 }
 0x41f   : > { %3723 = vmatmul.bf16.gmra.mxu3 %v5918_v63  ;;  %v4245_v31 = vmax.f32 %v4104_v19, 0.0  ;;  %4142 = vmatmul.bf16.gmra.mxu0 %v3978_v59  ;;  %v3515_v9 = vpop.f32.mrf.mxu2 }
 0x420   : > { %v3516_v42 = vadd.f32 %v3515_v9, %v3347_v26  ;;  %v6732_v9 = vld [vmem:[%s7198_s11 + $0x654] sm:$0xf]  ;;  %v6737_v26 = vld [vmem:[%s7198_s11 + $0x674] sm:$0xf0] }
 0x421   : > { %v8316_v61 = vsel %vm4299_vm0, %v4245_v31, -1e+30  ;;  %v3348_v43 = vpop.f32.mrf.mxu1 }
 0x422   : > { %v3684_v30 = vpop.f32.mrf.mxu3  ;;  %4388 = vmax.xlane.f32.xlu0 %v8316_v61  ;;  %v3349_v8 = vadd.f32 %v3348_v43, %v7863_v57  ;;  %v5971_v43 = vld [vmem:[%s7198_s11 + $0x670] sm:$0xf0] }
 0x423   : > { %v3685_v12 = vadd.f32 %v3684_v30, %v3516_v42 }
 0x424   : > { %v4105_v56 = vpop.f32.mrf.mxu0 }
 0x425   : > { %v4106_v37 = vadd.f32 %v8188_v11, %v4105_v56  ;;  %v5977_v56 = vld [vmem:[%s7198_s11 + $0x658] sm:$0xf] }
 0x426   : > { %v5978_v54 = vor.u32 %v6737_v26, %v5977_v56  ;;  %v6741_v26 = vld [vmem:[%s7198_s11 + $0x69c] sm:$0xf] }
 0x427   : > { %v4246_v50 = vmax.f32 %v4106_v37, 0.0  ;;  %v3517_v1 = vpop.f32.mrf.mxu2 }
 0x428   : > { %v3518_v29 = vadd.f32 %v3517_v1, %v3349_v8 }
 0x429   : > { %v8330_v2 = vsel %vm4299_vm0, %v4246_v50, -1e+30  ;;  %v3351_v49 = vpop.f32.mrf.mxu1 }
 0x42a   : > { %v3686_v53 = vpop.f32.mrf.mxu3  ;;  %4390 = vmax.xlane.f32.xlu1 %v8330_v2  ;;  %v3352_v59 = vadd.f32 %v3351_v49, %v7866_v18 }
 0x42b   : > { %v3687_v58 = vadd.f32 %v3686_v53, %v3518_v29  ;;  %v5982_v29 = vor.u32 %v6733_v35, %v5979_v38 }
 0x42c   : > { %v4108_v17 = vpop.f32.mrf.mxu0  ;;  %3390 = vmatmul.bf16.gmra.mxu1 %v5942_v4  ;;  %3559 = vmatmul.bf16.gmra.mxu2 %v5946_v39 }
 0x42d   : > { %v3979_v57 = vpack.c.bf16 %v3687_v58, %v3685_v12  ;;  %v4109_v20 = vadd.f32 %v8188_v11, %v4108_v17 }
 0x42f   : > { %3728 = vmatmul.bf16.gmra.mxu3 %v5950_v60  ;;  %v4247_v62 = vmax.f32 %v4109_v20, 0.0  ;;  %4147 = vmatmul.bf16.gmra.mxu0 %v3979_v57  ;;  %v3520_v28 = vpop.f32.mrf.mxu2 }
 0x430   : > { %v3521_v37 = vadd.f32 %v3520_v28, %v3352_v59 }
 0x431   : > { %v8336_v32 = vsel %vm4299_vm0, %v4247_v62, -1e+30  ;;  %v3353_v33 = vpop.f32.mrf.mxu1 }
 0x432   : > { %v3689_v63 = vpop.f32.mrf.mxu3  ;;  %4392 = vmax.xlane.f32.xlu2 %v8336_v32  ;;  %v3354_v15 = vadd.f32 %v3353_v33, %v7877_v36 }
 0x433   : > { %v3690_v36 = vadd.f32 %v3689_v63, %v3521_v37  ;;  %v6011_v37 = vld [vmem:[%s7198_s11 + $0x6b8] sm:$0xf0] }
 0x434   : > { %v4110_v47 = vpop.f32.mrf.mxu0 }
 0x435   : > { %v4111_v19 = vadd.f32 %v8188_v11, %v4110_v47  ;;  %v4365_v31 = vpop.xlane.xlu0 %4364  ;;  %v6740_v47 = vld [vmem:[%s7198_s11 + $0x694] sm:$0xf] }
 0x436   : > { %v8343_v30 = vsub.f32 %v8196_v7, %v4365_v31  ;;  %v5974_v7 = vor.u32 %v6732_v9, %v5971_v43  ;;  %v6009_v31 = vld [vmem:[%s7198_s11 + $0x698] sm:$0xf] }
 0x437   : > { %v4248_v51 = vmax.f32 %v4111_v19, 0.0  ;;  %v3522_v8 = vpop.f32.mrf.mxu2  ;;  %v6003_v19 = vld [vmem:[%s7198_s11 + $0x6b0] sm:$0xf0]  ;;  %v6745_v9 = vld [vmem:[%s7198_s11 + $0x6b4] sm:$0xf0] }
 0x438   : > { %v4556_v42 = vmul.f32 1.442695, %v8343_v30  ;;  %v3523_v18 = vadd.f32 %v3522_v8, %v3354_v15  ;;  %v6006_v8 = vor.u32 %v6740_v47, %v6003_v19  ;;  %v6035_v47 = vld [vmem:[%s7198_s11 + $0x6f0] sm:$0xf0]  ;;  %v6041_v19 = vld [vmem:[%s7198_s11 + $0x6d8] sm:$0xf] }
 0x439   : > { %v8354_v0 = vsel %vm4299_vm0, %v4248_v51, -1e+30  ;;  %v3356_v1 = vpop.f32.mrf.mxu1 }
 0x43a   : > { %v3691_v50 = vpop.f32.mrf.mxu3  ;;  %6843 = vpow2.f32 %v4556_v42  ;;  %4394 = vmax.xlane.f32.xlu0 %v8354_v0 }
 0x43b   : > { %v3692_v53 = vadd.f32 %v3691_v50, %v3523_v18  ;;  %v6010_v18 = vor.u32 %v6745_v9, %v6009_v31  ;;  %v6014_v50 = vor.u32 %v6741_v26, %v6011_v37  ;;  %v6753_v31 = vld [vmem:[%s7198_s11 + $0x6f4] sm:$0xf0]  ;;  %v6043_v26 = vld [vmem:[%s7198_s11 + $0x6f8] sm:$0xf0] }
 0x43c   : > { %v4113_v4 = vpop.f32.mrf.mxu0  ;;  %3395 = vmatmul.bf16.gmra.mxu1 %v5974_v7  ;;  %3564 = vmatmul.bf16.gmra.mxu2 %v5978_v54 }
 0x43d   : > { %v3980_v39 = vpack.c.bf16 %v3692_v53, %v3690_v36  ;;  %v4367_v49 = vpop.xlane.xlu0 %4366  ;;  %v4114_v58 = vadd.f32 %v8188_v11, %v4113_v4 }
 0x43e   : > { %v8358_v60 = vsub.f32 %v8210_v34, %v4367_v49  ;;  %v3357_v34 = vadd.f32 %v3356_v1, %v7880_v52 }
 0x43f   : > { %3733 = vmatmul.bf16.gmra.mxu3 %v5982_v29  ;;  %4152 = vmatmul.bf16.gmra.mxu0 %v3980_v39  ;;  %v3525_v57 = vpop.f32.mrf.mxu2  ;;  %v4249_v28 = vmax.f32 %v4114_v58, 0.0 }
 0x440   : > { %v6844_v12 = vpop.eup %6843  ;;  %v4558_v17 = vmul.f32 1.442695, %v8358_v60  ;;  %v3526_v43 = vadd.f32 %v3525_v57, %v3357_v34  ;;  %v6748_v34 = vld [vmem:[%s7198_s11 + $0x6d4] sm:$0xf] }
 0x441   : > { %4684 = vadd.xlane.f32.xlu1 %v6844_v12  ;;  %v3358_v62 = vpop.f32.mrf.mxu1  ;;  %v8377_v52 = vsel %vm4299_vm0, %v4249_v28, -1e+30 }
 0x442   : > { %v3694_v20 = vpop.f32.mrf.mxu3  ;;  %6845 = vpow2.f32 %v4558_v17  ;;  %v3359_v56 = vadd.f32 %v3358_v62, %v7891_v16 }
 0x443   : > { %v3695_v7 = vadd.f32 %v3694_v20, %v3526_v43 }
 0x444   : > { %v4115_v63 = vpop.f32.mrf.mxu0 }
 0x445   : > { %v4369_v33 = vpop.xlane.xlu1 %4368  ;;  %v4116_v51 = vadd.f32 %v8188_v11, %v4115_v63 }
 0x446   : > { %v8365_v59 = vsub.f32 %v8216_v46, %v4369_v33 }
 0x447   : > { %v3527_v38 = vpop.f32.mrf.mxu2  ;;  %v4250_v1 = vmax.f32 %v4116_v51, 0.0 }
 0x448   : > { %v6846_v15 = vpop.eup %6845  ;;  %v4560_v35 = vmul.f32 1.442695, %v8365_v59  ;;  %v3528_v46 = vadd.f32 %v3527_v38, %v3359_v56  ;;  %v6749_v56 = vld [vmem:[%s7198_s11 + $0x6dc] sm:$0xf] }
 0x449   : > { %4396 = vmax.xlane.f32.xlu1 %v8377_v52  ;;  %4686 = vadd.xlane.f32.xlu2 %v6846_v15  ;;  %v3361_v16 = vpop.f32.mrf.mxu1  ;;  %v8387_v17 = vsel %vm4299_vm0, %v4250_v1, -1e+30 }
 0x44a   : > { %v3696_v42 = vpop.f32.mrf.mxu3  ;;  %6847 = vpow2.f32 %v4560_v35  ;;  %v3362_v28 = vadd.f32 %v3361_v16, %v7903_v45 }
 0x44b   : > { %v3697_v54 = vadd.f32 %v3696_v42, %v3528_v46  ;;  %v6038_v46 = vor.u32 %v6748_v34, %v6035_v47  ;;  %v6042_v42 = vor.u32 %v6753_v31, %v6041_v19  ;;  %v6067_v34 = vld [vmem:[%s7198_s11 + $0x730] sm:$0xf0]  ;;  %v6073_v47 = vld [vmem:[%s7198_s11 + $0x718] sm:$0xf] }
 0x44c   : > { %v4118_v29 = vpop.f32.mrf.mxu0  ;;  %3400 = vmatmul.bf16.gmra.mxu1 %v6006_v8  ;;  %3569 = vmatmul.bf16.gmra.mxu2 %v6010_v18  ;;  %v6046_v8 = vor.u32 %v6749_v56, %v6043_v26  ;;  %v6761_v19 = vld [vmem:[%s7198_s11 + $0x734] sm:$0xf0]  ;;  %v6075_v56 = vld [vmem:[%s7198_s11 + $0x738] sm:$0xf0] }
 0x44d   : > { %v3981_v36 = vpack.c.bf16 %v3697_v54, %v3695_v7  ;;  %v4371_v53 = vpop.xlane.xlu1 %4370  ;;  %v4119_v49 = vadd.f32 %v8188_v11, %v4118_v29 }
 0x44e   : > { %v8381_v4 = vsub.f32 %v8230_v55, %v4371_v53 }
 0x44f   : > { %3738 = vmatmul.bf16.gmra.mxu3 %v6014_v50  ;;  %4157 = vmatmul.bf16.gmra.mxu0 %v3981_v36  ;;  %v3530_v58 = vpop.f32.mrf.mxu2  ;;  %v4251_v20 = vmax.f32 %v4119_v49, 0.0 }
 0x450   : > { %v6848_v39 = vpop.eup %6847  ;;  %v4562_v12 = vmul.f32 1.442695, %v8381_v4  ;;  %v3531_v9 = vadd.f32 %v3530_v58, %v3362_v28  ;;  %v6756_v28 = vld [vmem:[%s7198_s11 + $0x714] sm:$0xf] }
 0x451   : > { %4688 = vadd.xlane.f32.xlu0 %v6848_v39  ;;  %4398 = vmax.xlane.f32.xlu2 %v8387_v17  ;;  %v3363_v55 = vpop.f32.mrf.mxu1  ;;  %v8405_v45 = vsel %vm4299_vm0, %v4251_v20, -1e+30 }
 0x452   : > { %v3699_v57 = vpop.f32.mrf.mxu3  ;;  %6849 = vpow2.f32 %v4562_v12  ;;  %v3364_v43 = vadd.f32 %v3363_v55, %v7914_v10 }
 0x453   : > { %v3700_v18 = vadd.f32 %v3699_v57, %v3531_v9 }
 0x454   : > { %v4120_v62 = vpop.f32.mrf.mxu0 }
 0x455   : > { %v4373_v63 = vpop.xlane.xlu2 %4372  ;;  %v4121_v15 = vadd.f32 %v8188_v11, %v4120_v62 }
 0x456   : > { %v8393_v33 = vsub.f32 %v8236_v13, %v4373_v63 }
 0x457   : > { %v3532_v35 = vpop.f32.mrf.mxu2  ;;  %v4252_v50 = vmax.f32 %v4121_v15, 0.0 }
 0x458   : > { %v6850_v37 = vpop.eup %6849  ;;  %v4564_v51 = vmul.f32 1.442695, %v8393_v33  ;;  %v3533_v13 = vadd.f32 %v3532_v35, %v3364_v43  ;;  %v6757_v43 = vld [vmem:[%s7198_s11 + $0x71c] sm:$0xf] }
 0x459   : > { %4400 = vmax.xlane.f32.xlu0 %v8405_v45  ;;  %4690 = vadd.xlane.f32.xlu1 %v6850_v37  ;;  %v3366_v10 = vpop.f32.mrf.mxu1  ;;  %v8415_v12 = vsel %vm4299_vm0, %v4252_v50, -1e+30 }
 0x45a   : > { %v3701_v38 = vpop.f32.mrf.mxu3  ;;  %6851 = vpow2.f32 %v4564_v51  ;;  %v3367_v20 = vadd.f32 %v3366_v10, %v7920_v40 }
 0x45b   : > { %v3702_v16 = vadd.f32 %v3701_v38, %v3533_v13  ;;  %v6070_v13 = vor.u32 %v6756_v28, %v6067_v34  ;;  %v6074_v38 = vor.u32 %v6761_v19, %v6073_v47  ;;  %v6099_v34 = vld [vmem:[%s7198_s11 + $0x770] sm:$0xf0]  ;;  %v6105_v47 = vld [vmem:[%s7198_s11 + $0x758] sm:$0xf] }
 0x45c   : > { %v4123_v7 = vpop.f32.mrf.mxu0  ;;  %3405 = vmatmul.bf16.gmra.mxu1 %v6038_v46  ;;  %3574 = vmatmul.bf16.gmra.mxu2 %v6042_v42  ;;  %v6078_v46 = vor.u32 %v6757_v43, %v6075_v56  ;;  %v6769_v19 = vld [vmem:[%s7198_s11 + $0x774] sm:$0xf0]  ;;  %v6765_v43 = vld [vmem:[%s7198_s11 + $0x75c] sm:$0xf] }
 0x45d   : > { %v3982_v54 = vpack.c.bf16 %v3702_v16, %v3700_v18  ;;  %v4375_v1 = vpop.xlane.xlu2 %4374  ;;  %v4124_v53 = vadd.f32 %v8188_v11, %v4123_v7  ;;  %v6107_v56 = vld [vmem:[%s7198_s11 + $0x778] sm:$0xf0] }
 0x45e   : > { %v8409_v29 = vsub.f32 %v8250_v27, %v4375_v1 }
 0x45f   : > { %3743 = vmatmul.bf16.gmra.mxu3 %v6046_v8  ;;  %4162 = vmatmul.bf16.gmra.mxu0 %v3982_v54  ;;  %v3535_v49 = vpop.f32.mrf.mxu2  ;;  %v4253_v57 = vmax.f32 %v4124_v53, 0.0 }
 0x460   : > { %v6852_v36 = vpop.eup %6851  ;;  %v4566_v39 = vmul.f32 1.442695, %v8409_v29  ;;  %v3536_v31 = vadd.f32 %v3535_v49, %v3367_v20 }
 0x461   : > { %4402 = vmax.xlane.f32.xlu1 %v8415_v12  ;;  %4692 = vadd.xlane.f32.xlu2 %v6852_v36  ;;  %v3368_v27 = vpop.f32.mrf.mxu1  ;;  %v8433_v40 = vsel %vm4299_vm0, %v4253_v57, -1e+30  ;;  %v3205_v57 = vadd.f32 %v7937_v25, %v7947_v41 }
 0x462   : > { %v3704_v58 = vpop.f32.mrf.mxu3  ;;  %6853 = vpow2.f32 %v4566_v39  ;;  %v3369_v9 = vadd.f32 %v3368_v27, %v7931_v21 }
 0x463   : > { %v3705_v42 = vadd.f32 %v3704_v58, %v3536_v31 }
 0x464   : > { %v4125_v55 = vpop.f32.mrf.mxu0 }
 0x465   : > { %v4377_v62 = vpop.xlane.xlu0 %4376  ;;  %v4126_v37 = vadd.f32 %v8188_v11, %v4125_v55 }
 0x466   : > { %v8421_v63 = vsub.f32 %v8256_v6, %v4377_v62  ;;  %v6764_v62 = vld [vmem:[%s7198_s11 + $0x754] sm:$0xf] }
 0x467   : > { %v3537_v51 = vpop.f32.mrf.mxu2  ;;  %v4254_v8 = vmax.f32 %v4126_v37, 0.0 }
 0x468   : > { %v6854_v26 = vpop.eup %6853  ;;  %v4568_v15 = vmul.f32 1.442695, %v8421_v63  ;;  %v3538_v6 = vadd.f32 %v3537_v51, %v3369_v9  ;;  %v6102_v51 = vor.u32 %v6764_v62, %v6099_v34  ;;  %v6772_v62 = vld [vmem:[%s7198_s11 + $0x794] sm:$0xf] }
 0x469   : > { %4694 = vadd.xlane.f32.xlu0 %v6854_v26  ;;  %4404 = vmax.xlane.f32.xlu2 %v8433_v40  ;;  %v3371_v21 = vpop.f32.mrf.mxu1  ;;  %v8443_v39 = vsel %vm4299_vm0, %v4254_v8, -1e+30 }
 0x46a   : > { %v3706_v35 = vpop.f32.mrf.mxu3  ;;  %6855 = vpow2.f32 %v4568_v15  ;;  %v3372_v55 = vadd.f32 %v3371_v21, %v7934_v5 }
 0x46b   : > { %v3707_v10 = vadd.f32 %v3706_v35, %v3538_v6  ;;  %v6106_v6 = vor.u32 %v6769_v19, %v6105_v47  ;;  %v6131_v47 = vld [vmem:[%s7198_s11 + $0x7b0] sm:$0xf0]  ;;  %v6137_v19 = vld [vmem:[%s7198_s11 + $0x798] sm:$0xf] }
 0x46c   : > { %v4128_v18 = vpop.f32.mrf.mxu0  ;;  %3410 = vmatmul.bf16.gmra.mxu1 %v6070_v13  ;;  %3579 = vmatmul.bf16.gmra.mxu2 %v6074_v38  ;;  %v6110_v13 = vor.u32 %v6765_v43, %v6107_v56  ;;  %v6773_v56 = vld [vmem:[%s7198_s11 + $0x79c] sm:$0xf] }
 0x46d   : > { %v3983_v16 = vpack.c.bf16 %v3707_v10, %v3705_v42  ;;  %v4379_v50 = vpop.xlane.xlu1 %4378  ;;  %v4129_v1 = vadd.f32 %v8188_v11, %v4128_v18 }
 0x46e   : > { %v8437_v7 = vsub.f32 %v8270_v24, %v4379_v50 }
 0x46f   : > { %3748 = vmatmul.bf16.gmra.mxu3 %v6078_v46  ;;  %4167 = vmatmul.bf16.gmra.mxu0 %v3983_v16  ;;  %v3540_v53 = vpop.f32.mrf.mxu2  ;;  %v4255_v58 = vmax.f32 %v4129_v1, 0.0 }
 0x470   : > { %v6856_v54 = vpop.eup %6855  ;;  %v4570_v36 = vmul.f32 1.442695, %v8437_v7  ;;  %v3541_v31 = vadd.f32 %v3540_v53, %v3372_v55 }
 0x471   : > { %4406 = vmax.xlane.f32.xlu0 %v8443_v39  ;;  %4696 = vadd.xlane.f32.xlu1 %v6856_v54  ;;  %v3373_v24 = vpop.f32.mrf.mxu1  ;;  %v8462_v5 = vsel %vm4299_vm0, %v4255_v58, -1e+30  ;;  %v9208_v58 = vld [vmem:[#allocation25_spill] sm:$0xff] }
 0x472   : > { %v3709_v49 = vpop.f32.mrf.mxu3  ;;  %6857 = vpow2.f32 %v4570_v36  ;;  %v3374_v9 = vadd.f32 %v3373_v24, %v3205_v57  ;;  %v9207_v24 = vld [vmem:[#allocation26_spill] sm:$0xff]  ;;  %v9209_v57 = vld [vmem:[#allocation24_spill] sm:$0xff] }
 0x473   : > { %v3710_v38 = vadd.f32 %v3709_v49, %v3541_v31  ;;  %v6777_v31 = vld [vmem:[%s7198_s11 + $0x7b4] sm:$0xf0] }
 0x474   : > { %v4130_v27 = vpop.f32.mrf.mxu0 }
 0x475   : > { %v4381_v20 = vpop.xlane.xlu2 %4380  ;;  %v4131_v37 = vadd.f32 %v8188_v11, %v4130_v27  ;;  %v3210_v27 = vadd.f32 %v9208_v58, %v9207_v24 }
 0x476   : > { %v8451_v28 = vsub.f32 %v8276_v44, %v4381_v20 }
 0x477   : > { %v3542_v25 = vpop.f32.mrf.mxu2  ;;  %v4256_v46 = vmax.f32 %v4131_v37, 0.0 }
 0x478   : > { %v6858_v26 = vpop.eup %6857  ;;  %v4572_v15 = vmul.f32 1.442695, %v8451_v28  ;;  %v3543_v41 = vadd.f32 %v3542_v25, %v3374_v9 }
 0x479   : > { %4698 = vadd.xlane.f32.xlu2 %v6858_v26  ;;  %4408 = vmax.xlane.f32.xlu1 %v8462_v5  ;;  %v3376_v35 = vpop.f32.mrf.mxu1  ;;  %v8472_v36 = vsel %vm4299_vm0, %v4256_v46, -1e+30  ;;  %v6139_v26 = vld [vmem:[%s7198_s11 + $0x7b8] sm:$0xf0] }
 0x47a   : > { %v3711_v44 = vpop.f32.mrf.mxu3  ;;  %6859 = vpow2.f32 %v4572_v15  ;;  %v3377_v55 = vadd.f32 %v3376_v35, %v9209_v57  ;;  %v8490_v15 = vld [vmem:[%s9131_s3] ss:$0 sm:$0xff]  ;;  %v6134_v35 = vor.u32 %v6772_v62, %v6131_v47  ;;  %v9210_v57 = vld [vmem:[#allocation17_spill] sm:$0xff] }
 0x47b   : > { %v3712_v21 = vadd.f32 %v3711_v44, %v3543_v41  ;;  %v9212_v62 = vld [vmem:[#allocation15_spill] sm:$0xff] }
 0x47c   : > { %v4133_v42 = vpop.f32.mrf.mxu0  ;;  %3415 = vmatmul.bf16.gmra.mxu1 %v6102_v51  ;;  %3584 = vmatmul.bf16.gmra.mxu2 %v6106_v6 }
 0x47d   : > { %v3984_v10 = vpack.c.bf16 %v3712_v21, %v3710_v38  ;;  %v4383_v8 = vpop.xlane.xlu0 %4382  ;;  %v4134_v50 = vadd.f32 %v8188_v11, %v4133_v42  ;;  %v6142_v21 = vor.u32 %v6773_v56, %v6139_v26  ;;  %v6169_v56 = vld [vmem:[%s7198_s11 + $0x7d8] sm:$0xf] }
 0x47e   : > { %v8466_v18 = vsub.f32 %v8290_v22, %v4383_v8  ;;  %v6785_v26 = vld [vmem:[%s7198_s11 + $0x7f4] sm:$0xf0] }
 0x47f   : > { %3753 = vmatmul.bf16.gmra.mxu3 %v6110_v13  ;;  %4172 = vmatmul.bf16.gmra.mxu0 %v3984_v10  ;;  %v3545_v1 = vpop.f32.mrf.mxu2  ;;  %v4257_v49 = vmax.f32 %v4134_v50, 0.0  ;;  %v6138_v13 = vor.u32 %v6777_v31, %v6137_v19  ;;  %v6780_v31 = vld [vmem:[%s7198_s11 + $0x7d4] sm:$0xf] }
 0x480   : > { %v6860_v16 = vpop.eup %6859  ;;  %v4574_v54 = vmul.f32 1.442695, %v8466_v18  ;;  %v3546_v9 = vadd.f32 %v3545_v1, %v3377_v55  ;;  %v9211_v55 = vld [vmem:[#allocation27_spill] sm:$0xff] }
 0x481   : > { %4700 = vadd.xlane.f32.xlu0 %v6860_v16  ;;  %4410 = vmax.xlane.f32.xlu2 %v8472_v36  ;;  %v3378_v22 = vpop.f32.mrf.mxu1 }
 0x482   : > { %v3714_v53 = vpop.f32.mrf.mxu3  ;;  %6861 = vpow2.f32 %v4574_v54  ;;  %v3379_v43 = vadd.f32 %v3378_v22, %v3210_v27 }
 0x483   : > { %v3715_v46 = vadd.f32 %v3714_v53, %v3546_v9 }
 0x484   : > { %v4135_v11 = vpop.f32.mrf.mxu0 }
 0x485   : > { %v4385_v20 = vpop.xlane.xlu1 %4384  ;;  %v4136_v25 = vadd.f32 %v8490_v15, %v4135_v11 }
 0x486   : > { %v8480_v34 = vsub.f32 %v8296_v23, %v4385_v20  ;;  %v8496_v23 = vsel %vm4299_vm0, %v4257_v49, -1e+30  ;;  %v3215_v20 = vadd.f32 %v9211_v55, %v9210_v57 }
 0x487   : > { %v3547_v44 = vpop.f32.mrf.mxu2  ;;  %v4258_v10 = vmax.f32 %v4136_v25, 0.0 }
 0x488   : > { %v6862_v37 = vpop.eup %6861  ;;  %v4576_v41 = vmul.f32 1.442695, %v8480_v34  ;;  %v3548_v51 = vadd.f32 %v3547_v44, %v3379_v43  ;;  %v6163_v43 = vld [vmem:[%s7198_s11 + $0x7f0] sm:$0xf0]  ;;  %v6171_v44 = vld [vmem:[%s7198_s11 + $0x7f8] sm:$0xf0] }
 0x489   : > { %4412 = vmax.xlane.f32.xlu0 %v8496_v23  ;;  %4702 = vadd.xlane.f32.xlu1 %v6862_v37  ;;  %v3381_v38 = vpop.f32.mrf.mxu1  ;;  %v8506_v11 = vsel %vm4299_vm0, %v4258_v10, -1e+30 }
 0x48a   : > { %v3716_v6 = vpop.f32.mrf.mxu3  ;;  %6863 = vpow2.f32 %v4576_v41  ;;  %v3382_v47 = vadd.f32 %v3381_v38, %v9212_v62  ;;  %v6781_v41 = vld [vmem:[%s7198_s11 + $0x7dc] sm:$0xf]  ;;  %s5150_s11 = sshll.u32 %s9244_s25, 3 }
 0x48b   : > { %v3717_v42 = vadd.f32 %v3716_v6, %v3548_v51  ;;  %s8574_s26 = scalar_lea.vmem %s9132_s4, %s5150_s11 }
 0x48c   : > { %v4138_v8 = vpop.f32.mrf.mxu0  ;;  %3420 = vmatmul.bf16.gmra.mxu1 %v6134_v35  ;;  %3589 = vmatmul.bf16.gmra.mxu2 %v6138_v13 }
 0x48d   : > { %v3985_v16 = vpack.c.bf16 %v3717_v42, %v3715_v46  ;;  %v4387_v50 = vpop.xlane.xlu2 %4386  ;;  %v4139_v22 = vadd.f32 %v8490_v15, %v4138_v8  ;;  %v6166_v46 = vor.u32 %v6780_v31, %v6163_v43  ;;  %v6170_v42 = vor.u32 %v6785_v26, %v6169_v56  ;;  %v9214_v31 = vld [vmem:[#allocation28_spill] sm:$0xff]  ;;  %v9215_v56 = vld [vmem:[#allocation19_spill] sm:$0xff] }
 0x48e   : > { %v8500_v54 = vsub.f32 %v8310_v48, %v4387_v50  ;;  %v6174_v8 = vor.u32 %v6781_v41, %v6171_v44 }
 0x48f   : > { %3758 = vmatmul.bf16.gmra.mxu3 %v6142_v21  ;;  %4177 = vmatmul.bf16.gmra.mxu0 %v3985_v16  ;;  %v3550_v53 = vpop.f32.mrf.mxu2  ;;  %v4259_v58 = vmax.f32 %v4139_v22, 0.0 }
 0x490   : > { %v6864_v1 = vpop.eup %6863  ;;  %v4578_v49 = vmul.f32 1.442695, %v8500_v54  ;;  %v3551_v37 = vadd.f32 %v3550_v53, %v3382_v47 }
 0x491   : > { %4704 = vadd.xlane.f32.xlu2 %v6864_v1  ;;  %4414 = vmax.xlane.f32.xlu1 %v8506_v11  ;;  %v3383_v48 = vpop.f32.mrf.mxu1  ;;  %v8525_v38 = vsel %vm4299_vm0, %v4259_v58, -1e+30 }
 0x492   : > { %v3719_v24 = vpop.f32.mrf.mxu3  ;;  %6865 = vpow2.f32 %v4578_v49  ;;  %v3384_v25 = vadd.f32 %v3383_v48, %v3215_v20 }
 0x493   : > { %v3720_v16 = vadd.f32 %v3719_v24, %v3551_v37 }
 0x494   : > { %v4140_v27 = vpop.f32.mrf.mxu0 }
 0x495   : > { %v4389_v19 = vpop.xlane.xlu0 %4388  ;;  %v4141_v6 = vadd.f32 %v8490_v15, %v4140_v27 }
 0x496   : > { %v8514_v9 = vsub.f32 %v8316_v61, %v4389_v19  ;;  %v9213_v19 = vld [vmem:[#allocation21_spill] sm:$0xff] }
 0x497   : > { %v3552_v13 = vpop.f32.mrf.mxu2  ;;  %v4260_v1 = vmax.f32 %v4141_v6, 0.0  ;;  %v3220_v43 = vadd.f32 %v9214_v31, %v9213_v19  ;;  %v9217_v19 = vld [vmem:[#allocation29_spill] sm:$0xff] }
 0x498   : > { %v6866_v51 = vpop.eup %6865  ;;  %v4580_v35 = vmul.f32 1.442695, %v8514_v9  ;;  %v3553_v21 = vadd.f32 %v3552_v13, %v3384_v25 }
 0x499   : > { %4706 = vadd.xlane.f32.xlu0 %v6866_v51  ;;  %4416 = vmax.xlane.f32.xlu2 %v8525_v38  ;;  %v3386_v10 = vpop.f32.mrf.mxu1  ;;  %v8535_v24 = vsel %vm4299_vm0, %v4260_v1, -1e+30 }
 0x49a   : > { %v3721_v61 = vpop.f32.mrf.mxu3  ;;  %6867 = vpow2.f32 %v4580_v35  ;;  %v3387_v26 = vadd.f32 %v3386_v10, %v9215_v56 }
 0x49b   : > { %v3722_v50 = vadd.f32 %v3721_v61, %v3553_v21 }
 0x49c   : > { %v4143_v22 = vpop.f32.mrf.mxu0  ;;  %3425 = vmatmul.bf16.gmra.mxu1 %v6166_v46  ;;  %3594 = vmatmul.bf16.gmra.mxu2 %v6170_v42 }
 0x49d   : > { %v3986_v49 = vpack.c.bf16 %v3722_v50, %v3720_v16  ;;  %v4391_v53 = vpop.xlane.xlu1 %4390  ;;  %v4144_v27 = vadd.f32 %v8490_v15, %v4143_v22 }
 0x49e   : > { %v8529_v48 = vsub.f32 %v8330_v2, %v4391_v53 }
 0x49f   : > { %3763 = vmatmul.bf16.gmra.mxu3 %v6174_v8  ;;  %4182 = vmatmul.bf16.gmra.mxu0 %v3986_v49  ;;  %v3555_v55 = vpop.f32.mrf.mxu2  ;;  %v4261_v47 = vmax.f32 %v4144_v27, 0.0 }
 0x4a0   : > { %v6868_v58 = vpop.eup %6867  ;;  %v4582_v57 = vmul.f32 1.442695, %v8529_v48  ;;  %v3556_v41 = vadd.f32 %v3555_v55, %v3387_v26 }
 0x4a1   : > { %4418 = vmax.xlane.f32.xlu0 %v8535_v24  ;;  %4708 = vadd.xlane.f32.xlu1 %v6868_v58  ;;  %v3388_v62 = vpop.f32.mrf.mxu1  ;;  %v8548_v21 = vsel %vm4299_vm0, %v4261_v47, -1e+30 }
 0x4a2   : > { %v3724_v20 = vpop.f32.mrf.mxu3  ;;  %6869 = vpow2.f32 %v4582_v57  ;;  %v3389_v44 = vadd.f32 %v3388_v62, %v3220_v43  ;;  %v9218_v43 = vld [vmem:[#allocation3_spill] sm:$0xff] }
 0x4a3   : > { %v3725_v42 = vadd.f32 %v3724_v20, %v3556_v41 }
 0x4a4   : > { %v4145_v2 = vpop.f32.mrf.mxu0 }
 0x4a5   : > { %v4393_v37 = vpop.xlane.xlu2 %4392  ;;  %v4146_v6 = vadd.f32 %v8490_v15, %v4145_v2  ;;  %v9216_v2 = vld [vmem:[#allocation4_spill] sm:$0xff] }
 0x4a6   : > { %v8542_v25 = vsub.f32 %v8336_v32, %v4393_v37  ;;  %v3225_v31 = vadd.f32 %v9217_v19, %v9216_v2  ;;  %v9220_v19 = vld [vmem:[#allocation30_spill] sm:$0xff] }
 0x4a7   : > { %v3557_v13 = vpop.f32.mrf.mxu2  ;;  %v4262_v8 = vmax.f32 %v4146_v6, 0.0 }
 0x4a8   : > { %v6870_v51 = vpop.eup %6869  ;;  %v4584_v35 = vmul.f32 1.442695, %v8542_v25  ;;  %v3558_v61 = vadd.f32 %v3557_v13, %v3389_v44 }
 0x4a9   : > { %4710 = vadd.xlane.f32.xlu2 %v6870_v51  ;;  %4420 = vmax.xlane.f32.xlu1 %v8548_v21  ;;  %v3391_v32 = vpop.f32.mrf.mxu1  ;;  %v8558_v57 = vsel %vm4299_vm0, %v4262_v8, -1e+30 }
 0x4aa   : > { %v3726_v46 = vpop.f32.mrf.mxu3  ;;  %6871 = vpow2.f32 %v4584_v35  ;;  %v3392_v56 = vadd.f32 %v3391_v32, %v9218_v43  ;;  %v9221_v43 = vld [vmem:[#allocation5_spill] sm:$0xff] }
 0x4ab   : > { %v3727_v10 = vadd.f32 %v3726_v46, %v3558_v61 }
 0x4ac   : > { %v4148_v16 = vpop.f32.mrf.mxu0 }
 0x4ad   : > { %v3987_v50 = vpack.c.bf16 %v3727_v10, %v3725_v42  ;;  %v4395_v1 = vpop.xlane.xlu0 %4394  ;;  %v4149_v53 = vadd.f32 %v8490_v15, %v4148_v16 }
 0x4ae   : > { %v8552_v22 = vsub.f32 %v8354_v0, %v4395_v1 }
 0x4af   : > { %4187 = vmatmul.bf16.gmra.mxu0 %v3987_v50  ;;  %v3560_v27 = vpop.f32.mrf.mxu2  ;;  %v4263_v62 = vmax.f32 %v4149_v53, 0.0 }
 0x4b0   : > { %v6872_v49 = vpop.eup %6871  ;;  %v4586_v58 = vmul.f32 1.442695, %v8552_v22  ;;  %v3561_v26 = vadd.f32 %v3560_v27, %v3392_v56 }
 0x4b1   : > { %4712 = vadd.xlane.f32.xlu0 %v6872_v49  ;;  %4422 = vmax.xlane.f32.xlu2 %v8558_v57  ;;  %v3393_v20 = vpop.f32.mrf.mxu1  ;;  %v8567_v6 = vsel %vm4299_vm0, %v4263_v62, -1e+30 }
 0x4b2   : > { %v3729_v55 = vpop.f32.mrf.mxu3  ;;  %6873 = vpow2.f32 %v4586_v58  ;;  %v3394_v37 = vadd.f32 %v3393_v20, %v3225_v31 }
 0x4b3   : > { %v3730_v32 = vadd.f32 %v3729_v55, %v3561_v26 }
 0x4b4   : > { %v4150_v0 = vpop.f32.mrf.mxu0  ;;  %v4685_v47 = vpop.xlane.xlu1 %4684 }
 0x4b5   : > { %6875 = vlog2.f32 %v4685_v47  ;;  %v4151_v44 = vadd.f32 %v8490_v15, %v4150_v0 }
 0x4b7   : > { %v3562_v51 = vpop.f32.mrf.mxu2  ;;  %v4264_v10 = vmax.f32 %v4151_v44, 0.0 }
 0x4b8   : > { %v6874_v41 = vpop.eup %6873  ;;  %v3563_v35 = vadd.f32 %v3562_v51, %v3394_v37 }
 0x4b9   : > { %4424 = vmax.xlane.f32.xlu0 %v8567_v6  ;;  %4714 = vadd.xlane.f32.xlu1 %v6874_v41  ;;  %v3396_v61 = vpop.f32.mrf.mxu1  ;;  %v8584_v20 = vsel %vm4299_vm0, %v4264_v10, -1e+30 }
 0x4ba   : > { %v3731_v13 = vpop.f32.mrf.mxu3  ;;  %v3397_v56 = vadd.f32 %v3396_v61, %v9221_v43 }
 0x4bb   : > { %v6876_v46 = vpop.eup %6875  ;;  %v3732_v42 = vadd.f32 %v3731_v13, %v3563_v35 }
 0x4bc   : > { %v4813_v8 = vmul.f32 0.6931472, %v6876_v46  ;;  %v4153_v16 = vpop.f32.mrf.mxu0  ;;  %v4397_v50 = vpop.xlane.xlu1 %4396 }
 0x4bd   : > { %v3988_v1 = vpack.c.bf16 %v3732_v42, %v3730_v32  ;;  %v8577_v49 = vsub.f32 %v8377_v52, %v4397_v50  ;;  %v4687_v53 = vpop.xlane.xlu2 %4686  ;;  %v4154_v51 = vadd.f32 %v8490_v15, %v4153_v16 }
 0x4be   : > { %v4940_v58 = vsub.f32 %v8343_v30, %v4813_v8  ;;  %6877 = vlog2.f32 %v4687_v53  ;;  %v9219_v30 = vld [vmem:[#allocation6_spill] sm:$0xff] }
 0x4bf   : > { %v4588_v27 = vmul.f32 1.442695, %v8577_v49  ;;  %4192 = vmatmul.bf16.gmra.mxu0 %v3988_v1  ;;  %v3565_v55 = vpop.f32.mrf.mxu2  ;;  %v3230_v31 = vadd.f32 %v9220_v19, %v9219_v30 }
 0x4c0   : > { %5004 = vst [vmem:[%s8574_s26] sm:$0xff] %v4940_v58  ;;  %v3566_v13 = vadd.f32 %v3565_v55, %v3397_v56 }
 0x4c1   : > { %6879 = vpow2.f32 %v4588_v27  ;;  %4426 = vmax.xlane.f32.xlu1 %v8584_v20  ;;  %v3398_v0 = vpop.f32.mrf.mxu1 }
 0x4c2   : > { %v3734_v62 = vpop.f32.mrf.mxu3  ;;  %v3399_v46 = vadd.f32 %v3398_v0, %v3230_v31 }
 0x4c3   : > { %v3735_v1 = vadd.f32 %v3734_v62, %v3566_v13 }
 0x4c4   : > { %v6878_v52 = vpop.eup %6877  ;;  %v4155_v47 = vpop.f32.mrf.mxu0 }
 0x4c5   : > { %v4689_v2 = vpop.xlane.xlu0 %4688  ;;  %v4815_v26 = vmul.f32 0.6931472, %v6878_v52  ;;  %v4399_v37 = vpop.xlane.xlu2 %4398  ;;  %v4156_v62 = vadd.f32 %v8490_v15, %v4155_v47  ;;  %v9224_v47 = vld [vmem:[#allocation7_spill] sm:$0xff] }
 0x4c6   : > { %6881 = vlog2.f32 %v4689_v2  ;;  %v8591_v41 = vsub.f32 %v8387_v17, %v4399_v37  ;;  %v4265_v17 = vmax.f32 %v4154_v51, 0.0  ;;  %v9222_v51 = vld [vmem:[#allocation8_spill] sm:$0xff] }
 0x4c7   : > { %v6880_v44 = vpop.eup %6879  ;;  %v4941_v35 = vsub.f32 %v8358_v60, %v4815_v26  ;;  %v3567_v42 = vpop.f32.mrf.mxu2  ;;  %v4266_v56 = vmax.f32 %v4156_v62, 0.0 }
 0x4c8   : > { %v4590_v32 = vmul.f32 1.442695, %v8591_v41  ;;  %4716 = vadd.xlane.f32.xlu2 %v6880_v44  ;;  %v3568_v10 = vadd.f32 %v3567_v42, %v3399_v46  ;;  %v8603_v2 = vsel %vm4299_vm0, %v4265_v17, -1e+30 }
 0x4c9   : > { %5005 = vst [vmem:[%s8574_s26 + $0x8] sm:$0xff] %v4941_v35  ;;  %v3401_v8 = vpop.f32.mrf.mxu1  ;;  %v9223_v35 = vld [vmem:[#allocation31_spill] sm:$0xff] }
 0x4ca   : > { %v3736_v61 = vpop.f32.mrf.mxu3  ;;  %6883 = vpow2.f32 %v4590_v32  ;;  %v3235_v13 = vadd.f32 %v9223_v35, %v9222_v51  ;;  %v3402_v46 = vadd.f32 %v3401_v8, %v9224_v47 }
 0x4cb   : > { %v3737_v53 = vadd.f32 %v3736_v61, %v3568_v10 }
 0x4cc   : > { %v6882_v50 = vpop.eup %6881  ;;  %v4158_v16 = vpop.f32.mrf.mxu0 }
 0x4cd   : > { %v4817_v58 = vmul.f32 0.6931472, %v6882_v50  ;;  %v4691_v27 = vpop.xlane.xlu1 %4690  ;;  %v3989_v60 = vpack.c.bf16 %v3737_v53, %v3735_v1  ;;  %v4401_v55 = vpop.xlane.xlu0 %4400  ;;  %v4159_v53 = vadd.f32 %v8490_v15, %v4158_v16 }
 0x4ce   : > { %6885 = vlog2.f32 %v4691_v27  ;;  %v8599_v52 = vsub.f32 %v8405_v45, %v4401_v55  ;;  %v8621_v27 = vsel %vm4299_vm0, %v4266_v56, -1e+30 }
 0x4cf   : > { %v4942_v0 = vsub.f32 %v8365_v59, %v4817_v58  ;;  %4197 = vmatmul.bf16.gmra.mxu0 %v3989_v60  ;;  %v3570_v31 = vpop.f32.mrf.mxu2 }
 0x4d0   : > { %v6884_v30 = vpop.eup %6883  ;;  %v4592_v19 = vmul.f32 1.442695, %v8599_v52  ;;  %4428 = vmax.xlane.f32.xlu2 %v8603_v2  ;;  %v3571_v61 = vadd.f32 %v3570_v31, %v3402_v46 }
 0x4d1   : > { %5006 = vst [vmem:[%s8574_s26 + $0x10] sm:$0xff] %v4942_v0  ;;  %4718 = vadd.xlane.f32.xlu0 %v6884_v30  ;;  %v3403_v59 = vpop.f32.mrf.mxu1  ;;  %v4267_v30 = vmax.f32 %v4159_v53, 0.0 }
 0x4d2   : > { %v3739_v43 = vpop.f32.mrf.mxu3  ;;  %6887 = vpow2.f32 %v4592_v19  ;;  %v3404_v50 = vadd.f32 %v3403_v59, %v3235_v13 }
 0x4d3   : > { %v3740_v60 = vadd.f32 %v3739_v43, %v3571_v61  ;;  %v8632_v35 = vsel %vm4299_vm0, %v4267_v30, -1e+30  ;;  %v9226_v61 = vld [vmem:[#allocation32_spill] sm:$0xff] }
 0x4d4   : > { %v6886_v45 = vpop.eup %6885  ;;  %v4160_v37 = vpop.f32.mrf.mxu0 }
 0x4d5   : > { %v4819_v26 = vmul.f32 0.6931472, %v6886_v45  ;;  %v4403_v44 = vpop.xlane.xlu1 %4402  ;;  %v4693_v42 = vpop.xlane.xlu2 %4692 }
 0x4d6   : > { %v8613_v32 = vsub.f32 %v8415_v12, %v4403_v44  ;;  %6889 = vlog2.f32 %v4693_v42 }
 0x4d7   : > { %v4943_v10 = vsub.f32 %v8381_v4, %v4819_v26  ;;  %v3572_v58 = vpop.f32.mrf.mxu2  ;;  %v4161_v26 = vadd.f32 %v8490_v15, %v4160_v37 }
 0x4d8   : > { %v4594_v17 = vmul.f32 1.442695, %v8613_v32  ;;  %v6888_v1 = vpop.eup %6887  ;;  %v3573_v12 = vadd.f32 %v3572_v58, %v3404_v50 }
 0x4d9   : > { %5007 = vst [vmem:[%s8574_s26 + $0x18] sm:$0xff] %v4943_v10  ;;  %4430 = vmax.xlane.f32.xlu0 %v8621_v27  ;;  %4720 = vadd.xlane.f32.xlu1 %v6888_v1  ;;  %v3406_v4 = vpop.f32.mrf.mxu1  ;;  %v4268_v37 = vmax.f32 %v4161_v26, 0.0  ;;  %v9225_v10 = vld [vmem:[#allocation10_spill] sm:$0xff] }
 0x4da   : > { %6891 = vpow2.f32 %v4594_v17  ;;  %v3741_v8 = vpop.f32.mrf.mxu3  ;;  %v3240_v50 = vadd.f32 %v9226_v61, %v9225_v10  ;;  %v9227_v17 = vld [vmem:[#allocation9_spill] sm:$0xff] }
 0x4db   : > { %v3742_v55 = vadd.f32 %v3741_v8, %v3573_v12  ;;  %v3407_v1 = vadd.f32 %v3406_v4, %v9227_v17 }
 0x4dc   : > { %v6890_v0 = vpop.eup %6889  ;;  %v4163_v62 = vpop.f32.mrf.mxu0 }
 0x4dd   : > { %v4695_v16 = vpop.xlane.xlu0 %4694  ;;  %v4821_v19 = vmul.f32 0.6931472, %v6890_v0  ;;  %v3990_v31 = vpack.c.bf16 %v3742_v55, %v3740_v60  ;;  %v4405_v59 = vpop.xlane.xlu2 %4404  ;;  %v8645_v55 = vsel %vm4299_vm0, %v4268_v37, -1e+30  ;;  %v4164_v30 = vadd.f32 %v8490_v15, %v4163_v62 }
 0x4de   : > { %6893 = vlog2.f32 %v4695_v16  ;;  %v8625_v45 = vsub.f32 %v8433_v40, %v4405_v59 }
 0x4df   : > { %v4944_v44 = vsub.f32 %v8393_v33, %v4821_v19  ;;  %4202 = vmatmul.bf16.gmra.mxu0 %v3990_v31  ;;  %v3575_v51 = vpop.f32.mrf.mxu2  ;;  %v4269_v26 = vmax.f32 %v4164_v30, 0.0 }
 0x4e0   : > { %v6892_v56 = vpop.eup %6891  ;;  %v4596_v43 = vmul.f32 1.442695, %v8625_v45  ;;  %v3576_v8 = vadd.f32 %v3575_v51, %v3407_v1 }
 0x4e1   : > { %4722 = vadd.xlane.f32.xlu2 %v6892_v56  ;;  %5008 = vst [vmem:[%s8574_s26 + $0x20] sm:$0xff] %v4944_v44  ;;  %4432 = vmax.xlane.f32.xlu1 %v8632_v35  ;;  %v3408_v40 = vpop.f32.mrf.mxu1  ;;  %v8660_v61 = vsel %vm4299_vm0, %v4269_v26, -1e+30 }
 0x4e2   : > { %v3744_v13 = vpop.f32.mrf.mxu3  ;;  %6895 = vpow2.f32 %v4596_v43  ;;  %v3409_v60 = vadd.f32 %v3408_v40, %v3240_v50 }
 0x4e3   : > { %v3745_v59 = vadd.f32 %v3744_v13, %v3576_v8  ;;  %v9229_v8 = vld [vmem:[#allocation33_spill] sm:$0xff] }
 0x4e4   : > { %v6894_v47 = vpop.eup %6893  ;;  %v4165_v33 = vpop.f32.mrf.mxu0 }
 0x4e5   : > { %v4823_v46 = vmul.f32 0.6931472, %v6894_v47  ;;  %v4697_v42 = vpop.xlane.xlu1 %4696  ;;  %v4407_v53 = vpop.xlane.xlu0 %4406 }
 0x4e6   : > { %6897 = vlog2.f32 %v4697_v42  ;;  %v8641_v12 = vsub.f32 %v8443_v39, %v4407_v53  ;;  %v4166_v42 = vadd.f32 %v8490_v15, %v4165_v33 }
 0x4e7   : > { %v4945_v58 = vsub.f32 %v8409_v29, %v4823_v46  ;;  %v3577_v4 = vpop.f32.mrf.mxu2 }
 0x4e8   : > { %v6896_v0 = vpop.eup %6895  ;;  %v4598_v16 = vmul.f32 1.442695, %v8641_v12  ;;  %v3578_v19 = vadd.f32 %v3577_v4, %v3409_v60  ;;  %v4270_v17 = vmax.f32 %v4166_v42, 0.0 }
 0x4e9   : > { %5009 = vst [vmem:[%s8574_s26 + $0x28] sm:$0xff] %v4945_v58  ;;  %4434 = vmax.xlane.f32.xlu2 %v8645_v55  ;;  %4724 = vadd.xlane.f32.xlu0 %v6896_v0  ;;  %v3411_v39 = vpop.f32.mrf.mxu1  ;;  %v9228_v58 = vld [vmem:[#allocation12_spill] sm:$0xff]  ;;  %v9230_v0 = vld [vmem:[#allocation11_spill] sm:$0xff] }
 0x4ea   : > { %v3746_v29 = vpop.f32.mrf.mxu3  ;;  %6899 = vpow2.f32 %v4598_v16  ;;  %v3245_v60 = vadd.f32 %v9229_v8, %v9228_v58  ;;  %v3412_v30 = vadd.f32 %v3411_v39, %v9230_v0 }
 0x4eb   : > { %v3747_v56 = vadd.f32 %v3746_v29, %v3578_v19 }
 0x4ec   : > { %v6898_v31 = vpop.eup %6897  ;;  %v4168_v43 = vpop.f32.mrf.mxu0 }
 0x4ed   : > { %v4825_v44 = vmul.f32 0.6931472, %v6898_v31  ;;  %v4699_v51 = vpop.xlane.xlu2 %4698  ;;  %v3991_v62 = vpack.c.bf16 %v3747_v56, %v3745_v59  ;;  %v4409_v40 = vpop.xlane.xlu1 %4408  ;;  %v4169_v26 = vadd.f32 %v8490_v15, %v4168_v43 }
 0x4ee   : > { %6901 = vlog2.f32 %v4699_v51  ;;  %v8653_v37 = vsub.f32 %v8462_v5, %v4409_v40  ;;  %v8675_v51 = vsel %vm4299_vm0, %v4270_v17, -1e+30 }
 0x4ef   : > { %v4946_v47 = vsub.f32 %v8421_v63, %v4825_v44  ;;  %4207 = vmatmul.bf16.gmra.mxu0 %v3991_v62  ;;  %v3580_v10 = vpop.f32.mrf.mxu2 }
 0x4f0   : > { %v6900_v46 = vpop.eup %6899  ;;  %v4600_v13 = vmul.f32 1.442695, %v8653_v37  ;;  %v3581_v29 = vadd.f32 %v3580_v10, %v3412_v30 }
 0x4f1   : > { %5010 = vst [vmem:[%s8574_s26 + $0x30] sm:$0xff] %v4946_v47  ;;  %4436 = vmax.xlane.f32.xlu0 %v8660_v61  ;;  %4726 = vadd.xlane.f32.xlu1 %v6900_v46  ;;  %v3413_v63 = vpop.f32.mrf.mxu1  ;;  %v4271_v46 = vmax.f32 %v4169_v26, 0.0 }
 0x4f2   : > { %v3749_v50 = vpop.f32.mrf.mxu3  ;;  %6903 = vpow2.f32 %v4600_v13  ;;  %v3414_v31 = vadd.f32 %v3413_v63, %v3245_v60 }
 0x4f3   : > { %v3750_v62 = vadd.f32 %v3749_v50, %v3581_v29  ;;  %v8686_v8 = vsel %vm4299_vm0, %v4271_v46, -1e+30  ;;  %v9232_v29 = vld [vmem:[#allocation34_spill] sm:$0xff] }
 0x4f4   : > { %v6902_v5 = vpop.eup %6901  ;;  %v4170_v53 = vpop.f32.mrf.mxu0 }
 0x4f5   : > { %v4827_v1 = vmul.f32 0.6931472, %v6902_v5  ;;  %v4411_v33 = vpop.xlane.xlu2 %4410  ;;  %v4701_v4 = vpop.xlane.xlu0 %4700 }
 0x4f6   : > { %v8667_v16 = vsub.f32 %v8472_v36, %v4411_v33  ;;  %6905 = vlog2.f32 %v4701_v4 }
 0x4f7   : > { %v4947_v19 = vsub.f32 %v8437_v7, %v4827_v1  ;;  %v3582_v44 = vpop.f32.mrf.mxu2  ;;  %v4171_v1 = vadd.f32 %v8490_v15, %v4170_v53 }
 0x4f8   : > { %v4602_v59 = vmul.f32 1.442695, %v8667_v16  ;;  %v6904_v56 = vpop.eup %6903  ;;  %v3583_v36 = vadd.f32 %v3582_v44, %v3414_v31 }
 0x4f9   : > { %5011 = vst [vmem:[%s8574_s26 + $0x38] sm:$0xff] %v4947_v19  ;;  %4728 = vadd.xlane.f32.xlu2 %v6904_v56  ;;  %4438 = vmax.xlane.f32.xlu1 %v8675_v51  ;;  %v3416_v7 = vpop.f32.mrf.mxu1  ;;  %v4272_v53 = vmax.f32 %v4171_v1, 0.0  ;;  %v9231_v19 = vld [vmem:[#allocation14_spill] sm:$0xff] }
 0x4fa   : > { %6907 = vpow2.f32 %v4602_v59  ;;  %v3751_v39 = vpop.f32.mrf.mxu3  ;;  %v3250_v31 = vadd.f32 %v9232_v29, %v9231_v19  ;;  %v9233_v59 = vld [vmem:[#allocation13_spill] sm:$0xff] }
 0x4fb   : > { %v3752_v40 = vadd.f32 %v3751_v39, %v3583_v36  ;;  %v3417_v56 = vadd.f32 %v3416_v7, %v9233_v59 }
 0x4fc   : > { %v6906_v47 = vpop.eup %6905  ;;  %v4173_v42 = vpop.f32.mrf.mxu0 }
 0x4fd   : > { %v4703_v43 = vpop.xlane.xlu1 %4702  ;;  %v4829_v13 = vmul.f32 0.6931472, %v6906_v47  ;;  %v3992_v10 = vpack.c.bf16 %v3752_v40, %v3750_v62  ;;  %v4413_v63 = vpop.xlane.xlu0 %4412  ;;  %v8699_v40 = vsel %vm4299_vm0, %v4272_v53, -1e+30  ;;  %v4174_v46 = vadd.f32 %v8490_v15, %v4173_v42 }
 0x4fe   : > { %6909 = vlog2.f32 %v4703_v43  ;;  %v8679_v5 = vsub.f32 %v8496_v23, %v4413_v63 }
 0x4ff   : > { %v4948_v33 = vsub.f32 %v8451_v28, %v4829_v13  ;;  %4212 = vmatmul.bf16.gmra.mxu0 %v3992_v10  ;;  %v3585_v58 = vpop.f32.mrf.mxu2  ;;  %v4273_v1 = vmax.f32 %v4174_v46, 0.0 }
 0x500   : > { %v6908_v17 = vpop.eup %6907  ;;  %v4604_v50 = vmul.f32 1.442695, %v8679_v5  ;;  %v3586_v39 = vadd.f32 %v3585_v58, %v3417_v56 }
 0x501   : > { %4730 = vadd.xlane.f32.xlu0 %v6908_v17  ;;  %5012 = vst [vmem:[%s8574_s26 + $0x40] sm:$0xff] %v4948_v33  ;;  %4440 = vmax.xlane.f32.xlu2 %v8686_v8  ;;  %v3418_v23 = vpop.f32.mrf.mxu1  ;;  %v8714_v29 = vsel %vm4299_vm0, %v4273_v1, -1e+30 }
 0x502   : > { %v3754_v60 = vpop.f32.mrf.mxu3  ;;  %6911 = vpow2.f32 %v4604_v50  ;;  %v3419_v62 = vadd.f32 %v3418_v23, %v3250_v31 }
 0x503   : > { %v3755_v63 = vadd.f32 %v3754_v60, %v3586_v39  ;;  %v9235_v39 = vld [vmem:[#allocation18_spill] sm:$0xff] }
 0x504   : > { %v6910_v0 = vpop.eup %6909  ;;  %v4175_v28 = vpop.f32.mrf.mxu0 }
 0x505   : > { %v4831_v30 = vmul.f32 0.6931472, %v6910_v0  ;;  %v4705_v4 = vpop.xlane.xlu2 %4704  ;;  %v4415_v26 = vpop.xlane.xlu1 %4414  ;;  %v4176_v19 = vadd.f32 %v8490_v15, %v4175_v28 }
 0x506   : > { %6913 = vlog2.f32 %v4705_v4  ;;  %v8695_v36 = vsub.f32 %v8506_v11, %v4415_v26 }
 0x507   : > { %v4949_v44 = vsub.f32 %v8466_v18, %v4831_v30  ;;  %v3587_v7 = vpop.f32.mrf.mxu2  ;;  %v4274_v59 = vmax.f32 %v4176_v19, 0.0 }
 0x508   : > { %v6912_v47 = vpop.eup %6911  ;;  %v4606_v43 = vmul.f32 1.442695, %v8695_v36  ;;  %v3588_v13 = vadd.f32 %v3587_v7, %v3419_v62  ;;  %v9236_v62 = vld [vmem:[#allocation16_spill] sm:$0xff] }
 0x509   : > { %5013 = vst [vmem:[%s8574_s26 + $0x48] sm:$0xff] %v4949_v44  ;;  %4442 = vmax.xlane.f32.xlu0 %v8699_v40  ;;  %4732 = vadd.xlane.f32.xlu1 %v6912_v47  ;;  %v3421_v11 = vpop.f32.mrf.mxu1  ;;  %v9234_v44 = vld [vmem:[#allocation35_spill] sm:$0xff] }
 0x50a   : > { %v3756_v18 = vpop.f32.mrf.mxu3  ;;  %6915 = vpow2.f32 %v4606_v43  ;;  %v3255_v28 = vadd.f32 %v9235_v39, %v9234_v44  ;;  %v3422_v47 = vadd.f32 %v3421_v11, %v9236_v62  ;;  %v8728_v11 = vsel %vm4299_vm0, %v4274_v59, -1e+30 }
 0x50b   : > { %v3757_v17 = vadd.f32 %v3756_v18, %v3588_v13 }
 0x50c   : > { %v6914_v10 = vpop.eup %6913  ;;  %v4178_v50 = vpop.f32.mrf.mxu0 }
 0x50d   : > { %v4833_v33 = vmul.f32 0.6931472, %v6914_v10  ;;  %v4417_v58 = vpop.xlane.xlu2 %4416  ;;  %v3993_v42 = vpack.c.bf16 %v3757_v17, %v3755_v63  ;;  %v4707_v0 = vpop.xlane.xlu0 %4706  ;;  %v4179_v18 = vadd.f32 %v8490_v15, %v4178_v50 }
 0x50e   : > { %v8706_v23 = vsub.f32 %v8525_v38, %v4417_v58  ;;  %6917 = vlog2.f32 %v4707_v0 }
 0x50f   : > { %v4950_v53 = vsub.f32 %v8480_v34, %v4833_v33  ;;  %4217 = vmatmul.bf16.gmra.mxu0 %v3993_v42  ;;  %v3590_v60 = vpop.f32.mrf.mxu2 }
 0x510   : > { %v4608_v30 = vmul.f32 1.442695, %v8706_v23  ;;  %v6916_v4 = vpop.eup %6915  ;;  %v3591_v63 = vadd.f32 %v3590_v60, %v3422_v47 }
 0x511   : > { %5014 = vst [vmem:[%s8574_s26 + $0x50] sm:$0xff] %v4950_v53  ;;  %4734 = vadd.xlane.f32.xlu2 %v6916_v4  ;;  %4444 = vmax.xlane.f32.xlu1 %v8714_v29  ;;  %v3423_v38 = vpop.f32.mrf.mxu1 }
 0x512   : > { %6919 = vpow2.f32 %v4608_v30  ;;  %v3759_v31 = vpop.f32.mrf.mxu3  ;;  %v3424_v17 = vadd.f32 %v3423_v38, %v3255_v28 }
 0x513   : > { %v3760_v0 = vadd.f32 %v3759_v31, %v3591_v63 }
 0x514   : > { %v6918_v34 = vpop.eup %6917  ;;  %v4180_v56 = vpop.f32.mrf.mxu0 }
 0x515   : > { %v4709_v26 = vpop.xlane.xlu1 %4708  ;;  %v4835_v46 = vmul.f32 0.6931472, %v6918_v34  ;;  %v4419_v43 = vpop.xlane.xlu0 %4418  ;;  %v4181_v31 = vadd.f32 %v8490_v15, %v4180_v56  ;;  %v9238_v56 = vld [vmem:[#allocation20_spill] sm:$0xff] }
 0x516   : > { %6921 = vlog2.f32 %v4709_v26  ;;  %v8721_v7 = vsub.f32 %v8535_v24, %v4419_v43 }
 0x517   : > { %v4951_v10 = vsub.f32 %v8500_v54, %v4835_v46  ;;  %v3592_v33 = vpop.f32.mrf.mxu2  ;;  %v4275_v54 = vmax.f32 %v4179_v18, 0.0  ;;  %v4276_v47 = vmax.f32 %v4181_v31, 0.0  ;;  %v9237_v18 = vld [vmem:[#allocation22_spill] sm:$0xff] }
 0x518   : > { %v6920_v13 = vpop.eup %6919  ;;  %v4610_v1 = vmul.f32 1.442695, %v8721_v7  ;;  %v3593_v58 = vadd.f32 %v3592_v33, %v3424_v17 }
 0x519   : > { %4736 = vadd.xlane.f32.xlu0 %v6920_v13  ;;  %5015 = vst [vmem:[%s8574_s26 + $0x58] sm:$0xff] %v4951_v10  ;;  %4446 = vmax.xlane.f32.xlu2 %v8728_v11  ;;  %v3426_v24 = vpop.f32.mrf.mxu1  ;;  %v8738_v26 = vsel %vm4299_vm0, %v4275_v54, -1e+30  ;;  %v3260_v10 = vadd.f32 %v8175_v3, %v9237_v18  ;;  %v8756_v3 = vsel %vm4299_vm0, %v4276_v47, -1e+30 }
 0x51a   : > { %v3761_v42 = vpop.f32.mrf.mxu3  ;;  %6923 = vpow2.f32 %v4610_v1  ;;  %v3427_v63 = vadd.f32 %v3426_v24, %v9238_v56 }
 0x51b   : > { %v3762_v53 = vadd.f32 %v3761_v42, %v3593_v58 }
 0x51c   : > { %v6922_v50 = vpop.eup %6921  ;;  %v4183_v4 = vpop.f32.mrf.mxu0 }
 0x51d   : > { %v4837_v30 = vmul.f32 0.6931472, %v6922_v50  ;;  %v4711_v19 = vpop.xlane.xlu2 %4710  ;;  %v3994_v60 = vpack.c.bf16 %v3762_v53, %v3760_v0  ;;  %v4421_v38 = vpop.xlane.xlu1 %4420  ;;  %v4184_v0 = vadd.f32 %v8490_v15, %v4183_v4 }
 0x51e   : > { %6925 = vlog2.f32 %v4711_v19  ;;  %v8734_v59 = vsub.f32 %v8548_v21, %v4421_v38 }
 0x51f   : > { %v4952_v34 = vsub.f32 %v8514_v9, %v4837_v30  ;;  %4222 = vmatmul.bf16.gmra.mxu0 %v3994_v60  ;;  %v3595_v28 = vpop.f32.mrf.mxu2  ;;  %v4277_v60 = vmax.f32 %v4184_v0, 0.0 }
 0x520   : > { %v6924_v44 = vpop.eup %6923  ;;  %v4612_v39 = vmul.f32 1.442695, %v8734_v59  ;;  %v3596_v58 = vadd.f32 %v3595_v28, %v3427_v63 }
 0x521   : > { %5016 = vst [vmem:[%s8574_s26 + $0x60] sm:$0xff] %v4952_v34  ;;  %4448 = vmax.xlane.f32.xlu0 %v8738_v26  ;;  %4738 = vadd.xlane.f32.xlu1 %v6924_v44  ;;  %v3428_v21 = vpop.f32.mrf.mxu1  ;;  %v8767_v47 = vsel %vm4299_vm0, %v4277_v60, -1e+30 }
 0x522   : > { %v3764_v62 = vpop.f32.mrf.mxu3  ;;  %6927 = vpow2.f32 %v4612_v39  ;;  %v3429_v42 = vadd.f32 %v3428_v21, %v3260_v10 }
 0x523   : > { %v3765_v24 = vadd.f32 %v3764_v62, %v3596_v58 }
 0x524   : > { %v6926_v9 = vpop.eup %6925  ;;  %v4185_v43 = vpop.f32.mrf.mxu0 }
 0x525   : > { %v4839_v46 = vmul.f32 0.6931472, %v6926_v9  ;;  %v4423_v13 = vpop.xlane.xlu2 %4422  ;;  %v4713_v1 = vpop.xlane.xlu0 %4712  ;;  %v4186_v9 = vadd.f32 %v8490_v15, %v4185_v43 }
 0x526   : > { %v8748_v17 = vsub.f32 %v8558_v57, %v4423_v13  ;;  %6929 = vlog2.f32 %v4713_v1 }
 0x527   : > { %v4953_v33 = vsub.f32 %v8529_v48, %v4839_v46  ;;  %v3597_v53 = vpop.f32.mrf.mxu2  ;;  %v4278_v46 = vmax.f32 %v4186_v9, 0.0 }
 0x528   : > { %v4614_v50 = vmul.f32 1.442695, %v8748_v17  ;;  %v6928_v54 = vpop.eup %6927  ;;  %v3598_v57 = vadd.f32 %v3597_v53, %v3429_v42 }
 0x529   : > { %5017 = vst [vmem:[%s8574_s26 + $0x68] sm:$0xff] %v4953_v33  ;;  %4740 = vadd.xlane.f32.xlu2 %v6928_v54  ;;  %4450 = vmax.xlane.f32.xlu1 %v8756_v3  ;;  %v8778_v63 = vsel %vm4299_vm0, %v4278_v46, -1e+30 }
 0x52a   : > { %6931 = vpow2.f32 %v4614_v50  ;;  %v3766_v48 = vpop.f32.mrf.mxu3 }
 0x52b   : > { %v3767_v30 = vadd.f32 %v3766_v48, %v3598_v57 }
 0x52c   : > { %v6930_v19 = vpop.eup %6929  ;;  %v4188_v38 = vpop.f32.mrf.mxu0 }
 0x52d   : > { %v4715_v34 = vpop.xlane.xlu1 %4714  ;;  %v4841_v4 = vmul.f32 0.6931472, %v6930_v19  ;;  %v3995_v44 = vpack.c.bf16 %v3767_v30, %v3765_v24  ;;  %v4425_v31 = vpop.xlane.xlu0 %4424  ;;  %v4189_v33 = vadd.f32 %v8490_v15, %v4188_v38 }
 0x52e   : > { %6933 = vlog2.f32 %v4715_v34  ;;  %v8760_v39 = vsub.f32 %v8567_v6, %v4425_v31 }
 0x52f   : > { %v4954_v21 = vsub.f32 %v8542_v25, %v4841_v4  ;;  %4227 = vmatmul.bf16.gmra.mxu0 %v3995_v44  ;;  %v4279_v42 = vmax.f32 %v4189_v33, 0.0 }
 0x530   : > { %v6932_v28 = vpop.eup %6931  ;;  %v4616_v62 = vmul.f32 1.442695, %v8760_v39 }
 0x531   : > { %4742 = vadd.xlane.f32.xlu0 %v6932_v28  ;;  %5018 = vst [vmem:[%s8574_s26 + $0x70] sm:$0xff] %v4954_v21  ;;  %4452 = vmax.xlane.f32.xlu2 %v8767_v47  ;;  %v8791_v15 = vsel %vm4299_vm0, %v4279_v42, -1e+30 }
 0x532   : > { %6935 = vpow2.f32 %v4616_v62 }
 0x534   : > { %v6934_v6 = vpop.eup %6933  ;;  %v4190_v18 = vpop.f32.mrf.mxu0 }
 0x535   : > { %v4843_v13 = vmul.f32 0.6931472, %v6934_v6  ;;  %v4427_v43 = vpop.xlane.xlu1 %4426 }
 0x536   : > { %v8772_v25 = vsub.f32 %v8584_v20, %v4427_v43 }
 0x537   : > { %v4955_v10 = vsub.f32 %v8552_v22, %v4843_v13  ;;  %v8786_v22 = vld [vmem:[%s9131_s3] ss:$0 sm:$0xff] }
 0x538   : > { %v4618_v56 = vmul.f32 1.442695, %v8772_v25  ;;  %v6936_v1 = vpop.eup %6935  ;;  %v4191_v54 = vadd.f32 %v8786_v22, %v4190_v18 }
 0x539   : > { %5019 = vst [vmem:[%s8574_s26 + $0x78] sm:$0xff] %v4955_v10  ;;  %4454 = vmax.xlane.f32.xlu0 %v8778_v63  ;;  %4744 = vadd.xlane.f32.xlu1 %v6936_v1 }
 0x53a   : > { %6937 = vpow2.f32 %v4618_v56  ;;  %v4280_v53 = vmax.f32 %v4191_v54, 0.0 }
 0x53b   : > { %v4717_v58 = vpop.xlane.xlu2 %4716 }
 0x53c   : > { %6939 = vlog2.f32 %v4717_v58  ;;  %v4193_v20 = vpop.f32.mrf.mxu0  ;;  %v8802_v34 = vsel %vm4299_vm0, %v4280_v53, -1e+30 }
 0x53d   : > { %v4194_v21 = vadd.f32 %v8786_v22, %v4193_v20 }
 0x53f   : > { %v4281_v46 = vmax.f32 %v4194_v21, 0.0 }
 0x540   : > { %v6938_v50 = vpop.eup %6937 }
 0x541   : > { %4746 = vadd.xlane.f32.xlu2 %v6938_v50  ;;  %4456 = vmax.xlane.f32.xlu1 %v8791_v15 }
 0x542   : > { %v6940_v0 = vpop.eup %6939 }
 0x543   : > { %v4845_v57 = vmul.f32 0.6931472, %v6940_v0  ;;  %v4429_v48 = vpop.xlane.xlu2 %4428 }
 0x544   : > { %v8795_v24 = vsub.f32 %v8603_v2, %v4429_v48  ;;  %v4719_v30 = vpop.xlane.xlu0 %4718  ;;  %v4195_v19 = vpop.f32.mrf.mxu0 }
 0x545   : > { %v4956_v60 = vsub.f32 %v8577_v49, %v4845_v57  ;;  %6941 = vlog2.f32 %v4719_v30  ;;  %v4196_v58 = vadd.f32 %v8786_v22, %v4195_v19 }
 0x546   : > { %v4620_v38 = vmul.f32 1.442695, %v8795_v24 }
 0x547   : > { %5020 = vst [vmem:[%s8574_s26 + $0x80] sm:$0xff] %v4956_v60  ;;  %v4282_v20 = vmax.f32 %v4196_v58, 0.0 }
 0x548   : > { %6943 = vpow2.f32 %v4620_v38 }
 0x549   : > { %4458 = vmax.xlane.f32.xlu2 %v8802_v34  ;;  %v8833_v60 = vsel %vm4299_vm0, %v4282_v20, -1e+30 }
 0x54b   : > { %v6942_v4 = vpop.eup %6941 }
 0x54c   : > { %v4847_v44 = vmul.f32 0.6931472, %v6942_v4  ;;  %v4721_v2 = vpop.xlane.xlu1 %4720  ;;  %v4431_v31 = vpop.xlane.xlu0 %4430 }
 0x54d   : > { %6945 = vlog2.f32 %v4721_v2  ;;  %v8806_v28 = vsub.f32 %v8621_v27, %v4431_v31  ;;  %v4198_v49 = vpop.f32.mrf.mxu0 }
 0x54e   : > { %v6944_v9 = vpop.eup %6943  ;;  %v4957_v62 = vsub.f32 %v8591_v41, %v4847_v44  ;;  %v8818_v41 = vsel %vm4299_vm0, %v4281_v46, -1e+30  ;;  %v4199_v19 = vadd.f32 %v8786_v22, %v4198_v49 }
 0x54f   : > { %v4622_v6 = vmul.f32 1.442695, %v8806_v28  ;;  %4748 = vadd.xlane.f32.xlu0 %v6944_v9 }
 0x550   : > { %5021 = vst [vmem:[%s8574_s26 + $0x88] sm:$0xff] %v4957_v62  ;;  %v4283_v38 = vmax.f32 %v4199_v19, 0.0 }
 0x551   : > { %6947 = vpow2.f32 %v4622_v6 }
 0x552   : > { %v8844_v6 = vsel %vm4299_vm0, %v4283_v38, -1e+30 }
 0x553   : > { %v6946_v13 = vpop.eup %6945 }
 0x554   : > { %v4723_v18 = vpop.xlane.xlu2 %4722  ;;  %v4849_v43 = vmul.f32 0.6931472, %v6946_v13  ;;  %v4433_v10 = vpop.xlane.xlu1 %4432 }
 0x555   : > { %6949 = vlog2.f32 %v4723_v18  ;;  %v8813_v27 = vsub.f32 %v8632_v35, %v4433_v10  ;;  %v4200_v56 = vpop.f32.mrf.mxu0 }
 0x556   : > { %v4958_v1 = vsub.f32 %v8599_v52, %v4849_v43  ;;  %v4201_v9 = vadd.f32 %v8786_v22, %v4200_v56 }
 0x557   : > { %v6948_v33 = vpop.eup %6947  ;;  %v4624_v42 = vmul.f32 1.442695, %v8813_v27  ;;  %4460 = vmax.xlane.f32.xlu0 %v8818_v41 }
 0x558   : > { %5022 = vst [vmem:[%s8574_s26 + $0x90] sm:$0xff] %v4958_v1  ;;  %4750 = vadd.xlane.f32.xlu1 %v6948_v33 }
 0x559   : > { %6951 = vpow2.f32 %v4624_v42 }
 0x55b   : > { %v6950_v35 = vpop.eup %6949 }
 0x55c   : > { %v4851_v50 = vmul.f32 0.6931472, %v6950_v35  ;;  %v4435_v54 = vpop.xlane.xlu2 %4434  ;;  %v4725_v0 = vpop.xlane.xlu0 %4724 }
 0x55d   : > { %v8825_v52 = vsub.f32 %v8645_v55, %v4435_v54  ;;  %6953 = vlog2.f32 %v4725_v0  ;;  %v4203_v57 = vpop.f32.mrf.mxu0 }
 0x55e   : > { %v4959_v53 = vsub.f32 %v8613_v32, %v4851_v50  ;;  %v4204_v58 = vadd.f32 %v8786_v22, %v4203_v57 }
 0x55f   : > { %v4626_v48 = vmul.f32 1.442695, %v8825_v52  ;;  %v6952_v30 = vpop.eup %6951 }
 0x560   : > { %5023 = vst [vmem:[%s8574_s26 + $0x98] sm:$0xff] %v4959_v53  ;;  %4752 = vadd.xlane.f32.xlu2 %v6952_v30  ;;  %4462 = vmax.xlane.f32.xlu1 %v8833_v60  ;;  %v4285_v35 = vmax.f32 %v4204_v58, 0.0 }
 0x561   : > { %6955 = vpow2.f32 %v4626_v48 }
 0x562   : > { %v8868_v19 = vsel %vm4299_vm0, %v4285_v35, -1e+30 }
 0x563   : > { %v6954_v55 = vpop.eup %6953 }
 0x564   : > { %v4853_v32 = vmul.f32 0.6931472, %v6954_v55  ;;  %v4727_v4 = vpop.xlane.xlu1 %4726  ;;  %v4437_v44 = vpop.xlane.xlu0 %4436 }
 0x565   : > { %6957 = vlog2.f32 %v4727_v4  ;;  %v8837_v2 = vsub.f32 %v8660_v61, %v4437_v44  ;;  %v4205_v31 = vpop.f32.mrf.mxu0  ;;  %v4284_v61 = vmax.f32 %v4201_v9, 0.0 }
 0x566   : > { %v4960_v21 = vsub.f32 %v8625_v45, %v4853_v32  ;;  %v4206_v48 = vadd.f32 %v8786_v22, %v4205_v31 }
 0x567   : > { %v6956_v49 = vpop.eup %6955  ;;  %v4628_v62 = vmul.f32 1.442695, %v8837_v2  ;;  %v8854_v1 = vsel %vm4299_vm0, %v4284_v61, -1e+30 }
 0x568   : > { %4754 = vadd.xlane.f32.xlu0 %v6956_v49  ;;  %5024 = vst [vmem:[%s8574_s26 + $0xa0] sm:$0xff] %v4960_v21  ;;  %4464 = vmax.xlane.f32.xlu2 %v8844_v6  ;;  %v4286_v55 = vmax.f32 %v4206_v48, 0.0 }
 0x569   : > { %6959 = vpow2.f32 %v4628_v62 }
 0x56a   : > { %v8881_v62 = vsel %vm4299_vm0, %v4286_v55, -1e+30 }
 0x56b   : > { %v6958_v46 = vpop.eup %6957 }
 0x56c   : > { %v4855_v13 = vmul.f32 0.6931472, %v6958_v46  ;;  %v4729_v18 = vpop.xlane.xlu2 %4728  ;;  %v4439_v43 = vpop.xlane.xlu1 %4438 }
 0x56d   : > { %6961 = vlog2.f32 %v4729_v18  ;;  %v8849_v45 = vsub.f32 %v8675_v51, %v4439_v43  ;;  %v4208_v10 = vpop.f32.mrf.mxu0 }
 0x56e   : > { %v4961_v56 = vsub.f32 %v8641_v12, %v4855_v13  ;;  %v4209_v21 = vadd.f32 %v8786_v22, %v4208_v10 }
 0x56f   : > { %v6960_v33 = vpop.eup %6959  ;;  %v4630_v42 = vmul.f32 1.442695, %v8849_v45 }
 0x570   : > { %4466 = vmax.xlane.f32.xlu0 %v8854_v1  ;;  %5025 = vst [vmem:[%s8574_s26 + $0xa8] sm:$0xff] %v4961_v56  ;;  %4756 = vadd.xlane.f32.xlu1 %v6960_v33  ;;  %v4287_v61 = vmax.f32 %v4209_v21, 0.0 }
 0x571   : > { %6963 = vpow2.f32 %v4630_v42 }
 0x572   : > { %v8892_v42 = vsel %vm4299_vm0, %v4287_v61, -1e+30 }
 0x573   : > { %v6962_v51 = vpop.eup %6961 }
 0x574   : > { %v4731_v20 = vpop.xlane.xlu0 %4730  ;;  %v4857_v50 = vmul.f32 0.6931472, %v6962_v51  ;;  %v4441_v12 = vpop.xlane.xlu2 %4440 }
 0x575   : > { %6965 = vlog2.f32 %v4731_v20  ;;  %v8861_v54 = vsub.f32 %v8686_v8, %v4441_v12  ;;  %v4210_v0 = vpop.f32.mrf.mxu0 }
 0x576   : > { %v4962_v53 = vsub.f32 %v8653_v37, %v4857_v50  ;;  %v4211_v56 = vadd.f32 %v8786_v22, %v4210_v0 }
 0x577   : > { %v6964_v57 = vpop.eup %6963  ;;  %v4632_v30 = vmul.f32 1.442695, %v8861_v54 }
 0x578   : > { %5026 = vst [vmem:[%s8574_s26 + $0xb0] sm:$0xff] %v4962_v53  ;;  %4758 = vadd.xlane.f32.xlu2 %v6964_v57  ;;  %4468 = vmax.xlane.f32.xlu1 %v8868_v19 }
 0x579   : > { %6967 = vpow2.f32 %v4632_v30 }
 0x57b   : > { %v6966_v8 = vpop.eup %6965 }
 0x57c   : > { %v4859_v38 = vmul.f32 0.6931472, %v6966_v8  ;;  %v4443_v32 = vpop.xlane.xlu0 %4442  ;;  %v4733_v37 = vpop.xlane.xlu1 %4732 }
 0x57d   : > { %v8873_v4 = vsub.f32 %v8699_v40, %v4443_v32  ;;  %6969 = vlog2.f32 %v4733_v37  ;;  %v4213_v31 = vpop.f32.mrf.mxu0 }
 0x57e   : > { %v4963_v44 = vsub.f32 %v8667_v16, %v4859_v38  ;;  %v4214_v48 = vadd.f32 %v8786_v22, %v4213_v31 }
 0x57f   : > { %v4634_v49 = vmul.f32 1.442695, %v8873_v4  ;;  %v6968_v9 = vpop.eup %6967 }
 0x580   : > { %5027 = vst [vmem:[%s8574_s26 + $0xb8] sm:$0xff] %v4963_v44  ;;  %4760 = vadd.xlane.f32.xlu0 %v6968_v9  ;;  %4470 = vmax.xlane.f32.xlu2 %v8881_v62  ;;  %v4289_v8 = vmax.f32 %v4214_v48, 0.0 }
 0x581   : > { %6971 = vpow2.f32 %v4634_v49 }
 0x583   : > { %v6970_v40 = vpop.eup %6969 }
 0x584   : > { %v4861_v16 = vmul.f32 0.6931472, %v6970_v40  ;;  %v4735_v46 = vpop.xlane.xlu2 %4734  ;;  %v4445_v13 = vpop.xlane.xlu1 %4444  ;;  %v8918_v40 = vsel %vm4299_vm0, %v4289_v8, -1e+30 }
 0x585   : > { %6973 = vlog2.f32 %v4735_v46  ;;  %v8885_v18 = vsub.f32 %v8714_v29, %v4445_v13  ;;  %v4215_v43 = vpop.f32.mrf.mxu0  ;;  %v4288_v29 = vmax.f32 %v4211_v56, 0.0 }
 0x586   : > { %v4964_v33 = vsub.f32 %v8679_v5, %v4861_v16  ;;  %v4216_v9 = vadd.f32 %v8786_v22, %v4215_v43 }
 0x587   : > { %v6972_v10 = vpop.eup %6971  ;;  %v4636_v58 = vmul.f32 1.442695, %v8885_v18  ;;  %v8902_v53 = vsel %vm4299_vm0, %v4288_v29, -1e+30 }
 0x588   : > { %4762 = vadd.xlane.f32.xlu1 %v6972_v10  ;;  %5028 = vst [vmem:[%s8574_s26 + $0xc0] sm:$0xff] %v4964_v33  ;;  %4472 = vmax.xlane.f32.xlu0 %v8892_v42 }
 0x589   : > { %6975 = vpow2.f32 %v4636_v58 }
 0x58b   : > { %v6974_v51 = vpop.eup %6973 }
 0x58c   : > { %v4737_v35 = vpop.xlane.xlu0 %4736  ;;  %v4863_v20 = vmul.f32 0.6931472, %v6974_v51  ;;  %v4447_v50 = vpop.xlane.xlu2 %4446 }
 0x58d   : > { %6977 = vlog2.f32 %v4737_v35  ;;  %v8897_v5 = vsub.f32 %v8728_v11, %v4447_v50  ;;  %v4218_v12 = vpop.f32.mrf.mxu0 }
 0x58e   : > { %v4965_v0 = vsub.f32 %v8695_v36, %v4863_v20  ;;  %v4219_v10 = vadd.f32 %v8786_v22, %v4218_v12 }
 0x58f   : > { %v6976_v57 = vpop.eup %6975  ;;  %v4638_v30 = vmul.f32 1.442695, %v8897_v5 }
 0x590   : > { %4474 = vmax.xlane.f32.xlu1 %v8902_v53  ;;  %5029 = vst [vmem:[%s8574_s26 + $0xc8] sm:$0xff] %v4965_v0  ;;  %4764 = vadd.xlane.f32.xlu2 %v6976_v57  ;;  %v4291_v51 = vmax.f32 %v4219_v10, 0.0 }
 0x591   : > { %6979 = vpow2.f32 %v4638_v30 }
 0x592   : > { %v8939_v30 = vsel %vm4299_vm0, %v4291_v51, -1e+30 }
 0x593   : > { %v6978_v11 = vpop.eup %6977 }
 0x594   : > { %v4865_v55 = vmul.f32 0.6931472, %v6978_v11  ;;  %v4449_v38 = vpop.xlane.xlu0 %4448  ;;  %v4739_v36 = vpop.xlane.xlu1 %4738 }
 0x595   : > { %v8909_v32 = vsub.f32 %v8738_v26, %v4449_v38  ;;  %6981 = vlog2.f32 %v4739_v36  ;;  %v4220_v44 = vpop.f32.mrf.mxu0  ;;  %v4290_v26 = vmax.f32 %v4216_v9, 0.0 }
 0x596   : > { %v4966_v37 = vsub.f32 %v8706_v23, %v4865_v55  ;;  %v4221_v21 = vadd.f32 %v8786_v22, %v4220_v44 }
 0x597   : > { %v4640_v31 = vmul.f32 1.442695, %v8909_v32  ;;  %v6980_v49 = vpop.eup %6979  ;;  %v8926_v58 = vsel %vm4299_vm0, %v4290_v26, -1e+30 }
 0x598   : > { %5030 = vst [vmem:[%s8574_s26 + $0xd0] sm:$0xff] %v4966_v37  ;;  %4766 = vadd.xlane.f32.xlu0 %v6980_v49  ;;  %4476 = vmax.xlane.f32.xlu2 %v8918_v40  ;;  %v4292_v61 = vmax.f32 %v4221_v21, 0.0 }
 0x599   : > { %6983 = vpow2.f32 %v4640_v31 }
 0x59a   : > { %v8930_v29 = vsel %vm4299_vm0, %v4292_v61, -1e+30 }
 0x59b   : > { %v6982_v23 = vpop.eup %6981 }
 0x59c   : > { %v4867_v16 = vmul.f32 0.6931472, %v6982_v23  ;;  %v4741_v46 = vpop.xlane.xlu2 %4740  ;;  %v4451_v12 = vpop.xlane.xlu1 %4450 }
 0x59d   : > { %6985 = vlog2.f32 %v4741_v46  ;;  %v4223_v13 = vpop.f32.mrf.mxu0 }
 0x59e   : > { %v4967_v56 = vsub.f32 %v8721_v7, %v4867_v16  ;;  %v4224_v33 = vadd.f32 %v8786_v22, %v4223_v13 }
 0x59f   : > { %v6984_v43 = vpop.eup %6983 }
 0x5a0   : > { %4768 = vadd.xlane.f32.xlu1 %v6984_v43  ;;  %5031 = vst [vmem:[%s8574_s26 + $0xd8] sm:$0xff] %v4967_v56  ;;  %4478 = vmax.xlane.f32.xlu0 %v8926_v58  ;;  %v4293_v7 = vmax.f32 %v4224_v33, 0.0 }
 0x5a1   : > { %4482 = vmax.xlane.f32.xlu2 %v8930_v29 }
 0x5a2   : > { %v8943_v11 = vsel %vm4299_vm0, %v4293_v7, -1e+30 }
 0x5a3   : > { %v6986_v35 = vpop.eup %6985 }
 0x5a4   : > { %v4743_v20 = vpop.xlane.xlu0 %4742  ;;  %v4869_v50 = vmul.f32 0.6931472, %v6986_v35  ;;  %v4453_v38 = vpop.xlane.xlu2 %4452 }
 0x5a5   : > { %6987 = vlog2.f32 %v4743_v20  ;;  %v4225_v0 = vpop.f32.mrf.mxu0  ;;  %v8969_v16 = vsub.f32 %v8767_v47, %v4453_v38 }
 0x5a6   : > { %v4968_v57 = vsub.f32 %v8734_v59, %v4869_v50  ;;  %v4226_v48 = vadd.f32 %v8786_v22, %v4225_v0  ;;  %v8949_v59 = vsub.f32 %v8756_v3, %v4451_v12 }
 0x5a7   : > { %v4644_v7 = vmul.f32 1.442695, %v8969_v16 }
 0x5a8   : > { %4480 = vmax.xlane.f32.xlu1 %v8939_v30  ;;  %5032 = vst [vmem:[%s8574_s26 + $0xe0] sm:$0xff] %v4968_v57  ;;  %4484 = vmax.xlane.f32.xlu0 %v8943_v11  ;;  %v4294_v55 = vmax.f32 %v4226_v48, 0.0  ;;  %v4642_v3 = vmul.f32 1.442695, %v8949_v59 }
 0x5aa   : > { %v8959_v26 = vsel %vm4299_vm0, %v4294_v55, -1e+30 }
 0x5ab   : > { %v6988_v8 = vpop.eup %6987 }
 0x5ac   : > { %v4871_v36 = vmul.f32 0.6931472, %v6988_v8  ;;  %v4455_v37 = vpop.xlane.xlu0 %4454  ;;  %v4745_v44 = vpop.xlane.xlu1 %4744 }
 0x5ad   : > { %v8952_v31 = vsub.f32 %v8778_v63, %v4455_v37  ;;  %6989 = vlog2.f32 %v4745_v44  ;;  %v4228_v9 = vpop.f32.mrf.mxu0 }
 0x5ae   : > { %v4969_v49 = vsub.f32 %v8748_v17, %v4871_v36  ;;  %v4229_v23 = vadd.f32 %v8786_v22, %v4228_v9 }
 0x5af   : > { %v4646_v21 = vmul.f32 1.442695, %v8952_v31 }
 0x5b0   : > { %5033 = vst [vmem:[%s8574_s26 + $0xe8] sm:$0xff] %v4969_v49  ;;  %4486 = vmax.xlane.f32.xlu1 %v8959_v26  ;;  %v4295_v63 = vmax.f32 %v4229_v23, 0.0 }
 0x5b1   : > { %6991 = vpow2.f32 %v4646_v21 }
 0x5b2   : > { %v8966_v17 = vsel %vm4299_vm0, %v4295_v63, -1e+30  ;;  %6993 = vpow2.f32 %v4642_v3 }
 0x5b3   : > { %v6990_v61 = vpop.eup %6989  ;;  %4488 = vmax.xlane.f32.xlu2 %v8966_v17 }
 0x5b4   : > { %v4747_v46 = vpop.xlane.xlu2 %4746  ;;  %v4873_v13 = vmul.f32 0.6931472, %v6990_v61  ;;  %v4457_v43 = vpop.xlane.xlu1 %4456 }
 0x5b5   : > { %6995 = vlog2.f32 %v4747_v46  ;;  %v8973_v10 = vsub.f32 %v8791_v15, %v4457_v43  ;;  %v4230_v56 = vpop.f32.mrf.mxu0 }
 0x5b6   : > { %v4970_v51 = vsub.f32 %v8760_v39, %v4873_v13  ;;  %v4231_v35 = vadd.f32 %v8786_v22, %v4230_v56  ;;  %6997 = vpow2.f32 %v4644_v7 }
 0x5b7   : > { %v6992_v33 = vpop.eup %6991  ;;  %v4648_v47 = vmul.f32 1.442695, %v8973_v10 }
 0x5b8   : > { %4774 = vadd.xlane.f32.xlu1 %v6992_v33  ;;  %5034 = vst [vmem:[%s8574_s26 + $0xf0] sm:$0xff] %v4970_v51  ;;  %v4296_v20 = vmax.f32 %v4231_v35, 0.0  ;;  %v6994_v50 = vpop.eup %6993 }
 0x5b9   : > { %6999 = vpow2.f32 %v4648_v47 }
 0x5ba   : > { %v8982_v15 = vsel %vm4299_vm0, %v4296_v20, -1e+30 }
 0x5bb   : > { %v6996_v12 = vpop.eup %6995  ;;  %4490 = vmax.xlane.f32.xlu0 %v8982_v15  ;;  %4770 = vadd.xlane.f32.xlu2 %v6994_v50 }
 0x5bc   : > { %v4875_v0 = vmul.f32 0.6931472, %v6996_v12  ;;  %v4459_v39 = vpop.xlane.xlu2 %4458  ;;  %v6998_v8 = vpop.eup %6997 }
 0x5bd   : > { %v8986_v22 = vsub.f32 %v8802_v34, %v4459_v39 }
 0x5be   : > { %v4971_v57 = vsub.f32 %v8772_v25, %v4875_v0 }
 0x5bf   : > { %v4650_v48 = vmul.f32 1.442695, %v8986_v22  ;;  %v7000_v55 = vpop.eup %6999 }
 0x5c0   : > { %5035 = vst [vmem:[%s8574_s26 + $0xf8] sm:$0xff] %v4971_v57 }
 0x5c2   : > { %v4749_v14 = vpop.xlane.xlu0 %4748 }
 0x5c3   : > { %4772 = vadd.xlane.f32.xlu0 %v6998_v8  ;;  %4776 = vadd.xlane.f32.xlu2 %v7000_v55  ;;  %7001 = vlog2.f32 %v4749_v14 }
 0x5c4   : > { %7003 = vpow2.f32 %v4650_v48 }
 0x5c9   : > { %v7002_v38 = vpop.eup %7001 }
 0x5ca   : > { %v7004_v36 = vpop.eup %7003  ;;  %v4877_v37 = vmul.f32 0.6931472, %v7002_v38  ;;  %v4461_v44 = vpop.xlane.xlu0 %4460 }
 0x5cb   : > { %4778 = vadd.xlane.f32.xlu0 %v7004_v36  ;;  %v4751_v34 = vpop.xlane.xlu1 %4750  ;;  %v8992_v49 = vsub.f32 %v8818_v41, %v4461_v44 }
 0x5cc   : > { %v4972_v25 = vsub.f32 %v8795_v24, %v4877_v37  ;;  %7005 = vlog2.f32 %v4751_v34 }
 0x5cd   : > { %v4652_v9 = vmul.f32 1.442695, %v8992_v49 }
 0x5ce   : > { %5036 = vst [vmem:[%s8574_s26 + $0x100] sm:$0xff] %v4972_v25 }
 0x5cf   : > { %7007 = vpow2.f32 %v4652_v9 }
 0x5d2   : > { %v7006_v21 = vpop.eup %7005 }
 0x5d3   : > { %v4879_v23 = vmul.f32 0.6931472, %v7006_v21  ;;  %v4753_v3 = vpop.xlane.xlu2 %4752  ;;  %v4463_v63 = vpop.xlane.xlu1 %4462 }
 0x5d4   : > { %7009 = vlog2.f32 %v4753_v3  ;;  %v8998_v61 = vsub.f32 %v8833_v60, %v4463_v63 }
 0x5d5   : > { %v7008_v46 = vpop.eup %7007  ;;  %v4973_v41 = vsub.f32 %v8806_v28, %v4879_v23 }
 0x5d6   : > { %v4654_v13 = vmul.f32 1.442695, %v8998_v61  ;;  %4780 = vadd.xlane.f32.xlu1 %v7008_v46 }
 0x5d7   : > { %5037 = vst [vmem:[%s8574_s26 + $0x108] sm:$0xff] %v4973_v41 }
 0x5d8   : > { %7011 = vpow2.f32 %v4654_v13 }
 0x5da   : > { %v7010_v24 = vpop.eup %7009 }
 0x5db   : > { %v4755_v43 = vpop.xlane.xlu0 %4754  ;;  %v4881_v56 = vmul.f32 0.6931472, %v7010_v24  ;;  %v4465_v33 = vpop.xlane.xlu2 %4464 }
 0x5dc   : > { %7013 = vlog2.f32 %v4755_v43  ;;  %v9004_v51 = vsub.f32 %v8844_v6, %v4465_v33 }
 0x5dd   : > { %v4974_v60 = vsub.f32 %v8813_v27, %v4881_v56 }
 0x5de   : > { %v7012_v35 = vpop.eup %7011  ;;  %v4656_v7 = vmul.f32 1.442695, %v9004_v51 }
 0x5df   : > { %5038 = vst [vmem:[%s8574_s26 + $0x110] sm:$0xff] %v4974_v60  ;;  %4782 = vadd.xlane.f32.xlu2 %v7012_v35 }
 0x5e0   : > { %7015 = vpow2.f32 %v4656_v7 }
 0x5e2   : > { %v7014_v28 = vpop.eup %7013 }
 0x5e3   : > { %v4883_v47 = vmul.f32 0.6931472, %v7014_v28  ;;  %v4467_v20 = vpop.xlane.xlu0 %4466  ;;  %v4757_v50 = vpop.xlane.xlu1 %4756 }
 0x5e4   : > { %v9010_v12 = vsub.f32 %v8854_v1, %v4467_v20  ;;  %7017 = vlog2.f32 %v4757_v50 }
 0x5e5   : > { %v4975_v0 = vsub.f32 %v8825_v52, %v4883_v47 }
 0x5e6   : > { %v4658_v6 = vmul.f32 1.442695, %v9010_v12  ;;  %v7016_v27 = vpop.eup %7015 }
 0x5e7   : > { %5039 = vst [vmem:[%s8574_s26 + $0x118] sm:$0xff] %v4975_v0  ;;  %4784 = vadd.xlane.f32.xlu0 %v7016_v27 }
 0x5e8   : > { %7019 = vpow2.f32 %v4658_v6 }
 0x5ea   : > { %v7018_v39 = vpop.eup %7017 }
 0x5eb   : > { %v4885_v57 = vmul.f32 0.6931472, %v7018_v39  ;;  %v4759_v48 = vpop.xlane.xlu2 %4758  ;;  %v4469_v8 = vpop.xlane.xlu1 %4468 }
 0x5ec   : > { %7021 = vlog2.f32 %v4759_v48  ;;  %v9016_v55 = vsub.f32 %v8868_v19, %v4469_v8 }
 0x5ed   : > { %v4976_v52 = vsub.f32 %v8837_v2, %v4885_v57 }
 0x5ee   : > { %v7020_v1 = vpop.eup %7019  ;;  %v4660_v14 = vmul.f32 1.442695, %v9016_v55 }
 0x5ef   : > { %4786 = vadd.xlane.f32.xlu1 %v7020_v1  ;;  %5040 = vst [vmem:[%s8574_s26 + $0x120] sm:$0xff] %v4976_v52 }
 0x5f0   : > { %7023 = vpow2.f32 %v4660_v14 }
 0x5f2   : > { %v7022_v38 = vpop.eup %7021 }
 0x5f3   : > { %v4887_v36 = vmul.f32 0.6931472, %v7022_v38  ;;  %v4471_v37 = vpop.xlane.xlu2 %4470  ;;  %v4761_v44 = vpop.xlane.xlu0 %4760 }
 0x5f4   : > { %v9022_v34 = vsub.f32 %v8881_v62, %v4471_v37  ;;  %7025 = vlog2.f32 %v4761_v44 }
 0x5f5   : > { %v4977_v19 = vsub.f32 %v8849_v45, %v4887_v36 }
 0x5f6   : > { %v7024_v25 = vpop.eup %7023  ;;  %v4662_v9 = vmul.f32 1.442695, %v9022_v34 }
 0x5f7   : > { %5041 = vst [vmem:[%s8574_s26 + $0x128] sm:$0xff] %v4977_v19  ;;  %4788 = vadd.xlane.f32.xlu2 %v7024_v25 }
 0x5f8   : > { %7027 = vpow2.f32 %v4662_v9 }
 0x5fa   : > { %v7026_v2 = vpop.eup %7025 }
 0x5fb   : > { %v4763_v21 = vpop.xlane.xlu1 %4762  ;;  %v4889_v23 = vmul.f32 0.6931472, %v7026_v2  ;;  %v4473_v3 = vpop.xlane.xlu0 %4472 }
 0x5fc   : > { %7029 = vlog2.f32 %v4763_v21  ;;  %v9028_v63 = vsub.f32 %v8892_v42, %v4473_v3 }
 0x5fd   : > { %v4978_v62 = vsub.f32 %v8861_v54, %v4889_v23 }
 0x5fe   : > { %v7028_v46 = vpop.eup %7027  ;;  %v4664_v45 = vmul.f32 1.442695, %v9028_v63 }
 0x5ff   : > { %5042 = vst [vmem:[%s8574_s26 + $0x130] sm:$0xff] %v4978_v62  ;;  %4790 = vadd.xlane.f32.xlu0 %v7028_v46 }
 0x600   : > { %7031 = vpow2.f32 %v4664_v45 }
 0x602   : > { %v7030_v41 = vpop.eup %7029 }
 0x603   : > { %v4891_v13 = vmul.f32 0.6931472, %v7030_v41  ;;  %v4475_v24 = vpop.xlane.xlu1 %4474  ;;  %v4765_v43 = vpop.xlane.xlu2 %4764 }
 0x604   : > { %v9034_v56 = vsub.f32 %v8902_v53, %v4475_v24  ;;  %7033 = vlog2.f32 %v4765_v43 }
 0x605   : > { %v4979_v33 = vsub.f32 %v8873_v4, %v4891_v13 }
 0x606   : > { %v4666_v42 = vmul.f32 1.442695, %v9034_v56  ;;  %v7032_v54 = vpop.eup %7031 }
 0x607   : > { %5043 = vst [vmem:[%s8574_s26 + $0x138] sm:$0xff] %v4979_v33  ;;  %4792 = vadd.xlane.f32.xlu1 %v7032_v54 }
 0x608   : > { %7035 = vpow2.f32 %v4666_v42 }
 0x60a   : > { %v7034_v60 = vpop.eup %7033 }
 0x60b   : > { %v4893_v35 = vmul.f32 0.6931472, %v7034_v60  ;;  %v4477_v7 = vpop.xlane.xlu2 %4476  ;;  %v4767_v28 = vpop.xlane.xlu0 %4766 }
 0x60c   : > { %v9040_v47 = vsub.f32 %v8918_v40, %v4477_v7  ;;  %7037 = vlog2.f32 %v4767_v28 }
 0x60d   : > { %v4980_v20 = vsub.f32 %v8885_v18, %v4893_v35 }
 0x60e   : > { %v7036_v53 = vpop.eup %7035  ;;  %v4668_v4 = vmul.f32 1.442695, %v9040_v47 }
 0x60f   : > { %4794 = vadd.xlane.f32.xlu2 %v7036_v53  ;;  %5044 = vst [vmem:[%s8574_s26 + $0x140] sm:$0xff] %v4980_v20 }
 0x610   : > { %7039 = vpow2.f32 %v4668_v4 }
 0x612   : > { %v7038_v50 = vpop.eup %7037 }
 0x613   : > { %v4769_v0 = vpop.xlane.xlu1 %4768  ;;  %v4895_v6 = vmul.f32 0.6931472, %v7038_v50  ;;  %v4479_v39 = vpop.xlane.xlu0 %4478 }
 0x614   : > { %v4483_v27 = vpop.xlane.xlu2 %4482  ;;  %7041 = vlog2.f32 %v4769_v0  ;;  %v9049_v40 = vsub.f32 %v8926_v58, %v4479_v39 }
 0x615   : > { %v9046_v57 = vsub.f32 %v8930_v29, %v4483_v27  ;;  %v4981_v18 = vsub.f32 %v8897_v5, %v4895_v6 }
 0x616   : > { %v7040_v48 = vpop.eup %7039  ;;  %v4670_v1 = vmul.f32 1.442695, %v9049_v40 }
 0x617   : > { %v4674_v8 = vmul.f32 1.442695, %v9046_v57  ;;  %5045 = vst [vmem:[%s8574_s26 + $0x148] sm:$0xff] %v4981_v18  ;;  %4796 = vadd.xlane.f32.xlu0 %v7040_v48 }
 0x619   : > { %7043 = vpow2.f32 %v4674_v8 }
 0x61a   : > { %v7042_v52 = vpop.eup %7041  ;;  %7045 = vpow2.f32 %v4670_v1 }
 0x61b   : > { %v4897_v14 = vmul.f32 0.6931472, %v7042_v52  ;;  %v4481_v38 = vpop.xlane.xlu1 %4480  ;;  %v4485_v58 = vpop.xlane.xlu0 %4484 }
 0x61c   : > { %v9056_v29 = vsub.f32 %v8939_v30, %v4481_v38  ;;  %v9060_v5 = vsub.f32 %v8943_v11, %v4485_v58 }
 0x61d   : > { %v4982_v36 = vsub.f32 %v8909_v32, %v4897_v14 }
 0x61e   : > { %v4672_v37 = vmul.f32 1.442695, %v9056_v29  ;;  %v4676_v19 = vmul.f32 1.442695, %v9060_v5 }
 0x61f   : > { %v7044_v44 = vpop.eup %7043  ;;  %5046 = vst [vmem:[%s8574_s26 + $0x150] sm:$0xff] %v4982_v36 }
 0x620   : > { %v7046_v25 = vpop.eup %7045  ;;  %7047 = vpow2.f32 %v4672_v37  ;;  %4802 = vadd.xlane.f32.xlu0 %v7044_v44 }
 0x621   : > { %7049 = vpow2.f32 %v4676_v19  ;;  %4798 = vadd.xlane.f32.xlu1 %v7046_v25 }
 0x623   : > { %v4487_v9 = vpop.xlane.xlu1 %4486 }
 0x624   : > { %v9066_v30 = vsub.f32 %v8959_v26, %v4487_v9 }
 0x626   : > { %v7048_v2 = vpop.eup %7047  ;;  %v4678_v32 = vmul.f32 1.442695, %v9066_v30  ;;  %v4489_v21 = vpop.xlane.xlu2 %4488 }
 0x627   : > { %v7050_v11 = vpop.eup %7049  ;;  %4800 = vadd.xlane.f32.xlu2 %v7048_v2  ;;  %v9070_v23 = vsub.f32 %v8966_v17, %v4489_v21 }
 0x628   : > { %7051 = vpow2.f32 %v4678_v32 }
 0x629   : > { %4804 = vadd.xlane.f32.xlu1 %v7050_v11  ;;  %v4680_v3 = vmul.f32 1.442695, %v9070_v23 }
 0x62b   : > { %v4775_v62 = vpop.xlane.xlu1 %4774  ;;  %7053 = vpow2.f32 %v4680_v3 }
 0x62c   : > { %7055 = vlog2.f32 %v4775_v62 }
 0x62e   : > { %v7052_v46 = vpop.eup %7051  ;;  %v4771_v45 = vpop.xlane.xlu2 %4770 }
 0x62f   : > { %v4491_v26 = vpop.xlane.xlu0 %4490  ;;  %4806 = vadd.xlane.f32.xlu2 %v7052_v46  ;;  %7057 = vlog2.f32 %v4771_v45 }
 0x630   : > { %v9074_v41 = vsub.f32 %v8982_v15, %v4491_v26 }
 0x631   : > { %v7054_v13 = vpop.eup %7053 }
 0x632   : > { %v4682_v17 = vmul.f32 1.442695, %v9074_v41  ;;  %v7056_v24 = vpop.eup %7055  ;;  %4808 = vadd.xlane.f32.xlu0 %v7054_v13 }
 0x633   : > { %v4903_v43 = vmul.f32 0.6931472, %v7056_v24 }
 0x634   : > { %7059 = vpow2.f32 %v4682_v17 }
 0x635   : > { %v7058_v33 = vpop.eup %7057  ;;  %v4985_v42 = vsub.f32 %v8952_v31, %v4903_v43 }
 0x636   : > { %v4899_v54 = vmul.f32 0.6931472, %v7058_v33  ;;  %v4777_v60 = vpop.xlane.xlu2 %4776 }
 0x637   : > { %v4773_v35 = vpop.xlane.xlu0 %4772  ;;  %5049 = vst [vmem:[%s8574_s26 + $0x168] sm:$0xff] %v4985_v42  ;;  %7061 = vlog2.f32 %v4777_v60 }
 0x638   : > { %v4983_v15 = vsub.f32 %v8949_v59, %v4899_v54  ;;  %7063 = vlog2.f32 %v4773_v35 }
 0x63a   : > { %v7060_v7 = vpop.eup %7059  ;;  %5047 = vst [vmem:[%s8574_s26 + $0x158] sm:$0xff] %v4983_v15 }
 0x63b   : > { %4810 = vadd.xlane.f32.xlu1 %v7060_v7 }
 0x63d   : > { %v7062_v28 = vpop.eup %7061 }
 0x63e   : > { %v7064_v53 = vpop.eup %7063  ;;  %v4905_v20 = vmul.f32 0.6931472, %v7062_v28 }
 0x63f   : > { %v4779_v4 = vpop.xlane.xlu0 %4778  ;;  %v4901_v50 = vmul.f32 0.6931472, %v7064_v53 }
 0x640   : > { %7065 = vlog2.f32 %v4779_v4  ;;  %v4986_v31 = vsub.f32 %v8973_v10, %v4905_v20 }
 0x641   : > { %v4984_v0 = vsub.f32 %v8969_v16, %v4901_v50 }
 0x642   : > { %5050 = vst [vmem:[%s8574_s26 + $0x170] sm:$0xff] %v4986_v31 }
 0x643   : > { %5048 = vst [vmem:[%s8574_s26 + $0x160] sm:$0xff] %v4984_v0 }
 0x646   : > { %v7066_v6 = vpop.eup %7065 }
 0x647   : > { %v4907_v59 = vmul.f32 0.6931472, %v7066_v6 }
 0x649   : > { %v4987_v27 = vsub.f32 %v8986_v22, %v4907_v59  ;;  %v4781_v39 = vpop.xlane.xlu1 %4780 }
 0x64a   : > { %7067 = vlog2.f32 %v4781_v39 }
 0x64b   : > { %5051 = vst [vmem:[%s8574_s26 + $0x178] sm:$0xff] %v4987_v27 }
 0x650   : > { %v7068_v18 = vpop.eup %7067 }
 0x651   : > { %v4909_v48 = vmul.f32 0.6931472, %v7068_v18 }
 0x652   : > { %v4783_v8 = vpop.xlane.xlu2 %4782 }
 0x653   : > { %v4988_v1 = vsub.f32 %v8992_v49, %v4909_v48  ;;  %7069 = vlog2.f32 %v4783_v8 }
 0x655   : > { %5052 = vst [vmem:[%s8574_s26 + $0x180] sm:$0xff] %v4988_v1 }
 0x659   : > { %v7070_v10 = vpop.eup %7069 }
 0x65a   : > { %v4911_v16 = vmul.f32 0.6931472, %v7070_v10  ;;  %v4785_v52 = vpop.xlane.xlu0 %4784 }
 0x65b   : > { %7071 = vlog2.f32 %v4785_v52 }
 0x65c   : > { %v4989_v14 = vsub.f32 %v8998_v61, %v4911_v16 }
 0x65e   : > { %5053 = vst [vmem:[%s8574_s26 + $0x188] sm:$0xff] %v4989_v14 }
 0x661   : > { %v7072_v22 = vpop.eup %7071 }
 0x662   : > { %v4787_v38 = vpop.xlane.xlu1 %4786  ;;  %v4913_v58 = vmul.f32 0.6931472, %v7072_v22 }
 0x663   : > { %7073 = vlog2.f32 %v4787_v38 }
 0x664   : > { %v4990_v36 = vsub.f32 %v9004_v51, %v4913_v58 }
 0x666   : > { %5054 = vst [vmem:[%s8574_s26 + $0x190] sm:$0xff] %v4990_v36 }
 0x669   : > { %v7074_v37 = vpop.eup %7073 }
 0x66a   : > { %v4915_v49 = vmul.f32 0.6931472, %v7074_v37  ;;  %v4789_v44 = vpop.xlane.xlu2 %4788 }
 0x66b   : > { %7075 = vlog2.f32 %v4789_v44 }
 0x66c   : > { %v4991_v19 = vsub.f32 %v9010_v12, %v4915_v49 }
 0x66e   : > { %5055 = vst [vmem:[%s8574_s26 + $0x198] sm:$0xff] %v4991_v19 }
 0x671   : > { %v7076_v25 = vpop.eup %7075 }
 0x672   : > { %v4917_v9 = vmul.f32 0.6931472, %v7076_v25  ;;  %v4791_v61 = vpop.xlane.xlu0 %4790 }
 0x673   : > { %7077 = vlog2.f32 %v4791_v61 }
 0x674   : > { %v4992_v2 = vsub.f32 %v9016_v55, %v4917_v9 }
 0x676   : > { %5056 = vst [vmem:[%s8574_s26 + $0x1a0] sm:$0xff] %v4992_v2 }
 0x679   : > { %v7078_v32 = vpop.eup %7077 }
 0x67a   : > { %v4919_v11 = vmul.f32 0.6931472, %v7078_v32  ;;  %v4793_v51 = vpop.xlane.xlu1 %4792 }
 0x67b   : > { %7079 = vlog2.f32 %v4793_v51 }
 0x67c   : > { %v4993_v21 = vsub.f32 %v9022_v34, %v4919_v11 }
 0x67e   : > { %5057 = vst [vmem:[%s8574_s26 + $0x1a8] sm:$0xff] %v4993_v21 }
 0x681   : > { %v7080_v3 = vpop.eup %7079 }
 0x682   : > { %v4795_v12 = vpop.xlane.xlu2 %4794  ;;  %v4921_v62 = vmul.f32 0.6931472, %v7080_v3 }
 0x683   : > { %7081 = vlog2.f32 %v4795_v12 }
 0x684   : > { %v4994_v46 = vsub.f32 %v9028_v63, %v4921_v62 }
 0x686   : > { %5058 = vst [vmem:[%s8574_s26 + $0x1b0] sm:$0xff] %v4994_v46 }
 0x689   : > { %v7082_v45 = vpop.eup %7081 }
 0x68a   : > { %v4923_v26 = vmul.f32 0.6931472, %v7082_v45  ;;  %v4797_v55 = vpop.xlane.xlu0 %4796 }
 0x68b   : > { %7083 = vlog2.f32 %v4797_v55 }
 0x68c   : > { %v4995_v13 = vsub.f32 %v9034_v56, %v4923_v26 }
 0x68e   : > { %5059 = vst [vmem:[%s8574_s26 + $0x1b8] sm:$0xff] %v4995_v13 }
 0x691   : > { %v7084_v17 = vpop.eup %7083 }
 0x692   : > { %v4925_v24 = vmul.f32 0.6931472, %v7084_v17 }
 0x693   : > { %v4803_v43 = vpop.xlane.xlu0 %4802 }
 0x694   : > { %v4799_v34 = vpop.xlane.xlu1 %4798  ;;  %7085 = vlog2.f32 %v4803_v43  ;;  %v4996_v33 = vsub.f32 %v9040_v47, %v4925_v24 }
 0x695   : > { %7087 = vlog2.f32 %v4799_v34 }
 0x696   : > { %5060 = vst [vmem:[%s8574_s26 + $0x1c0] sm:$0xff] %v4996_v33 }
 0x69a   : > { %v7086_v63 = vpop.eup %7085  ;;  %v4801_v42 = vpop.xlane.xlu2 %4800 }
 0x69b   : > { %v7088_v54 = vpop.eup %7087  ;;  %v4931_v60 = vmul.f32 0.6931472, %v7086_v63  ;;  %7089 = vlog2.f32 %v4801_v42 }
 0x69c   : > { %v4927_v56 = vmul.f32 0.6931472, %v7088_v54  ;;  %v4805_v35 = vpop.xlane.xlu1 %4804 }
 0x69d   : > { %v4999_v15 = vsub.f32 %v9046_v57, %v4931_v60  ;;  %7091 = vlog2.f32 %v4805_v35 }
 0x69e   : > { %v4997_v7 = vsub.f32 %v9049_v40, %v4927_v56 }
 0x69f   : > { %5063 = vst [vmem:[%s8574_s26 + $0x1d8] sm:$0xff] %v4999_v15 }
 0x6a0   : > { %5061 = vst [vmem:[%s8574_s26 + $0x1c8] sm:$0xff] %v4997_v7 }
 0x6a1   : > { %v7090_v28 = vpop.eup %7089 }
 0x6a2   : > { %v4929_v47 = vmul.f32 0.6931472, %v7090_v28  ;;  %v4807_v53 = vpop.xlane.xlu2 %4806 }
 0x6a3   : > { %v7092_v20 = vpop.eup %7091  ;;  %7093 = vlog2.f32 %v4807_v53 }
 0x6a4   : > { %v4998_v4 = vsub.f32 %v9056_v29, %v4929_v47  ;;  %v4933_v50 = vmul.f32 0.6931472, %v7092_v20 }
 0x6a5   : > { %v4809_v57 = vpop.xlane.xlu0 %4808 }
 0x6a6   : > { %5062 = vst [vmem:[%s8574_s26 + $0x1d0] sm:$0xff] %v4998_v4  ;;  %v5000_v31 = vsub.f32 %v9060_v5, %v4933_v50  ;;  %7095 = vlog2.f32 %v4809_v57 }
 0x6a8   : > { %5064 = vst [vmem:[%s8574_s26 + $0x1e0] sm:$0xff] %v5000_v31 }
 0x6a9   : > { %v7094_v40 = vpop.eup %7093 }
 0x6aa   : > { %v4935_v0 = vmul.f32 0.6931472, %v7094_v40 }
 0x6ac   : > { %v5001_v6 = vsub.f32 %v9066_v30, %v4935_v0  ;;  %v7096_v59 = vpop.eup %7095 }
 0x6ad   : > { %v4937_v27 = vmul.f32 0.6931472, %v7096_v59 }
 0x6ae   : > { %5065 = vst [vmem:[%s8574_s26 + $0x1e8] sm:$0xff] %v5001_v6  ;;  %v4811_v39 = vpop.xlane.xlu1 %4810 }
 0x6af   : > { %7097 = vlog2.f32 %v4811_v39  ;;  %v5002_v29 = vsub.f32 %v9070_v23, %v4937_v27 }
 0x6b1   : > { %5066 = vst [vmem:[%s8574_s26 + $0x1f0] sm:$0xff] %v5002_v29 }
 0x6b5   : > { %v7098_v18 = vpop.eup %7097 }
 0x6b6   : > { %v4939_v48 = vmul.f32 0.6931472, %v7098_v18 }
 0x6b8   : > { %v5003_v5 = vsub.f32 %v9074_v41, %v4939_v48 }
 0x6ba   : > { %5067 = vst [vmem:[%s8574_s26 + $0x1f8] sm:$0xff] %v5003_v5 }
 0x6bb PF: > { %s14_s17 = sadd.s32 1, %s7123_s17   ;;  %s9239_s15 = smov %s7119_s16 }
 0x6bc   : > { %p11_p5 = scmp.ge.s32.totalorder %s14_s17, 4   ;;  %s9240_s16 = smov %s9242_s18 }
 0x6be   :  { %13 = sbr.rel (!%p11_p5) target bundleno = 2 (0x2), region = 75 }

</bundles_post_ra>
